<compile_context>
chip_gen: v5e
topology: v5e:2x2
jax: 0.10.0
libtpu: 0.0.40
codegen_flags: <defaults>
</compile_context>

<pallas_src>
import functools

import jax
import jax.numpy as jnp
from jax import lax
from jax.experimental import pallas as pl
from jax.experimental.pallas import tpu as pltpu

H1 = 100       # lstm1 hidden size   (nn.LSTM(512, 100))
H2 = 20        # lstm2 hidden size   (nn.LSTM(100, 20))
D_MODEL = 512  # frozen-encoder feature dim fed into lstm1
HP = 128       # lane-padded hidden size used inside the kernel
G4 = 4 * HP    # padded gate width (i, f, g, o, each padded to 128 lanes)

# bf16 MXU operands only where the backend actually supports BF16xBF16=F32
# dots (TPU).  On CPU / interpret harnesses everything stays f32.
_ON_TPU = jax.default_backend() == "tpu"

# sigmoid(x) = 0.5 * (1 + tanh(x/2))  ->  pre-scale i/f/o columns by 0.5 so a
# single tanh over the whole gate slab yields all four nonlinearities.
_GATE_SCALE = (0.5, 0.5, 1.0, 0.5)   # PyTorch gate order: i, f, g, o


def _recurrent_kernel(pre1_ref, whh1_ref, w2_ref, b2_ref, wl_ref, bl_ref,
                      out_ref, h1_ref, c1_ref, h2_ref, c2_ref,
                      *, t_total, time_tile, unroll):
    """Stacked-LSTM recurrence over one (TT, BH, 4*HP) pre-gate time block.

    grid = (batch_splits, num_time_blocks); time axis is "arbitrary" and the
    LSTM state persists across time blocks in VMEM scratch.  The head
    (last step -> spectral-norm linear -> ReLU) runs on the last time block.
    """
    t_blk = pl.program_id(1)
    n_tblk = pl.num_programs(1)

    # New batch split -> reset recurrent state (must be zero: padding invariant).
    @pl.when(t_blk == 0)
    def _():
        h1_ref[...] = jnp.zeros_like(h1_ref)
        c1_ref[...] = jnp.zeros_like(c1_ref)
        h2_ref[...] = jnp.zeros_like(h2_ref)
        c2_ref[...] = jnp.zeros_like(c2_ref)

    # Number of non-padded timesteps in this block (last block may be partial).
    n_valid = jnp.minimum(time_tile, t_total - t_blk * time_tile)
    rdt = whh1_ref.dtype   # recurrent MXU operand dtype (bf16 on TPU, else f32)

    def gates_from(pre):
        # One tanh over the full (bh, 4*HP) slab; i/f/o columns were halved in
        # the weights/bias so this equals sigmoid on the unhalved activations.
        t = jnp.tanh(pre)
        i = 0.5 * (t[:, 0 * HP:1 * HP] + 1.0)
        f = 0.5 * (t[:, 1 * HP:2 * HP] + 1.0)
        g = t[:, 2 * HP:3 * HP]
        o = 0.5 * (t[:, 3 * HP:4 * HP] + 1.0)
        return i, f, g, o

    def body(ts, carry):
        h1, c1, h2, c2 = carry
        # ---- LSTM1: streamed pre-gates (b1 already folded in) + h @ W_hh1 ----
        g1 = (pre1_ref[ts].astype(jnp.float32)
              + jnp.dot(h1.astype(rdt), whh1_ref[...],
                        preferred_element_type=jnp.float32))
        i1, f1, gg1, o1 = gates_from(g1)
        c1n = f1 * c1 + i1 * gg1
        h1n = o1 * jnp.tanh(c1n)
        # ---- LSTM2: fused [h1_new, h2] @ [W_ih2; W_hh2] (single K=256 pass) ----
        hcat = jnp.concatenate([h1n, h2], axis=1).astype(rdt)
        g2 = (jnp.dot(hcat, w2_ref[...], preferred_element_type=jnp.float32)
              + b2_ref[...])
        i2, f2, gg2, o2 = gates_from(g2)
        c2n = f2 * c2 + i2 * gg2
        h2n = o2 * jnp.tanh(c2n)
        # Static trip count: run every step, discard padded ones via predicate.
        valid = ts < n_valid
        h1 = jnp.where(valid, h1n, h1)
        c1 = jnp.where(valid, c1n, c1)
        h2 = jnp.where(valid, h2n, h2)
        c2 = jnp.where(valid, c2n, c2)
        return h1, c1, h2, c2

    carry0 = (h1_ref[...], c1_ref[...], h2_ref[...], c2_ref[...])
    h1, c1, h2, c2 = lax.fori_loop(0, time_tile, body, carry0, unroll=unroll)
    h1_ref[...] = h1
    c1_ref[...] = c1
    h2_ref[...] = h2
    c2_ref[...] = c2

    @pl.when(t_blk == n_tblk - 1)
    def _():
        logit = (jnp.dot(h2, wl_ref[...], preferred_element_type=jnp.float32)
                 + bl_ref[...])
        out_ref[...] = jnp.maximum(logit, 0.0)


def _pad_lstm(wih, whh, b, din_pad):
    """Zero-pad (din,4H)/(H,4H)/(4H,) LSTM weights to 128-lane gate blocks,
    pre-scaling the i/f/o gate columns by 0.5 for the single-tanh gate trick."""
    din, four_h = wih.shape
    h = whh.shape[0]
    assert four_h == 4 * h
    wih_p = jnp.zeros((din_pad, G4), jnp.float32)
    whh_p = jnp.zeros((HP, G4), jnp.float32)
    b_p = jnp.zeros((1, G4), jnp.float32)
    for g in range(4):
        s = _GATE_SCALE[g]
        wih_p = wih_p.at[:din, g * HP:g * HP + h].set(
            s * wih[:, g * h:(g + 1) * h].astype(jnp.float32))
        whh_p = whh_p.at[:h, g * HP:g * HP + h].set(
            s * whh[:, g * h:(g + 1) * h].astype(jnp.float32))
        b_p = b_p.at[0, g * HP:g * HP + h].set(
            s * b[g * h:(g + 1) * h].astype(jnp.float32))
    return wih_p, whh_p, b_p


def gan_critic_forward(z_feats, f_feats, params, *, time_tile=64, batch_splits=1):
    """z_feats / f_feats: (B, T, 512) frozen-encoder features of real / fake audio.

    batch_splits should stay 1 on single-TensorCore chips (v5e/v6e); set it to
    the number of TensorCores (2 on v7x) to run the two halves in parallel via
    CORE_PARALLEL.
    """
    B, T, D = z_feats.shape
    assert D == D_MODEL
    nb = 2 * B

    gemm_dtype = jnp.bfloat16 if _ON_TPU else jnp.float32
    rec_dtype = jnp.bfloat16 if _ON_TPU else jnp.float32

    # Pad each batch split to a whole number of 16-row sublane tiles (bf16
    # pre-gate stream friendly); padded rows are sliced off after the call.
    b_unit = 16 * batch_splits
    b_pad = ((nb + b_unit - 1) // b_unit) * b_unit
    bh = b_pad // batch_splits
    tt = max(1, min(time_tile, T))
    n_tblk = pl.cdiv(T, tt)
    t_pad = n_tblk * tt

    wih1_p, whh1_p, b1_p = _pad_lstm(params['wih1'], params['whh1'], params['b1'], D_MODEL)
    wih2_p, whh2_p, b2_p = _pad_lstm(params['wih2'], params['whh2'], params['b2'], HP)
    w2_p = jnp.concatenate([wih2_p, whh2_p], axis=0)      # (2*HP, G4) fused LSTM2 weight

    # Hoisted LSTM1 input projection: one large GEMM over all (time, batch)
    # rows, done time-major so the output needs no transpose, with b1 folded
    # into the epilogue.  Streamed to the kernel in bf16.
    x = jnp.concatenate([z_feats, f_feats], axis=0).astype(gemm_dtype)   # (2B,T,D)
    x = jnp.pad(x, ((0, b_pad - nb), (0, t_pad - T), (0, 0)))
    x = jnp.swapaxes(x, 0, 1)                                            # (t_pad,b_pad,D)
    pre1 = (jnp.einsum('tbd,dg->tbg', x, wih1_p.astype(gemm_dtype),
                       preferred_element_type=jnp.float32)
            + b1_p).astype(jnp.bfloat16)                                 # (t_pad,b_pad,G4)

    # Spectral norm of a 1x20 weight == L2 norm of its single row (exact for a
    # rank-1 weight, matching a converged torch power iteration).
    w_lin = params['w_lin'].astype(jnp.float32)                          # (H2, 1)
    w_sn = w_lin / jnp.sqrt(jnp.sum(w_lin * w_lin))
    wl_p = jnp.zeros((HP, 1), jnp.float32).at[:H2, :].set(w_sn)
    bl = params['b_lin'].reshape(1, 1).astype(jnp.float32)

    const = lambda s, t: (0, 0)
    grid_spec = pltpu.PrefetchScalarGridSpec(
        num_scalar_prefetch=0,
        grid=(batch_splits, n_tblk),
        in_specs=[
            pl.BlockSpec((tt, bh, G4), lambda s, t: (t, s, 0)),  # pre-gates (bf16 stream)
            pl.BlockSpec((HP, G4), const),                       # whh1 (resident)
            pl.BlockSpec((2 * HP, G4), const),                   # [wih2; whh2]
            pl.BlockSpec((1, G4), const),                        # b2
            pl.BlockSpec((HP, 1), const),                        # spectral-norm linear W
            pl.BlockSpec((1, 1), const),                         # linear bias
        ],
        out_specs=pl.BlockSpec((bh, 1), lambda s, t: (s, 0)),
        scratch_shapes=[pltpu.VMEM((bh, HP), jnp.float32)] * 4,  # h1, c1, h2, c2
    )

    # Tight VMEM budget: double-buffered bf16 pre-gate tile + resident weights
    # + state scratch, x4 headroom (no 32 MiB floor).
    rec_bytes = jnp.dtype(rec_dtype).itemsize
    tile_bytes = tt * bh * G4 * 2
    weight_bytes = 3 * HP * G4 * rec_bytes + (G4 + HP + 1) * 4
    scratch_bytes = 4 * bh * HP * 4
    footprint = 2 * tile_bytes + 2 * weight_bytes + scratch_bytes
    vmem_limit = int(max(8 * 1024 * 1024, min(32 * 1024 * 1024, 4 * footprint)))

    if batch_splits > 1:
        dims = (pltpu.CORE_PARALLEL, pltpu.ARBITRARY)   # v7x: one split per TensorCore
    else:
        dims = ("arbitrary", "arbitrary")

    out = pl.pallas_call(
        functools.partial(_recurrent_kernel, t_total=T, time_tile=tt,
                          unroll=min(8, tt)),
        out_shape=jax.ShapeDtypeStruct((b_pad, 1), jnp.float32),
        grid_spec=grid_spec,
        compiler_params=pltpu.CompilerParams(
            dimension_semantics=dims,
            vmem_limit_bytes=vmem_limit,
        ),
    )(pre1, whh1_p.astype(rec_dtype), w2_p.astype(rec_dtype), b2_p, wl_p, bl)
    return out[:B], out[B:nb]


def _ref_forward(feats, params, *, gemm_dtype, rec_dtype, pre1_bf16):
    """Pure-JAX reference: LSTM->LSTM->last step->SN linear->ReLU (unpadded)."""
    B, T, _ = feats.shape
    f32 = jnp.float32
    wih1 = params['wih1'].astype(f32); whh1 = params['whh1'].astype(f32)
    b1 = params['b1'].astype(f32)
    wih2 = params['wih2'].astype(f32); whh2 = params['whh2'].astype(f32)
    b2 = params['b2'].astype(f32)

    pre1 = jnp.einsum('btd,dg->btg', feats.astype(gemm_dtype),
                      wih1.astype(gemm_dtype), preferred_element_type=f32) + b1
    if pre1_bf16:
        pre1 = pre1.astype(jnp.bfloat16).astype(f32)

    def rdot(a, w):
        return jnp.dot(a.astype(rec_dtype), w.astype(rec_dtype),
                       preferred_element_type=f32)

    def gates(g, hd):
        return (jax.nn.sigmoid(g[:, :hd]), jax.nn.sigmoid(g[:, hd:2 * hd]),
                jnp.tanh(g[:, 2 * hd:3 * hd]), jax.nn.sigmoid(g[:, 3 * hd:]))

    h1 = jnp.zeros((B, H1), f32); c1 = jnp.zeros((B, H1), f32)
    h2 = jnp.zeros((B, H2), f32); c2 = jnp.zeros((B, H2), f32)
    for t in range(T):
        g1 = pre1[:, t, :] + rdot(h1, whh1)
        i, f, g, o = gates(g1, H1)
        c1 = f * c1 + i * g
        h1 = o * jnp.tanh(c1)
        g2 = rdot(h1, wih2) + rdot(h2, whh2) + b2
        i, f, g, o = gates(g2, H2)
        c2 = f * c2 + i * g
        h2 = o * jnp.tanh(c2)
    w_sn = params['w_lin'].astype(f32)
    w_sn = w_sn / jnp.sqrt(jnp.sum(w_sn * w_sn))
    return jnp.maximum(h2 @ w_sn + params['b_lin'].astype(f32), 0.0)


if __name__ == "__main__":
    B, T = 2, 12
    key = jax.random.PRNGKey(0)
    ks = jax.random.split(key, 10)
    s1 = 1.0 / (H1 ** 0.5)
    s2 = 1.0 / (H2 ** 0.5)
    params = {
        'wih1': jax.random.uniform(ks[0], (D_MODEL, 4 * H1), minval=-s1, maxval=s1),
        'whh1': jax.random.uniform(ks[1], (H1, 4 * H1), minval=-s1, maxval=s1),
        'b1':   jax.random.uniform(ks[2], (4 * H1,), minval=-s1, maxval=s1),
        'wih2': jax.random.uniform(ks[3], (H1, 4 * H2), minval=-s2, maxval=s2),
        'whh2': jax.random.uniform(ks[4], (H2, 4 * H2), minval=-s2, maxval=s2),
        'b2':   jax.random.uniform(ks[5], (4 * H2,), minval=-s2, maxval=s2),
        'w_lin': jax.random.uniform(ks[6], (H2, 1), minval=-s2, maxval=s2),
        'b_lin': jax.random.uniform(ks[7], (1,), minval=-s2, maxval=s2),
    }
    # Synthetic 512-dim features stand in for the frozen embed/encoder output.
    z_feats = jax.random.normal(ks[8], (B, T, D_MODEL), jnp.float32)
    f_feats = jax.random.normal(ks[9], (B, T, D_MODEL), jnp.float32)

    # time_tile=8 with T=12 -> two time blocks (second one partial), exercising
    # the cross-block state carry and the predicated (static-trip-count) loop.
    z_out, f_out = gan_critic_forward(z_feats, f_feats, params,
                                      time_tile=8, batch_splits=1)
    jax.block_until_ready((z_out, f_out))

    # Tight check vs. a reference mirroring the kernel's dtype choices.
    gdt = jnp.bfloat16 if _ON_TPU else jnp.float32
    z_ref = _ref_forward(z_feats, params, gemm_dtype=gdt, rec_dtype=gdt, pre1_bf16=True)
    f_ref = _ref_forward(f_feats, params, gemm_dtype=gdt, rec_dtype=gdt, pre1_bf16=True)
    assert jnp.allclose(z_out, z_ref, atol=5e-3), (z_out, z_ref)
    assert jnp.allclose(f_out, f_ref, atol=5e-3), (f_out, f_ref)

    # Looser sanity check vs. full-f32 module semantics (bf16 rounding of the
    # hoisted projection / recurrent MXU operands is the only approximation).
    z_ref32 = _ref_forward(z_feats, params, gemm_dtype=jnp.float32,
                           rec_dtype=jnp.float32, pre1_bf16=False)
    f_ref32 = _ref_forward(f_feats, params, gemm_dtype=jnp.float32,
                           rec_dtype=jnp.float32, pre1_bf16=False)
    assert jnp.allclose(z_out, z_ref32, atol=2.5e-2), (z_out, z_ref32)
    assert jnp.allclose(f_out, f_ref32, atol=2.5e-2), (f_out, f_ref32)

    print("KERNEL_OK")
</pallas_src>

<mosaic_0001>
module attributes {stable_mosaic.version = 11 : i64} {
  func.func @_recurrent_kernel(%arg0: i32, %arg1: i32, %arg2: memref<8x16x512xbf16, #tpu.memory_space<vmem>>, %arg3: memref<128x512xf32, #tpu.memory_space<vmem>>, %arg4: memref<256x512xf32, #tpu.memory_space<vmem>>, %arg5: memref<1x512xf32, #tpu.memory_space<vmem>>, %arg6: memref<128x1xf32, #tpu.memory_space<vmem>>, %arg7: memref<1x1xf32, #tpu.memory_space<vmem>>, %arg8: memref<16x1xf32, #tpu.memory_space<vmem>>, %arg9: memref<16x128xf32, #tpu.memory_space<vmem>>, %arg10: memref<16x128xf32, #tpu.memory_space<vmem>>, %arg11: memref<16x128xf32, #tpu.memory_space<vmem>>, %arg12: memref<16x128xf32, #tpu.memory_space<vmem>>) attributes {dimension_semantics = [#tpu.dimension_semantics<arbitrary>, #tpu.dimension_semantics<arbitrary>], iteration_bounds = array<i64: 1, 2>, scalar_prefetch = 0 : i64, scratch_operands = 4 : i64, tpu.core_type = #tpu.core_type<tc>, window_params = [{transform_indices = @transform_0, window_bounds = array<i64: 8, 16, 512>}, {pipeline_mode = #tpu.pipeline_mode<synchronous>, transform_indices = @transform_1, window_bounds = array<i64: 128, 512>}, {pipeline_mode = #tpu.pipeline_mode<synchronous>, transform_indices = @transform_2, window_bounds = array<i64: 256, 512>}, {pipeline_mode = #tpu.pipeline_mode<synchronous>, transform_indices = @transform_3, window_bounds = array<i64: 1, 512>}, {pipeline_mode = #tpu.pipeline_mode<synchronous>, transform_indices = @transform_4, window_bounds = array<i64: 128, 1>}, {pipeline_mode = #tpu.pipeline_mode<synchronous>, transform_indices = @transform_5, window_bounds = array<i64: 1, 1>}, {transform_indices = @transform_6, window_bounds = array<i64: 16, 1>}]} {
    %c0_i32 = arith.constant 0 : i32
    %0 = arith.cmpi eq, %arg1, %c0_i32 : i32
    %1 = arith.extui %0 : i1 to i32
    %c0_i32_0 = arith.constant 0 : i32
    %2 = arith.cmpi ne, %1, %c0_i32_0 : i32
    scf.if %2 {
      %cst_196 = arith.constant 0.000000e+00 : f32
      %513 = vector.broadcast %cst_196 : f32 to vector<16x128xf32>
      %c0_197 = arith.constant 0 : index
      %c0_198 = arith.constant 0 : index
      %514 = vector.load %arg9[%c0_197, %c0_198] : memref<16x128xf32, #tpu.memory_space<vmem>>, vector<16x128xf32>
      tpu.vector_store %arg9[%c0_197, %c0_198], %513 {strides = array<i32>} : memref<16x128xf32, #tpu.memory_space<vmem>>, vector<16x128xf32>,
      %cst_199 = arith.constant 0.000000e+00 : f32
      %515 = vector.broadcast %cst_199 : f32 to vector<16x128xf32>
      %c0_200 = arith.constant 0 : index
      %c0_201 = arith.constant 0 : index
      %516 = vector.load %arg10[%c0_200, %c0_201] : memref<16x128xf32, #tpu.memory_space<vmem>>, vector<16x128xf32>
      tpu.vector_store %arg10[%c0_200, %c0_201], %515 {strides = array<i32>} : memref<16x128xf32, #tpu.memory_space<vmem>>, vector<16x128xf32>,
      %cst_202 = arith.constant 0.000000e+00 : f32
      %517 = vector.broadcast %cst_202 : f32 to vector<16x128xf32>
      %c0_203 = arith.constant 0 : index
      %c0_204 = arith.constant 0 : index
      %518 = vector.load %arg11[%c0_203, %c0_204] : memref<16x128xf32, #tpu.memory_space<vmem>>, vector<16x128xf32>
      tpu.vector_store %arg11[%c0_203, %c0_204], %517 {strides = array<i32>} : memref<16x128xf32, #tpu.memory_space<vmem>>, vector<16x128xf32>,
      %cst_205 = arith.constant 0.000000e+00 : f32
      %519 = vector.broadcast %cst_205 : f32 to vector<16x128xf32>
      %c0_206 = arith.constant 0 : index
      %c0_207 = arith.constant 0 : index
      %520 = vector.load %arg12[%c0_206, %c0_207] : memref<16x128xf32, #tpu.memory_space<vmem>>, vector<16x128xf32>
      tpu.vector_store %arg12[%c0_206, %c0_207], %519 {strides = array<i32>} : memref<16x128xf32, #tpu.memory_space<vmem>>, vector<16x128xf32>,
    } else {
    }
    %c8_i32 = arith.constant 8 : i32
    %3 = arith.muli %arg1, %c8_i32 : i32
    %c12_i32 = arith.constant 12 : i32
    %4 = arith.subi %c12_i32, %3 : i32
    %c8_i32_1 = arith.constant 8 : i32
    %5 = arith.minsi %c8_i32_1, %4 : i32
    %c0 = arith.constant 0 : index
    %c0_2 = arith.constant 0 : index
    %6 = vector.load %arg9[%c0, %c0_2] : memref<16x128xf32, #tpu.memory_space<vmem>>, vector<16x128xf32>
    %c0_3 = arith.constant 0 : index
    %c0_4 = arith.constant 0 : index
    %7 = vector.load %arg10[%c0_3, %c0_4] : memref<16x128xf32, #tpu.memory_space<vmem>>, vector<16x128xf32>
    %c0_5 = arith.constant 0 : index
    %c0_6 = arith.constant 0 : index
    %8 = vector.load %arg11[%c0_5, %c0_6] : memref<16x128xf32, #tpu.memory_space<vmem>>, vector<16x128xf32>
    %c0_7 = arith.constant 0 : index
    %c0_8 = arith.constant 0 : index
    %9 = vector.load %arg12[%c0_7, %c0_8] : memref<16x128xf32, #tpu.memory_space<vmem>>, vector<16x128xf32>
    %c0_i32_9 = arith.constant 0 : i32
    %10 = arith.index_cast %c0_i32_9 : i32 to index
    %c0_10 = arith.constant 0 : index
    %c0_11 = arith.constant 0 : index
    %11 = vector.load %arg2[%10, %c0_10, %c0_11] : memref<8x16x512xbf16, #tpu.memory_space<vmem>>, vector<1x16x512xbf16>
    %12 = vector.shape_cast %11 : vector<1x16x512xbf16> to vector<16x512xbf16>
    %13 = arith.extf %12 : vector<16x512xbf16> to vector<16x512xf32>
    %c0_12 = arith.constant 0 : index
    %c0_13 = arith.constant 0 : index
    %14 = vector.load %arg3[%c0_12, %c0_13] : memref<128x512xf32, #tpu.memory_space<vmem>>, vector<128x512xf32>
    %cst = arith.constant dense<0.000000e+00> : vector<16x512xf32>
    %15 = tpu.matmul %6, %14, %cst {dimension_numbers = #tpu.dot_dimension_numbers<[1], [0], [0], [1], [0, 0, 1, 1], [], []>} : vector<16x128xf32>, vector<128x512xf32>, vector<16x512xf32> -> vector<16x512xf32>
    %16 = arith.addf %13, %15 : vector<16x512xf32>
    %17 = math.tanh %16 : vector<16x512xf32>
    %18 = vector.extract_strided_slice %17 {offsets = [0, 0], sizes = [16, 128], strides = [1, 1]} : vector<16x512xf32> to vector<16x128xf32>
    %cst_14 = arith.constant 1.000000e+00 : f32
    %19 = vector.broadcast %cst_14 : f32 to vector<16x128xf32>
    %20 = arith.addf %18, %19 : vector<16x128xf32>
    %cst_15 = arith.constant 5.000000e-01 : f32
    %21 = vector.broadcast %cst_15 : f32 to vector<16x128xf32>
    %22 = arith.mulf %21, %20 : vector<16x128xf32>
    %23 = vector.extract_strided_slice %17 {offsets = [0, 128], sizes = [16, 128], strides = [1, 1]} : vector<16x512xf32> to vector<16x128xf32>
    %cst_16 = arith.constant 1.000000e+00 : f32
    %24 = vector.broadcast %cst_16 : f32 to vector<16x128xf32>
    %25 = arith.addf %23, %24 : vector<16x128xf32>
    %cst_17 = arith.constant 5.000000e-01 : f32
    %26 = vector.broadcast %cst_17 : f32 to vector<16x128xf32>
    %27 = arith.mulf %26, %25 : vector<16x128xf32>
    %28 = vector.extract_strided_slice %17 {offsets = [0, 256], sizes = [16, 128], strides = [1, 1]} : vector<16x512xf32> to vector<16x128xf32>
    %29 = vector.extract_strided_slice %17 {offsets = [0, 384], sizes = [16, 128], strides = [1, 1]} : vector<16x512xf32> to vector<16x128xf32>
    %cst_18 = arith.constant 1.000000e+00 : f32
    %30 = vector.broadcast %cst_18 : f32 to vector<16x128xf32>
    %31 = arith.addf %29, %30 : vector<16x128xf32>
    %cst_19 = arith.constant 5.000000e-01 : f32
    %32 = vector.broadcast %cst_19 : f32 to vector<16x128xf32>
    %33 = arith.mulf %32, %31 : vector<16x128xf32>
    %34 = arith.mulf %27, %7 : vector<16x128xf32>
    %35 = arith.mulf %22, %28 : vector<16x128xf32>
    %36 = arith.addf %34, %35 : vector<16x128xf32>
    %37 = math.tanh %36 : vector<16x128xf32>
    %38 = arith.mulf %33, %37 : vector<16x128xf32>
    %39 = tpu.concatenate %38, %8 in 1 : vector<16x128xf32>, vector<16x128xf32> -> vector<16x256xf32>
    %c0_20 = arith.constant 0 : index
    %c0_21 = arith.constant 0 : index
    %40 = vector.load %arg4[%c0_20, %c0_21] : memref<256x512xf32, #tpu.memory_space<vmem>>, vector<256x512xf32>
    %cst_22 = arith.constant dense<0.000000e+00> : vector<16x512xf32>
    %41 = tpu.matmul %39, %40, %cst_22 {dimension_numbers = #tpu.dot_dimension_numbers<[1], [0], [0], [1], [0, 0, 1, 1], [], []>} : vector<16x256xf32>, vector<256x512xf32>, vector<16x512xf32> -> vector<16x512xf32>
    %c0_23 = arith.constant 0 : index
    %c0_24 = arith.constant 0 : index
    %42 = vector.load %arg5[%c0_23, %c0_24] : memref<1x512xf32, #tpu.memory_space<vmem>>, vector<1x512xf32>
    %43 = vector.broadcast %42 : vector<1x512xf32> to vector<16x512xf32>
    %44 = arith.addf %41, %43 : vector<16x512xf32>
    %45 = math.tanh %44 : vector<16x512xf32>
    %46 = vector.extract_strided_slice %45 {offsets = [0, 0], sizes = [16, 128], strides = [1, 1]} : vector<16x512xf32> to vector<16x128xf32>
    %cst_25 = arith.constant 1.000000e+00 : f32
    %47 = vector.broadcast %cst_25 : f32 to vector<16x128xf32>
    %48 = arith.addf %46, %47 : vector<16x128xf32>
    %cst_26 = arith.constant 5.000000e-01 : f32
    %49 = vector.broadcast %cst_26 : f32 to vector<16x128xf32>
    %50 = arith.mulf %49, %48 : vector<16x128xf32>
    %51 = vector.extract_strided_slice %45 {offsets = [0, 128], sizes = [16, 128], strides = [1, 1]} : vector<16x512xf32> to vector<16x128xf32>
    %cst_27 = arith.constant 1.000000e+00 : f32
    %52 = vector.broadcast %cst_27 : f32 to vector<16x128xf32>
    %53 = arith.addf %51, %52 : vector<16x128xf32>
    %cst_28 = arith.constant 5.000000e-01 : f32
    %54 = vector.broadcast %cst_28 : f32 to vector<16x128xf32>
    %55 = arith.mulf %54, %53 : vector<16x128xf32>
    %56 = vector.extract_strided_slice %45 {offsets = [0, 256], sizes = [16, 128], strides = [1, 1]} : vector<16x512xf32> to vector<16x128xf32>
    %57 = vector.extract_strided_slice %45 {offsets = [0, 384], sizes = [16, 128], strides = [1, 1]} : vector<16x512xf32> to vector<16x128xf32>
    %cst_29 = arith.constant 1.000000e+00 : f32
    %58 = vector.broadcast %cst_29 : f32 to vector<16x128xf32>
    %59 = arith.addf %57, %58 : vector<16x128xf32>
    %cst_30 = arith.constant 5.000000e-01 : f32
    %60 = vector.broadcast %cst_30 : f32 to vector<16x128xf32>
    %61 = arith.mulf %60, %59 : vector<16x128xf32>
    %62 = arith.mulf %55, %9 : vector<16x128xf32>
    %63 = arith.mulf %50, %56 : vector<16x128xf32>
    %64 = arith.addf %62, %63 : vector<16x128xf32>
    %65 = math.tanh %64 : vector<16x128xf32>
    %66 = arith.mulf %61, %65 : vector<16x128xf32>
    %67 = arith.cmpi slt, %c0_i32_9, %5 : i32
    %68 = arith.select %67, %38, %6 : vector<16x128xf32>
    %69 = arith.select %67, %36, %7 : vector<16x128xf32>
    %70 = arith.select %67, %66, %8 : vector<16x128xf32>
    %71 = arith.select %67, %64, %9 : vector<16x128xf32>
    %c1_i32 = arith.constant 1 : i32
    %72 = arith.index_cast %c1_i32 : i32 to index
    %c0_31 = arith.constant 0 : index
    %c0_32 = arith.constant 0 : index
    %73 = vector.load %arg2[%72, %c0_31, %c0_32] : memref<8x16x512xbf16, #tpu.memory_space<vmem>>, vector<1x16x512xbf16>
    %74 = vector.shape_cast %73 : vector<1x16x512xbf16> to vector<16x512xbf16>
    %75 = arith.extf %74 : vector<16x512xbf16> to vector<16x512xf32>
    %c0_33 = arith.constant 0 : index
    %c0_34 = arith.constant 0 : index
    %76 = vector.load %arg3[%c0_33, %c0_34] : memref<128x512xf32, #tpu.memory_space<vmem>>, vector<128x512xf32>
    %cst_35 = arith.constant dense<0.000000e+00> : vector<16x512xf32>
    %77 = tpu.matmul %68, %76, %cst_35 {dimension_numbers = #tpu.dot_dimension_numbers<[1], [0], [0], [1], [0, 0, 1, 1], [], []>} : vector<16x128xf32>, vector<128x512xf32>, vector<16x512xf32> -> vector<16x512xf32>
    %78 = arith.addf %75, %77 : vector<16x512xf32>
    %79 = math.tanh %78 : vector<16x512xf32>
    %80 = vector.extract_strided_slice %79 {offsets = [0, 0], sizes = [16, 128], strides = [1, 1]} : vector<16x512xf32> to vector<16x128xf32>
    %cst_36 = arith.constant 1.000000e+00 : f32
    %81 = vector.broadcast %cst_36 : f32 to vector<16x128xf32>
    %82 = arith.addf %80, %81 : vector<16x128xf32>
    %cst_37 = arith.constant 5.000000e-01 : f32
    %83 = vector.broadcast %cst_37 : f32 to vector<16x128xf32>
    %84 = arith.mulf %83, %82 : vector<16x128xf32>
    %85 = vector.extract_strided_slice %79 {offsets = [0, 128], sizes = [16, 128], strides = [1, 1]} : vector<16x512xf32> to vector<16x128xf32>
    %cst_38 = arith.constant 1.000000e+00 : f32
    %86 = vector.broadcast %cst_38 : f32 to vector<16x128xf32>
    %87 = arith.addf %85, %86 : vector<16x128xf32>
    %cst_39 = arith.constant 5.000000e-01 : f32
    %88 = vector.broadcast %cst_39 : f32 to vector<16x128xf32>
    %89 = arith.mulf %88, %87 : vector<16x128xf32>
    %90 = vector.extract_strided_slice %79 {offsets = [0, 256], sizes = [16, 128], strides = [1, 1]} : vector<16x512xf32> to vector<16x128xf32>
    %91 = vector.extract_strided_slice %79 {offsets = [0, 384], sizes = [16, 128], strides = [1, 1]} : vector<16x512xf32> to vector<16x128xf32>
    %cst_40 = arith.constant 1.000000e+00 : f32
    %92 = vector.broadcast %cst_40 : f32 to vector<16x128xf32>
    %93 = arith.addf %91, %92 : vector<16x128xf32>
    %cst_41 = arith.constant 5.000000e-01 : f32
    %94 = vector.broadcast %cst_41 : f32 to vector<16x128xf32>
    %95 = arith.mulf %94, %93 : vector<16x128xf32>
    %96 = arith.mulf %89, %69 : vector<16x128xf32>
    %97 = arith.mulf %84, %90 : vector<16x128xf32>
    %98 = arith.addf %96, %97 : vector<16x128xf32>
    %99 = math.tanh %98 : vector<16x128xf32>
    %100 = arith.mulf %95, %99 : vector<16x128xf32>
    %101 = tpu.concatenate %100, %70 in 1 : vector<16x128xf32>, vector<16x128xf32> -> vector<16x256xf32>
    %c0_42 = arith.constant 0 : index
    %c0_43 = arith.constant 0 : index
    %102 = vector.load %arg4[%c0_42, %c0_43] : memref<256x512xf32, #tpu.memory_space<vmem>>, vector<256x512xf32>
    %cst_44 = arith.constant dense<0.000000e+00> : vector<16x512xf32>
    %103 = tpu.matmul %101, %102, %cst_44 {dimension_numbers = #tpu.dot_dimension_numbers<[1], [0], [0], [1], [0, 0, 1, 1], [], []>} : vector<16x256xf32>, vector<256x512xf32>, vector<16x512xf32> -> vector<16x512xf32>
    %c0_45 = arith.constant 0 : index
    %c0_46 = arith.constant 0 : index
    %104 = vector.load %arg5[%c0_45, %c0_46] : memref<1x512xf32, #tpu.memory_space<vmem>>, vector<1x512xf32>
    %105 = vector.broadcast %104 : vector<1x512xf32> to vector<16x512xf32>
    %106 = arith.addf %103, %105 : vector<16x512xf32>
    %107 = math.tanh %106 : vector<16x512xf32>
    %108 = vector.extract_strided_slice %107 {offsets = [0, 0], sizes = [16, 128], strides = [1, 1]} : vector<16x512xf32> to vector<16x128xf32>
    %cst_47 = arith.constant 1.000000e+00 : f32
    %109 = vector.broadcast %cst_47 : f32 to vector<16x128xf32>
    %110 = arith.addf %108, %109 : vector<16x128xf32>
    %cst_48 = arith.constant 5.000000e-01 : f32
    %111 = vector.broadcast %cst_48 : f32 to vector<16x128xf32>
    %112 = arith.mulf %111, %110 : vector<16x128xf32>
    %113 = vector.extract_strided_slice %107 {offsets = [0, 128], sizes = [16, 128], strides = [1, 1]} : vector<16x512xf32> to vector<16x128xf32>
    %cst_49 = arith.constant 1.000000e+00 : f32
    %114 = vector.broadcast %cst_49 : f32 to vector<16x128xf32>
    %115 = arith.addf %113, %114 : vector<16x128xf32>
    %cst_50 = arith.constant 5.000000e-01 : f32
    %116 = vector.broadcast %cst_50 : f32 to vector<16x128xf32>
    %117 = arith.mulf %116, %115 : vector<16x128xf32>
    %118 = vector.extract_strided_slice %107 {offsets = [0, 256], sizes = [16, 128], strides = [1, 1]} : vector<16x512xf32> to vector<16x128xf32>
    %119 = vector.extract_strided_slice %107 {offsets = [0, 384], sizes = [16, 128], strides = [1, 1]} : vector<16x512xf32> to vector<16x128xf32>
    %cst_51 = arith.constant 1.000000e+00 : f32
    %120 = vector.broadcast %cst_51 : f32 to vector<16x128xf32>
    %121 = arith.addf %119, %120 : vector<16x128xf32>
    %cst_52 = arith.constant 5.000000e-01 : f32
    %122 = vector.broadcast %cst_52 : f32 to vector<16x128xf32>
    %123 = arith.mulf %122, %121 : vector<16x128xf32>
    %124 = arith.mulf %117, %71 : vector<16x128xf32>
    %125 = arith.mulf %112, %118 : vector<16x128xf32>
    %126 = arith.addf %124, %125 : vector<16x128xf32>
    %127 = math.tanh %126 : vector<16x128xf32>
    %128 = arith.mulf %123, %127 : vector<16x128xf32>
    %129 = arith.cmpi slt, %c1_i32, %5 : i32
    %130 = arith.select %129, %100, %68 : vector<16x128xf32>
    %131 = arith.select %129, %98, %69 : vector<16x128xf32>
    %132 = arith.select %129, %128, %70 : vector<16x128xf32>
    %133 = arith.select %129, %126, %71 : vector<16x128xf32>
    %c2_i32 = arith.constant 2 : i32
    %134 = arith.index_cast %c2_i32 : i32 to index
    %c0_53 = arith.constant 0 : index
    %c0_54 = arith.constant 0 : index
    %135 = vector.load %arg2[%134, %c0_53, %c0_54] : memref<8x16x512xbf16, #tpu.memory_space<vmem>>, vector<1x16x512xbf16>
    %136 = vector.shape_cast %135 : vector<1x16x512xbf16> to vector<16x512xbf16>
    %137 = arith.extf %136 : vector<16x512xbf16> to vector<16x512xf32>
    %c0_55 = arith.constant 0 : index
    %c0_56 = arith.constant 0 : index
    %138 = vector.load %arg3[%c0_55, %c0_56] : memref<128x512xf32, #tpu.memory_space<vmem>>, vector<128x512xf32>
    %cst_57 = arith.constant dense<0.000000e+00> : vector<16x512xf32>
    %139 = tpu.matmul %130, %138, %cst_57 {dimension_numbers = #tpu.dot_dimension_numbers<[1], [0], [0], [1], [0, 0, 1, 1], [], []>} : vector<16x128xf32>, vector<128x512xf32>, vector<16x512xf32> -> vector<16x512xf32>
    %140 = arith.addf %137, %139 : vector<16x512xf32>
    %141 = math.tanh %140 : vector<16x512xf32>
    %142 = vector.extract_strided_slice %141 {offsets = [0, 0], sizes = [16, 128], strides = [1, 1]} : vector<16x512xf32> to vector<16x128xf32>
    %cst_58 = arith.constant 1.000000e+00 : f32
    %143 = vector.broadcast %cst_58 : f32 to vector<16x128xf32>
    %144 = arith.addf %142, %143 : vector<16x128xf32>
    %cst_59 = arith.constant 5.000000e-01 : f32
    %145 = vector.broadcast %cst_59 : f32 to vector<16x128xf32>
    %146 = arith.mulf %145, %144 : vector<16x128xf32>
    %147 = vector.extract_strided_slice %141 {offsets = [0, 128], sizes = [16, 128], strides = [1, 1]} : vector<16x512xf32> to vector<16x128xf32>
    %cst_60 = arith.constant 1.000000e+00 : f32
    %148 = vector.broadcast %cst_60 : f32 to vector<16x128xf32>
    %149 = arith.addf %147, %148 : vector<16x128xf32>
    %cst_61 = arith.constant 5.000000e-01 : f32
    %150 = vector.broadcast %cst_61 : f32 to vector<16x128xf32>
    %151 = arith.mulf %150, %149 : vector<16x128xf32>
    %152 = vector.extract_strided_slice %141 {offsets = [0, 256], sizes = [16, 128], strides = [1, 1]} : vector<16x512xf32> to vector<16x128xf32>
    %153 = vector.extract_strided_slice %141 {offsets = [0, 384], sizes = [16, 128], strides = [1, 1]} : vector<16x512xf32> to vector<16x128xf32>
    %cst_62 = arith.constant 1.000000e+00 : f32
    %154 = vector.broadcast %cst_62 : f32 to vector<16x128xf32>
    %155 = arith.addf %153, %154 : vector<16x128xf32>
    %cst_63 = arith.constant 5.000000e-01 : f32
    %156 = vector.broadcast %cst_63 : f32 to vector<16x128xf32>
    %157 = arith.mulf %156, %155 : vector<16x128xf32>
    %158 = arith.mulf %151, %131 : vector<16x128xf32>
    %159 = arith.mulf %146, %152 : vector<16x128xf32>
    %160 = arith.addf %158, %159 : vector<16x128xf32>
    %161 = math.tanh %160 : vector<16x128xf32>
    %162 = arith.mulf %157, %161 : vector<16x128xf32>
    %163 = tpu.concatenate %162, %132 in 1 : vector<16x128xf32>, vector<16x128xf32> -> vector<16x256xf32>
    %c0_64 = arith.constant 0 : index
    %c0_65 = arith.constant 0 : index
    %164 = vector.load %arg4[%c0_64, %c0_65] : memref<256x512xf32, #tpu.memory_space<vmem>>, vector<256x512xf32>
    %cst_66 = arith.constant dense<0.000000e+00> : vector<16x512xf32>
    %165 = tpu.matmul %163, %164, %cst_66 {dimension_numbers = #tpu.dot_dimension_numbers<[1], [0], [0], [1], [0, 0, 1, 1], [], []>} : vector<16x256xf32>, vector<256x512xf32>, vector<16x512xf32> -> vector<16x512xf32>
    %c0_67 = arith.constant 0 : index
    %c0_68 = arith.constant 0 : index
    %166 = vector.load %arg5[%c0_67, %c0_68] : memref<1x512xf32, #tpu.memory_space<vmem>>, vector<1x512xf32>
    %167 = vector.broadcast %166 : vector<1x512xf32> to vector<16x512xf32>
    %168 = arith.addf %165, %167 : vector<16x512xf32>
    %169 = math.tanh %168 : vector<16x512xf32>
    %170 = vector.extract_strided_slice %169 {offsets = [0, 0], sizes = [16, 128], strides = [1, 1]} : vector<16x512xf32> to vector<16x128xf32>
    %cst_69 = arith.constant 1.000000e+00 : f32
    %171 = vector.broadcast %cst_69 : f32 to vector<16x128xf32>
    %172 = arith.addf %170, %171 : vector<16x128xf32>
    %cst_70 = arith.constant 5.000000e-01 : f32
    %173 = vector.broadcast %cst_70 : f32 to vector<16x128xf32>
    %174 = arith.mulf %173, %172 : vector<16x128xf32>
    %175 = vector.extract_strided_slice %169 {offsets = [0, 128], sizes = [16, 128], strides = [1, 1]} : vector<16x512xf32> to vector<16x128xf32>
    %cst_71 = arith.constant 1.000000e+00 : f32
    %176 = vector.broadcast %cst_71 : f32 to vector<16x128xf32>
    %177 = arith.addf %175, %176 : vector<16x128xf32>
    %cst_72 = arith.constant 5.000000e-01 : f32
    %178 = vector.broadcast %cst_72 : f32 to vector<16x128xf32>
    %179 = arith.mulf %178, %177 : vector<16x128xf32>
    %180 = vector.extract_strided_slice %169 {offsets = [0, 256], sizes = [16, 128], strides = [1, 1]} : vector<16x512xf32> to vector<16x128xf32>
    %181 = vector.extract_strided_slice %169 {offsets = [0, 384], sizes = [16, 128], strides = [1, 1]} : vector<16x512xf32> to vector<16x128xf32>
    %cst_73 = arith.constant 1.000000e+00 : f32
    %182 = vector.broadcast %cst_73 : f32 to vector<16x128xf32>
    %183 = arith.addf %181, %182 : vector<16x128xf32>
    %cst_74 = arith.constant 5.000000e-01 : f32
    %184 = vector.broadcast %cst_74 : f32 to vector<16x128xf32>
    %185 = arith.mulf %184, %183 : vector<16x128xf32>
    %186 = arith.mulf %179, %133 : vector<16x128xf32>
    %187 = arith.mulf %174, %180 : vector<16x128xf32>
    %188 = arith.addf %186, %187 : vector<16x128xf32>
    %189 = math.tanh %188 : vector<16x128xf32>
    %190 = arith.mulf %185, %189 : vector<16x128xf32>
    %191 = arith.cmpi slt, %c2_i32, %5 : i32
    %192 = arith.select %191, %162, %130 : vector<16x128xf32>
    %193 = arith.select %191, %160, %131 : vector<16x128xf32>
    %194 = arith.select %191, %190, %132 : vector<16x128xf32>
    %195 = arith.select %191, %188, %133 : vector<16x128xf32>
    %c3_i32 = arith.constant 3 : i32
    %196 = arith.index_cast %c3_i32 : i32 to index
    %c0_75 = arith.constant 0 : index
    %c0_76 = arith.constant 0 : index
    %197 = vector.load %arg2[%196, %c0_75, %c0_76] : memref<8x16x512xbf16, #tpu.memory_space<vmem>>, vector<1x16x512xbf16>
    %198 = vector.shape_cast %197 : vector<1x16x512xbf16> to vector<16x512xbf16>
    %199 = arith.extf %198 : vector<16x512xbf16> to vector<16x512xf32>
    %c0_77 = arith.constant 0 : index
    %c0_78 = arith.constant 0 : index
    %200 = vector.load %arg3[%c0_77, %c0_78] : memref<128x512xf32, #tpu.memory_space<vmem>>, vector<128x512xf32>
    %cst_79 = arith.constant dense<0.000000e+00> : vector<16x512xf32>
    %201 = tpu.matmul %192, %200, %cst_79 {dimension_numbers = #tpu.dot_dimension_numbers<[1], [0], [0], [1], [0, 0, 1, 1], [], []>} : vector<16x128xf32>, vector<128x512xf32>, vector<16x512xf32> -> vector<16x512xf32>
    %202 = arith.addf %199, %201 : vector<16x512xf32>
    %203 = math.tanh %202 : vector<16x512xf32>
    %204 = vector.extract_strided_slice %203 {offsets = [0, 0], sizes = [16, 128], strides = [1, 1]} : vector<16x512xf32> to vector<16x128xf32>
    %cst_80 = arith.constant 1.000000e+00 : f32
    %205 = vector.broadcast %cst_80 : f32 to vector<16x128xf32>
    %206 = arith.addf %204, %205 : vector<16x128xf32>
    %cst_81 = arith.constant 5.000000e-01 : f32
    %207 = vector.broadcast %cst_81 : f32 to vector<16x128xf32>
    %208 = arith.mulf %207, %206 : vector<16x128xf32>
    %209 = vector.extract_strided_slice %203 {offsets = [0, 128], sizes = [16, 128], strides = [1, 1]} : vector<16x512xf32> to vector<16x128xf32>
    %cst_82 = arith.constant 1.000000e+00 : f32
    %210 = vector.broadcast %cst_82 : f32 to vector<16x128xf32>
    %211 = arith.addf %209, %210 : vector<16x128xf32>
    %cst_83 = arith.constant 5.000000e-01 : f32
    %212 = vector.broadcast %cst_83 : f32 to vector<16x128xf32>
    %213 = arith.mulf %212, %211 : vector<16x128xf32>
    %214 = vector.extract_strided_slice %203 {offsets = [0, 256], sizes = [16, 128], strides = [1, 1]} : vector<16x512xf32> to vector<16x128xf32>
    %215 = vector.extract_strided_slice %203 {offsets = [0, 384], sizes = [16, 128], strides = [1, 1]} : vector<16x512xf32> to vector<16x128xf32>
    %cst_84 = arith.constant 1.000000e+00 : f32
    %216 = vector.broadcast %cst_84 : f32 to vector<16x128xf32>
    %217 = arith.addf %215, %216 : vector<16x128xf32>
    %cst_85 = arith.constant 5.000000e-01 : f32
    %218 = vector.broadcast %cst_85 : f32 to vector<16x128xf32>
    %219 = arith.mulf %218, %217 : vector<16x128xf32>
    %220 = arith.mulf %213, %193 : vector<16x128xf32>
    %221 = arith.mulf %208, %214 : vector<16x128xf32>
    %222 = arith.addf %220, %221 : vector<16x128xf32>
    %223 = math.tanh %222 : vector<16x128xf32>
    %224 = arith.mulf %219, %223 : vector<16x128xf32>
    %225 = tpu.concatenate %224, %194 in 1 : vector<16x128xf32>, vector<16x128xf32> -> vector<16x256xf32>
    %c0_86 = arith.constant 0 : index
    %c0_87 = arith.constant 0 : index
    %226 = vector.load %arg4[%c0_86, %c0_87] : memref<256x512xf32, #tpu.memory_space<vmem>>, vector<256x512xf32>
    %cst_88 = arith.constant dense<0.000000e+00> : vector<16x512xf32>
    %227 = tpu.matmul %225, %226, %cst_88 {dimension_numbers = #tpu.dot_dimension_numbers<[1], [0], [0], [1], [0, 0, 1, 1], [], []>} : vector<16x256xf32>, vector<256x512xf32>, vector<16x512xf32> -> vector<16x512xf32>
    %c0_89 = arith.constant 0 : index
    %c0_90 = arith.constant 0 : index
    %228 = vector.load %arg5[%c0_89, %c0_90] : memref<1x512xf32, #tpu.memory_space<vmem>>, vector<1x512xf32>
    %229 = vector.broadcast %228 : vector<1x512xf32> to vector<16x512xf32>
    %230 = arith.addf %227, %229 : vector<16x512xf32>
    %231 = math.tanh %230 : vector<16x512xf32>
    %232 = vector.extract_strided_slice %231 {offsets = [0, 0], sizes = [16, 128], strides = [1, 1]} : vector<16x512xf32> to vector<16x128xf32>
    %cst_91 = arith.constant 1.000000e+00 : f32
    %233 = vector.broadcast %cst_91 : f32 to vector<16x128xf32>
    %234 = arith.addf %232, %233 : vector<16x128xf32>
    %cst_92 = arith.constant 5.000000e-01 : f32
    %235 = vector.broadcast %cst_92 : f32 to vector<16x128xf32>
    %236 = arith.mulf %235, %234 : vector<16x128xf32>
    %237 = vector.extract_strided_slice %231 {offsets = [0, 128], sizes = [16, 128], strides = [1, 1]} : vector<16x512xf32> to vector<16x128xf32>
    %cst_93 = arith.constant 1.000000e+00 : f32
    %238 = vector.broadcast %cst_93 : f32 to vector<16x128xf32>
    %239 = arith.addf %237, %238 : vector<16x128xf32>
    %cst_94 = arith.constant 5.000000e-01 : f32
    %240 = vector.broadcast %cst_94 : f32 to vector<16x128xf32>
    %241 = arith.mulf %240, %239 : vector<16x128xf32>
    %242 = vector.extract_strided_slice %231 {offsets = [0, 256], sizes = [16, 128], strides = [1, 1]} : vector<16x512xf32> to vector<16x128xf32>
    %243 = vector.extract_strided_slice %231 {offsets = [0, 384], sizes = [16, 128], strides = [1, 1]} : vector<16x512xf32> to vector<16x128xf32>
    %cst_95 = arith.constant 1.000000e+00 : f32
    %244 = vector.broadcast %cst_95 : f32 to vector<16x128xf32>
    %245 = arith.addf %243, %244 : vector<16x128xf32>
    %cst_96 = arith.constant 5.000000e-01 : f32
    %246 = vector.broadcast %cst_96 : f32 to vector<16x128xf32>
    %247 = arith.mulf %246, %245 : vector<16x128xf32>
    %248 = arith.mulf %241, %195 : vector<16x128xf32>
    %249 = arith.mulf %236, %242 : vector<16x128xf32>
    %250 = arith.addf %248, %249 : vector<16x128xf32>
    %251 = math.tanh %250 : vector<16x128xf32>
    %252 = arith.mulf %247, %251 : vector<16x128xf32>
    %253 = arith.cmpi slt, %c3_i32, %5 : i32
    %254 = arith.select %253, %224, %192 : vector<16x128xf32>
    %255 = arith.select %253, %222, %193 : vector<16x128xf32>
    %256 = arith.select %253, %252, %194 : vector<16x128xf32>
    %257 = arith.select %253, %250, %195 : vector<16x128xf32>
    %c4_i32 = arith.constant 4 : i32
    %258 = arith.index_cast %c4_i32 : i32 to index
    %c0_97 = arith.constant 0 : index
    %c0_98 = arith.constant 0 : index
    %259 = vector.load %arg2[%258, %c0_97, %c0_98] : memref<8x16x512xbf16, #tpu.memory_space<vmem>>, vector<1x16x512xbf16>
    %260 = vector.shape_cast %259 : vector<1x16x512xbf16> to vector<16x512xbf16>
    %261 = arith.extf %260 : vector<16x512xbf16> to vector<16x512xf32>
    %c0_99 = arith.constant 0 : index
    %c0_100 = arith.constant 0 : index
    %262 = vector.load %arg3[%c0_99, %c0_100] : memref<128x512xf32, #tpu.memory_space<vmem>>, vector<128x512xf32>
    %cst_101 = arith.constant dense<0.000000e+00> : vector<16x512xf32>
    %263 = tpu.matmul %254, %262, %cst_101 {dimension_numbers = #tpu.dot_dimension_numbers<[1], [0], [0], [1], [0, 0, 1, 1], [], []>} : vector<16x128xf32>, vector<128x512xf32>, vector<16x512xf32> -> vector<16x512xf32>
    %264 = arith.addf %261, %263 : vector<16x512xf32>
    %265 = math.tanh %264 : vector<16x512xf32>
    %266 = vector.extract_strided_slice %265 {offsets = [0, 0], sizes = [16, 128], strides = [1, 1]} : vector<16x512xf32> to vector<16x128xf32>
    %cst_102 = arith.constant 1.000000e+00 : f32
    %267 = vector.broadcast %cst_102 : f32 to vector<16x128xf32>
    %268 = arith.addf %266, %267 : vector<16x128xf32>
    %cst_103 = arith.constant 5.000000e-01 : f32
    %269 = vector.broadcast %cst_103 : f32 to vector<16x128xf32>
    %270 = arith.mulf %269, %268 : vector<16x128xf32>
    %271 = vector.extract_strided_slice %265 {offsets = [0, 128], sizes = [16, 128], strides = [1, 1]} : vector<16x512xf32> to vector<16x128xf32>
    %cst_104 = arith.constant 1.000000e+00 : f32
    %272 = vector.broadcast %cst_104 : f32 to vector<16x128xf32>
    %273 = arith.addf %271, %272 : vector<16x128xf32>
    %cst_105 = arith.constant 5.000000e-01 : f32
    %274 = vector.broadcast %cst_105 : f32 to vector<16x128xf32>
    %275 = arith.mulf %274, %273 : vector<16x128xf32>
    %276 = vector.extract_strided_slice %265 {offsets = [0, 256], sizes = [16, 128], strides = [1, 1]} : vector<16x512xf32> to vector<16x128xf32>
    %277 = vector.extract_strided_slice %265 {offsets = [0, 384], sizes = [16, 128], strides = [1, 1]} : vector<16x512xf32> to vector<16x128xf32>
    %cst_106 = arith.constant 1.000000e+00 : f32
    %278 = vector.broadcast %cst_106 : f32 to vector<16x128xf32>
    %279 = arith.addf %277, %278 : vector<16x128xf32>
    %cst_107 = arith.constant 5.000000e-01 : f32
    %280 = vector.broadcast %cst_107 : f32 to vector<16x128xf32>
    %281 = arith.mulf %280, %279 : vector<16x128xf32>
    %282 = arith.mulf %275, %255 : vector<16x128xf32>
    %283 = arith.mulf %270, %276 : vector<16x128xf32>
    %284 = arith.addf %282, %283 : vector<16x128xf32>
    %285 = math.tanh %284 : vector<16x128xf32>
    %286 = arith.mulf %281, %285 : vector<16x128xf32>
    %287 = tpu.concatenate %286, %256 in 1 : vector<16x128xf32>, vector<16x128xf32> -> vector<16x256xf32>
    %c0_108 = arith.constant 0 : index
    %c0_109 = arith.constant 0 : index
    %288 = vector.load %arg4[%c0_108, %c0_109] : memref<256x512xf32, #tpu.memory_space<vmem>>, vector<256x512xf32>
    %cst_110 = arith.constant dense<0.000000e+00> : vector<16x512xf32>
    %289 = tpu.matmul %287, %288, %cst_110 {dimension_numbers = #tpu.dot_dimension_numbers<[1], [0], [0], [1], [0, 0, 1, 1], [], []>} : vector<16x256xf32>, vector<256x512xf32>, vector<16x512xf32> -> vector<16x512xf32>
    %c0_111 = arith.constant 0 : index
    %c0_112 = arith.constant 0 : index
    %290 = vector.load %arg5[%c0_111, %c0_112] : memref<1x512xf32, #tpu.memory_space<vmem>>, vector<1x512xf32>
    %291 = vector.broadcast %290 : vector<1x512xf32> to vector<16x512xf32>
    %292 = arith.addf %289, %291 : vector<16x512xf32>
    %293 = math.tanh %292 : vector<16x512xf32>
    %294 = vector.extract_strided_slice %293 {offsets = [0, 0], sizes = [16, 128], strides = [1, 1]} : vector<16x512xf32> to vector<16x128xf32>
    %cst_113 = arith.constant 1.000000e+00 : f32
    %295 = vector.broadcast %cst_113 : f32 to vector<16x128xf32>
    %296 = arith.addf %294, %295 : vector<16x128xf32>
    %cst_114 = arith.constant 5.000000e-01 : f32
    %297 = vector.broadcast %cst_114 : f32 to vector<16x128xf32>
    %298 = arith.mulf %297, %296 : vector<16x128xf32>
    %299 = vector.extract_strided_slice %293 {offsets = [0, 128], sizes = [16, 128], strides = [1, 1]} : vector<16x512xf32> to vector<16x128xf32>
    %cst_115 = arith.constant 1.000000e+00 : f32
    %300 = vector.broadcast %cst_115 : f32 to vector<16x128xf32>
    %301 = arith.addf %299, %300 : vector<16x128xf32>
    %cst_116 = arith.constant 5.000000e-01 : f32
    %302 = vector.broadcast %cst_116 : f32 to vector<16x128xf32>
    %303 = arith.mulf %302, %301 : vector<16x128xf32>
    %304 = vector.extract_strided_slice %293 {offsets = [0, 256], sizes = [16, 128], strides = [1, 1]} : vector<16x512xf32> to vector<16x128xf32>
    %305 = vector.extract_strided_slice %293 {offsets = [0, 384], sizes = [16, 128], strides = [1, 1]} : vector<16x512xf32> to vector<16x128xf32>
    %cst_117 = arith.constant 1.000000e+00 : f32
    %306 = vector.broadcast %cst_117 : f32 to vector<16x128xf32>
    %307 = arith.addf %305, %306 : vector<16x128xf32>
    %cst_118 = arith.constant 5.000000e-01 : f32
    %308 = vector.broadcast %cst_118 : f32 to vector<16x128xf32>
    %309 = arith.mulf %308, %307 : vector<16x128xf32>
    %310 = arith.mulf %303, %257 : vector<16x128xf32>
    %311 = arith.mulf %298, %304 : vector<16x128xf32>
    %312 = arith.addf %310, %311 : vector<16x128xf32>
    %313 = math.tanh %312 : vector<16x128xf32>
    %314 = arith.mulf %309, %313 : vector<16x128xf32>
    %315 = arith.cmpi slt, %c4_i32, %5 : i32
    %316 = arith.select %315, %286, %254 : vector<16x128xf32>
    %317 = arith.select %315, %284, %255 : vector<16x128xf32>
    %318 = arith.select %315, %314, %256 : vector<16x128xf32>
    %319 = arith.select %315, %312, %257 : vector<16x128xf32>
    %c5_i32 = arith.constant 5 : i32
    %320 = arith.index_cast %c5_i32 : i32 to index
    %c0_119 = arith.constant 0 : index
    %c0_120 = arith.constant 0 : index
    %321 = vector.load %arg2[%320, %c0_119, %c0_120] : memref<8x16x512xbf16, #tpu.memory_space<vmem>>, vector<1x16x512xbf16>
    %322 = vector.shape_cast %321 : vector<1x16x512xbf16> to vector<16x512xbf16>
    %323 = arith.extf %322 : vector<16x512xbf16> to vector<16x512xf32>
    %c0_121 = arith.constant 0 : index
    %c0_122 = arith.constant 0 : index
    %324 = vector.load %arg3[%c0_121, %c0_122] : memref<128x512xf32, #tpu.memory_space<vmem>>, vector<128x512xf32>
    %cst_123 = arith.constant dense<0.000000e+00> : vector<16x512xf32>
    %325 = tpu.matmul %316, %324, %cst_123 {dimension_numbers = #tpu.dot_dimension_numbers<[1], [0], [0], [1], [0, 0, 1, 1], [], []>} : vector<16x128xf32>, vector<128x512xf32>, vector<16x512xf32> -> vector<16x512xf32>
    %326 = arith.addf %323, %325 : vector<16x512xf32>
    %327 = math.tanh %326 : vector<16x512xf32>
    %328 = vector.extract_strided_slice %327 {offsets = [0, 0], sizes = [16, 128], strides = [1, 1]} : vector<16x512xf32> to vector<16x128xf32>
    %cst_124 = arith.constant 1.000000e+00 : f32
    %329 = vector.broadcast %cst_124 : f32 to vector<16x128xf32>
    %330 = arith.addf %328, %329 : vector<16x128xf32>
    %cst_125 = arith.constant 5.000000e-01 : f32
    %331 = vector.broadcast %cst_125 : f32 to vector<16x128xf32>
    %332 = arith.mulf %331, %330 : vector<16x128xf32>
    %333 = vector.extract_strided_slice %327 {offsets = [0, 128], sizes = [16, 128], strides = [1, 1]} : vector<16x512xf32> to vector<16x128xf32>
    %cst_126 = arith.constant 1.000000e+00 : f32
    %334 = vector.broadcast %cst_126 : f32 to vector<16x128xf32>
    %335 = arith.addf %333, %334 : vector<16x128xf32>
    %cst_127 = arith.constant 5.000000e-01 : f32
    %336 = vector.broadcast %cst_127 : f32 to vector<16x128xf32>
    %337 = arith.mulf %336, %335 : vector<16x128xf32>
    %338 = vector.extract_strided_slice %327 {offsets = [0, 256], sizes = [16, 128], strides = [1, 1]} : vector<16x512xf32> to vector<16x128xf32>
    %339 = vector.extract_strided_slice %327 {offsets = [0, 384], sizes = [16, 128], strides = [1, 1]} : vector<16x512xf32> to vector<16x128xf32>
    %cst_128 = arith.constant 1.000000e+00 : f32
    %340 = vector.broadcast %cst_128 : f32 to vector<16x128xf32>
    %341 = arith.addf %339, %340 : vector<16x128xf32>
    %cst_129 = arith.constant 5.000000e-01 : f32
    %342 = vector.broadcast %cst_129 : f32 to vector<16x128xf32>
    %343 = arith.mulf %342, %341 : vector<16x128xf32>
    %344 = arith.mulf %337, %317 : vector<16x128xf32>
    %345 = arith.mulf %332, %338 : vector<16x128xf32>
    %346 = arith.addf %344, %345 : vector<16x128xf32>
    %347 = math.tanh %346 : vector<16x128xf32>
    %348 = arith.mulf %343, %347 : vector<16x128xf32>
    %349 = tpu.concatenate %348, %318 in 1 : vector<16x128xf32>, vector<16x128xf32> -> vector<16x256xf32>
    %c0_130 = arith.constant 0 : index
    %c0_131 = arith.constant 0 : index
    %350 = vector.load %arg4[%c0_130, %c0_131] : memref<256x512xf32, #tpu.memory_space<vmem>>, vector<256x512xf32>
    %cst_132 = arith.constant dense<0.000000e+00> : vector<16x512xf32>
    %351 = tpu.matmul %349, %350, %cst_132 {dimension_numbers = #tpu.dot_dimension_numbers<[1], [0], [0], [1], [0, 0, 1, 1], [], []>} : vector<16x256xf32>, vector<256x512xf32>, vector<16x512xf32> -> vector<16x512xf32>
    %c0_133 = arith.constant 0 : index
    %c0_134 = arith.constant 0 : index
    %352 = vector.load %arg5[%c0_133, %c0_134] : memref<1x512xf32, #tpu.memory_space<vmem>>, vector<1x512xf32>
    %353 = vector.broadcast %352 : vector<1x512xf32> to vector<16x512xf32>
    %354 = arith.addf %351, %353 : vector<16x512xf32>
    %355 = math.tanh %354 : vector<16x512xf32>
    %356 = vector.extract_strided_slice %355 {offsets = [0, 0], sizes = [16, 128], strides = [1, 1]} : vector<16x512xf32> to vector<16x128xf32>
    %cst_135 = arith.constant 1.000000e+00 : f32
    %357 = vector.broadcast %cst_135 : f32 to vector<16x128xf32>
    %358 = arith.addf %356, %357 : vector<16x128xf32>
    %cst_136 = arith.constant 5.000000e-01 : f32
    %359 = vector.broadcast %cst_136 : f32 to vector<16x128xf32>
    %360 = arith.mulf %359, %358 : vector<16x128xf32>
    %361 = vector.extract_strided_slice %355 {offsets = [0, 128], sizes = [16, 128], strides = [1, 1]} : vector<16x512xf32> to vector<16x128xf32>
    %cst_137 = arith.constant 1.000000e+00 : f32
    %362 = vector.broadcast %cst_137 : f32 to vector<16x128xf32>
    %363 = arith.addf %361, %362 : vector<16x128xf32>
    %cst_138 = arith.constant 5.000000e-01 : f32
    %364 = vector.broadcast %cst_138 : f32 to vector<16x128xf32>
    %365 = arith.mulf %364, %363 : vector<16x128xf32>
    %366 = vector.extract_strided_slice %355 {offsets = [0, 256], sizes = [16, 128], strides = [1, 1]} : vector<16x512xf32> to vector<16x128xf32>
    %367 = vector.extract_strided_slice %355 {offsets = [0, 384], sizes = [16, 128], strides = [1, 1]} : vector<16x512xf32> to vector<16x128xf32>
    %cst_139 = arith.constant 1.000000e+00 : f32
    %368 = vector.broadcast %cst_139 : f32 to vector<16x128xf32>
    %369 = arith.addf %367, %368 : vector<16x128xf32>
    %cst_140 = arith.constant 5.000000e-01 : f32
    %370 = vector.broadcast %cst_140 : f32 to vector<16x128xf32>
    %371 = arith.mulf %370, %369 : vector<16x128xf32>
    %372 = arith.mulf %365, %319 : vector<16x128xf32>
    %373 = arith.mulf %360, %366 : vector<16x128xf32>
    %374 = arith.addf %372, %373 : vector<16x128xf32>
    %375 = math.tanh %374 : vector<16x128xf32>
    %376 = arith.mulf %371, %375 : vector<16x128xf32>
    %377 = arith.cmpi slt, %c5_i32, %5 : i32
    %378 = arith.select %377, %348, %316 : vector<16x128xf32>
    %379 = arith.select %377, %346, %317 : vector<16x128xf32>
    %380 = arith.select %377, %376, %318 : vector<16x128xf32>
    %381 = arith.select %377, %374, %319 : vector<16x128xf32>
    %c6_i32 = arith.constant 6 : i32
    %382 = arith.index_cast %c6_i32 : i32 to index
    %c0_141 = arith.constant 0 : index
    %c0_142 = arith.constant 0 : index
    %383 = vector.load %arg2[%382, %c0_141, %c0_142] : memref<8x16x512xbf16, #tpu.memory_space<vmem>>, vector<1x16x512xbf16>
    %384 = vector.shape_cast %383 : vector<1x16x512xbf16> to vector<16x512xbf16>
    %385 = arith.extf %384 : vector<16x512xbf16> to vector<16x512xf32>
    %c0_143 = arith.constant 0 : index
    %c0_144 = arith.constant 0 : index
    %386 = vector.load %arg3[%c0_143, %c0_144] : memref<128x512xf32, #tpu.memory_space<vmem>>, vector<128x512xf32>
    %cst_145 = arith.constant dense<0.000000e+00> : vector<16x512xf32>
    %387 = tpu.matmul %378, %386, %cst_145 {dimension_numbers = #tpu.dot_dimension_numbers<[1], [0], [0], [1], [0, 0, 1, 1], [], []>} : vector<16x128xf32>, vector<128x512xf32>, vector<16x512xf32> -> vector<16x512xf32>
    %388 = arith.addf %385, %387 : vector<16x512xf32>
    %389 = math.tanh %388 : vector<16x512xf32>
    %390 = vector.extract_strided_slice %389 {offsets = [0, 0], sizes = [16, 128], strides = [1, 1]} : vector<16x512xf32> to vector<16x128xf32>
    %cst_146 = arith.constant 1.000000e+00 : f32
    %391 = vector.broadcast %cst_146 : f32 to vector<16x128xf32>
    %392 = arith.addf %390, %391 : vector<16x128xf32>
    %cst_147 = arith.constant 5.000000e-01 : f32
    %393 = vector.broadcast %cst_147 : f32 to vector<16x128xf32>
    %394 = arith.mulf %393, %392 : vector<16x128xf32>
    %395 = vector.extract_strided_slice %389 {offsets = [0, 128], sizes = [16, 128], strides = [1, 1]} : vector<16x512xf32> to vector<16x128xf32>
    %cst_148 = arith.constant 1.000000e+00 : f32
    %396 = vector.broadcast %cst_148 : f32 to vector<16x128xf32>
    %397 = arith.addf %395, %396 : vector<16x128xf32>
    %cst_149 = arith.constant 5.000000e-01 : f32
    %398 = vector.broadcast %cst_149 : f32 to vector<16x128xf32>
    %399 = arith.mulf %398, %397 : vector<16x128xf32>
    %400 = vector.extract_strided_slice %389 {offsets = [0, 256], sizes = [16, 128], strides = [1, 1]} : vector<16x512xf32> to vector<16x128xf32>
    %401 = vector.extract_strided_slice %389 {offsets = [0, 384], sizes = [16, 128], strides = [1, 1]} : vector<16x512xf32> to vector<16x128xf32>
    %cst_150 = arith.constant 1.000000e+00 : f32
    %402 = vector.broadcast %cst_150 : f32 to vector<16x128xf32>
    %403 = arith.addf %401, %402 : vector<16x128xf32>
    %cst_151 = arith.constant 5.000000e-01 : f32
    %404 = vector.broadcast %cst_151 : f32 to vector<16x128xf32>
    %405 = arith.mulf %404, %403 : vector<16x128xf32>
    %406 = arith.mulf %399, %379 : vector<16x128xf32>
    %407 = arith.mulf %394, %400 : vector<16x128xf32>
    %408 = arith.addf %406, %407 : vector<16x128xf32>
    %409 = math.tanh %408 : vector<16x128xf32>
    %410 = arith.mulf %405, %409 : vector<16x128xf32>
    %411 = tpu.concatenate %410, %380 in 1 : vector<16x128xf32>, vector<16x128xf32> -> vector<16x256xf32>
    %c0_152 = arith.constant 0 : index
    %c0_153 = arith.constant 0 : index
    %412 = vector.load %arg4[%c0_152, %c0_153] : memref<256x512xf32, #tpu.memory_space<vmem>>, vector<256x512xf32>
    %cst_154 = arith.constant dense<0.000000e+00> : vector<16x512xf32>
    %413 = tpu.matmul %411, %412, %cst_154 {dimension_numbers = #tpu.dot_dimension_numbers<[1], [0], [0], [1], [0, 0, 1, 1], [], []>} : vector<16x256xf32>, vector<256x512xf32>, vector<16x512xf32> -> vector<16x512xf32>
    %c0_155 = arith.constant 0 : index
    %c0_156 = arith.constant 0 : index
    %414 = vector.load %arg5[%c0_155, %c0_156] : memref<1x512xf32, #tpu.memory_space<vmem>>, vector<1x512xf32>
    %415 = vector.broadcast %414 : vector<1x512xf32> to vector<16x512xf32>
    %416 = arith.addf %413, %415 : vector<16x512xf32>
    %417 = math.tanh %416 : vector<16x512xf32>
    %418 = vector.extract_strided_slice %417 {offsets = [0, 0], sizes = [16, 128], strides = [1, 1]} : vector<16x512xf32> to vector<16x128xf32>
    %cst_157 = arith.constant 1.000000e+00 : f32
    %419 = vector.broadcast %cst_157 : f32 to vector<16x128xf32>
    %420 = arith.addf %418, %419 : vector<16x128xf32>
    %cst_158 = arith.constant 5.000000e-01 : f32
    %421 = vector.broadcast %cst_158 : f32 to vector<16x128xf32>
    %422 = arith.mulf %421, %420 : vector<16x128xf32>
    %423 = vector.extract_strided_slice %417 {offsets = [0, 128], sizes = [16, 128], strides = [1, 1]} : vector<16x512xf32> to vector<16x128xf32>
    %cst_159 = arith.constant 1.000000e+00 : f32
    %424 = vector.broadcast %cst_159 : f32 to vector<16x128xf32>
    %425 = arith.addf %423, %424 : vector<16x128xf32>
    %cst_160 = arith.constant 5.000000e-01 : f32
    %426 = vector.broadcast %cst_160 : f32 to vector<16x128xf32>
    %427 = arith.mulf %426, %425 : vector<16x128xf32>
    %428 = vector.extract_strided_slice %417 {offsets = [0, 256], sizes = [16, 128], strides = [1, 1]} : vector<16x512xf32> to vector<16x128xf32>
    %429 = vector.extract_strided_slice %417 {offsets = [0, 384], sizes = [16, 128], strides = [1, 1]} : vector<16x512xf32> to vector<16x128xf32>
    %cst_161 = arith.constant 1.000000e+00 : f32
    %430 = vector.broadcast %cst_161 : f32 to vector<16x128xf32>
    %431 = arith.addf %429, %430 : vector<16x128xf32>
    %cst_162 = arith.constant 5.000000e-01 : f32
    %432 = vector.broadcast %cst_162 : f32 to vector<16x128xf32>
    %433 = arith.mulf %432, %431 : vector<16x128xf32>
    %434 = arith.mulf %427, %381 : vector<16x128xf32>
    %435 = arith.mulf %422, %428 : vector<16x128xf32>
    %436 = arith.addf %434, %435 : vector<16x128xf32>
    %437 = math.tanh %436 : vector<16x128xf32>
    %438 = arith.mulf %433, %437 : vector<16x128xf32>
    %439 = arith.cmpi slt, %c6_i32, %5 : i32
    %440 = arith.select %439, %410, %378 : vector<16x128xf32>
    %441 = arith.select %439, %408, %379 : vector<16x128xf32>
    %442 = arith.select %439, %438, %380 : vector<16x128xf32>
    %443 = arith.select %439, %436, %381 : vector<16x128xf32>
    %c7_i32 = arith.constant 7 : i32
    %444 = arith.index_cast %c7_i32 : i32 to index
    %c0_163 = arith.constant 0 : index
    %c0_164 = arith.constant 0 : index
    %445 = vector.load %arg2[%444, %c0_163, %c0_164] : memref<8x16x512xbf16, #tpu.memory_space<vmem>>, vector<1x16x512xbf16>
    %446 = vector.shape_cast %445 : vector<1x16x512xbf16> to vector<16x512xbf16>
    %447 = arith.extf %446 : vector<16x512xbf16> to vector<16x512xf32>
    %c0_165 = arith.constant 0 : index
    %c0_166 = arith.constant 0 : index
    %448 = vector.load %arg3[%c0_165, %c0_166] : memref<128x512xf32, #tpu.memory_space<vmem>>, vector<128x512xf32>
    %cst_167 = arith.constant dense<0.000000e+00> : vector<16x512xf32>
    %449 = tpu.matmul %440, %448, %cst_167 {dimension_numbers = #tpu.dot_dimension_numbers<[1], [0], [0], [1], [0, 0, 1, 1], [], []>} : vector<16x128xf32>, vector<128x512xf32>, vector<16x512xf32> -> vector<16x512xf32>
    %450 = arith.addf %447, %449 : vector<16x512xf32>
    %451 = math.tanh %450 : vector<16x512xf32>
    %452 = vector.extract_strided_slice %451 {offsets = [0, 0], sizes = [16, 128], strides = [1, 1]} : vector<16x512xf32> to vector<16x128xf32>
    %cst_168 = arith.constant 1.000000e+00 : f32
    %453 = vector.broadcast %cst_168 : f32 to vector<16x128xf32>
    %454 = arith.addf %452, %453 : vector<16x128xf32>
    %cst_169 = arith.constant 5.000000e-01 : f32
    %455 = vector.broadcast %cst_169 : f32 to vector<16x128xf32>
    %456 = arith.mulf %455, %454 : vector<16x128xf32>
    %457 = vector.extract_strided_slice %451 {offsets = [0, 128], sizes = [16, 128], strides = [1, 1]} : vector<16x512xf32> to vector<16x128xf32>
    %cst_170 = arith.constant 1.000000e+00 : f32
    %458 = vector.broadcast %cst_170 : f32 to vector<16x128xf32>
    %459 = arith.addf %457, %458 : vector<16x128xf32>
    %cst_171 = arith.constant 5.000000e-01 : f32
    %460 = vector.broadcast %cst_171 : f32 to vector<16x128xf32>
    %461 = arith.mulf %460, %459 : vector<16x128xf32>
    %462 = vector.extract_strided_slice %451 {offsets = [0, 256], sizes = [16, 128], strides = [1, 1]} : vector<16x512xf32> to vector<16x128xf32>
    %463 = vector.extract_strided_slice %451 {offsets = [0, 384], sizes = [16, 128], strides = [1, 1]} : vector<16x512xf32> to vector<16x128xf32>
    %cst_172 = arith.constant 1.000000e+00 : f32
    %464 = vector.broadcast %cst_172 : f32 to vector<16x128xf32>
    %465 = arith.addf %463, %464 : vector<16x128xf32>
    %cst_173 = arith.constant 5.000000e-01 : f32
    %466 = vector.broadcast %cst_173 : f32 to vector<16x128xf32>
    %467 = arith.mulf %466, %465 : vector<16x128xf32>
    %468 = arith.mulf %461, %441 : vector<16x128xf32>
    %469 = arith.mulf %456, %462 : vector<16x128xf32>
    %470 = arith.addf %468, %469 : vector<16x128xf32>
    %471 = math.tanh %470 : vector<16x128xf32>
    %472 = arith.mulf %467, %471 : vector<16x128xf32>
    %473 = tpu.concatenate %472, %442 in 1 : vector<16x128xf32>, vector<16x128xf32> -> vector<16x256xf32>
    %c0_174 = arith.constant 0 : index
    %c0_175 = arith.constant 0 : index
    %474 = vector.load %arg4[%c0_174, %c0_175] : memref<256x512xf32, #tpu.memory_space<vmem>>, vector<256x512xf32>
    %cst_176 = arith.constant dense<0.000000e+00> : vector<16x512xf32>
    %475 = tpu.matmul %473, %474, %cst_176 {dimension_numbers = #tpu.dot_dimension_numbers<[1], [0], [0], [1], [0, 0, 1, 1], [], []>} : vector<16x256xf32>, vector<256x512xf32>, vector<16x512xf32> -> vector<16x512xf32>
    %c0_177 = arith.constant 0 : index
    %c0_178 = arith.constant 0 : index
    %476 = vector.load %arg5[%c0_177, %c0_178] : memref<1x512xf32, #tpu.memory_space<vmem>>, vector<1x512xf32>
    %477 = vector.broadcast %476 : vector<1x512xf32> to vector<16x512xf32>
    %478 = arith.addf %475, %477 : vector<16x512xf32>
    %479 = math.tanh %478 : vector<16x512xf32>
    %480 = vector.extract_strided_slice %479 {offsets = [0, 0], sizes = [16, 128], strides = [1, 1]} : vector<16x512xf32> to vector<16x128xf32>
    %cst_179 = arith.constant 1.000000e+00 : f32
    %481 = vector.broadcast %cst_179 : f32 to vector<16x128xf32>
    %482 = arith.addf %480, %481 : vector<16x128xf32>
    %cst_180 = arith.constant 5.000000e-01 : f32
    %483 = vector.broadcast %cst_180 : f32 to vector<16x128xf32>
    %484 = arith.mulf %483, %482 : vector<16x128xf32>
    %485 = vector.extract_strided_slice %479 {offsets = [0, 128], sizes = [16, 128], strides = [1, 1]} : vector<16x512xf32> to vector<16x128xf32>
    %cst_181 = arith.constant 1.000000e+00 : f32
    %486 = vector.broadcast %cst_181 : f32 to vector<16x128xf32>
    %487 = arith.addf %485, %486 : vector<16x128xf32>
    %cst_182 = arith.constant 5.000000e-01 : f32
    %488 = vector.broadcast %cst_182 : f32 to vector<16x128xf32>
    %489 = arith.mulf %488, %487 : vector<16x128xf32>
    %490 = vector.extract_strided_slice %479 {offsets = [0, 256], sizes = [16, 128], strides = [1, 1]} : vector<16x512xf32> to vector<16x128xf32>
    %491 = vector.extract_strided_slice %479 {offsets = [0, 384], sizes = [16, 128], strides = [1, 1]} : vector<16x512xf32> to vector<16x128xf32>
    %cst_183 = arith.constant 1.000000e+00 : f32
    %492 = vector.broadcast %cst_183 : f32 to vector<16x128xf32>
    %493 = arith.addf %491, %492 : vector<16x128xf32>
    %cst_184 = arith.constant 5.000000e-01 : f32
    %494 = vector.broadcast %cst_184 : f32 to vector<16x128xf32>
    %495 = arith.mulf %494, %493 : vector<16x128xf32>
    %496 = arith.mulf %489, %443 : vector<16x128xf32>
    %497 = arith.mulf %484, %490 : vector<16x128xf32>
    %498 = arith.addf %496, %497 : vector<16x128xf32>
    %499 = math.tanh %498 : vector<16x128xf32>
    %500 = arith.mulf %495, %499 : vector<16x128xf32>
    %501 = arith.cmpi slt, %c7_i32, %5 : i32
    %502 = arith.select %501, %472, %440 : vector<16x128xf32>
    %503 = arith.select %501, %470, %441 : vector<16x128xf32>
    %504 = arith.select %501, %500, %442 : vector<16x128xf32>
    %505 = arith.select %501, %498, %443 : vector<16x128xf32>
    %c8_i32_185 = arith.constant 8 : i32
    %c0_186 = arith.constant 0 : index
    %c0_187 = arith.constant 0 : index
    %506 = vector.load %arg9[%c0_186, %c0_187] : memref<16x128xf32, #tpu.memory_space<vmem>>, vector<16x128xf32>
    tpu.vector_store %arg9[%c0_186, %c0_187], %502 {strides = array<i32>} : memref<16x128xf32, #tpu.memory_space<vmem>>, vector<16x128xf32>,
    %c0_188 = arith.constant 0 : index
    %c0_189 = arith.constant 0 : index
    %507 = vector.load %arg10[%c0_188, %c0_189] : memref<16x128xf32, #tpu.memory_space<vmem>>, vector<16x128xf32>
    tpu.vector_store %arg10[%c0_188, %c0_189], %503 {strides = array<i32>} : memref<16x128xf32, #tpu.memory_space<vmem>>, vector<16x128xf32>,
    %c0_190 = arith.constant 0 : index
    %c0_191 = arith.constant 0 : index
    %508 = vector.load %arg11[%c0_190, %c0_191] : memref<16x128xf32, #tpu.memory_space<vmem>>, vector<16x128xf32>
    tpu.vector_store %arg11[%c0_190, %c0_191], %504 {strides = array<i32>} : memref<16x128xf32, #tpu.memory_space<vmem>>, vector<16x128xf32>,
    %c0_192 = arith.constant 0 : index
    %c0_193 = arith.constant 0 : index
    %509 = vector.load %arg12[%c0_192, %c0_193] : memref<16x128xf32, #tpu.memory_space<vmem>>, vector<16x128xf32>
    tpu.vector_store %arg12[%c0_192, %c0_193], %505 {strides = array<i32>} : memref<16x128xf32, #tpu.memory_space<vmem>>, vector<16x128xf32>,
    %c1_i32_194 = arith.constant 1 : i32
    %510 = arith.cmpi eq, %arg1, %c1_i32_194 : i32
    %511 = arith.extui %510 : i1 to i32
    %c0_i32_195 = arith.constant 0 : i32
    %512 = arith.cmpi ne, %511, %c0_i32_195 : i32
    scf.if %512 {
      %c0_196 = arith.constant 0 : index
      %c0_197 = arith.constant 0 : index
      %513 = vector.load %arg6[%c0_196, %c0_197] : memref<128x1xf32, #tpu.memory_space<vmem>>, vector<128x1xf32>
      %cst_198 = arith.constant dense<0.000000e+00> : vector<16x1xf32>
      %514 = tpu.matmul %504, %513, %cst_198 {dimension_numbers = #tpu.dot_dimension_numbers<[1], [0], [0], [1], [0, 0, 1, 1], [], []>} : vector<16x128xf32>, vector<128x1xf32>, vector<16x1xf32> -> vector<16x1xf32>
      %c0_199 = arith.constant 0 : index
      %c0_200 = arith.constant 0 : index
      %515 = vector.load %arg7[%c0_199, %c0_200] : memref<1x1xf32, #tpu.memory_space<vmem>>, vector<1x1xf32>
      %516 = vector.broadcast %515 : vector<1x1xf32> to vector<16x1xf32>
      %517 = arith.addf %514, %516 : vector<16x1xf32>
      %cst_201 = arith.constant 0.000000e+00 : f32
      %518 = vector.broadcast %cst_201 : f32 to vector<16x1xf32>
      %519 = arith.maximumf %517, %518 : vector<16x1xf32>
      %c0_202 = arith.constant 0 : index
      %c0_203 = arith.constant 0 : index
      %520 = vector.load %arg8[%c0_202, %c0_203] : memref<16x1xf32, #tpu.memory_space<vmem>>, vector<16x1xf32>
      tpu.vector_store %arg8[%c0_202, %c0_203], %519 {strides = array<i32>} : memref<16x1xf32, #tpu.memory_space<vmem>>, vector<16x1xf32>,
    } else {
    }
    return
  }
  func.func @transform_0(%arg0: i32, %arg1: i32) -> (i32, i32, i32) {
    %c0_i32 = arith.constant 0 : i32
    %c0_i32_0 = arith.constant 0 : i32
    return %arg1, %arg0, %c0_i32 : i32, i32, i32
  }
  func.func @transform_1(%arg0: i32, %arg1: i32) -> (i32, i32) {
    %c0_i32 = arith.constant 0 : i32
    %c0_i32_0 = arith.constant 0 : i32
    %c0_i32_1 = arith.constant 0 : i32
    return %c0_i32, %c0_i32_0 : i32, i32
  }
  func.func @transform_2(%arg0: i32, %arg1: i32) -> (i32, i32) {
    %c0_i32 = arith.constant 0 : i32
    %c0_i32_0 = arith.constant 0 : i32
    %c0_i32_1 = arith.constant 0 : i32
    return %c0_i32, %c0_i32_0 : i32, i32
  }
  func.func @transform_3(%arg0: i32, %arg1: i32) -> (i32, i32) {
    %c0_i32 = arith.constant 0 : i32
    %c0_i32_0 = arith.constant 0 : i32
    %c0_i32_1 = arith.constant 0 : i32
    return %c0_i32, %c0_i32_0 : i32, i32
  }
  func.func @transform_4(%arg0: i32, %arg1: i32) -> (i32, i32) {
    %c0_i32 = arith.constant 0 : i32
    %c0_i32_0 = arith.constant 0 : i32
    %c0_i32_1 = arith.constant 0 : i32
    return %c0_i32, %c0_i32_0 : i32, i32
  }
  func.func @transform_5(%arg0: i32, %arg1: i32) -> (i32, i32) {
    %c0_i32 = arith.constant 0 : i32
    %c0_i32_0 = arith.constant 0 : i32
    %c0_i32_1 = arith.constant 0 : i32
    return %c0_i32, %c0_i32_0 : i32, i32
  }
  func.func @transform_6(%arg0: i32, %arg1: i32) -> (i32, i32) {
    %c0_i32 = arith.constant 0 : i32
    %c0_i32_0 = arith.constant 0 : i32
    return %arg0, %c0_i32 : i32, i32
  }
}

</mosaic_0001>

<bundles_post_ra>
// kernel: tpu_custom_call.1
= control target key start
LH: loop header
LB: loop body
LE: loop exit
PB: predicated region body
PF: predicated region fallthrough
CT: control target
= control target key end

     0   :  { %s8778_s0 = inlined_call_operand.hbm [shape: bf16[16,16,512], index: 0, kind: input, shape index: {}]   ;;  %s8779_s1 = inlined_call_operand.hbm [shape: f32[128,512], index: 1, kind: input, shape index: {}]   ;;  %s8780_s2 = inlined_call_operand.hbm [shape: f32[256,512], index: 2, kind: input, shape index: {}]   ;;  %s8781_s3 = inlined_call_operand.vmem [shape: f32[1,512], index: 3, kind: input, shape index: {}]   ;;  %s8782_s4 = inlined_call_operand.vmem [shape: f32[128,1], index: 4, kind: input, shape index: {}]   ;;  %s8783_s5 = inlined_call_operand.<no memory space> [shape: f32[1,1], index: 5, kind: input, shape index: {}]   ;;  %s8784_s6 = inlined_call_operand.vmem [shape: f32[16,1], index: 6, kind: output, shape index: {}]  }
   0x1   :  { %v11_v0 = vstv %s8783_s5 }
   0x2   :  { %12 = vst [vmem:[#allocation6] sm:$0x1] %v11_v0 }
   0x3   :  { %13 = vsyncpa [#allocation8], 0 }
   0x4   :  { %15 = vsyncpa [#allocation8 + $0x1], 0 }
   0x5   :  { %16 = vsyncpa [#allocation10], 0  ;;  %s4977_s23 = smov 0   ;;  %s4979_s24 = smov 0  }
   0x6   :  { %s4981_s25 = smov 0   ;;  %s4983_s26 = smov 0  }
   0x7   :  { %s4985_s27 = smov 0   ;;  %s4987_s28 = smov 0  }
   0x8 LB: > { %s3662_s5 = sadd.s32 4294967295, %s4930_s28   ;;  %p56_p0 = scmp.ne.s32.totalorder %s4914_s24, %s4910_s23  ;;  %s4930_s28 = sphi %s4987_s28, %s22_s28   ;;  %s4926_s27 = sphi %s4985_s27, %s10392_s27   ;;  %s4922_s26 = sphi %s4983_s26, %s10391_s26   ;;  %s4918_s25 = sphi %s4981_s25, %s10390_s25   ;;  %s4914_s24 = sphi %s4979_s24, %s10389_s24   ;;  %s4910_s23 = sphi %s4977_s23, %s10388_s23  }
   0x9   : > { %p5007_p1 = scmp.eq.s32.totalorder %s3662_s5, 0  ;;  %p3663_p2 = scmp.ge.s32.totalorder %s4930_s28, 1 }
   0xa   : > { %p198_p3 = scmp.lt.s32.totalorder %s4930_s28, 3  ;;  %s209_s9 = sshll.u32 %s8779_s1, 4  ;;  %s210_s9 = int_to_ptr.hbm [resolvable:$true] %s209_s9 }
   0xb   : > { %p5015_p4 = por %p5007_p1, %p56_p0  ;;  %s4932_s11 = smov [#allocation9]  }
   0xc   : > { %p5022_p5 = pnand %p3663_p2, %p198_p3  ;;  %s211_s12 = sshll.u32 %s4932_s11, 4  ;;  %s212_s12 = int_to_ptr.vmem [resolvable:$true] %s211_s12 }
   0xd   : > { %s223_s15 = sshll.u32 %s8780_s2, 4  ;;  %s4933_s16 = smov 512   ;;  %s224_s15 = int_to_ptr.hbm [resolvable:$true] %s223_s15 }
   0xe   : > { %p3794_p6 = pneg %p5022_p5  ;;  %s4934_s17 = smov 32  }
   0xf   : > { %s4935_s18 = smov [#allocation11]   ;;  %s31_s20 = sadd.s32 1, %s4926_s27 }
  0x10   : > { %p3795_p7 = pnand %p3794_p6, %p5007_p1  ;;  %s225_s19 = sshll.u32 %s4935_s18, 4  ;;  %s226_s19 = int_to_ptr.vmem [resolvable:$true] %s225_s19 }
  0x11   : > { %s43_s21 = sadd.s32 1, %s4918_s25  ;;  %p32_p8 = scmp.ge.s32.totalorder %s31_s20, 2 }
  0x12   : > { %3797 = dma.hbm_to_vmem [thread:$0]  (!%p3795_p7), %s210_s9, 8192, %s212_s12, [#allocation10], %s4933_s16, %s4933_s16, %s4934_s17  }
  0x13   : > { %3800 = dma.hbm_to_vmem [thread:$0]  (!%p3795_p7), %s224_s15, 16384, %s226_s19, [#allocation10], %s4933_s16, %s4933_s16, %s4934_s17  }
  0x14   : > { %p50_p9 = scmp.ne.s32.totalorder %s4918_s25, %s4914_s24  ;;  %p51_p10 = scmp.eq.s32.totalorder %s4930_s28, 0 }
  0x15   : > { %p3807_p11 = scmp.lt.s32.totalorder %s4930_s28, 2  ;;  %s10394_s20 = smov (%p32_p8, %s31_s20), 0 }
  0x16   : > { %p5041_p12 = por %p51_p10, %p50_p9  ;;  %s248_s23 = sand.u32 1, %s4918_s25  }
  0x17   : > { %s38_s5 = ssub.s32 %s4926_s27, %s10394_s20  ;;  %s3667_s7 = sshll.u32 %s248_s23, 8 }
  0x18   : > { %p41_p13 = scmp.eq.s32.totalorder %s38_s5, 0  ;;  %s3751_s8 = sshll.u32 %s4926_s27, 8 }
  0x19   : > { %s261_s13 = scalar_lea.hbm %s8778_s0, %s3751_s8  ;;  %s252_s14 = scalar_lea.vmem [#allocation7], %s3667_s7 }
  0x1a   : > { %s5050_s9 = scalar_select %p41_p13, %s4918_s25, %s43_s21  }
  0x1b   : > { %s264_s15 = sshll.u32 %s252_s14, 4  ;;  %s262_s16 = sshll.u32 %s261_s13, 4  ;;  %s265_s15 = int_to_ptr.vmem [resolvable:$true] %s264_s15  ;;  %s263_s16 = int_to_ptr.hbm [resolvable:$true] %s262_s16 }
  0x1c   : > { %p3802_p0 = pnand %p3807_p11, %p5041_p12  ;;  %s249_s17 = scalar_lea.sflag [#allocation8], %s248_s23 }
  0x1d   : > { %s4936_s18 = smov 256   ;;  %s4937_s19 = smov 16  }
  0x1e   : > { %3804 = dma.hbm_to_vmem [thread:$0]  (!%p3802_p0), %s263_s16, 4096, %s265_s15, %s249_s17, %s4936_s18, %s4936_s18, %s4937_s19  }
  0x1f   : > { %276 = sbr.rel (%p5022_p5) target bundleno = 1970 (0x7b2), region = 44 }
  0x24   : > { %s278_s21 = sand.u32 1, %s4914_s24  }
  0x25   : > { %s3672_s5 = sshll.u32 %s278_s21, 8  ;;  %s279_s8 = scalar_lea.sflag [#allocation8], %s278_s21 }
  0x26   : > { %s5062_s7 = scalar_lea.vmem [#allocation7], %s3672_s5 }
  0x27   : > { %4901 = dma.done.wait (%p5015_p4), %s279_s8, 4096  }
  0x28   : > { %4903 = vsyncadd (%p5015_p4), %s279_s8, 4294963200 }
  0x29   : > { %4905 = dma.done.wait (%p5007_p1), [#allocation10], 24576  }
  0x2a   : > { %4907 = vsyncadd (%p5007_p1), [#allocation10], 4294942720  ;;  %p3675_p2 = scmp.ne.s32.totalorder %s4922_s26, 0 }
  0x2c   : > { %333 = sbr.rel (%p3675_p2) target bundleno = 58 (0x3a), region = 60 }
  0x31   : > { %v4938_v1 = vmov 0.0  }
  0x32   : > { %334 = vst [vmem:[#allocation2] sm:$0xff] %v4938_v1 }
  0x33   : > { %335 = vst [vmem:[#allocation2 + $0x8] sm:$0xff] %v4938_v1 }
  0x34   : > { %336 = vst [vmem:[#allocation3 + $0x8] sm:$0xff] %v4938_v1 }
  0x35   : > { %337 = vst [vmem:[#allocation3] sm:$0xff] %v4938_v1 }
  0x36   : > { %338 = vst [vmem:[#allocation4 + $0x8] sm:$0xff] %v4938_v1 }
  0x37   : > { %339 = vst [vmem:[#allocation4] sm:$0xff] %v4938_v1 }
  0x38   : > { %340 = vst [vmem:[#allocation5] sm:$0xff] %v4938_v1 }
  0x39   : > { %341 = vst [vmem:[#allocation5 + $0x8] sm:$0xff] %v4938_v1 }
  0x3a PF: > { %v428_v2 = vld [vmem:[#allocation9 + $0x1f0] sm:$0xff]  ;;  %v426_v3 = vld [vmem:[#allocation9 + $0x1e0] sm:$0xff]  ;;  %v5073_v4 = vld [vmem:[#allocation9 + $0x1e8] sm:$0xff]  ;;  %s3676_s29 = sshll.u32 %s4922_s26, 3  ;;  %p3745_p10 = scmp.ne.s32.totalorder %s4922_s26, 1 }
  0x3b   : > { %476 = vmatpush.msra.mxu2 %v428_v2  ;;  %430 = vmatpush.msra.mxu0 %v426_v3  ;;  %v424_v5 = vld [vmem:[#allocation9 + $0x1d0] sm:$0xff]  ;;  %v422_v6 = vld [vmem:[#allocation9 + $0x1c0] sm:$0xff]  ;;  %v5075_v7 = vld [vmem:[#allocation9 + $0x1c8] sm:$0xff]  ;;  %s5671_s30 = ssub.s32 12, %s3676_s29 }
  0x3c   : > { %453 = vmatpush.msra.mxu1 %v5073_v4  ;;  %v420_v8 = vld [vmem:[#allocation9 + $0x1b0] sm:$0xff]  ;;  %v418_v9 = vld [vmem:[#allocation9 + $0x1a0] sm:$0xff]  ;;  %v5078_v10 = vld [vmem:[#allocation9 + $0x1a8] sm:$0xff]  ;;  %p3677_p1 = scmp.gt.s32.totalorder %s5671_s30, 0  ;;  %p3686_p3 = scmp.gt.s32.totalorder %s5671_s30, 1 }
  0x3d   : > { %477 = vmatpush.msra.mxu2 %v424_v5  ;;  %431 = vmatpush.msra.mxu0 %v422_v6  ;;  %v5080_v11 = vld [vmem:[#allocation9 + $0x1f8] sm:$0xff]  ;;  %v416_v12 = vld [vmem:[#allocation9 + $0x190] sm:$0xff]  ;;  %v414_v13 = vld [vmem:[#allocation9 + $0x180] sm:$0xff]  ;;  %p3695_p4 = scmp.gt.s32.totalorder %s5671_s30, 2  ;;  %p3704_p5 = scmp.gt.s32.totalorder %s5671_s30, 3 }
  0x3e   : > { %454 = vmatpush.msra.mxu1 %v5075_v7  ;;  %499 = vmatpush.msra.mxu3 %v5080_v11  ;;  %v5084_v14 = vld [vmem:[#allocation9 + $0x1d8] sm:$0xff]  ;;  %v5086_v15 = vld [vmem:[#allocation9 + $0x188] sm:$0xff]  ;;  %v412_v16 = vld [vmem:[#allocation9 + $0x170] sm:$0xff]  ;;  %s3753_s10 = scalar_select %p3677_p1, 1, 0 }
  0x3f   : > { %478 = vmatpush.msra.mxu2 %v420_v8  ;;  %432 = vmatpush.msra.mxu0 %v418_v9  ;;  %v410_v17 = vld [vmem:[#allocation9 + $0x160] sm:$0xff]  ;;  %v5090_v18 = vld [vmem:[#allocation9 + $0x1b8] sm:$0xff]  ;;  %v5092_v19 = vld [vmem:[#allocation9 + $0x168] sm:$0xff]  ;;  %s5928_s11 = scalar_select %p3686_p3, 1, 0 }
  0x40   : > { %455 = vmatpush.msra.mxu1 %v5078_v10  ;;  %500 = vmatpush.msra.mxu3 %v5084_v14  ;;  %v5094_v20 = vld [vmem:[#allocation9 + $0x198] sm:$0xff]  ;;  %v408_v21 = vld [vmem:[#allocation9 + $0x150] sm:$0xff]  ;;  %v406_v22 = vld [vmem:[#allocation9 + $0x140] sm:$0xff]  ;;  %s3757_s12 = scalar_select %p3695_p4, 1, 0 }
  0x41   : > { %479 = vmatpush.msra.mxu2 %v416_v12  ;;  %433 = vmatpush.msra.mxu0 %v414_v13  ;;  %v5098_v23 = vld [vmem:[#allocation9 + $0x148] sm:$0xff]  ;;  %v5100_v24 = vld [vmem:[#allocation9 + $0x178] sm:$0xff]  ;;  %v404_v25 = vld [vmem:[#allocation9 + $0x130] sm:$0xff]  ;;  %s6871_s13 = scalar_select %p3704_p5, 1, 0 }
  0x42   : > { %456 = vmatpush.msra.mxu1 %v5086_v15  ;;  %501 = vmatpush.msra.mxu3 %v5090_v18  ;;  %v402_v26 = vld [vmem:[#allocation9 + $0x120] sm:$0xff]  ;;  %v5104_v27 = vld [vmem:[#allocation9 + $0x128] sm:$0xff]  ;;  %v5106_v28 = vld [vmem:[#allocation9 + $0x158] sm:$0xff]  ;;  %p3713_p6 = scmp.gt.s32.totalorder %s5671_s30, 4  ;;  %p3722_p7 = scmp.gt.s32.totalorder %s5671_s30, 5 }
  0x43   : > { %480 = vmatpush.msra.mxu2 %v412_v16  ;;  %434 = vmatpush.msra.mxu0 %v410_v17  ;;  %v400_v29 = vld [vmem:[#allocation9 + $0x110] sm:$0xff]  ;;  %v398_v30 = vld [vmem:[#allocation9 + $0x100] sm:$0xff]  ;;  %v5110_v31 = vld [vmem:[#allocation9 + $0x108] sm:$0xff]  ;;  %p3731_p8 = scmp.gt.s32.totalorder %s5671_s30, 6  ;;  %p3740_p9 = scmp.gt.s32.totalorder %s5671_s30, 7 }
  0x44   : > { %457 = vmatpush.msra.mxu1 %v5092_v19  ;;  %502 = vmatpush.msra.mxu3 %v5094_v20  ;;  %v5112_v32 = vld [vmem:[#allocation9 + $0x138] sm:$0xff]  ;;  %v396_v33 = vld [vmem:[#allocation9 + $0xf0] sm:$0xff]  ;;  %v394_v34 = vld [vmem:[#allocation9 + $0xe0] sm:$0xff]  ;;  %s3761_s14 = scalar_select %p3713_p6, 1, 0 }
  0x45   : > { %481 = vmatpush.msra.mxu2 %v408_v21  ;;  %435 = vmatpush.msra.mxu0 %v406_v22  ;;  %v5116_v35 = vld [vmem:[#allocation9 + $0xe8] sm:$0xff]  ;;  %v5118_v36 = vld [vmem:[#allocation9 + $0x118] sm:$0xff]  ;;  %v392_v37 = vld [vmem:[#allocation9 + $0xd0] sm:$0xff]  ;;  %s7800_s15 = scalar_select %p3722_p7, 1, 0 }
  0x46   : > { %458 = vmatpush.msra.mxu1 %v5098_v23  ;;  %503 = vmatpush.msra.mxu3 %v5100_v24  ;;  %v390_v38 = vld [vmem:[#allocation9 + $0xc0] sm:$0xff]  ;;  %v5122_v39 = vld [vmem:[#allocation9 + $0xc8] sm:$0xff]  ;;  %v5124_v40 = vld [vmem:[#allocation9 + $0xf8] sm:$0xff]  ;;  %s3765_s16 = scalar_select %p3731_p8, 1, 0 }
  0x47   : > { %482 = vmatpush.msra.mxu2 %v404_v25  ;;  %436 = vmatpush.msra.mxu0 %v402_v26  ;;  %v388_v41 = vld [vmem:[#allocation9 + $0xb0] sm:$0xff]  ;;  %v386_v42 = vld [vmem:[#allocation9 + $0xa0] sm:$0xff]  ;;  %v5128_v43 = vld [vmem:[#allocation9 + $0xa8] sm:$0xff]  ;;  %s3767_s17 = scalar_select %p3740_p9, 1, 0 }
  0x48   : > { %459 = vmatpush.msra.mxu1 %v5104_v27  ;;  %504 = vmatpush.msra.mxu3 %v5106_v28  ;;  %v5130_v44 = vld [vmem:[#allocation9 + $0xd8] sm:$0xff]  ;;  %v384_v45 = vld [vmem:[#allocation9 + $0x90] sm:$0xff]  ;;  %v5134_v46 = vld [vmem:[#allocation9 + $0x80] sm:$0xff] }
  0x49   : > { %483 = vmatpush.msra.mxu2 %v400_v29  ;;  %437 = vmatpush.msra.mxu0 %v398_v30  ;;  %9320 = vst [vmem:[#allocation14_spill] sm:$0xff] %v5134_v46  ;;  %v5136_v47 = vld [vmem:[#allocation9 + $0x88] sm:$0xff]  ;;  %v5138_v48 = vld [vmem:[#allocation9 + $0xb8] sm:$0xff]  ;;  %v5141_v49 = vld [vmem:[#allocation9 + $0x70] sm:$0xff] }
  0x4a   : > { %460 = vmatpush.msra.mxu1 %v5110_v31  ;;  %505 = vmatpush.msra.mxu3 %v5112_v32  ;;  %9321 = vst [vmem:[#allocation15_spill] sm:$0xff] %v5141_v49  ;;  %v5144_v50 = vld [vmem:[#allocation9 + $0x60] sm:$0xff]  ;;  %v5147_v51 = vld [vmem:[#allocation9 + $0x68] sm:$0xff]  ;;  %v5149_v52 = vld [vmem:[#allocation9 + $0x98] sm:$0xff] }
  0x4b   : > { %484 = vmatpush.msra.mxu2 %v396_v33  ;;  %438 = vmatpush.msra.mxu0 %v394_v34  ;;  %9322 = vst [vmem:[#allocation16_spill] sm:$0xff] %v5144_v50  ;;  %v5152_v53 = vld [vmem:[#allocation9 + $0x50] sm:$0xff]  ;;  %v5155_v54 = vld [vmem:[#allocation9 + $0x40] sm:$0xff]  ;;  %v5159_v55 = vld [vmem:[#allocation9 + $0x48] sm:$0xff] }
  0x4c   : > { %461 = vmatpush.msra.mxu1 %v5116_v35  ;;  %506 = vmatpush.msra.mxu3 %v5118_v36  ;;  %9323 = vst [vmem:[#allocation17_spill] sm:$0xff] %v5152_v53  ;;  %v5161_v56 = vld [vmem:[#allocation9 + $0x78] sm:$0xff]  ;;  %v5164_v57 = vld [vmem:[#allocation9 + $0x30] sm:$0xff]  ;;  %v5167_v58 = vld [vmem:[#allocation9 + $0x20] sm:$0xff] }
  0x4d   : > { %485 = vmatpush.msra.mxu2 %v392_v37  ;;  %439 = vmatpush.msra.mxu0 %v390_v38  ;;  %9324 = vst [vmem:[#allocation18_spill] sm:$0xff] %v5155_v54  ;;  %v5171_v59 = vld [vmem:[#allocation9 + $0x28] sm:$0xff]  ;;  %v5173_v60 = vld [vmem:[#allocation9 + $0x58] sm:$0xff]  ;;  %v5176_v61 = vld [vmem:[#allocation9 + $0x10] sm:$0xff] }
  0x4e   : > { %462 = vmatpush.msra.mxu1 %v5122_v39  ;;  %507 = vmatpush.msra.mxu3 %v5124_v40  ;;  %9325 = vst [vmem:[#allocation19_spill] sm:$0xff] %v5164_v57  ;;  %v5179_v62 = vld [vmem:[#allocation9] sm:$0xff]  ;;  %v5185_v0 = vld [vmem:[#allocation9 + $0x8] sm:$0xff]  ;;  %v5191_v1 = vld [vmem:[#allocation9 + $0x38] sm:$0xff] }
  0x4f   : > { %486 = vmatpush.msra.mxu2 %v388_v41  ;;  %440 = vmatpush.msra.mxu0 %v386_v42  ;;  %9326 = vst [vmem:[#allocation20_spill] sm:$0xff] %v5167_v58  ;;  %v5183_v63 = vld [vmem:[#allocation2] sm:$0xff]  ;;  %v5205_v6 = vld [vmem:[#allocation11 + $0x3e8] sm:$0xff] }
  0x50   : > { %463 = vmatpush.msra.mxu1 %v5128_v43  ;;  %508 = vmatpush.msra.mxu3 %v5130_v44  ;;  %9327 = vst [vmem:[#allocation21_spill] sm:$0xff] %v5176_v61  ;;  %v5193_v2 = vld [vmem:[#allocation11 + $0x3e0] sm:$0xff]  ;;  %v5199_v3 = vld [vmem:[#allocation9 + $0x18] sm:$0xff]  ;;  %v5213_v12 = vld [vmem:[#allocation11 + $0x1e8] sm:$0xff] }
  0x51   : > { %487 = vmatpush.msra.mxu2 %v384_v45  ;;  %441 = vmatpush.msra.mxu0 %v5134_v46  ;;  %9328 = vst [vmem:[#allocation22_spill] sm:$0xff] %v5179_v62  ;;  %v5201_v5 = vld [vmem:[#allocation11 + $0x3c0] sm:$0xff]  ;;  %v5218_v16 = vld [vmem:[#allocation11 + $0x3c8] sm:$0xff] }
  0x52   : > { %464 = vmatpush.msra.mxu1 %v5136_v47  ;;  %509 = vmatpush.msra.mxu3 %v5138_v48  ;;  %9329 = vst [vmem:[#allocation23_spill] sm:$0xff] %v5183_v63  ;;  %v5207_v8 = vld [vmem:[#allocation11 + $0x3a0] sm:$0xff]  ;;  %v5225_v21 = vld [vmem:[#allocation11 + $0x3a8] sm:$0xff] }
  0x53   : > { %488 = vmatpush.msra.mxu2 %v5141_v49  ;;  %442 = vmatpush.msra.mxu0 %v5144_v50  ;;  %v5211_v9 = vld [vmem:[#allocation11 + $0x1e0] sm:$0xff]  ;;  %9331 = vst [vmem:[#allocation25_spill] sm:$0xff] %v5213_v12  ;;  %v5233_v25 = vld [vmem:[#allocation11 + $0x1c8] sm:$0xff] }
  0x54   : > { %465 = vmatpush.msra.mxu1 %v5147_v51  ;;  %510 = vmatpush.msra.mxu3 %v5149_v52  ;;  %9330 = vst [vmem:[#allocation24_spill] sm:$0xff] %v5211_v9  ;;  %v5216_v13 = vld [vmem:[#allocation2 + $0x8] sm:$0xff] }
  0x55   : > { %489 = vmatpush.msra.mxu2 %v5152_v53  ;;  %443 = vmatpush.msra.mxu0 %v5155_v54  ;;  %9332 = vst [vmem:[#allocation26_spill] sm:$0xff] %v5216_v13  ;;  %v5221_v17 = vld [vmem:[#allocation11 + $0x1c0] sm:$0xff]  ;;  %v5239_v29 = vld [vmem:[#allocation11 + $0x388] sm:$0xff] }
  0x56   : > { %466 = vmatpush.msra.mxu1 %v5159_v55  ;;  %511 = vmatpush.msra.mxu3 %v5161_v56  ;;  %9333 = vst [vmem:[#allocation27_spill] sm:$0xff] %v5221_v17  ;;  %v5227_v22 = vld [vmem:[#allocation11 + $0x380] sm:$0xff]  ;;  %v5245_v33 = vld [vmem:[#allocation11 + $0x1a8] sm:$0xff] }
  0x57   : > { %490 = vmatpush.msra.mxu2 %v5164_v57  ;;  %444 = vmatpush.msra.mxu0 %v5167_v58  ;;  %9334 = vst [vmem:[#allocation28_spill] sm:$0xff] %v5233_v25  ;;  %v5235_v26 = vld [vmem:[#allocation11 + $0x1a0] sm:$0xff]  ;;  %v5247_v34 = vld [vmem:[#allocation11 + $0x368] sm:$0xff] }
  0x58   : > { %467 = vmatpush.msra.mxu1 %v5171_v59  ;;  %512 = vmatpush.msra.mxu3 %v5173_v60  ;;  %9335 = vst [vmem:[#allocation29_spill] sm:$0xff] %v5235_v26  ;;  %v5241_v30 = vld [vmem:[#allocation11 + $0x360] sm:$0xff]  ;;  %v5257_v41 = vld [vmem:[#allocation11 + $0x188] sm:$0xff] }
  0x59   : > { %491 = vmatpush.msra.mxu2 %v5176_v61  ;;  %445 = vmatpush.msra.mxu0 %v5179_v62  ;;  %9336 = vst [vmem:[#allocation30_spill] sm:$0xff] %v5245_v33  ;;  %v5249_v37 = vld [vmem:[#allocation11 + $0x340] sm:$0xff]  ;;  %v5260_v42 = vld [vmem:[#allocation11 + $0x348] sm:$0xff] }
  0x5a   : > { %492 = vmatmul.f32.vlgmr.msra.gmra.mxu2 %v5183_v63  ;;  %468 = vmatpush.msra.mxu1 %v5185_v0  ;;  %v5255_v38 = vld [vmem:[#allocation11 + $0x180] sm:$0xff]  ;;  %9338 = vst [vmem:[#allocation32_spill] sm:$0xff] %v5257_v41  ;;  %v5283_v61 = vld [vmem:[#allocation11 + $0x308] sm:$0xff] }
  0x5b   : > { %446 = vmatmul.f32.vlgmr.msra.gmra.mxu0 %v5183_v63  ;;  %469 = vmatmul.f32.vlgmr.msra.gmra.mxu1 %v5183_v63  ;;  %9337 = vst [vmem:[#allocation31_spill] sm:$0xff] %v5255_v38  ;;  %v5262_v45 = vld [vmem:[#allocation11 + $0x320] sm:$0xff]  ;;  %v5295_v57 = vld [vmem:[#allocation11 + $0x2e8] sm:$0xff] }
  0x5c   : > { %513 = vmatpush.msra.mxu3 %v5191_v1  ;;  %721 = vmatpush.msrb.mxu1 %v5193_v2  ;;  %v5285_v62 = vld [vmem:[#allocation11 + $0x2e0] sm:$0xff]  ;;  %v5307_v53 = vld [vmem:[#allocation11 + $0x2c8] sm:$0xff] }
  0x5d   : > { %698 = vmatpush.msrb.mxu0 %v5211_v9  ;;  %744 = vmatpush.msrb.mxu2 %v5213_v12  ;;  %v5273_v12 = vld [vmem:[#allocation11 + $0x300] sm:$0xff]  ;;  %v5281_v9 = vld [vmem:[#allocation11 + $0x148] sm:$0xff] }
  0x5e   : > { %514 = vmatpush.msra.mxu3 %v5199_v3  ;;  %722 = vmatpush.msrb.mxu1 %v5201_v5  ;;  %9342 = vst [vmem:[#allocation36_spill] sm:$0xff] %v5281_v9  ;;  %v5297_v58 = vld [vmem:[#allocation11 + $0x2c0] sm:$0xff]  ;;  %v5319_v49 = vld [vmem:[#allocation11 + $0x2a8] sm:$0xff] }
  0x5f   : > { %515 = vmatmul.f32.vlgmr.msra.gmra.mxu3 %v5183_v63  ;;  %699 = vmatpush.msrb.mxu0 %v5221_v17  ;;  %v5271_v17 = vld [vmem:[#allocation11 + $0x328] sm:$0xff]  ;;  %v5309_v54 = vld [vmem:[#allocation11 + $0x2a0] sm:$0xff]  ;;  %9350 = vst [vmem:[#allocation44_spill] sm:$0xff] %v5319_v49 }
  0x60   : > { %767 = vmatpush.msrb.mxu3 %v5205_v6  ;;  %723 = vmatpush.msrb.mxu1 %v5207_v8  ;;  %9347 = vst [vmem:[#allocation41_spill] sm:$0xff] %v5309_v54  ;;  %v5321_v50 = vld [vmem:[#allocation11 + $0x280] sm:$0xff]  ;;  %v5331_v46 = vld [vmem:[#allocation11 + $0x288] sm:$0xff] }
  0x61   : > { %745 = vmatpush.msrb.mxu2 %v5233_v25  ;;  %700 = vmatpush.msrb.mxu0 %v5235_v26  ;;  %v5267_v26 = vld [vmem:[#allocation11 + $0x160] sm:$0xff]  ;;  %v5269_v25 = vld [vmem:[#allocation11 + $0x168] sm:$0xff]  ;;  %9351 = vst [vmem:[#allocation45_spill] sm:$0xff] %v5321_v50 }
  0x62   : > { %495 = vmatmul.f32.gmra.mxu2 %v5216_v13  ;;  %768 = vmatpush.msrb.mxu3 %v5218_v16  ;;  %9339 = vst [vmem:[#allocation33_spill] sm:$0xff] %v5267_v26  ;;  %v5343_v63 = vld [vmem:[#allocation11 + $0x268] sm:$0xff] }
  0x63   : > { %449 = vmatmul.f32.gmra.mxu0 %v5216_v13  ;;  %472 = vmatmul.f32.gmra.mxu1 %v5216_v13  ;;  %9340 = vst [vmem:[#allocation34_spill] sm:$0xff] %v5269_v25 }
  0x64   : > { %769 = vmatpush.msrb.mxu3 %v5225_v21  ;;  %724 = vmatpush.msrb.mxu1 %v5227_v22  ;;  %9354 = vst [vmem:[#allocation48_spill] sm:$0xff] %v5331_v46 }
  0x65   : > { %746 = vmatpush.msrb.mxu2 %v5245_v33  ;;  %701 = vmatpush.msrb.mxu0 %v5255_v38  ;;  %v5279_v33 = vld [vmem:[#allocation11 + $0x140] sm:$0xff]  ;;  %v5293_v38 = vld [vmem:[#allocation11 + $0x128] sm:$0xff]  ;;  %9358 = vst [vmem:[#allocation52_spill] sm:$0xff] %v5343_v63 }
  0x66   : > { %770 = vmatpush.msrb.mxu3 %v5239_v29  ;;  %725 = vmatpush.msrb.mxu1 %v5241_v30  ;;  %9341 = vst [vmem:[#allocation35_spill] sm:$0xff] %v5279_v33 }
  0x67   : > { %518 = vmatmul.f32.gmra.mxu3 %v5216_v13  ;;  %747 = vmatpush.msrb.mxu2 %v5257_v41  ;;  %v5291_v41 = vld [vmem:[#allocation11 + $0x120] sm:$0xff]  ;;  %9344 = vst [vmem:[#allocation38_spill] sm:$0xff] %v5293_v38 }
  0x68   : > { %771 = vmatpush.msrb.mxu3 %v5247_v34  ;;  %726 = vmatpush.msrb.mxu1 %v5249_v37  ;;  %9343 = vst [vmem:[#allocation37_spill] sm:$0xff] %v5291_v41  ;;  %v5333_v13 = vld [vmem:[#allocation11 + $0x260] sm:$0xff] }
  0x69   : > { %702 = vmatpush.msrb.mxu0 %v5267_v26  ;;  %748 = vmatpush.msrb.mxu2 %v5269_v25  ;;  %v5303_v25 = vld [vmem:[#allocation11 + $0x100] sm:$0xff]  ;;  %v5305_v26 = vld [vmem:[#allocation11 + $0x108] sm:$0xff]  ;;  %9355 = vst [vmem:[#allocation49_spill] sm:$0xff] %v5333_v13 }
  0x6a   : > { %772 = vmatpush.msrb.mxu3 %v5260_v42  ;;  %727 = vmatpush.msrb.mxu1 %v5262_v45  ;;  %9345 = vst [vmem:[#allocation39_spill] sm:$0xff] %v5303_v25 }
  0x6b   : > { %703 = vmatpush.msrb.mxu0 %v5279_v33  ;;  %749 = vmatpush.msrb.mxu2 %v5281_v9  ;;  %9346 = vst [vmem:[#allocation40_spill] sm:$0xff] %v5305_v26  ;;  %v5315_v9 = vld [vmem:[#allocation11 + $0xe0] sm:$0xff]  ;;  %v5317_v33 = vld [vmem:[#allocation11 + $0xe8] sm:$0xff] }
  0x6c   : > { %773 = vmatpush.msrb.mxu3 %v5271_v17  ;;  %728 = vmatpush.msrb.mxu1 %v5273_v12  ;;  %9348 = vst [vmem:[#allocation42_spill] sm:$0xff] %v5315_v9 }
  0x6d   : > { %704 = vmatpush.msrb.mxu0 %v5291_v41  ;;  %750 = vmatpush.msrb.mxu2 %v5293_v38  ;;  %9349 = vst [vmem:[#allocation43_spill] sm:$0xff] %v5317_v33  ;;  %v5327_v38 = vld [vmem:[#allocation11 + $0xc0] sm:$0xff]  ;;  %v5329_v41 = vld [vmem:[#allocation11 + $0xc8] sm:$0xff] }
  0x6e   : > { %774 = vmatpush.msrb.mxu3 %v5283_v61  ;;  %729 = vmatpush.msrb.mxu1 %v5285_v62  ;;  %9352 = vst [vmem:[#allocation46_spill] sm:$0xff] %v5327_v38 }
  0x6f   : > { %705 = vmatpush.msrb.mxu0 %v5303_v25  ;;  %751 = vmatpush.msrb.mxu2 %v5305_v26  ;;  %9353 = vst [vmem:[#allocation47_spill] sm:$0xff] %v5329_v41  ;;  %v5339_v26 = vld [vmem:[#allocation11 + $0xa0] sm:$0xff]  ;;  %v5341_v25 = vld [vmem:[#allocation11 + $0xa8] sm:$0xff] }
  0x70   : > { %775 = vmatpush.msrb.mxu3 %v5295_v57  ;;  %730 = vmatpush.msrb.mxu1 %v5297_v58  ;;  %9356 = vst [vmem:[#allocation50_spill] sm:$0xff] %v5339_v26 }
  0x71   : > { %706 = vmatpush.msrb.mxu0 %v5315_v9  ;;  %752 = vmatpush.msrb.mxu2 %v5317_v33  ;;  %9357 = vst [vmem:[#allocation51_spill] sm:$0xff] %v5341_v25  ;;  %v5351_v33 = vld [vmem:[#allocation11 + $0x80] sm:$0xff]  ;;  %v5353_v9 = vld [vmem:[#allocation11 + $0x88] sm:$0xff] }
  0x72   : > { %776 = vmatpush.msrb.mxu3 %v5307_v53  ;;  %731 = vmatpush.msrb.mxu1 %v5309_v54  ;;  %v5345_v54 = vld [vmem:[#allocation11 + $0x240] sm:$0xff]  ;;  %9360 = vst [vmem:[#allocation54_spill] sm:$0xff] %v5351_v33 }
  0x73   : > { %9359 = vst [vmem:[#allocation53_spill] sm:$0xff] %v5345_v54  ;;  %707 = vmatpush.msrb.mxu0 %v5327_v38  ;;  %753 = vmatpush.msrb.mxu2 %v5329_v41  ;;  %v5363_v41 = vld [vmem:[#allocation11 + $0x60] sm:$0xff]  ;;  %v5365_v38 = vld [vmem:[#allocation11 + $0x68] sm:$0xff] }
  0x74   : > { %777 = vmatpush.msrb.mxu3 %v5319_v49  ;;  %732 = vmatpush.msrb.mxu1 %v5321_v50  ;;  %9361 = vst [vmem:[#allocation55_spill] sm:$0xff] %v5353_v9  ;;  %v5355_v50 = vld [vmem:[#allocation11 + $0x248] sm:$0xff]  ;;  %v5357_v49 = vld [vmem:[#allocation11 + $0x220] sm:$0xff] }
  0x75   : > { %9362 = vst [vmem:[#allocation56_spill] sm:$0xff] %v5355_v50  ;;  %708 = vmatpush.msrb.mxu0 %v5339_v26  ;;  %754 = vmatpush.msrb.mxu2 %v5341_v25  ;;  %v5375_v25 = vld [vmem:[#allocation11 + $0x3f0] sm:$0xff]  ;;  %v5377_v26 = vld [vmem:[#allocation11 + $0x40] sm:$0xff] }
  0x76   : > { %778 = vmatpush.msrb.mxu3 %v5331_v46  ;;  %733 = vmatpush.msrb.mxu1 %v5333_v13  ;;  %9363 = vst [vmem:[#allocation57_spill] sm:$0xff] %v5357_v49  ;;  %v5367_v13 = vld [vmem:[#allocation11 + $0x228] sm:$0xff]  ;;  %v5369_v46 = vld [vmem:[#allocation11 + $0x200] sm:$0xff] }
  0x77   : > { %9364 = vst [vmem:[#allocation58_spill] sm:$0xff] %v5363_v41  ;;  %709 = vmatpush.msrb.mxu0 %v5351_v33  ;;  %755 = vmatpush.msrb.mxu2 %v5353_v9  ;;  %v5387_v9 = vld [vmem:[#allocation11 + $0x3f8] sm:$0xff]  ;;  %v5389_v33 = vld [vmem:[#allocation11 + $0x3d0] sm:$0xff] }
  0x78   : > { %779 = vmatpush.msrb.mxu3 %v5343_v63  ;;  %734 = vmatpush.msrb.mxu1 %v5345_v54  ;;  %9365 = vst [vmem:[#allocation59_spill] sm:$0xff] %v5365_v38  ;;  %v5379_v54 = vld [vmem:[#allocation11 + $0x208] sm:$0xff] }
  0x79   : > { %9366 = vst [vmem:[#allocation60_spill] sm:$0xff] %v5367_v13  ;;  %710 = vmatpush.msrb.mxu0 %v5363_v41  ;;  %756 = vmatpush.msrb.mxu2 %v5365_v38  ;;  %v5383_v63 = vld [vmem:[#allocation11 + $0x48] sm:$0xff]  ;;  %v5398_v38 = vld [vmem:[#allocation11 + $0x3d8] sm:$0xff]  ;;  %v5400_v41 = vld [vmem:[#allocation11 + $0x3b0] sm:$0xff] }
  0x7a   : > { %9367 = vst [vmem:[#allocation61_spill] sm:$0xff] %v5369_v46  ;;  %780 = vmatpush.msrb.mxu3 %v5355_v50  ;;  %735 = vmatpush.msrb.mxu1 %v5357_v49  ;;  %v5393_v49 = vld [vmem:[#allocation11 + $0x20] sm:$0xff]  ;;  %v5395_v50 = vld [vmem:[#allocation11 + $0x28] sm:$0xff] }
  0x7b   : > { %9368 = vst [vmem:[#allocation62_spill] sm:$0xff] %v5375_v25  ;;  %711 = vmatpush.msrb.mxu0 %v5377_v26  ;;  %757 = vmatpush.msrb.mxu2 %v5383_v63 }
  0x7c   : > { %9369 = vst [vmem:[#allocation63_spill] sm:$0xff] %v5377_v26  ;;  %781 = vmatpush.msrb.mxu3 %v5367_v13  ;;  %736 = vmatpush.msrb.mxu1 %v5369_v46  ;;  %v5405_v46 = vld [vmem:[#allocation11] sm:$0xff]  ;;  %v5409_v26 = vld [vmem:[#allocation11 + $0x3b8] sm:$0xff]  ;;  %v5411_v13 = vld [vmem:[#allocation11 + $0x390] sm:$0xff] }
  0x7d   : > { %9370 = vst [vmem:[#allocation64_spill] sm:$0xff] %v5379_v54  ;;  %712 = vmatpush.msrb.mxu0 %v5393_v49  ;;  %758 = vmatpush.msrb.mxu2 %v5395_v50 }
  0x7e   : > { %9371 = vst [vmem:[#allocation65_spill] sm:$0xff] %v5383_v63  ;;  %813 = vmatpush.msra.mxu1 %v5375_v25  ;;  %782 = vmatpush.msrb.mxu3 %v5379_v54  ;;  %v5407_v25 = vld [vmem:[#allocation4 + $0x8] sm:$0xff]  ;;  %v5445_v54 = vld [vmem:[#allocation11 + $0x330] sm:$0xff] }
  0x7f   : > { %9372 = vst [vmem:[#allocation66_spill] sm:$0xff] %v5387_v9  ;;  %v5417_v63 = vld [vmem:[#allocation11 + $0x8] sm:$0xff]  ;;  %713 = vmatpush.msrb.mxu0 %v5405_v46  ;;  %737 = vmatmul.f32.vlgmr.msrb.gmra.mxu1 %v5407_v25 }
  0x80   : > { %9373 = vst [vmem:[#allocation67_spill] sm:$0xff] %v5389_v33  ;;  %859 = vmatpush.msra.mxu3 %v5387_v9  ;;  %814 = vmatpush.msra.mxu1 %v5389_v33  ;;  %v5419_v9 = vld [vmem:[#allocation11 + $0x398] sm:$0xff]  ;;  %v5421_v33 = vld [vmem:[#allocation11 + $0x370] sm:$0xff] }
  0x81   : > { %9374 = vst [vmem:[#allocation68_spill] sm:$0xff] %v5393_v49  ;;  %v5427_v49 = vld [vmem:[#allocation11 + $0x1f0] sm:$0xff]  ;;  %759 = vmatpush.msrb.mxu2 %v5417_v63  ;;  %783 = vmatmul.f32.vlgmr.msrb.gmra.mxu3 %v5407_v25 }
  0x82   : > { %9375 = vst [vmem:[#allocation69_spill] sm:$0xff] %v5395_v50  ;;  %860 = vmatpush.msra.mxu3 %v5398_v38  ;;  %815 = vmatpush.msra.mxu1 %v5400_v41  ;;  %v5429_v50 = vld [vmem:[#allocation11 + $0x1f8] sm:$0xff] }
  0x83   : > { %9376 = vst [vmem:[#allocation70_spill] sm:$0xff] %v5398_v38  ;;  %v5431_v38 = vld [vmem:[#allocation11 + $0x378] sm:$0xff]  ;;  %790 = vmatpush.msra.mxu0 %v5427_v49  ;;  %836 = vmatpush.msra.mxu2 %v5429_v50 }
  0x84   : > { %9377 = vst [vmem:[#allocation71_spill] sm:$0xff] %v5400_v41  ;;  %861 = vmatpush.msra.mxu3 %v5409_v26  ;;  %816 = vmatpush.msra.mxu1 %v5411_v13  ;;  %v5433_v41 = vld [vmem:[#allocation11 + $0x350] sm:$0xff] }
  0x85   : > { %9378 = vst [vmem:[#allocation72_spill] sm:$0xff] %v5405_v46  ;;  %v5439_v46 = vld [vmem:[#allocation11 + $0x1d0] sm:$0xff] }
  0x86   : > { %9379 = vst [vmem:[#allocation73_spill] sm:$0xff] %v5409_v26  ;;  %862 = vmatpush.msra.mxu3 %v5419_v9  ;;  %817 = vmatpush.msra.mxu1 %v5421_v33  ;;  %v5441_v26 = vld [vmem:[#allocation11 + $0x1d8] sm:$0xff] }
  0x87   : > { %9380 = vst [vmem:[#allocation74_spill] sm:$0xff] %v5411_v13  ;;  %v5443_v13 = vld [vmem:[#allocation11 + $0x358] sm:$0xff]  ;;  %791 = vmatpush.msra.mxu0 %v5439_v46  ;;  %837 = vmatpush.msra.mxu2 %v5441_v26 }
  0x88   : > { %9381 = vst [vmem:[#allocation75_spill] sm:$0xff] %v5417_v63  ;;  %863 = vmatpush.msra.mxu3 %v5431_v38  ;;  %818 = vmatpush.msra.mxu1 %v5433_v41  ;;  %v5451_v63 = vld [vmem:[#allocation11 + $0x338] sm:$0xff] }
  0x89   : > { %9382 = vst [vmem:[#allocation76_spill] sm:$0xff] %v5419_v9  ;;  %v5453_v9 = vld [vmem:[#allocation11 + $0x310] sm:$0xff] }
  0x8a   : > { %9383 = vst [vmem:[#allocation77_spill] sm:$0xff] %v5421_v33  ;;  %864 = vmatpush.msra.mxu3 %v5443_v13  ;;  %819 = vmatpush.msra.mxu1 %v5445_v54  ;;  %v5459_v33 = vld [vmem:[#allocation11 + $0x318] sm:$0xff] }
  0x8b   : > { %9384 = vst [vmem:[#allocation78_spill] sm:$0xff] %v5427_v49  ;;  %v5461_v49 = vld [vmem:[#allocation11 + $0x2f0] sm:$0xff] }
  0x8c   : > { %9385 = vst [vmem:[#allocation79_spill] sm:$0xff] %v5429_v50  ;;  %865 = vmatpush.msra.mxu3 %v5451_v63  ;;  %820 = vmatpush.msra.mxu1 %v5453_v9  ;;  %v5465_v50 = vld [vmem:[#allocation11 + $0x2f8] sm:$0xff] }
  0x8d   : > { %9386 = vst [vmem:[#allocation80_spill] sm:$0xff] %v5433_v41  ;;  %v5467_v41 = vld [vmem:[#allocation11 + $0x2d0] sm:$0xff] }
  0x8e   : > { %9387 = vst [vmem:[#allocation81_spill] sm:$0xff] %v5439_v46  ;;  %866 = vmatpush.msra.mxu3 %v5459_v33  ;;  %821 = vmatpush.msra.mxu1 %v5461_v49  ;;  %v5473_v46 = vld [vmem:[#allocation11 + $0x2b0] sm:$0xff] }
  0x8f   : > { %9388 = vst [vmem:[#allocation82_spill] sm:$0xff] %v5441_v26  ;;  %v5471_v26 = vld [vmem:[#allocation11 + $0x2d8] sm:$0xff] }
  0x90   : > { %9389 = vst [vmem:[#allocation83_spill] sm:$0xff] %v5445_v54  ;;  %867 = vmatpush.msra.mxu3 %v5465_v50  ;;  %822 = vmatpush.msra.mxu1 %v5467_v41  ;;  %v5477_v54 = vld [vmem:[#allocation11 + $0x2b8] sm:$0xff] }
  0x91   : > { %9390 = vst [vmem:[#allocation84_spill] sm:$0xff] %v5451_v63  ;;  %v5479_v63 = vld [vmem:[#allocation11 + $0x290] sm:$0xff] }
  0x92   : > { %9391 = vst [vmem:[#allocation85_spill] sm:$0xff] %v5453_v9  ;;  %868 = vmatpush.msra.mxu3 %v5471_v26  ;;  %823 = vmatpush.msra.mxu1 %v5473_v46  ;;  %v5483_v9 = vld [vmem:[#allocation11 + $0x298] sm:$0xff] }
  0x93   : > { %9392 = vst [vmem:[#allocation86_spill] sm:$0xff] %v5459_v33  ;;  %v5485_v33 = vld [vmem:[#allocation11 + $0x270] sm:$0xff] }
  0x94   : > { %9393 = vst [vmem:[#allocation87_spill] sm:$0xff] %v5461_v49  ;;  %869 = vmatpush.msra.mxu3 %v5477_v54  ;;  %824 = vmatpush.msra.mxu1 %v5479_v63  ;;  %v5489_v49 = vld [vmem:[#allocation11 + $0x278] sm:$0xff] }
  0x95   : > { %9394 = vst [vmem:[#allocation88_spill] sm:$0xff] %v5465_v50  ;;  %v5491_v50 = vld [vmem:[#allocation11 + $0x250] sm:$0xff] }
  0x96   : > { %9395 = vst [vmem:[#allocation89_spill] sm:$0xff] %v5467_v41  ;;  %870 = vmatpush.msra.mxu3 %v5483_v9  ;;  %825 = vmatpush.msra.mxu1 %v5485_v33  ;;  %v5495_v41 = vld [vmem:[#allocation11 + $0x258] sm:$0xff] }
  0x97   : > { %9396 = vst [vmem:[#allocation90_spill] sm:$0xff] %v5471_v26  ;;  %v5497_v26 = vld [vmem:[#allocation11 + $0x230] sm:$0xff] }
  0x98   : > { %9397 = vst [vmem:[#allocation91_spill] sm:$0xff] %v5473_v46  ;;  %871 = vmatpush.msra.mxu3 %v5489_v49  ;;  %826 = vmatpush.msra.mxu1 %v5491_v50  ;;  %v5501_v46 = vld [vmem:[#allocation11 + $0x238] sm:$0xff] }
  0x99   : > { %9398 = vst [vmem:[#allocation92_spill] sm:$0xff] %v5477_v54  ;;  %v5503_v54 = vld [vmem:[#allocation11 + $0x210] sm:$0xff] }
  0x9a   : > { %9399 = vst [vmem:[#allocation93_spill] sm:$0xff] %v5479_v63  ;;  %872 = vmatpush.msra.mxu3 %v5495_v41  ;;  %827 = vmatpush.msra.mxu1 %v5497_v26  ;;  %v5507_v63 = vld [vmem:[#allocation11 + $0x218] sm:$0xff] }
  0x9c   : > { %873 = vmatpush.msra.mxu3 %v5501_v46  ;;  %828 = vmatpush.msra.mxu1 %v5503_v54 }
  0x9e   : > { %960 = vmatpush.msrb.mxu1 %v5073_v4  ;;  %874 = vmatpush.msra.mxu3 %v5507_v63  ;;  %v5541_v4 = vld [vmem:[#allocation11 + $0x1b0] sm:$0xff] }
  0x9f   : > { %792 = vmatpush.msra.mxu0 %v5541_v4 }
  0xa0   : > { %1006 = vmatpush.msrb.mxu3 %v5080_v11  ;;  %961 = vmatpush.msrb.mxu1 %v5075_v7  ;;  %v5543_v7 = vld [vmem:[#allocation11 + $0x1b8] sm:$0xff] }
  0xa1   : > { %838 = vmatpush.msra.mxu2 %v5543_v7  ;;  %v5549_v11 = vld [vmem:[#allocation11 + $0x198] sm:$0xff] }
  0xa2   : > { %1007 = vmatpush.msrb.mxu3 %v5084_v14  ;;  %962 = vmatpush.msrb.mxu1 %v5078_v10  ;;  %v5547_v10 = vld [vmem:[#allocation11 + $0x190] sm:$0xff]  ;;  %v5555_v14 = vld [vmem:[#allocation4] sm:$0xff] }
  0xa3   : > { %793 = vmatpush.msra.mxu0 %v5547_v10  ;;  %839 = vmatpush.msra.mxu2 %v5549_v11 }
  0xa4   : > { %1008 = vmatpush.msrb.mxu3 %v5090_v18  ;;  %963 = vmatpush.msrb.mxu1 %v5086_v15  ;;  %v5559_v15 = vld [vmem:[#allocation11 + $0x170] sm:$0xff]  ;;  %v5561_v18 = vld [vmem:[#allocation11 + $0x178] sm:$0xff] }
  0xa5   : > { %740 = vmatmul.f32.gmra.mxu1 %v5555_v14  ;;  %786 = vmatmul.f32.gmra.mxu3 %v5555_v14 }
  0xa6   : > { %1009 = vmatpush.msrb.mxu3 %v5094_v20  ;;  %964 = vmatpush.msrb.mxu1 %v5092_v19  ;;  %v5565_v19 = vld [vmem:[#allocation11 + $0x150] sm:$0xff]  ;;  %v5567_v20 = vld [vmem:[#allocation11 + $0x158] sm:$0xff] }
  0xa7   : > { %794 = vmatpush.msra.mxu0 %v5559_v15  ;;  %840 = vmatpush.msra.mxu2 %v5561_v18 }
  0xa8   : > { %1010 = vmatpush.msrb.mxu3 %v5100_v24  ;;  %965 = vmatpush.msrb.mxu1 %v5098_v23  ;;  %v5572_v23 = vld [vmem:[#allocation11 + $0x130] sm:$0xff]  ;;  %v5574_v24 = vld [vmem:[#allocation11 + $0x138] sm:$0xff] }
  0xa9   : > { %795 = vmatpush.msra.mxu0 %v5565_v19  ;;  %841 = vmatpush.msra.mxu2 %v5567_v20 }
  0xaa   : > { %1011 = vmatpush.msrb.mxu3 %v5106_v28  ;;  %966 = vmatpush.msrb.mxu1 %v5104_v27  ;;  %v5578_v27 = vld [vmem:[#allocation11 + $0x110] sm:$0xff]  ;;  %v5580_v28 = vld [vmem:[#allocation11 + $0x118] sm:$0xff] }
  0xab   : > { %796 = vmatpush.msra.mxu0 %v5572_v23  ;;  %842 = vmatpush.msra.mxu2 %v5574_v24 }
  0xac   : > { %1012 = vmatpush.msrb.mxu3 %v5112_v32  ;;  %967 = vmatpush.msrb.mxu1 %v5110_v31  ;;  %v5586_v31 = vld [vmem:[#allocation11 + $0xf0] sm:$0xff]  ;;  %v5588_v32 = vld [vmem:[#allocation11 + $0xf8] sm:$0xff] }
  0xad   : > { %797 = vmatpush.msra.mxu0 %v5578_v27  ;;  %843 = vmatpush.msra.mxu2 %v5580_v28 }
  0xae   : > { %1013 = vmatpush.msrb.mxu3 %v5118_v36  ;;  %968 = vmatpush.msrb.mxu1 %v5116_v35  ;;  %v5592_v35 = vld [vmem:[#allocation11 + $0xd0] sm:$0xff]  ;;  %v5594_v36 = vld [vmem:[#allocation11 + $0xd8] sm:$0xff] }
  0xaf   : > { %829 = vmatmul.f32.vlgmr.msra.gmra.mxu1 %v5407_v25  ;;  %875 = vmatmul.f32.vlgmr.msra.gmra.mxu3 %v5407_v25  ;;  %v9400_v25 = vld [vmem:[#allocation41_spill] sm:$0xff] }
  0xb0   : > { %1014 = vmatpush.msrb.mxu3 %v5124_v40  ;;  %969 = vmatpush.msrb.mxu1 %v5122_v39  ;;  %v5600_v39 = vld [vmem:[#allocation11 + $0xb0] sm:$0xff]  ;;  %v5602_v40 = vld [vmem:[#allocation11 + $0xb8] sm:$0xff] }
  0xb1   : > { %798 = vmatpush.msra.mxu0 %v5586_v31  ;;  %844 = vmatpush.msra.mxu2 %v5588_v32 }
  0xb2   : > { %1015 = vmatpush.msrb.mxu3 %v5130_v44  ;;  %970 = vmatpush.msrb.mxu1 %v5128_v43  ;;  %v5608_v43 = vld [vmem:[#allocation11 + $0x90] sm:$0xff]  ;;  %v5610_v44 = vld [vmem:[#allocation11 + $0x98] sm:$0xff] }
  0xb3   : > { %799 = vmatpush.msra.mxu0 %v5592_v35  ;;  %845 = vmatpush.msra.mxu2 %v5594_v36 }
  0xb4   : > { %1016 = vmatpush.msrb.mxu3 %v5138_v48  ;;  %971 = vmatpush.msrb.mxu1 %v5136_v47  ;;  %v5618_v47 = vld [vmem:[#allocation11 + $0x70] sm:$0xff]  ;;  %v5620_v48 = vld [vmem:[#allocation11 + $0x78] sm:$0xff] }
  0xb5   : > { %800 = vmatpush.msra.mxu0 %v5600_v39  ;;  %846 = vmatpush.msra.mxu2 %v5602_v40 }
  0xb6   : > { %1017 = vmatpush.msrb.mxu3 %v5149_v52  ;;  %972 = vmatpush.msrb.mxu1 %v5147_v51  ;;  %v5624_v51 = vld [vmem:[#allocation11 + $0x50] sm:$0xff]  ;;  %v5626_v52 = vld [vmem:[#allocation11 + $0x58] sm:$0xff] }
  0xb7   : > { %801 = vmatpush.msra.mxu0 %v5608_v43  ;;  %847 = vmatpush.msra.mxu2 %v5610_v44 }
  0xb8   : > { %1018 = vmatpush.msrb.mxu3 %v5161_v56  ;;  %973 = vmatpush.msrb.mxu1 %v5159_v55  ;;  %v5632_v55 = vld [vmem:[#allocation11 + $0x30] sm:$0xff]  ;;  %v5634_v56 = vld [vmem:[#allocation11 + $0x38] sm:$0xff] }
  0xb9   : > { %832 = vmatmul.f32.gmra.mxu1 %v5555_v14  ;;  %878 = vmatmul.f32.gmra.mxu3 %v5555_v14 }
  0xba   : > { %1019 = vmatpush.msrb.mxu3 %v5173_v60  ;;  %974 = vmatpush.msrb.mxu1 %v5171_v59  ;;  %v354_v59 = vld [vmem:[%s5062_s7] sm:$0xff]  ;;  %v5641_v60 = vld [vmem:[#allocation11 + $0x10] sm:$0xff] }
  0xbb   : > { %802 = vmatpush.msra.mxu0 %v5618_v47  ;;  %848 = vmatpush.msra.mxu2 %v5620_v48 }
  0xbc   : > { %1020 = vmatpush.msrb.mxu3 %v5191_v1  ;;  %975 = vmatpush.msrb.mxu1 %v5185_v0  ;;  %v5643_v0 = vld [vmem:[#allocation11 + $0x18] sm:$0xff]  ;;  %v358_v1 = vunpack.c.l.bf16 %v354_v59 }
  0xbd   : > { %803 = vmatpush.msra.mxu0 %v5624_v51  ;;  %849 = vmatpush.msra.mxu2 %v5626_v52 }
  0xbe   : > { %1021 = vmatpush.msrb.mxu3 %v5199_v3  ;;  %1090 = vmatpush.msra.mxu1 %v5193_v2  ;;  %v359_v2 = vunpack.c.h.bf16 %v354_v59  ;;  %v355_v3 = vld [vmem:[%s5062_s7 + $0x8] sm:$0xff] }
  0xbf   : > { %804 = vmatpush.msra.mxu0 %v5632_v55  ;;  %850 = vmatpush.msra.mxu2 %v5634_v56 }
  0xc0   : > { %1136 = vmatpush.msra.mxu3 %v5205_v6  ;;  %1091 = vmatpush.msra.mxu1 %v5201_v5 }
  0xc1   : > { %805 = vmatpush.msra.mxu0 %v5641_v60  ;;  %851 = vmatpush.msra.mxu2 %v5643_v0 }
  0xc2   : > { %1137 = vmatpush.msra.mxu3 %v5218_v16  ;;  %1092 = vmatpush.msra.mxu1 %v5207_v8 }
  0xc4   : > { %1138 = vmatpush.msra.mxu3 %v5225_v21  ;;  %1093 = vmatpush.msra.mxu1 %v5227_v22  ;;  %v360_v21 = vunpack.c.l.bf16 %v355_v3  ;;  %v356_v22 = vld [vmem:[%s5062_s7 + $0x10] sm:$0xff] }
  0xc6   : > { %1139 = vmatpush.msra.mxu3 %v5239_v29  ;;  %1094 = vmatpush.msra.mxu1 %v5241_v30  ;;  %v9401_v29 = vld [vmem:[#allocation44_spill] sm:$0xff] }
  0xc8   : > { %1140 = vmatpush.msra.mxu3 %v5247_v34  ;;  %1095 = vmatpush.msra.mxu1 %v5249_v37  ;;  %v361_v34 = vunpack.c.h.bf16 %v355_v3  ;;  %v9403_v37 = vld [vmem:[#allocation48_spill] sm:$0xff] }
  0xca   : > { %1141 = vmatpush.msra.mxu3 %v5260_v42  ;;  %1096 = vmatpush.msra.mxu1 %v5262_v45 }
  0xcc   : > { %1142 = vmatpush.msra.mxu3 %v5271_v17  ;;  %1097 = vmatpush.msra.mxu1 %v5273_v12  ;;  %v362_v17 = vunpack.c.l.bf16 %v356_v22 }
  0xce   : > { %1143 = vmatpush.msra.mxu3 %v5283_v61  ;;  %1098 = vmatpush.msra.mxu1 %v5285_v62  ;;  %v363_v61 = vunpack.c.h.bf16 %v356_v22  ;;  %v357_v62 = vld [vmem:[%s5062_s7 + $0x18] sm:$0xff] }
  0xcf   : > { %v364_v3 = vunpack.c.l.bf16 %v357_v62  ;;  %v9406_v22 = vld [vmem:[#allocation53_spill] sm:$0xff] }
  0xd0   : > { %1144 = vmatpush.msra.mxu3 %v5295_v57  ;;  %1099 = vmatpush.msra.mxu1 %v5297_v58  ;;  %v9402_v57 = vld [vmem:[#allocation45_spill] sm:$0xff] }
  0xd2   : > { %1145 = vmatpush.msra.mxu3 %v5307_v53  ;;  %1100 = vmatpush.msra.mxu1 %v9400_v25 }
  0xd4   : > { %1146 = vmatpush.msra.mxu3 %v9401_v29  ;;  %1101 = vmatpush.msra.mxu1 %v9402_v57  ;;  %v5669_v29 = vld [vmem:[#allocation3 + $0x8] sm:$0xff] }
  0xd5   : > { %v9409_v57 = vld [vmem:[#allocation60_spill] sm:$0xff] }
  0xd6   : > { %1147 = vmatpush.msra.mxu3 %v9403_v37 }
  0xd8   : > { %v447_v5 = vpop.f32.mrf.mxu0  ;;  %v470_v6 = vpop.f32.mrf.mxu1 }
  0xd9   : > { %v522_v8 = vadd.f32 %v447_v5, %v358_v1  ;;  %v523_v16 = vadd.f32 %v470_v6, %v359_v2  ;;  %v9404_v1 = vld [vmem:[#allocation49_spill] sm:$0xff]  ;;  %v9405_v2 = vld [vmem:[#allocation52_spill] sm:$0xff] }
  0xda   : > { %1102 = vmatpush.msra.mxu1 %v9404_v1  ;;  %1148 = vmatpush.msra.mxu3 %v9405_v2  ;;  %v9411_v1 = vld [vmem:[#allocation64_spill] sm:$0xff] }
  0xdb   : > { %3865 = vtanh.f32 %v522_v8 }
  0xdc   : > { %3867 = vtanh.f32 %v523_v16  ;;  %1103 = vmatpush.msra.mxu1 %v9406_v22 }
  0xdd   : > { %v493_v12 = vpop.f32.mrf.mxu2 }
  0xde   : > { %v524_v30 = vadd.f32 %v493_v12, %v360_v21  ;;  %v9407_v12 = vld [vmem:[#allocation56_spill] sm:$0xff] }
  0xdf   : > { %1149 = vmatpush.msra.mxu3 %v9407_v12  ;;  %v5682_v12 = vld [vmem:[#allocation3] sm:$0xff] }
  0xe0   : > { %3869 = vtanh.f32 %v524_v30  ;;  %v450_v58 = vpop.f32.mrf.mxu0  ;;  %v473_v42 = vpop.f32.mrf.mxu1  ;;  %v9408_v30 = vld [vmem:[#allocation57_spill] sm:$0xff] }
  0xe1   : > { %v3866_v53 = vpop.eup %3865  ;;  %v526_v45 = vadd.f32 %v450_v58, %v362_v17  ;;  %v527_v59 = vadd.f32 %v473_v42, %v363_v61  ;;  %1104 = vmatpush.msra.mxu1 %v9408_v30  ;;  %1150 = vmatpush.msra.mxu3 %v9409_v57 }
  0xe2   : > { %v3868_v5 = vpop.eup %3867  ;;  %v538_v6 = vadd.f32 1.0, %v3866_v53  ;;  %v516_v8 = vpop.f32.mrf.mxu3  ;;  %v365_v53 = vunpack.c.h.bf16 %v357_v62 }
  0xe3   : > { %v542_v16 = vadd.f32 1.0, %v3868_v5  ;;  %3871 = vtanh.f32 %v526_v45  ;;  %v525_v21 = vadd.f32 %v516_v8, %v361_v34  ;;  %v9410_v45 = vld [vmem:[#allocation61_spill] sm:$0xff]  ;;  %1151 = vmatpush.msra.mxu3 %v9411_v1 }
  0xe4   : > { %v540_v25 = vmul.f32 0.5, %v538_v6  ;;  %3873 = vtanh.f32 %v527_v59  ;;  %1105 = vmatpush.msra.mxu1 %v9410_v45 }
  0xe5   : > { %v544_v17 = vmul.f32 0.5, %v542_v16  ;;  %3875 = vtanh.f32 %v525_v21  ;;  %v496_v61 = vpop.f32.mrf.mxu2 }
  0xe6   : > { %v3870_v37 = vpop.eup %3869  ;;  %v528_v34 = vadd.f32 %v496_v61, %v364_v3 }
  0xe7   : > { %v550_v58 = vmul.f32 %v544_v17, %v5669_v29  ;;  %v552_v42 = vmul.f32 %v3870_v37, %v540_v25  ;;  %v914_v37 = vstv %s3753_s10 }
  0xe8   : > { %3877 = vtanh.f32 %v528_v34  ;;  %vm5688_vm0 = vcmp.eq.s32.totalorder %v914_v37, 1  ;;  %v9418_v37 = vld [vmem:[#allocation70_spill] sm:$0xff] }
  0xe9   : > { %v3872_v59 = vpop.eup %3871  ;;  %v5679_v2 = vadd.f32 %v552_v42, %v550_v58 }
  0xea   : > { %v3874_v5 = vpop.eup %3873  ;;  %v539_v6 = vadd.f32 1.0, %v3872_v59  ;;  %v519_v8 = vpop.f32.mrf.mxu3  ;;  %v9414_v59 = vld [vmem:[#allocation23_spill] sm:$0xff] }
  0xeb   : > { %v3876_v16 = vpop.eup %3875  ;;  %3879 = vtanh.f32 %v5679_v2  ;;  %v543_v3 = vadd.f32 1.0, %v3874_v5  ;;  %v529_v21 = vadd.f32 %v519_v8, %v365_v53 }
  0xec   : > { %v541_v22 = vmul.f32 0.5, %v539_v6  ;;  %v546_v62 = vadd.f32 1.0, %v3876_v16  ;;  %v5697_v6 = vld [vmem:[#allocation9 + $0x1e0] sm:$0xff]  ;;  %v5701_v16 = vld [vmem:[#allocation9 + $0x1f0] sm:$0xff] }
  0xed   : > { %v545_v25 = vmul.f32 0.5, %v543_v3  ;;  %3881 = vtanh.f32 %v529_v21  ;;  %v5705_v3 = vld [vmem:[#allocation9 + $0x1c0] sm:$0xff] }
  0xee   : > { %v3878_v17 = vpop.eup %3877  ;;  %v548_v61 = vmul.f32 0.5, %v546_v62  ;;  %v9415_v21 = vld [vmem:[#allocation62_spill] sm:$0xff] }
  0xef   : > { %v551_v30 = vmul.f32 %v545_v25, %v5682_v12  ;;  %v553_v57 = vmul.f32 %v3878_v17, %v541_v22  ;;  %v5709_v22 = vld [vmem:[#allocation9 + $0x1d0] sm:$0xff]  ;;  %v9416_v62 = vld [vmem:[#allocation66_spill] sm:$0xff] }
  0xf0   : > { %v5713_v17 = vld [vmem:[#allocation9 + $0x1a0] sm:$0xff] }
  0xf1   : > { %v3880_v34 = vpop.eup %3879  ;;  %v5685_v58 = vadd.f32 %v553_v57, %v551_v30  ;;  %v5717_v57 = vld [vmem:[#allocation9 + $0x1b0] sm:$0xff] }
  0xf2   : > { %v558_v42 = vmul.f32 %v3880_v34, %v548_v61  ;;  %v9417_v61 = vld [vmem:[#allocation67_spill] sm:$0xff]  ;;  %v5721_v34 = vld [vmem:[#allocation9 + $0x180] sm:$0xff] }
  0xf3   : > { %v3882_v45 = vpop.eup %3881  ;;  %3883 = vtanh.f32 %v5685_v58 }
  0xf4   : > { %v547_v1 = vadd.f32 1.0, %v3882_v45  ;;  %714 = vmatmul.f32.vlgmr.msrb.gmra.mxu0 %v558_v42  ;;  %760 = vmatmul.f32.vlgmr.msrb.gmra.mxu2 %v558_v42  ;;  %v5695_v5 = vsel %vm5688_vm0, %v558_v42, %v9414_v59  ;;  %v9419_v45 = vld [vmem:[#allocation71_spill] sm:$0xff]  ;;  %v9421_v59 = vld [vmem:[#allocation26_spill] sm:$0xff] }
  0xf5   : > { %937 = vmatpush.msrb.mxu0 %v5697_v6  ;;  %976 = vmatmul.f32.vlgmr.msrb.gmra.mxu1 %v5695_v5 }
  0xf6   : > { %v549_v8 = vmul.f32 0.5, %v547_v1  ;;  %983 = vmatpush.msrb.mxu2 %v5701_v16  ;;  %1022 = vmatmul.f32.vlgmr.msrb.gmra.mxu3 %v5695_v5  ;;  %v5725_v1 = vld [vmem:[#allocation9 + $0x190] sm:$0xff] }
  0xf7   : > { %938 = vmatpush.msrb.mxu0 %v5705_v3  ;;  %1182 = vmatpush.msrb.mxu1 %v9415_v21  ;;  %9420 = vst [vmem:[#allocation41_spill] sm:$0xff] %v5725_v1  ;;  %v5733_v21 = vld [vmem:[#allocation9 + $0x160] sm:$0xff] }
  0xf8   : > { %984 = vmatpush.msrb.mxu2 %v5709_v22  ;;  %1228 = vmatpush.msrb.mxu3 %v9416_v62  ;;  %9422 = vst [vmem:[#allocation44_spill] sm:$0xff] %v5733_v21  ;;  %v5737_v62 = vld [vmem:[#allocation9 + $0x170] sm:$0xff] }
  0xf9   : > { %v3884_v25 = vpop.eup %3883  ;;  %939 = vmatpush.msrb.mxu0 %v5713_v17  ;;  %1183 = vmatpush.msrb.mxu1 %v9417_v61  ;;  %9423 = vst [vmem:[#allocation45_spill] sm:$0xff] %v5737_v62  ;;  %v5744_v61 = vld [vmem:[#allocation9 + $0x150] sm:$0xff] }
  0xfa   : > { %v559_v30 = vmul.f32 %v3884_v25, %v549_v8  ;;  %985 = vmatpush.msrb.mxu2 %v5717_v57  ;;  %1229 = vmatpush.msrb.mxu3 %v9418_v37  ;;  %v5741_v25 = vld [vmem:[#allocation9 + $0x140] sm:$0xff]  ;;  %9425 = vst [vmem:[#allocation49_spill] sm:$0xff] %v5744_v61  ;;  %v9426_v37 = vld [vmem:[#allocation73_spill] sm:$0xff] }
  0xfb   : > { %940 = vmatpush.msrb.mxu0 %v5721_v34  ;;  %1184 = vmatpush.msrb.mxu1 %v9419_v45  ;;  %9424 = vst [vmem:[#allocation48_spill] sm:$0xff] %v5741_v25  ;;  %v5748_v45 = vld [vmem:[#allocation9 + $0x120] sm:$0xff] }
  0xfc   : > { %986 = vmatpush.msrb.mxu2 %v5725_v1  ;;  %717 = vmatmul.f32.gmra.mxu0 %v559_v30  ;;  %v5731_v8 = vsel %vm5688_vm0, %v559_v30, %v9421_v59  ;;  %v9427_v59 = vld [vmem:[#allocation74_spill] sm:$0xff] }
  0xfd   : > { %763 = vmatmul.f32.gmra.mxu2 %v559_v30  ;;  %941 = vmatpush.msrb.mxu0 %v5733_v21  ;;  %v5752_v21 = vld [vmem:[#allocation9 + $0x130] sm:$0xff]  ;;  %v5756_v1 = vld [vmem:[#allocation9 + $0x100] sm:$0xff] }
  0xfe   : > { %979 = vmatmul.f32.gmra.mxu1 %v5731_v8  ;;  %987 = vmatpush.msrb.mxu2 %v5737_v62  ;;  %9428 = vst [vmem:[#allocation52_spill] sm:$0xff] %v5752_v21  ;;  %v9429_v62 = vld [vmem:[#allocation76_spill] sm:$0xff] }
  0xff   : > { %1025 = vmatmul.f32.gmra.mxu3 %v5731_v8  ;;  %942 = vmatpush.msrb.mxu0 %v5741_v25  ;;  %9430 = vst [vmem:[#allocation53_spill] sm:$0xff] %v5756_v1  ;;  %v9431_v25 = vld [vmem:[#allocation77_spill] sm:$0xff] }
 0x100   : > { %988 = vmatpush.msrb.mxu2 %v5744_v61  ;;  %1230 = vmatpush.msrb.mxu3 %v9426_v37  ;;  %v5760_v61 = vld [vmem:[#allocation9 + $0x110] sm:$0xff]  ;;  %v5763_v37 = vld [vmem:[#allocation9 + $0xe0] sm:$0xff] }
 0x101   : > { %943 = vmatpush.msrb.mxu0 %v5748_v45  ;;  %1185 = vmatpush.msrb.mxu1 %v9427_v59  ;;  %9432 = vst [vmem:[#allocation56_spill] sm:$0xff] %v5760_v61  ;;  %v5766_v59 = vld [vmem:[#allocation9 + $0xf0] sm:$0xff] }
 0x102   : > { %989 = vmatpush.msrb.mxu2 %v5752_v21  ;;  %1231 = vmatpush.msrb.mxu3 %v9429_v62  ;;  %9433 = vst [vmem:[#allocation57_spill] sm:$0xff] %v5763_v37  ;;  %v5770_v62 = vld [vmem:[#allocation9 + $0xc0] sm:$0xff]  ;;  %v9453_v21 = vld [vmem:[#allocation89_spill] sm:$0xff] }
 0x103   : > { %944 = vmatpush.msrb.mxu0 %v5756_v1  ;;  %1186 = vmatpush.msrb.mxu1 %v9431_v25  ;;  %9434 = vst [vmem:[#allocation60_spill] sm:$0xff] %v5766_v59  ;;  %v9436_v25 = vld [vmem:[#allocation80_spill] sm:$0xff] }
 0x104   : > { %990 = vmatpush.msrb.mxu2 %v5760_v61  ;;  %806 = vmatmul.f32.vlgmr.msra.gmra.mxu0 %v558_v42  ;;  %9435 = vst [vmem:[#allocation61_spill] sm:$0xff] %v5770_v62  ;;  %v5774_v1 = vld [vmem:[#allocation9 + $0xd0] sm:$0xff] }
 0x105   : > { %852 = vmatmul.f32.vlgmr.msra.gmra.mxu2 %v558_v42  ;;  %945 = vmatpush.msrb.mxu0 %v5763_v37  ;;  %9437 = vst [vmem:[#allocation64_spill] sm:$0xff] %v5774_v1  ;;  %v5778_v42 = vld [vmem:[#allocation9 + $0xa0] sm:$0xff]  ;;  %v9439_v37 = vld [vmem:[#allocation83_spill] sm:$0xff]  ;;  %v5788_v61 = vld [vmem:[#allocation9 + $0x90] sm:$0xff] }
 0x106   : > { %991 = vmatpush.msrb.mxu2 %v5766_v59  ;;  %1232 = vmatpush.msrb.mxu3 %v5431_v38  ;;  %9438 = vst [vmem:[#allocation23_spill] sm:$0xff] %v5778_v42  ;;  %v5782_v59 = vld [vmem:[#allocation9 + $0xb0] sm:$0xff] }
 0x107   : > { %946 = vmatpush.msrb.mxu0 %v5770_v62  ;;  %1187 = vmatpush.msrb.mxu1 %v9436_v25  ;;  %9440 = vst [vmem:[#allocation62_spill] sm:$0xff] %v5782_v59  ;;  %v9441_v38 = vld [vmem:[#allocation84_spill] sm:$0xff]  ;;  %v9442_v62 = vld [vmem:[#allocation14_spill] sm:$0xff]  ;;  %v9443_v25 = vld [vmem:[#allocation85_spill] sm:$0xff] }
 0x108   : > { %992 = vmatpush.msrb.mxu2 %v5774_v1  ;;  %1233 = vmatpush.msrb.mxu3 %v5443_v13  ;;  %9444 = vst [vmem:[#allocation66_spill] sm:$0xff] %v5788_v61  ;;  %v9445_v13 = vld [vmem:[#allocation16_spill] sm:$0xff]  ;;  %v9448_v1 = vld [vmem:[#allocation18_spill] sm:$0xff] }
 0x109   : > { %947 = vmatpush.msrb.mxu0 %v5778_v42  ;;  %1188 = vmatpush.msrb.mxu1 %v9439_v37  ;;  %v9446_v42 = vld [vmem:[#allocation15_spill] sm:$0xff]  ;;  %v9447_v37 = vld [vmem:[#allocation86_spill] sm:$0xff] }
 0x10a   : > { %993 = vmatpush.msrb.mxu2 %v5782_v59  ;;  %1234 = vmatpush.msrb.mxu3 %v9441_v38  ;;  %v9449_v59 = vld [vmem:[#allocation87_spill] sm:$0xff]  ;;  %v9450_v38 = vld [vmem:[#allocation17_spill] sm:$0xff] }
 0x10b   : > { %948 = vmatpush.msrb.mxu0 %v9442_v62  ;;  %1189 = vmatpush.msrb.mxu1 %v9443_v25  ;;  %v9451_v62 = vld [vmem:[#allocation88_spill] sm:$0xff] }
 0x10c   : > { %994 = vmatpush.msrb.mxu2 %v5788_v61  ;;  %809 = vmatmul.f32.gmra.mxu0 %v559_v30  ;;  %v9452_v25 = vld [vmem:[#allocation20_spill] sm:$0xff]  ;;  %v9454_v61 = vld [vmem:[#allocation19_spill] sm:$0xff] }
 0x10d   : > { %855 = vmatmul.f32.gmra.mxu2 %v559_v30  ;;  %949 = vmatpush.msrb.mxu0 %v9445_v13  ;;  %v9455_v30 = vld [vmem:[#allocation90_spill] sm:$0xff] }
 0x10e   : > { %995 = vmatpush.msrb.mxu2 %v9446_v42  ;;  %1235 = vmatpush.msrb.mxu3 %v9447_v37  ;;  %v9456_v13 = vld [vmem:[#allocation22_spill] sm:$0xff]  ;;  %v9457_v42 = vld [vmem:[#allocation91_spill] sm:$0xff]  ;;  %v9458_v37 = vld [vmem:[#allocation21_spill] sm:$0xff] }
 0x10f   : > { %950 = vmatpush.msrb.mxu0 %v9448_v1  ;;  %1190 = vmatpush.msrb.mxu1 %v9449_v59  ;;  %v9459_v1 = vld [vmem:[#allocation24_spill] sm:$0xff]  ;;  %v9460_v59 = vld [vmem:[#allocation25_spill] sm:$0xff] }
 0x110   : > { %996 = vmatpush.msrb.mxu2 %v9450_v38  ;;  %1236 = vmatpush.msrb.mxu3 %v9451_v62  ;;  %v9461_v38 = vld [vmem:[#allocation92_spill] sm:$0xff] }
 0x111   : > { %951 = vmatpush.msrb.mxu0 %v9452_v25  ;;  %1191 = vmatpush.msrb.mxu1 %v9453_v21  ;;  %v9462_v21 = vld [vmem:[#allocation27_spill] sm:$0xff]  ;;  %v9464_v62 = vld [vmem:[#allocation28_spill] sm:$0xff]  ;;  %v9465_v25 = vld [vmem:[#allocation29_spill] sm:$0xff] }
 0x112   : > { %997 = vmatpush.msrb.mxu2 %v9454_v61  ;;  %1237 = vmatpush.msrb.mxu3 %v9455_v30  ;;  %v9463_v61 = vld [vmem:[#allocation93_spill] sm:$0xff]  ;;  %v9466_v30 = vld [vmem:[#allocation30_spill] sm:$0xff] }
 0x113   : > { %952 = vmatpush.msrb.mxu0 %v9456_v13  ;;  %1192 = vmatpush.msrb.mxu1 %v9457_v42  ;;  %v9467_v13 = vld [vmem:[#allocation31_spill] sm:$0xff]  ;;  %v9468_v42 = vld [vmem:[#allocation32_spill] sm:$0xff] }
 0x114   : > { %998 = vmatpush.msrb.mxu2 %v9458_v37  ;;  %953 = vmatmul.f32.vlgmr.msrb.gmra.mxu0 %v5695_v5  ;;  %v9469_v37 = vld [vmem:[#allocation33_spill] sm:$0xff] }
 0x115   : > { %999 = vmatmul.f32.vlgmr.msrb.gmra.mxu2 %v5695_v5  ;;  %1067 = vmatpush.msra.mxu0 %v9459_v1  ;;  %v9474_v1 = vld [vmem:[#allocation38_spill] sm:$0xff] }
 0x116   : > { %1113 = vmatpush.msra.mxu2 %v9460_v59  ;;  %1238 = vmatpush.msrb.mxu3 %v9461_v38  ;;  %v9475_v59 = vld [vmem:[#allocation39_spill] sm:$0xff]  ;;  %v9476_v38 = vld [vmem:[#allocation40_spill] sm:$0xff] }
 0x117   : > { %1068 = vmatpush.msra.mxu0 %v9462_v21  ;;  %1193 = vmatpush.msrb.mxu1 %v9463_v61  ;;  %v9478_v21 = vld [vmem:[#allocation43_spill] sm:$0xff] }
 0x118   : > { %1114 = vmatpush.msra.mxu2 %v9464_v62  ;;  %1239 = vmatpush.msrb.mxu3 %v5483_v9  ;;  %v9470_v9 = vld [vmem:[#allocation34_spill] sm:$0xff]  ;;  %v9480_v61 = vld [vmem:[#allocation47_spill] sm:$0xff] }
 0x119   : > { %1069 = vmatpush.msra.mxu0 %v9465_v25  ;;  %1194 = vmatpush.msrb.mxu1 %v5485_v33  ;;  %v9471_v33 = vld [vmem:[#allocation35_spill] sm:$0xff] }
 0x11a   : > { %1115 = vmatpush.msra.mxu2 %v9466_v30  ;;  %1240 = vmatpush.msrb.mxu3 %v5489_v49  ;;  %v9472_v49 = vld [vmem:[#allocation36_spill] sm:$0xff]  ;;  %v9482_v62 = vld [vmem:[#allocation51_spill] sm:$0xff] }
 0x11b   : > { %1070 = vmatpush.msra.mxu0 %v9467_v13  ;;  %1195 = vmatpush.msrb.mxu1 %v5491_v50  ;;  %v9473_v50 = vld [vmem:[#allocation37_spill] sm:$0xff]  ;;  %v9484_v25 = vld [vmem:[#allocation55_spill] sm:$0xff] }
 0x11c   : > { %956 = vmatmul.f32.gmra.mxu0 %v5731_v8  ;;  %1116 = vmatpush.msra.mxu2 %v9468_v42  ;;  %v9486_v30 = vld [vmem:[#allocation59_spill] sm:$0xff]  ;;  %v9488_v42 = vld [vmem:[#allocation65_spill] sm:$0xff] }
 0x11d   : > { %1002 = vmatmul.f32.gmra.mxu2 %v5731_v8  ;;  %1071 = vmatpush.msra.mxu0 %v9469_v37  ;;  %v9487_v13 = vld [vmem:[#allocation63_spill] sm:$0xff]  ;;  %v9489_v37 = vld [vmem:[#allocation68_spill] sm:$0xff] }
 0x11e   : > { %1117 = vmatpush.msra.mxu2 %v9470_v9  ;;  %1241 = vmatpush.msrb.mxu3 %v5495_v41  ;;  %v9477_v41 = vld [vmem:[#allocation42_spill] sm:$0xff]  ;;  %v9490_v9 = vld [vmem:[#allocation69_spill] sm:$0xff] }
 0x11f   : > { %1072 = vmatpush.msra.mxu0 %v9471_v33  ;;  %1196 = vmatpush.msrb.mxu1 %v5497_v26  ;;  %v9479_v26 = vld [vmem:[#allocation46_spill] sm:$0xff]  ;;  %v9491_v33 = vld [vmem:[#allocation72_spill] sm:$0xff] }
 0x120   : > { %1118 = vmatpush.msra.mxu2 %v9472_v49  ;;  %1242 = vmatpush.msrb.mxu3 %v5501_v46  ;;  %v9481_v46 = vld [vmem:[#allocation50_spill] sm:$0xff]  ;;  %v9492_v49 = vld [vmem:[#allocation75_spill] sm:$0xff] }
 0x121   : > { %1073 = vmatpush.msra.mxu0 %v9473_v50  ;;  %1197 = vmatpush.msrb.mxu1 %v5503_v54  ;;  %v9483_v54 = vld [vmem:[#allocation54_spill] sm:$0xff] }
 0x122   : > { %1119 = vmatpush.msra.mxu2 %v9474_v1  ;;  %1243 = vmatpush.msrb.mxu3 %v5507_v63  ;;  %v9485_v63 = vld [vmem:[#allocation58_spill] sm:$0xff]  ;;  %v9494_v1 = vld [vmem:[#allocation79_spill] sm:$0xff] }
 0x123   : > { %1074 = vmatpush.msra.mxu0 %v9475_v59  ;;  %v9493_v50 = vld [vmem:[#allocation78_spill] sm:$0xff]  ;;  %v9495_v59 = vld [vmem:[#allocation81_spill] sm:$0xff] }
 0x124   : > { %1120 = vmatpush.msra.mxu2 %v9476_v38  ;;  %v9496_v38 = vld [vmem:[#allocation82_spill] sm:$0xff] }
 0x125   : > { %1075 = vmatpush.msra.mxu0 %v9477_v41 }
 0x126   : > { %1121 = vmatpush.msra.mxu2 %v9478_v21  ;;  %v3682_v21 = vld [vmem:[%s5062_s7 + $0x20] sm:$0xff] }
 0x127   : > { %1076 = vmatpush.msra.mxu0 %v9479_v26 }
 0x128   : > { %1122 = vmatpush.msra.mxu2 %v9480_v61 }
 0x129   : > { %1077 = vmatpush.msra.mxu0 %v9481_v46 }
 0x12a   : > { %1123 = vmatpush.msra.mxu2 %v9482_v62 }
 0x12b   : > { %1078 = vmatpush.msra.mxu0 %v9483_v54  ;;  %v930_v54 = vunpack.c.h.bf16 %v3682_v21 }
 0x12c   : > { %1124 = vmatpush.msra.mxu2 %v9484_v25 }
 0x12d   : > { %1079 = vmatpush.msra.mxu0 %v9485_v63 }
 0x12e   : > { %1125 = vmatpush.msra.mxu2 %v9486_v30 }
 0x12f   : > { %1080 = vmatpush.msra.mxu0 %v9487_v13 }
 0x130   : > { %1126 = vmatpush.msra.mxu2 %v9488_v42 }
 0x131   : > { %1081 = vmatpush.msra.mxu0 %v9489_v37 }
 0x132   : > { %1127 = vmatpush.msra.mxu2 %v9490_v9  ;;  %v5903_v9 = vld [vmem:[#allocation5] sm:$0xff] }
 0x133   : > { %1082 = vmatpush.msra.mxu0 %v9491_v33 }
 0x134   : > { %1128 = vmatpush.msra.mxu2 %v9492_v49 }
 0x135   : > { %1159 = vmatpush.msrb.mxu0 %v9493_v50 }
 0x136   : > { %1205 = vmatpush.msrb.mxu2 %v9494_v1 }
 0x137   : > { %1160 = vmatpush.msrb.mxu0 %v9495_v59 }
 0x138   : > { %1206 = vmatpush.msrb.mxu2 %v9496_v38 }
 0x139   : > { %1161 = vmatpush.msrb.mxu0 %v5541_v4  ;;  %v738_v4 = vpop.f32.mrf.mxu1 }
 0x13a   : > { %1207 = vmatpush.msrb.mxu2 %v5543_v7 }
 0x13b   : > { %1162 = vmatpush.msrb.mxu0 %v5547_v10  ;;  %v784_v10 = vpop.f32.mrf.mxu3 }
 0x13c   : > { %1208 = vmatpush.msrb.mxu2 %v5549_v11  ;;  %v688_v11 = vld [vmem:[%s8781_s3] sm:$0xf] }
 0x13d   : > { %1163 = vmatpush.msrb.mxu0 %v5559_v15  ;;  %v5898_v41 = vperm.slane %v688_v11, 3 }
 0x13e   : > { %1209 = vmatpush.msrb.mxu2 %v5561_v18 }
 0x13f   : > { %1164 = vmatpush.msrb.mxu0 %v5565_v19  ;;  %v5887_v19 = vperm.slane %v688_v11, 0 }
 0x140   : > { %1210 = vmatpush.msrb.mxu2 %v5567_v20  ;;  %v5889_v20 = vperm.slane %v688_v11, 1 }
 0x141   : > { %1165 = vmatpush.msrb.mxu0 %v5572_v23  ;;  %v741_v7 = vpop.f32.mrf.mxu1  ;;  %9497 = vst [vmem:[#allocation67_spill] sm:$0xff] %v5887_v19 }
 0x142   : > { %1211 = vmatpush.msrb.mxu2 %v5574_v24  ;;  %9498 = vst [vmem:[#allocation70_spill] sm:$0xff] %v5889_v20 }
 0x143   : > { %1166 = vmatpush.msrb.mxu0 %v5578_v27  ;;  %v787_v23 = vpop.f32.mrf.mxu3 }
 0x144   : > { %1212 = vmatpush.msrb.mxu2 %v5580_v28 }
 0x145   : > { %1167 = vmatpush.msrb.mxu0 %v5586_v31 }
 0x146   : > { %1213 = vmatpush.msrb.mxu2 %v5588_v32 }
 0x147   : > { %1168 = vmatpush.msrb.mxu0 %v5592_v35 }
 0x148   : > { %1214 = vmatpush.msrb.mxu2 %v5594_v36 }
 0x149   : > { %1169 = vmatpush.msrb.mxu0 %v5600_v39  ;;  %v830_v18 = vpop.f32.mrf.mxu1 }
 0x14a   : > { %1215 = vmatpush.msrb.mxu2 %v5602_v40  ;;  %v5894_v40 = vperm.slane %v688_v11, 2 }
 0x14b   : > { %1170 = vmatpush.msrb.mxu0 %v5608_v43  ;;  %v876_v43 = vpop.f32.mrf.mxu3 }
 0x14c   : > { %1216 = vmatpush.msrb.mxu2 %v5610_v44  ;;  %9499 = vst [vmem:[#allocation71_spill] sm:$0xff] %v5894_v40 }
 0x14d   : > { %1171 = vmatpush.msrb.mxu0 %v5618_v47 }
 0x14e   : > { %1217 = vmatpush.msrb.mxu2 %v5620_v48 }
 0x14f   : > { %1172 = vmatpush.msrb.mxu0 %v5624_v51 }
 0x150   : > { %1218 = vmatpush.msrb.mxu2 %v5626_v52 }
 0x151   : > { %1173 = vmatpush.msrb.mxu0 %v5632_v55  ;;  %v833_v36 = vpop.f32.mrf.mxu1 }
 0x152   : > { %1219 = vmatpush.msrb.mxu2 %v5634_v56 }
 0x153   : > { %1174 = vmatpush.msrb.mxu0 %v5641_v60  ;;  %v879_v30 = vpop.f32.mrf.mxu3 }
 0x154   : > { %1220 = vmatpush.msrb.mxu2 %v5643_v0 }
 0x171   : > { %v715_v15 = vpop.f32.mrf.mxu0 }
 0x172   : > { %v716_v24 = vadd.f32 %v715_v15, %v5887_v19  ;;  %v977_v61 = vpop.f32.mrf.mxu1  ;;  %v929_v15 = vunpack.c.l.bf16 %v3682_v21 }
 0x173   : > { %v1030_v38 = vadd.f32 %v977_v61, %v930_v54 }
 0x174   : > { %v739_v35 = vadd.f32 %v738_v4, %v716_v24  ;;  %v3684_v4 = vld [vmem:[%s5062_s7 + $0x30] sm:$0xff] }
 0x177   : > { %v761_v27 = vpop.f32.mrf.mxu2 }
 0x178   : > { %v762_v28 = vadd.f32 %v761_v27, %v5889_v20 }
 0x179   : > { %v718_v31 = vpop.f32.mrf.mxu0 }
 0x17a   : > { %v785_v32 = vadd.f32 %v784_v10, %v762_v28  ;;  %v719_v39 = vadd.f32 %v718_v31, %v5887_v19 }
 0x17b   : > { %v980_v28 = vpop.f32.mrf.mxu1 }
 0x17c   : > { %3885 = vtanh.f32 %v785_v32  ;;  %v742_v51 = vadd.f32 %v741_v7, %v719_v39 }
 0x17d   : > { %3887 = vtanh.f32 %v739_v35 }
 0x180   : > { %v764_v44 = vpop.f32.mrf.mxu2 }
 0x181   : > { %v765_v47 = vadd.f32 %v764_v44, %v5889_v20  ;;  %v807_v48 = vpop.f32.mrf.mxu0  ;;  %v3683_v44 = vld [vmem:[%s5062_s7 + $0x28] sm:$0xff] }
 0x182   : > { %v808_v52 = vadd.f32 %v807_v48, %v5894_v40  ;;  %v3886_v55 = vpop.eup %3885  ;;  %v931_v21 = vunpack.c.l.bf16 %v3683_v44 }
 0x183   : > { %v788_v56 = vadd.f32 %v787_v23, %v765_v47  ;;  %v3888_v0 = vpop.eup %3887  ;;  %v894_v26 = vadd.f32 1.0, %v3886_v55  ;;  %v934_v23 = vunpack.c.h.bf16 %v3684_v4 }
 0x184   : > { %v831_v60 = vadd.f32 %v830_v18, %v808_v52  ;;  %v890_v46 = vadd.f32 1.0, %v3888_v0  ;;  %v1023_v52 = vpop.f32.mrf.mxu3 }
 0x185   : > { %3889 = vtanh.f32 %v788_v56  ;;  %v896_v13 = vmul.f32 0.5, %v894_v26  ;;  %v1034_v55 = vadd.f32 %v980_v28, %v934_v23  ;;  %v932_v26 = vunpack.c.h.bf16 %v3683_v44 }
 0x186   : > { %3891 = vtanh.f32 %v742_v51  ;;  %v892_v50 = vmul.f32 0.5, %v890_v46  ;;  %v933_v46 = vunpack.c.l.bf16 %v3684_v4 }
 0x187   : > { %3893 = vtanh.f32 %v831_v60  ;;  %v902_v10 = vmul.f32 %v896_v13, %v5903_v9 }
 0x188   : > { %v853_v62 = vpop.f32.mrf.mxu2 }
 0x189   : > { %v854_v25 = vadd.f32 %v853_v62, %v5898_v41  ;;  %v810_v63 = vpop.f32.mrf.mxu0 }
 0x18a   : > { %v811_v42 = vadd.f32 %v810_v63, %v5894_v40 }
 0x18b   : > { %v3890_v37 = vpop.eup %3889  ;;  %v877_v33 = vadd.f32 %v876_v43, %v854_v25 }
 0x18c   : > { %v3892_v49 = vpop.eup %3891  ;;  %v834_v1 = vadd.f32 %v833_v36, %v811_v42  ;;  %v895_v7 = vadd.f32 1.0, %v3890_v37  ;;  %v5910_v36 = vld [vmem:[#allocation5 + $0x8] sm:$0xff] }
 0x18d   : > { %v3894_v59 = vpop.eup %3893  ;;  %3895 = vtanh.f32 %v877_v33  ;;  %v891_v18 = vadd.f32 1.0, %v3892_v49  ;;  %v1032_v49 = vadd.f32 %v1023_v52, %v932_v26 }
 0x18e   : > { %v904_v11 = vmul.f32 %v3894_v59, %v892_v50  ;;  %3897 = vtanh.f32 %v834_v1  ;;  %v897_v31 = vmul.f32 0.5, %v895_v7  ;;  %v3685_v50 = vld [vmem:[%s5062_s7 + $0x38] sm:$0xff] }
 0x18f   : > { %3899 = vtanh.f32 %v1030_v38  ;;  %v893_v47 = vmul.f32 0.5, %v891_v18  ;;  %v4208_v38 = vld [vmem:[#allocation4 + $0x8] sm:$0xff]  ;;  %v5933_v18 = vld [vmem:[#allocation9 + $0x1f8] sm:$0xff]  ;;  %v935_v23 = vunpack.c.l.bf16 %v3685_v50 }
 0x190   : > { %v5907_v24 = vadd.f32 %v904_v11, %v902_v10  ;;  %v856_v27 = vpop.f32.mrf.mxu2  ;;  %v903_v60 = vmul.f32 %v897_v31, %v5910_v36  ;;  %v936_v11 = vunpack.c.h.bf16 %v3685_v50  ;;  %v1026_v31 = vpop.f32.mrf.mxu3 }
 0x191   : > { %v857_v32 = vadd.f32 %v856_v27, %v5898_v41  ;;  %v954_v35 = vpop.f32.mrf.mxu0 }
 0x192   : > { %3901 = vtanh.f32 %v5907_v24  ;;  %v1029_v39 = vadd.f32 %v954_v35, %v929_v15  ;;  %v5930_v15 = vld [vmem:[#allocation9 + $0x1e8] sm:$0xff] }
 0x193   : > { %v3896_v43 = vpop.eup %3895  ;;  %v880_v48 = vadd.f32 %v879_v30, %v857_v32 }
 0x194   : > { %v3898_v51 = vpop.eup %3897  ;;  %v898_v56 = vadd.f32 1.0, %v3896_v43  ;;  %3903 = vtanh.f32 %v1029_v39  ;;  %v5936_v39 = vld [vmem:[#allocation9 + $0x1c8] sm:$0xff]  ;;  %v5939_v43 = vld [vmem:[#allocation9 + $0x1d8] sm:$0xff] }
 0x195   : > { %v905_v0 = vmul.f32 %v3898_v51, %v893_v47  ;;  %3905 = vtanh.f32 %v880_v48  ;;  %v3900_v62 = vpop.eup %3899  ;;  %v1283_v51 = vstv %s5928_s11 }
 0x196   : > { %v900_v61 = vmul.f32 0.5, %v898_v56  ;;  %3907 = vtanh.f32 %v1034_v55  ;;  %v1049_v33 = vadd.f32 1.0, %v3900_v62  ;;  %v918_v55 = vsel %vm5688_vm0, %v5679_v2, %v5669_v29  ;;  %v5958_v29 = vld [vmem:[#allocation9 + $0x188] sm:$0xff]  ;;  %v5961_v2 = vld [vmem:[#allocation9 + $0x198] sm:$0xff] }
 0x197   : > { %v5915_v54 = vadd.f32 %v905_v0, %v903_v60  ;;  %v1036_v56 = vadd.f32 %v1026_v31, %v936_v11  ;;  %v5947_v0 = vld [vmem:[#allocation9 + $0x1a8] sm:$0xff]  ;;  %vm5964_vm1 = vcmp.eq.s32.totalorder %v1283_v51, 1 }
 0x198   : > { %v3902_v25 = vpop.eup %3901  ;;  %v1000_v63 = vpop.f32.mrf.mxu2  ;;  %v1051_v28 = vmul.f32 0.5, %v1049_v33  ;;  %v5990_v11 = vld [vmem:[#allocation9 + $0x128] sm:$0xff] }
 0x199   : > { %v910_v30 = vmul.f32 %v3902_v25, %v900_v61  ;;  %3909 = vtanh.f32 %v5915_v54  ;;  %v1031_v13 = vadd.f32 %v1000_v63, %v931_v21  ;;  %v957_v42 = vpop.f32.mrf.mxu0  ;;  %v5950_v21 = vld [vmem:[#allocation9 + $0x1b8] sm:$0xff] }
 0x19a   : > { %v3904_v37 = vpop.eup %3903  ;;  %v1033_v1 = vadd.f32 %v957_v42, %v933_v46  ;;  %v1057_v61 = vmul.f32 %v1051_v28, %v918_v55 }
 0x19b   : > { %v3906_v59 = vpop.eup %3905  ;;  %3911 = vtanh.f32 %v1031_v13  ;;  %v5922_v4 = vsel %vm5688_vm0, %v910_v30, %v4208_v38  ;;  %v1045_v10 = vadd.f32 1.0, %v3904_v37  ;;  %v5973_v37 = vld [vmem:[#allocation9 + $0x178] sm:$0xff] }
 0x19c   : > { %v899_v7 = vadd.f32 1.0, %v3906_v59  ;;  %3913 = vtanh.f32 %v1033_v1  ;;  %1106 = vmatmul.f32.vlgmr.msra.gmra.mxu1 %v5922_v4  ;;  %1152 = vmatmul.f32.vlgmr.msra.gmra.mxu3 %v5922_v4  ;;  %v3908_v27 = vpop.eup %3907  ;;  %v5980_v1 = vld [vmem:[#allocation9 + $0x148] sm:$0xff]  ;;  %v5983_v59 = vld [vmem:[#allocation9 + $0x158] sm:$0xff] }
 0x19d   : > { %1329 = vmatpush.msra.mxu1 %v5930_v15  ;;  %1375 = vmatpush.msra.mxu3 %v5933_v18  ;;  %3915 = vtanh.f32 %v1032_v49  ;;  %v1047_v47 = vmul.f32 0.5, %v1045_v10  ;;  %v1050_v46 = vadd.f32 1.0, %v3908_v27  ;;  %v919_v10 = vsel %vm5688_vm0, %v5685_v58, %v5682_v12 }
 0x19e   : > { %v901_v32 = vmul.f32 0.5, %v899_v7 }
 0x19f   : > { %v3910_v35 = vpop.eup %3909  ;;  %1330 = vmatpush.msra.mxu1 %v5936_v39  ;;  %1376 = vmatpush.msra.mxu3 %v5939_v43  ;;  %v1052_v33 = vmul.f32 0.5, %v1050_v46 }
 0x1a0   : > { %v911_v44 = vmul.f32 %v3910_v35, %v901_v32  ;;  %v1003_v48 = vpop.f32.mrf.mxu2  ;;  %v5996_v35 = vld [vmem:[#allocation9 + $0x108] sm:$0xff] }
 0x1a1   : > { %v3912_v52 = vpop.eup %3911  ;;  %v1035_v60 = vadd.f32 %v1003_v48, %v935_v23  ;;  %1331 = vmatpush.msra.mxu1 %v5947_v0  ;;  %1377 = vmatpush.msra.mxu3 %v5950_v21  ;;  %v5993_v23 = vld [vmem:[#allocation9 + $0x138] sm:$0xff]  ;;  %v1058_v27 = vmul.f32 %v1052_v33, %v919_v10 }
 0x1a2   : > { %v3914_v26 = vpop.eup %3913  ;;  %v1059_v62 = vmul.f32 %v3912_v52, %v1047_v47  ;;  %v5956_v25 = vsel %vm5688_vm0, %v911_v44, %v5555_v14  ;;  %v5970_v14 = vld [vmem:[#allocation9 + $0x168] sm:$0xff]  ;;  %v5999_v44 = vld [vmem:[#allocation9 + $0x118] sm:$0xff] }
 0x1a3   : > { %3917 = vtanh.f32 %v1035_v60  ;;  %1332 = vmatpush.msra.mxu1 %v5958_v29  ;;  %1378 = vmatpush.msra.mxu3 %v5961_v2  ;;  %v3916_v30 = vpop.eup %3915  ;;  %v1046_v42 = vadd.f32 1.0, %v3914_v26  ;;  %v6004_v47 = vld [vmem:[#allocation9 + $0xe8] sm:$0xff]  ;;  %v6007_v48 = vld [vmem:[#allocation9 + $0xf8] sm:$0xff] }
 0x1a4   : > { %v1061_v13 = vadd.f32 %v1059_v62, %v1057_v61  ;;  %1109 = vmatmul.f32.gmra.mxu1 %v5956_v25  ;;  %1155 = vmatmul.f32.gmra.mxu3 %v5956_v25  ;;  %3919 = vtanh.f32 %v1036_v56  ;;  %v1053_v50 = vadd.f32 1.0, %v3916_v30  ;;  %v6014_v56 = vld [vmem:[#allocation9 + $0xc8] sm:$0xff]  ;;  %v6017_v60 = vld [vmem:[#allocation9 + $0xd8] sm:$0xff] }
 0x1a5   : > { %1333 = vmatpush.msra.mxu1 %v5970_v14  ;;  %1379 = vmatpush.msra.mxu3 %v5973_v37  ;;  %v1048_v38 = vmul.f32 0.5, %v1046_v42  ;;  %v6022_v26 = vld [vmem:[#allocation9 + $0xa8] sm:$0xff]  ;;  %v6025_v61 = vld [vmem:[#allocation9 + $0xb8] sm:$0xff] }
 0x1a6   : > { %3921 = vtanh.f32 %v1061_v13  ;;  %v5978_v49 = vsel %vm5964_vm1, %v1061_v13, %v918_v55  ;;  %v1055_v32 = vmul.f32 0.5, %v1053_v50  ;;  %v6030_v30 = vld [vmem:[#allocation9 + $0x88] sm:$0xff]  ;;  %v9502_v13 = vld [vmem:[#allocation41_spill] sm:$0xff] }
 0x1a7   : > { %1334 = vmatpush.msra.mxu1 %v5980_v1  ;;  %1380 = vmatpush.msra.mxu3 %v5983_v59  ;;  %v6048_v42 = vld [vmem:[#allocation9 + $0x48] sm:$0xff]  ;;  %v9505_v33 = vld [vmem:[#allocation45_spill] sm:$0xff] }
 0x1a8   : > { %v6056_v50 = vld [vmem:[#allocation9 + $0x28] sm:$0xff] }
 0x1a9   : > { %v3918_v7 = vpop.eup %3917  ;;  %1335 = vmatpush.msra.mxu1 %v5990_v11  ;;  %1381 = vmatpush.msra.mxu3 %v5993_v23  ;;  %9506 = vst [vmem:[#allocation73_spill] sm:$0xff] %v6056_v50 }
 0x1aa   : > { %v1060_v28 = vmul.f32 %v3918_v7, %v1048_v38  ;;  %v3920_v31 = vpop.eup %3919  ;;  %v9508_v38 = vld [vmem:[#allocation48_spill] sm:$0xff]  ;;  %v9509_v7 = vld [vmem:[#allocation49_spill] sm:$0xff] }
 0x1ab   : > { %1336 = vmatpush.msra.mxu1 %v5996_v35  ;;  %1382 = vmatpush.msra.mxu3 %v5999_v44  ;;  %v1054_v55 = vadd.f32 1.0, %v3920_v31  ;;  %v9513_v31 = vld [vmem:[#allocation52_spill] sm:$0xff] }
 0x1ac   : > { %v3922_v12 = vpop.eup %3921  ;;  %v1062_v58 = vadd.f32 %v1060_v28, %v1058_v27  ;;  %1198 = vmatmul.f32.vlgmr.msrb.gmra.mxu1 %v5922_v4  ;;  %1244 = vmatmul.f32.vlgmr.msrb.gmra.mxu3 %v5922_v4  ;;  %v6067_v27 = vld [vmem:[#allocation9 + $0x18] sm:$0xff] }
 0x1ad   : > { %1337 = vmatpush.msra.mxu1 %v6004_v47  ;;  %1383 = vmatpush.msra.mxu3 %v6007_v48  ;;  %v1065_v51 = vmul.f32 %v3922_v12, %v1055_v32  ;;  %v1056_v46 = vmul.f32 0.5, %v1054_v55  ;;  %9511 = vst [vmem:[#allocation77_spill] sm:$0xff] %v6067_v27  ;;  %v9514_v32 = vld [vmem:[#allocation53_spill] sm:$0xff]  ;;  %v9515_v12 = vld [vmem:[#allocation56_spill] sm:$0xff]  ;;  %v6082_v55 = vld [vmem:[#allocation11 + $0x3e0] sm:$0xff] }
 0x1ae   : > { %3923 = vtanh.f32 %v1062_v58  ;;  %v6012_v52 = vsel %vm5964_vm1, %v1062_v58, %v919_v10  ;;  %v6064_v10 = vld [vmem:[#allocation9 + $0x8] sm:$0xff]  ;;  %v9516_v58 = vld [vmem:[#allocation57_spill] sm:$0xff]  ;;  %9517 = vst [vmem:[#allocation83_spill] sm:$0xff] %v6082_v55 }
 0x1af   : > { %1083 = vmatmul.f32.vlgmr.msra.gmra.mxu0 %v1065_v51  ;;  %1129 = vmatmul.f32.vlgmr.msra.gmra.mxu2 %v1065_v51  ;;  %9510 = vst [vmem:[#allocation76_spill] sm:$0xff] %v6064_v10  ;;  %v6073_v28 = vsel %vm5964_vm1, %v1065_v51, %v5695_v5  ;;  %v9518_v5 = vld [vmem:[#allocation60_spill] sm:$0xff] }
 0x1b0   : > { %1338 = vmatpush.msra.mxu1 %v6014_v56  ;;  %1384 = vmatpush.msra.mxu3 %v6017_v60  ;;  %9512 = vst [vmem:[#allocation80_spill] sm:$0xff] %v6073_v28 }
 0x1b1   : > { %1306 = vmatpush.msra.mxu0 %v5697_v6  ;;  %1352 = vmatpush.msra.mxu2 %v5701_v16  ;;  %v6033_v6 = vld [vmem:[#allocation9 + $0x98] sm:$0xff] }
 0x1b2   : > { %1339 = vmatpush.msra.mxu1 %v6022_v26  ;;  %1385 = vmatpush.msra.mxu3 %v6025_v61 }
 0x1b3   : > { %1307 = vmatpush.msra.mxu0 %v5705_v3  ;;  %1353 = vmatpush.msra.mxu2 %v5709_v22  ;;  %v6040_v3 = vld [vmem:[#allocation9 + $0x68] sm:$0xff]  ;;  %v6043_v22 = vld [vmem:[#allocation9 + $0x78] sm:$0xff] }
 0x1b4   : > { %v3924_v62 = vpop.eup %3923  ;;  %1340 = vmatpush.msra.mxu1 %v6030_v30  ;;  %1386 = vmatpush.msra.mxu3 %v6033_v6 }
 0x1b5   : > { %1201 = vmatmul.f32.gmra.mxu1 %v5956_v25  ;;  %1247 = vmatmul.f32.gmra.mxu3 %v5956_v25  ;;  %v1066_v16 = vmul.f32 %v3924_v62, %v1056_v46  ;;  %v9520_v46 = vld [vmem:[#allocation61_spill] sm:$0xff]  ;;  %v6090_v62 = vld [vmem:[#allocation11 + $0x3c0] sm:$0xff] }
 0x1b6   : > { %1308 = vmatpush.msra.mxu0 %v5713_v17  ;;  %1354 = vmatpush.msra.mxu2 %v5717_v57  ;;  %v6051_v17 = vld [vmem:[#allocation9 + $0x58] sm:$0xff]  ;;  %v9504_v57 = vld [vmem:[#allocation44_spill] sm:$0xff]  ;;  %9521 = vst [vmem:[#allocation14_spill] sm:$0xff] %v6090_v62 }
 0x1b7   : > { %1341 = vmatpush.msra.mxu1 %v6040_v3  ;;  %1387 = vmatpush.msra.mxu3 %v6043_v22  ;;  %9503 = vst [vmem:[#allocation26_spill] sm:$0xff] %v6051_v17 }
 0x1b8   : > { %1309 = vmatpush.msra.mxu0 %v5721_v34  ;;  %1355 = vmatpush.msra.mxu2 %v9502_v13  ;;  %v6059_v34 = vld [vmem:[#allocation9 + $0x38] sm:$0xff]  ;;  %v9522_v13 = vld [vmem:[#allocation64_spill] sm:$0xff] }
 0x1b9   : > { %1086 = vmatmul.f32.gmra.mxu0 %v1066_v16  ;;  %1132 = vmatmul.f32.gmra.mxu2 %v1066_v16  ;;  %9507 = vst [vmem:[#allocation74_spill] sm:$0xff] %v6059_v34 }
 0x1ba   : > { %1342 = vmatpush.msra.mxu1 %v6048_v42  ;;  %1388 = vmatpush.msra.mxu3 %v6051_v17 }
 0x1bb   : > { %1310 = vmatpush.msra.mxu0 %v9504_v57  ;;  %1356 = vmatpush.msra.mxu2 %v9505_v33  ;;  %v6099_v57 = vld [vmem:[#allocation11 + $0x3c8] sm:$0xff] }
 0x1bc   : > { %1343 = vmatpush.msra.mxu1 %v6056_v50  ;;  %1389 = vmatpush.msra.mxu3 %v6059_v34  ;;  %9524 = vst [vmem:[#allocation16_spill] sm:$0xff] %v6099_v57  ;;  %v9525_v33 = vld [vmem:[#allocation23_spill] sm:$0xff] }
 0x1bd   : > { %1311 = vmatpush.msra.mxu0 %v9508_v38  ;;  %1357 = vmatpush.msra.mxu2 %v9509_v7  ;;  %v9526_v38 = vld [vmem:[#allocation62_spill] sm:$0xff] }
 0x1be   : > { %1344 = vmatpush.msra.mxu1 %v6064_v10  ;;  %1390 = vmatpush.msra.mxu3 %v6067_v27  ;;  %v6106_v7 = vld [vmem:[#allocation9 + $0x80] sm:$0xff] }
 0x1bf   : > { %1312 = vmatpush.msra.mxu0 %v5748_v45  ;;  %1345 = vmatmul.f32.vlgmr.msra.gmra.mxu1 %v6073_v28  ;;  %v6086_v45 = vld [vmem:[#allocation11 + $0x3e8] sm:$0xff]  ;;  %9527 = vst [vmem:[#allocation15_spill] sm:$0xff] %v6106_v7 }
 0x1c0   : > { %1358 = vmatpush.msra.mxu2 %v9513_v31  ;;  %1391 = vmatmul.f32.vlgmr.msra.gmra.mxu3 %v6073_v28  ;;  %9519 = vst [vmem:[#allocation84_spill] sm:$0xff] %v6086_v45  ;;  %v9528_v31 = vld [vmem:[#allocation66_spill] sm:$0xff] }
 0x1c1   : > { %1313 = vmatpush.msra.mxu0 %v9514_v32  ;;  %1221 = vmatmul.f32.vlgmr.msrb.gmra.mxu2 %v1065_v51  ;;  %v6113_v32 = vld [vmem:[#allocation11 + $0x3a0] sm:$0xff] }
 0x1c2   : > { %1359 = vmatpush.msra.mxu2 %v9515_v12  ;;  %1175 = vmatmul.f32.vlgmr.msrb.gmra.mxu0 %v1065_v51  ;;  %v6097_v51 = vsel %vm5964_vm1, %v1066_v16, %v5731_v8  ;;  %v6110_v8 = vld [vmem:[#allocation9 + $0x60] sm:$0xff]  ;;  %9530 = vst [vmem:[#allocation18_spill] sm:$0xff] %v6113_v32  ;;  %v6116_v12 = vld [vmem:[#allocation9 + $0x70] sm:$0xff] }
 0x1c3   : > { %1314 = vmatpush.msra.mxu0 %v9516_v58  ;;  %1459 = vmatpush.msrb.mxu1 %v6082_v55  ;;  %9523 = vst [vmem:[#allocation85_spill] sm:$0xff] %v6097_v51  ;;  %v6119_v58 = vld [vmem:[#allocation11 + $0x3a8] sm:$0xff] }
 0x1c4   : > { %1360 = vmatpush.msra.mxu2 %v9518_v5  ;;  %1505 = vmatpush.msrb.mxu3 %v6086_v45  ;;  %9529 = vst [vmem:[#allocation86_spill] sm:$0xff] %v6110_v8  ;;  %v6122_v5 = vld [vmem:[#allocation9 + $0x40] sm:$0xff] }
 0x1c5   : > { %1315 = vmatpush.msra.mxu0 %v9520_v46  ;;  %1460 = vmatpush.msrb.mxu1 %v6090_v62  ;;  %9531 = vst [vmem:[#allocation87_spill] sm:$0xff] %v6116_v12  ;;  %v6128_v46 = vld [vmem:[#allocation9 + $0x50] sm:$0xff] }
 0x1c6   : > { %1361 = vmatpush.msra.mxu2 %v9522_v13  ;;  %1506 = vmatpush.msrb.mxu3 %v6099_v57  ;;  %9532 = vst [vmem:[#allocation17_spill] sm:$0xff] %v6119_v58  ;;  %v6131_v13 = vld [vmem:[#allocation11 + $0x388] sm:$0xff] }
 0x1c7   : > { %1316 = vmatpush.msra.mxu0 %v9525_v33  ;;  %1348 = vmatmul.f32.gmra.mxu1 %v6097_v51  ;;  %9533 = vst [vmem:[#allocation88_spill] sm:$0xff] %v6122_v5  ;;  %v6134_v33 = vld [vmem:[#allocation9 + $0x20] sm:$0xff] }
 0x1c8   : > { %1362 = vmatpush.msra.mxu2 %v9526_v38  ;;  %1394 = vmatmul.f32.gmra.mxu3 %v6097_v51  ;;  %9535 = vst [vmem:[#allocation89_spill] sm:$0xff] %v6128_v46  ;;  %v6137_v38 = vld [vmem:[#allocation11 + $0x360] sm:$0xff] }
 0x1c9   : > { %1317 = vmatpush.msra.mxu0 %v6106_v7  ;;  %1224 = vmatmul.f32.gmra.mxu2 %v1066_v16  ;;  %9536 = vst [vmem:[#allocation19_spill] sm:$0xff] %v6131_v13 }
 0x1ca   : > { %1363 = vmatpush.msra.mxu2 %v9528_v31  ;;  %1178 = vmatmul.f32.gmra.mxu0 %v1066_v16  ;;  %v6125_v16 = vld [vmem:[#allocation11 + $0x380] sm:$0xff]  ;;  %9537 = vst [vmem:[#allocation90_spill] sm:$0xff] %v6134_v33  ;;  %v6140_v31 = vld [vmem:[#allocation9 + $0x30] sm:$0xff] }
 0x1cb   : > { %1318 = vmatpush.msra.mxu0 %v6110_v8  ;;  %1461 = vmatpush.msrb.mxu1 %v6113_v32  ;;  %9534 = vst [vmem:[#allocation20_spill] sm:$0xff] %v6125_v16 }
 0x1cc   : > { %1364 = vmatpush.msra.mxu2 %v6116_v12  ;;  %1507 = vmatpush.msrb.mxu3 %v6119_v58  ;;  %9538 = vst [vmem:[#allocation22_spill] sm:$0xff] %v6137_v38 }
 0x1cd   : > { %1319 = vmatpush.msra.mxu0 %v6122_v5  ;;  %1462 = vmatpush.msrb.mxu1 %v6125_v16  ;;  %9539 = vst [vmem:[#allocation91_spill] sm:$0xff] %v6140_v31  ;;  %v6143_v16 = vld [vmem:[#allocation11 + $0x368] sm:$0xff] }
 0x1ce   : > { %1365 = vmatpush.msra.mxu2 %v6128_v46  ;;  %1508 = vmatpush.msrb.mxu3 %v6131_v13  ;;  %9540 = vst [vmem:[#allocation21_spill] sm:$0xff] %v6143_v16  ;;  %v6146_v46 = vld [vmem:[#allocation9] sm:$0xff] }
 0x1cf   : > { %1320 = vmatpush.msra.mxu0 %v6134_v33  ;;  %1463 = vmatpush.msrb.mxu1 %v6137_v38  ;;  %9541 = vst [vmem:[#allocation24_spill] sm:$0xff] %v6146_v46  ;;  %v6149_v13 = vld [vmem:[#allocation11 + $0x340] sm:$0xff]  ;;  %v6152_v33 = vld [vmem:[#allocation9 + $0x10] sm:$0xff] }
 0x1d0   : > { %1366 = vmatpush.msra.mxu2 %v6140_v31  ;;  %1509 = vmatpush.msrb.mxu3 %v6143_v16  ;;  %9542 = vst [vmem:[#allocation25_spill] sm:$0xff] %v6149_v13  ;;  %v6157_v31 = vld [vmem:[#allocation11 + $0x348] sm:$0xff]  ;;  %v6160_v16 = vld [vmem:[#allocation11 + $0x320] sm:$0xff] }
 0x1d1   : > { %1321 = vmatpush.msra.mxu0 %v6146_v46  ;;  %1464 = vmatpush.msrb.mxu1 %v6149_v13  ;;  %9543 = vst [vmem:[#allocation92_spill] sm:$0xff] %v6152_v33  ;;  %v6163_v46 = vld [vmem:[#allocation11 + $0x1e0] sm:$0xff]  ;;  %v6166_v13 = vld [vmem:[#allocation11 + $0x328] sm:$0xff] }
 0x1d2   : > { %1367 = vmatpush.msra.mxu2 %v6152_v33  ;;  %1322 = vmatmul.f32.vlgmr.msra.gmra.mxu0 %v6073_v28  ;;  %9544 = vst [vmem:[#allocation27_spill] sm:$0xff] %v6157_v31  ;;  %v6169_v33 = vld [vmem:[#allocation11 + $0x1e8] sm:$0xff]  ;;  %v6172_v38 = vld [vmem:[#allocation11 + $0x300] sm:$0xff] }
 0x1d3   : > { %1368 = vmatmul.f32.vlgmr.msra.gmra.mxu2 %v6073_v28  ;;  %1510 = vmatpush.msrb.mxu3 %v6157_v31  ;;  %9545 = vst [vmem:[#allocation93_spill] sm:$0xff] %v6160_v16  ;;  %v6175_v31 = vld [vmem:[#allocation11 + $0x1c0] sm:$0xff] }
 0x1d4   : > { %1465 = vmatpush.msrb.mxu1 %v6160_v16  ;;  %9546 = vst [vmem:[#allocation28_spill] sm:$0xff] %v6163_v46  ;;  %1436 = vmatpush.msrb.mxu0 %v6163_v46  ;;  %v6178_v16 = vld [vmem:[#allocation11 + $0x308] sm:$0xff] }
 0x1d5   : > { %9547 = vst [vmem:[#allocation29_spill] sm:$0xff] %v6166_v13  ;;  %1511 = vmatpush.msrb.mxu3 %v6166_v13  ;;  %1482 = vmatpush.msrb.mxu2 %v6169_v33  ;;  %v6181_v46 = vld [vmem:[#allocation11 + $0x1c8] sm:$0xff]  ;;  %v6184_v13 = vld [vmem:[#allocation11 + $0x2e0] sm:$0xff] }
 0x1d6   : > { %9548 = vst [vmem:[#allocation30_spill] sm:$0xff] %v6169_v33  ;;  %1466 = vmatpush.msrb.mxu1 %v6172_v38  ;;  %1437 = vmatpush.msrb.mxu0 %v6175_v31  ;;  %v6187_v33 = vld [vmem:[#allocation11 + $0x1a0] sm:$0xff] }
 0x1d7   : > { %9549 = vst [vmem:[#allocation31_spill] sm:$0xff] %v6172_v38  ;;  %1512 = vmatpush.msrb.mxu3 %v6178_v16  ;;  %1483 = vmatpush.msrb.mxu2 %v6181_v46  ;;  %v6190_v38 = vld [vmem:[#allocation11 + $0x2e8] sm:$0xff] }
 0x1d8   : > { %9550 = vst [vmem:[#allocation32_spill] sm:$0xff] %v6175_v31  ;;  %1467 = vmatpush.msrb.mxu1 %v6184_v13  ;;  %1438 = vmatpush.msrb.mxu0 %v6187_v33  ;;  %v6193_v31 = vld [vmem:[#allocation11 + $0x1a8] sm:$0xff] }
 0x1d9   : > { %9551 = vst [vmem:[#allocation33_spill] sm:$0xff] %v6178_v16  ;;  %1513 = vmatpush.msrb.mxu3 %v6190_v38  ;;  %1484 = vmatpush.msrb.mxu2 %v6193_v31  ;;  %v6197_v16 = vld [vmem:[#allocation11 + $0x2c0] sm:$0xff] }
 0x1da   : > { %9552 = vst [vmem:[#allocation34_spill] sm:$0xff] %v6181_v46  ;;  %1325 = vmatmul.f32.gmra.mxu0 %v6097_v51  ;;  %1468 = vmatpush.msrb.mxu1 %v6197_v16  ;;  %v6213_v46 = vld [vmem:[#allocation11 + $0x188] sm:$0xff] }
 0x1db   : > { %9553 = vst [vmem:[#allocation35_spill] sm:$0xff] %v6184_v13  ;;  %1371 = vmatmul.f32.gmra.mxu2 %v6097_v51  ;;  %v6201_v13 = vld [vmem:[#allocation11 + $0x2c8] sm:$0xff] }
 0x1dc   : > { %9554 = vst [vmem:[#allocation36_spill] sm:$0xff] %v6187_v33  ;;  %1514 = vmatpush.msrb.mxu3 %v6201_v13  ;;  %v6204_v33 = vld [vmem:[#allocation11 + $0x2a0] sm:$0xff]  ;;  %1485 = vmatpush.msrb.mxu2 %v6213_v46 }
 0x1dd   : > { %9555 = vst [vmem:[#allocation37_spill] sm:$0xff] %v6190_v38  ;;  %1469 = vmatpush.msrb.mxu1 %v6204_v33  ;;  %v6207_v38 = vld [vmem:[#allocation11 + $0x180] sm:$0xff] }
 0x1de   : > { %9556 = vst [vmem:[#allocation38_spill] sm:$0xff] %v6193_v31  ;;  %1439 = vmatpush.msrb.mxu0 %v6207_v38  ;;  %v6210_v31 = vld [vmem:[#allocation11 + $0x2a8] sm:$0xff] }
 0x1df   : > { %9557 = vst [vmem:[#allocation39_spill] sm:$0xff] %v6197_v16  ;;  %1515 = vmatpush.msrb.mxu3 %v6210_v31  ;;  %v6216_v16 = vld [vmem:[#allocation11 + $0x280] sm:$0xff] }
 0x1e0   : > { %9558 = vst [vmem:[#allocation40_spill] sm:$0xff] %v6201_v13  ;;  %1470 = vmatpush.msrb.mxu1 %v6216_v16  ;;  %v6219_v13 = vld [vmem:[#allocation11 + $0x160] sm:$0xff] }
 0x1e1   : > { %9559 = vst [vmem:[#allocation42_spill] sm:$0xff] %v6204_v33  ;;  %1440 = vmatpush.msrb.mxu0 %v6219_v13  ;;  %v6222_v33 = vld [vmem:[#allocation11 + $0x288] sm:$0xff] }
 0x1e2   : > { %9560 = vst [vmem:[#allocation43_spill] sm:$0xff] %v6207_v38  ;;  %1516 = vmatpush.msrb.mxu3 %v6222_v33  ;;  %v6225_v38 = vld [vmem:[#allocation11 + $0x168] sm:$0xff] }
 0x1e3   : > { %9561 = vst [vmem:[#allocation46_spill] sm:$0xff] %v6210_v31  ;;  %1486 = vmatpush.msrb.mxu2 %v6225_v38  ;;  %v6228_v31 = vld [vmem:[#allocation11 + $0x260] sm:$0xff] }
 0x1e4   : > { %9562 = vst [vmem:[#allocation47_spill] sm:$0xff] %v6213_v46  ;;  %1471 = vmatpush.msrb.mxu1 %v6228_v31  ;;  %v6231_v46 = vld [vmem:[#allocation11 + $0x140] sm:$0xff] }
 0x1e5   : > { %9563 = vst [vmem:[#allocation50_spill] sm:$0xff] %v6216_v16  ;;  %1441 = vmatpush.msrb.mxu0 %v6231_v46  ;;  %v6234_v16 = vld [vmem:[#allocation11 + $0x268] sm:$0xff] }
 0x1e6   : > { %9564 = vst [vmem:[#allocation51_spill] sm:$0xff] %v6219_v13  ;;  %1517 = vmatpush.msrb.mxu3 %v6234_v16  ;;  %v6237_v13 = vld [vmem:[#allocation11 + $0x148] sm:$0xff] }
 0x1e7   : > { %9565 = vst [vmem:[#allocation54_spill] sm:$0xff] %v6222_v33  ;;  %1487 = vmatpush.msrb.mxu2 %v6237_v13  ;;  %v6240_v33 = vld [vmem:[#allocation11 + $0x240] sm:$0xff] }
 0x1e8   : > { %9566 = vst [vmem:[#allocation55_spill] sm:$0xff] %v6225_v38  ;;  %1472 = vmatpush.msrb.mxu1 %v6240_v33  ;;  %v6243_v38 = vld [vmem:[#allocation11 + $0x120] sm:$0xff] }
 0x1e9   : > { %9567 = vst [vmem:[#allocation58_spill] sm:$0xff] %v6228_v31  ;;  %1442 = vmatpush.msrb.mxu0 %v6243_v38  ;;  %v6246_v31 = vld [vmem:[#allocation11 + $0x248] sm:$0xff] }
 0x1ea   : > { %9568 = vst [vmem:[#allocation59_spill] sm:$0xff] %v6231_v46  ;;  %1518 = vmatpush.msrb.mxu3 %v6246_v31  ;;  %v6249_v46 = vld [vmem:[#allocation11 + $0x128] sm:$0xff] }
 0x1eb   : > { %9569 = vst [vmem:[#allocation63_spill] sm:$0xff] %v6234_v16  ;;  %1488 = vmatpush.msrb.mxu2 %v6249_v46  ;;  %v6252_v16 = vld [vmem:[#allocation11 + $0x220] sm:$0xff] }
 0x1ec   : > { %9570 = vst [vmem:[#allocation65_spill] sm:$0xff] %v6237_v13  ;;  %1473 = vmatpush.msrb.mxu1 %v6252_v16  ;;  %v6255_v13 = vld [vmem:[#allocation11 + $0x100] sm:$0xff] }
 0x1ed   : > { %9571 = vst [vmem:[#allocation68_spill] sm:$0xff] %v6240_v33  ;;  %1443 = vmatpush.msrb.mxu0 %v6255_v13  ;;  %v6258_v33 = vld [vmem:[#allocation11 + $0x228] sm:$0xff] }
 0x1ee   : > { %9572 = vst [vmem:[#allocation69_spill] sm:$0xff] %v6243_v38  ;;  %1519 = vmatpush.msrb.mxu3 %v6258_v33  ;;  %v6261_v38 = vld [vmem:[#allocation11 + $0x108] sm:$0xff] }
 0x1ef   : > { %9573 = vst [vmem:[#allocation72_spill] sm:$0xff] %v6246_v31  ;;  %1489 = vmatpush.msrb.mxu2 %v6261_v38  ;;  %v6264_v31 = vld [vmem:[#allocation11 + $0x200] sm:$0xff] }
 0x1f0   : > { %9574 = vst [vmem:[#allocation75_spill] sm:$0xff] %v6249_v46  ;;  %1474 = vmatpush.msrb.mxu1 %v6264_v31  ;;  %v6267_v46 = vld [vmem:[#allocation11 + $0xe0] sm:$0xff] }
 0x1f1   : > { %9575 = vst [vmem:[#allocation78_spill] sm:$0xff] %v6252_v16  ;;  %1444 = vmatpush.msrb.mxu0 %v6267_v46  ;;  %v6270_v16 = vld [vmem:[#allocation11 + $0x208] sm:$0xff] }
 0x1f2   : > { %9576 = vst [vmem:[#allocation79_spill] sm:$0xff] %v6255_v13  ;;  %1520 = vmatpush.msrb.mxu3 %v6270_v16  ;;  %v6273_v13 = vld [vmem:[#allocation11 + $0x3f0] sm:$0xff] }
 0x1f3   : > { %9577 = vst [vmem:[#allocation81_spill] sm:$0xff] %v6258_v33  ;;  %1551 = vmatpush.msra.mxu1 %v6273_v13  ;;  %v6276_v33 = vld [vmem:[#allocation11 + $0x3f8] sm:$0xff] }
 0x1f4   : > { %9578 = vst [vmem:[#allocation82_spill] sm:$0xff] %v6261_v38  ;;  %1597 = vmatpush.msra.mxu3 %v6276_v33  ;;  %v6279_v38 = vld [vmem:[#allocation11 + $0xe8] sm:$0xff] }
 0x1f5   : > { %9579 = vst [vmem:[#allocation41_spill] sm:$0xff] %v6264_v31  ;;  %1490 = vmatpush.msrb.mxu2 %v6279_v38  ;;  %v6282_v31 = vld [vmem:[#allocation11 + $0x3d0] sm:$0xff] }
 0x1f6   : > { %9580 = vst [vmem:[#allocation44_spill] sm:$0xff] %v6267_v46  ;;  %1552 = vmatpush.msra.mxu1 %v6282_v31  ;;  %v6285_v46 = vld [vmem:[#allocation11 + $0xc0] sm:$0xff] }
 0x1f7   : > { %9581 = vst [vmem:[#allocation45_spill] sm:$0xff] %v6270_v16  ;;  %1445 = vmatpush.msrb.mxu0 %v6285_v46  ;;  %v6288_v16 = vld [vmem:[#allocation11 + $0x3d8] sm:$0xff] }
 0x1f8   : > { %9582 = vst [vmem:[#allocation48_spill] sm:$0xff] %v6273_v13  ;;  %1598 = vmatpush.msra.mxu3 %v6288_v16  ;;  %v6291_v13 = vld [vmem:[#allocation11 + $0xc8] sm:$0xff] }
 0x1f9   : > { %9583 = vst [vmem:[#allocation49_spill] sm:$0xff] %v6276_v33  ;;  %1491 = vmatpush.msrb.mxu2 %v6291_v13  ;;  %v6294_v33 = vld [vmem:[#allocation11 + $0x3b0] sm:$0xff] }
 0x1fa   : > { %9584 = vst [vmem:[#allocation52_spill] sm:$0xff] %v6279_v38  ;;  %1553 = vmatpush.msra.mxu1 %v6294_v33  ;;  %v6297_v38 = vld [vmem:[#allocation11 + $0xa0] sm:$0xff] }
 0x1fb   : > { %9585 = vst [vmem:[#allocation53_spill] sm:$0xff] %v6282_v31  ;;  %1446 = vmatpush.msrb.mxu0 %v6297_v38  ;;  %v6300_v31 = vld [vmem:[#allocation11 + $0x3b8] sm:$0xff] }
 0x1fc   : > { %9586 = vst [vmem:[#allocation56_spill] sm:$0xff] %v6285_v46  ;;  %1599 = vmatpush.msra.mxu3 %v6300_v31  ;;  %v6303_v46 = vld [vmem:[#allocation11 + $0xa8] sm:$0xff] }
 0x1fd   : > { %9587 = vst [vmem:[#allocation57_spill] sm:$0xff] %v6288_v16  ;;  %1492 = vmatpush.msrb.mxu2 %v6303_v46  ;;  %v6306_v16 = vld [vmem:[#allocation11 + $0x390] sm:$0xff] }
 0x1fe   : > { %9588 = vst [vmem:[#allocation60_spill] sm:$0xff] %v6291_v13  ;;  %1554 = vmatpush.msra.mxu1 %v6306_v16  ;;  %v6309_v13 = vld [vmem:[#allocation11 + $0x80] sm:$0xff] }
 0x1ff   : > { %9589 = vst [vmem:[#allocation61_spill] sm:$0xff] %v6294_v33  ;;  %1447 = vmatpush.msrb.mxu0 %v6309_v13  ;;  %v6312_v33 = vld [vmem:[#allocation11 + $0x398] sm:$0xff] }
 0x200   : > { %9590 = vst [vmem:[#allocation64_spill] sm:$0xff] %v6297_v38  ;;  %1600 = vmatpush.msra.mxu3 %v6312_v33  ;;  %v6315_v38 = vld [vmem:[#allocation11 + $0x88] sm:$0xff] }
 0x201   : > { %9591 = vst [vmem:[#allocation23_spill] sm:$0xff] %v6300_v31  ;;  %1493 = vmatpush.msrb.mxu2 %v6315_v38  ;;  %v6318_v31 = vld [vmem:[#allocation11 + $0x370] sm:$0xff] }
 0x202   : > { %9592 = vst [vmem:[#allocation62_spill] sm:$0xff] %v6303_v46  ;;  %1555 = vmatpush.msra.mxu1 %v6318_v31  ;;  %v6321_v46 = vld [vmem:[#allocation11 + $0x60] sm:$0xff] }
 0x203   : > { %9593 = vst [vmem:[#allocation66_spill] sm:$0xff] %v6306_v16  ;;  %1448 = vmatpush.msrb.mxu0 %v6321_v46  ;;  %v6324_v16 = vld [vmem:[#allocation11 + $0x378] sm:$0xff] }
 0x204   : > { %9594 = vst [vmem:[#allocation94_spill] sm:$0xff] %v6309_v13  ;;  %1601 = vmatpush.msra.mxu3 %v6324_v16  ;;  %v6327_v13 = vld [vmem:[#allocation11 + $0x68] sm:$0xff] }
 0x205   : > { %9595 = vst [vmem:[#allocation95_spill] sm:$0xff] %v6312_v33  ;;  %1494 = vmatpush.msrb.mxu2 %v6327_v13  ;;  %v6330_v33 = vld [vmem:[#allocation11 + $0x350] sm:$0xff] }
 0x206   : > { %9596 = vst [vmem:[#allocation96_spill] sm:$0xff] %v6315_v38  ;;  %1556 = vmatpush.msra.mxu1 %v6330_v33  ;;  %v6333_v38 = vld [vmem:[#allocation11 + $0x40] sm:$0xff] }
 0x207   : > { %9597 = vst [vmem:[#allocation97_spill] sm:$0xff] %v6318_v31  ;;  %1449 = vmatpush.msrb.mxu0 %v6333_v38  ;;  %v6336_v31 = vld [vmem:[#allocation11 + $0x358] sm:$0xff] }
 0x208   : > { %9598 = vst [vmem:[#allocation98_spill] sm:$0xff] %v6321_v46  ;;  %1602 = vmatpush.msra.mxu3 %v6336_v31  ;;  %v6339_v46 = vld [vmem:[#allocation11 + $0x48] sm:$0xff] }
 0x209   : > { %9599 = vst [vmem:[#allocation99_spill] sm:$0xff] %v6324_v16  ;;  %1495 = vmatpush.msrb.mxu2 %v6339_v46  ;;  %v6342_v16 = vld [vmem:[#allocation11 + $0x330] sm:$0xff] }
 0x20a   : > { %9600 = vst [vmem:[#allocation100_spill] sm:$0xff] %v6327_v13  ;;  %1557 = vmatpush.msra.mxu1 %v6342_v16  ;;  %v6345_v13 = vld [vmem:[#allocation11 + $0x20] sm:$0xff] }
 0x20b   : > { %9601 = vst [vmem:[#allocation101_spill] sm:$0xff] %v6330_v33  ;;  %1450 = vmatpush.msrb.mxu0 %v6345_v13  ;;  %v6348_v33 = vld [vmem:[#allocation11 + $0x338] sm:$0xff] }
 0x20c   : > { %9602 = vst [vmem:[#allocation102_spill] sm:$0xff] %v6333_v38  ;;  %1603 = vmatpush.msra.mxu3 %v6348_v33  ;;  %v6351_v38 = vld [vmem:[#allocation11 + $0x28] sm:$0xff] }
 0x20d   : > { %9603 = vst [vmem:[#allocation103_spill] sm:$0xff] %v6336_v31  ;;  %1496 = vmatpush.msrb.mxu2 %v6351_v38  ;;  %v6354_v31 = vld [vmem:[#allocation11 + $0x310] sm:$0xff] }
 0x20e   : > { %9604 = vst [vmem:[#allocation104_spill] sm:$0xff] %v6339_v46  ;;  %1558 = vmatpush.msra.mxu1 %v6354_v31  ;;  %v6357_v46 = vld [vmem:[#allocation11] sm:$0xff] }
 0x20f   : > { %9605 = vst [vmem:[#allocation105_spill] sm:$0xff] %v6342_v16  ;;  %1451 = vmatpush.msrb.mxu0 %v6357_v46  ;;  %v6360_v16 = vld [vmem:[#allocation11 + $0x318] sm:$0xff] }
 0x210   : > { %9606 = vst [vmem:[#allocation106_spill] sm:$0xff] %v6345_v13  ;;  %1604 = vmatpush.msra.mxu3 %v6360_v16  ;;  %v6363_v13 = vld [vmem:[#allocation11 + $0x8] sm:$0xff] }
 0x211   : > { %9607 = vst [vmem:[#allocation107_spill] sm:$0xff] %v6348_v33  ;;  %1497 = vmatpush.msrb.mxu2 %v6363_v13  ;;  %v6366_v33 = vld [vmem:[#allocation11 + $0x2f0] sm:$0xff] }
 0x212   : > { %9608 = vst [vmem:[#allocation108_spill] sm:$0xff] %v6351_v38  ;;  %1559 = vmatpush.msra.mxu1 %v6366_v33  ;;  %v6369_v38 = vld [vmem:[#allocation11 + $0x1f0] sm:$0xff] }
 0x213   : > { %9609 = vst [vmem:[#allocation109_spill] sm:$0xff] %v6354_v31  ;;  %1528 = vmatpush.msra.mxu0 %v6369_v38  ;;  %v6372_v31 = vld [vmem:[#allocation11 + $0x2f8] sm:$0xff] }
 0x214   : > { %9610 = vst [vmem:[#allocation110_spill] sm:$0xff] %v6357_v46  ;;  %1605 = vmatpush.msra.mxu3 %v6372_v31  ;;  %v6375_v46 = vld [vmem:[#allocation11 + $0x1f8] sm:$0xff] }
 0x215   : > { %9611 = vst [vmem:[#allocation111_spill] sm:$0xff] %v6360_v16  ;;  %1574 = vmatpush.msra.mxu2 %v6375_v46  ;;  %v6378_v16 = vld [vmem:[#allocation11 + $0x2d0] sm:$0xff] }
 0x216   : > { %9612 = vst [vmem:[#allocation112_spill] sm:$0xff] %v6363_v13  ;;  %1560 = vmatpush.msra.mxu1 %v6378_v16  ;;  %v6381_v13 = vld [vmem:[#allocation11 + $0x1d0] sm:$0xff] }
 0x217   : > { %9613 = vst [vmem:[#allocation113_spill] sm:$0xff] %v6366_v33  ;;  %1529 = vmatpush.msra.mxu0 %v6381_v13  ;;  %v6384_v33 = vld [vmem:[#allocation11 + $0x2d8] sm:$0xff] }
 0x218   : > { %9614 = vst [vmem:[#allocation114_spill] sm:$0xff] %v6369_v38  ;;  %1606 = vmatpush.msra.mxu3 %v6384_v33  ;;  %v6387_v38 = vld [vmem:[#allocation11 + $0x1d8] sm:$0xff] }
 0x219   : > { %9615 = vst [vmem:[#allocation115_spill] sm:$0xff] %v6372_v31  ;;  %1575 = vmatpush.msra.mxu2 %v6387_v38  ;;  %v6390_v31 = vld [vmem:[#allocation11 + $0x2b0] sm:$0xff] }
 0x21a   : > { %9616 = vst [vmem:[#allocation116_spill] sm:$0xff] %v6375_v46  ;;  %1561 = vmatpush.msra.mxu1 %v6390_v31  ;;  %v6393_v46 = vld [vmem:[#allocation11 + $0x1b0] sm:$0xff] }
 0x21b   : > { %9617 = vst [vmem:[#allocation117_spill] sm:$0xff] %v6378_v16  ;;  %1530 = vmatpush.msra.mxu0 %v6393_v46  ;;  %v6396_v16 = vld [vmem:[#allocation11 + $0x2b8] sm:$0xff] }
 0x21c   : > { %9618 = vst [vmem:[#allocation118_spill] sm:$0xff] %v6381_v13  ;;  %1607 = vmatpush.msra.mxu3 %v6396_v16  ;;  %v6399_v13 = vld [vmem:[#allocation11 + $0x1b8] sm:$0xff] }
 0x21d   : > { %9619 = vst [vmem:[#allocation119_spill] sm:$0xff] %v6384_v33  ;;  %1576 = vmatpush.msra.mxu2 %v6399_v13  ;;  %v6402_v33 = vld [vmem:[#allocation11 + $0x290] sm:$0xff] }
 0x21e   : > { %9620 = vst [vmem:[#allocation120_spill] sm:$0xff] %v6387_v38  ;;  %1562 = vmatpush.msra.mxu1 %v6402_v33  ;;  %v6405_v38 = vld [vmem:[#allocation11 + $0x190] sm:$0xff] }
 0x21f   : > { %9621 = vst [vmem:[#allocation121_spill] sm:$0xff] %v6390_v31  ;;  %1531 = vmatpush.msra.mxu0 %v6405_v38  ;;  %v6408_v31 = vld [vmem:[#allocation11 + $0x298] sm:$0xff]  ;;  %v1153_v58 = vpop.f32.mrf.mxu3 }
 0x220   : > { %9622 = vst [vmem:[#allocation122_spill] sm:$0xff] %v6393_v46  ;;  %1608 = vmatpush.msra.mxu3 %v6408_v31  ;;  %v6411_v46 = vld [vmem:[#allocation11 + $0x198] sm:$0xff] }
 0x221   : > { %9623 = vst [vmem:[#allocation123_spill] sm:$0xff] %v6396_v16  ;;  %1577 = vmatpush.msra.mxu2 %v6411_v46  ;;  %v6414_v16 = vld [vmem:[#allocation11 + $0x270] sm:$0xff] }
 0x222   : > { %9624 = vst [vmem:[#allocation124_spill] sm:$0xff] %v6399_v13  ;;  %1563 = vmatpush.msra.mxu1 %v6414_v16  ;;  %v6417_v13 = vld [vmem:[#allocation11 + $0x170] sm:$0xff] }
 0x223   : > { %9625 = vst [vmem:[#allocation125_spill] sm:$0xff] %v6402_v33  ;;  %1532 = vmatpush.msra.mxu0 %v6417_v13  ;;  %v6420_v33 = vld [vmem:[#allocation11 + $0x278] sm:$0xff] }
 0x224   : > { %9626 = vst [vmem:[#allocation126_spill] sm:$0xff] %v6405_v38  ;;  %1609 = vmatpush.msra.mxu3 %v6420_v33  ;;  %v6423_v38 = vld [vmem:[#allocation11 + $0x178] sm:$0xff] }
 0x225   : > { %9627 = vst [vmem:[#allocation127_spill] sm:$0xff] %v6408_v31  ;;  %1578 = vmatpush.msra.mxu2 %v6423_v38  ;;  %v6426_v31 = vld [vmem:[#allocation11 + $0x250] sm:$0xff] }
 0x226   : > { %9628 = vst [vmem:[#allocation128_spill] sm:$0xff] %v6411_v46  ;;  %1564 = vmatpush.msra.mxu1 %v6426_v31  ;;  %v6429_v46 = vld [vmem:[#allocation11 + $0x150] sm:$0xff] }
 0x227   : > { %9629 = vst [vmem:[#allocation129_spill] sm:$0xff] %v6414_v16  ;;  %1533 = vmatpush.msra.mxu0 %v6429_v46  ;;  %v6432_v16 = vld [vmem:[#allocation11 + $0x258] sm:$0xff]  ;;  %v1156_v8 = vpop.f32.mrf.mxu3 }
 0x228   : > { %9630 = vst [vmem:[#allocation130_spill] sm:$0xff] %v6417_v13  ;;  %1610 = vmatpush.msra.mxu3 %v6432_v16  ;;  %v6435_v13 = vld [vmem:[#allocation11 + $0x158] sm:$0xff] }
 0x229   : > { %9631 = vst [vmem:[#allocation131_spill] sm:$0xff] %v6420_v33  ;;  %1579 = vmatpush.msra.mxu2 %v6435_v13  ;;  %v6438_v33 = vld [vmem:[#allocation11 + $0x230] sm:$0xff] }
 0x22a   : > { %9632 = vst [vmem:[#allocation132_spill] sm:$0xff] %v6423_v38  ;;  %1565 = vmatpush.msra.mxu1 %v6438_v33  ;;  %v6441_v38 = vld [vmem:[#allocation11 + $0x130] sm:$0xff] }
 0x22b   : > { %9633 = vst [vmem:[#allocation133_spill] sm:$0xff] %v6426_v31  ;;  %1534 = vmatpush.msra.mxu0 %v6441_v38  ;;  %v6444_v31 = vld [vmem:[#allocation11 + $0x238] sm:$0xff] }
 0x22c   : > { %9634 = vst [vmem:[#allocation134_spill] sm:$0xff] %v6429_v46  ;;  %1611 = vmatpush.msra.mxu3 %v6444_v31  ;;  %v6447_v46 = vld [vmem:[#allocation11 + $0x138] sm:$0xff] }
 0x22d   : > { %9635 = vst [vmem:[#allocation135_spill] sm:$0xff] %v6432_v16  ;;  %1580 = vmatpush.msra.mxu2 %v6447_v46  ;;  %v6450_v16 = vld [vmem:[#allocation11 + $0x210] sm:$0xff] }
 0x22e   : > { %9636 = vst [vmem:[#allocation136_spill] sm:$0xff] %v6435_v13  ;;  %1566 = vmatpush.msra.mxu1 %v6450_v16  ;;  %v6453_v13 = vld [vmem:[#allocation11 + $0x110] sm:$0xff] }
 0x22f   : > { %9637 = vst [vmem:[#allocation137_spill] sm:$0xff] %v6438_v33  ;;  %1535 = vmatpush.msra.mxu0 %v6453_v13  ;;  %v6456_v33 = vld [vmem:[#allocation11 + $0x218] sm:$0xff]  ;;  %v1245_v55 = vpop.f32.mrf.mxu3 }
 0x230   : > { %9638 = vst [vmem:[#allocation138_spill] sm:$0xff] %v6441_v38  ;;  %1612 = vmatpush.msra.mxu3 %v6456_v33  ;;  %v6459_v38 = vld [vmem:[#allocation11 + $0x118] sm:$0xff] }
 0x231   : > { %9639 = vst [vmem:[#allocation139_spill] sm:$0xff] %v6444_v31  ;;  %1581 = vmatpush.msra.mxu2 %v6459_v38  ;;  %v6462_v31 = vld [vmem:[#allocation11 + $0xf0] sm:$0xff] }
 0x232   : > { %9640 = vst [vmem:[#allocation140_spill] sm:$0xff] %v6447_v46  ;;  %1536 = vmatpush.msra.mxu0 %v6462_v31  ;;  %v6465_v46 = vld [vmem:[#allocation11 + $0xf8] sm:$0xff]  ;;  %v1130_v32 = vpop.f32.mrf.mxu2 }
 0x233   : > { %9641 = vst [vmem:[#allocation141_spill] sm:$0xff] %v6450_v16  ;;  %1582 = vmatpush.msra.mxu2 %v6465_v46  ;;  %v6468_v16 = vld [vmem:[#allocation11 + $0xd0] sm:$0xff] }
 0x234   : > { %9642 = vst [vmem:[#allocation142_spill] sm:$0xff] %v6453_v13  ;;  %1537 = vmatpush.msra.mxu0 %v6468_v16  ;;  %v6471_v13 = vld [vmem:[#allocation11 + $0xd8] sm:$0xff] }
 0x235   : > { %9643 = vst [vmem:[#allocation143_spill] sm:$0xff] %v6456_v33  ;;  %1583 = vmatpush.msra.mxu2 %v6471_v13  ;;  %v6474_v33 = vld [vmem:[#allocation11 + $0xb0] sm:$0xff] }
 0x236   : > { %9644 = vst [vmem:[#allocation144_spill] sm:$0xff] %v6459_v38  ;;  %1538 = vmatpush.msra.mxu0 %v6474_v33  ;;  %v6477_v38 = vld [vmem:[#allocation11 + $0xb8] sm:$0xff] }
 0x237   : > { %9645 = vst [vmem:[#allocation145_spill] sm:$0xff] %v6462_v31  ;;  %1584 = vmatpush.msra.mxu2 %v6477_v38  ;;  %v6480_v31 = vld [vmem:[#allocation11 + $0x90] sm:$0xff] }
 0x238   : > { %9646 = vst [vmem:[#allocation146_spill] sm:$0xff] %v6465_v46  ;;  %1539 = vmatpush.msra.mxu0 %v6480_v31  ;;  %v6483_v46 = vld [vmem:[#allocation11 + $0x98] sm:$0xff] }
 0x239   : > { %9647 = vst [vmem:[#allocation147_spill] sm:$0xff] %v6468_v16  ;;  %1585 = vmatpush.msra.mxu2 %v6483_v46  ;;  %v6486_v16 = vld [vmem:[#allocation11 + $0x70] sm:$0xff] }
 0x23a   : > { %9648 = vst [vmem:[#allocation148_spill] sm:$0xff] %v6471_v13  ;;  %1540 = vmatpush.msra.mxu0 %v6486_v16  ;;  %v6489_v13 = vld [vmem:[#allocation11 + $0x78] sm:$0xff] }
 0x23b   : > { %9649 = vst [vmem:[#allocation149_spill] sm:$0xff] %v6474_v33  ;;  %1586 = vmatpush.msra.mxu2 %v6489_v13  ;;  %v6492_v33 = vld [vmem:[#allocation11 + $0x50] sm:$0xff] }
 0x23c   : > { %9650 = vst [vmem:[#allocation150_spill] sm:$0xff] %v6477_v38  ;;  %1541 = vmatpush.msra.mxu0 %v6492_v33  ;;  %v6495_v38 = vld [vmem:[#allocation11 + $0x58] sm:$0xff] }
 0x23d   : > { %9651 = vst [vmem:[#allocation151_spill] sm:$0xff] %v6480_v31  ;;  %1587 = vmatpush.msra.mxu2 %v6495_v38  ;;  %v6498_v31 = vld [vmem:[#allocation11 + $0x30] sm:$0xff] }
 0x23e   : > { %9652 = vst [vmem:[#allocation152_spill] sm:$0xff] %v6483_v46  ;;  %1542 = vmatpush.msra.mxu0 %v6498_v31  ;;  %v6501_v46 = vld [vmem:[#allocation11 + $0x38] sm:$0xff] }
 0x23f   : > { %9653 = vst [vmem:[#allocation153_spill] sm:$0xff] %v6486_v16  ;;  %1588 = vmatpush.msra.mxu2 %v6501_v46  ;;  %v6504_v16 = vld [vmem:[#allocation11 + $0x10] sm:$0xff] }
 0x240   : > { %9654 = vst [vmem:[#allocation154_spill] sm:$0xff] %v6489_v13  ;;  %1543 = vmatpush.msra.mxu0 %v6504_v16  ;;  %v6507_v13 = vld [vmem:[#allocation11 + $0x18] sm:$0xff] }
 0x241   : > { %9655 = vst [vmem:[#allocation155_spill] sm:$0xff] %v6492_v33  ;;  %1589 = vmatpush.msra.mxu2 %v6507_v13  ;;  %v1107_v33 = vpop.f32.mrf.mxu1 }
 0x242   : > { %9656 = vst [vmem:[#allocation156_spill] sm:$0xff] %v6495_v38  ;;  %v1084_v38 = vpop.f32.mrf.mxu0 }
 0x243   : > { %9657 = vst [vmem:[#allocation157_spill] sm:$0xff] %v6498_v31  ;;  %v1131_v31 = vadd.f32 %v1130_v32, %v5889_v20  ;;  %v1085_v7 = vadd.f32 %v1084_v38, %v5887_v19 }
 0x244   : > { %9658 = vst [vmem:[#allocation158_spill] sm:$0xff] %v6501_v46 }
 0x245   : > { %9659 = vst [vmem:[#allocation159_spill] sm:$0xff] %v6504_v16  ;;  %v1154_v46 = vadd.f32 %v1153_v58, %v1131_v31  ;;  %v1108_v51 = vadd.f32 %v1107_v33, %v1085_v7 }
 0x246   : > { %9660 = vst [vmem:[#allocation160_spill] sm:$0xff] %v6507_v13  ;;  %v1133_v13 = vpop.f32.mrf.mxu2 }
 0x247   : > { %3925 = vtanh.f32 %v1154_v46  ;;  %v1134_v45 = vadd.f32 %v1133_v13, %v5889_v20  ;;  %v3691_v46 = vld [vmem:[%s5062_s7 + $0x40] sm:$0xff] }
 0x248   : > { %3927 = vtanh.f32 %v1108_v51  ;;  %v1299_v13 = vunpack.c.h.bf16 %v3691_v46 }
 0x249   : > { %v1110_v5 = vpop.f32.mrf.mxu1  ;;  %v1157_v27 = vadd.f32 %v1156_v8, %v1134_v45 }
 0x24a   : > { %v1087_v57 = vpop.f32.mrf.mxu0 }
 0x24b   : > { %v1088_v62 = vadd.f32 %v1087_v57, %v5887_v19  ;;  %3929 = vtanh.f32 %v1157_v27  ;;  %v1298_v19 = vunpack.c.l.bf16 %v3691_v46 }
 0x24d   : > { %v1111_v28 = vadd.f32 %v1110_v5, %v1088_v62  ;;  %v3926_v32 = vpop.eup %3925  ;;  %v1248_v5 = vpop.f32.mrf.mxu3 }
 0x24e   : > { %v3928_v38 = vpop.eup %3927  ;;  %v1263_v7 = vadd.f32 1.0, %v3926_v32  ;;  %v1222_v33 = vpop.f32.mrf.mxu2 }
 0x24f   : > { %3931 = vtanh.f32 %v1111_v28  ;;  %v1259_v57 = vadd.f32 1.0, %v3928_v38  ;;  %v1223_v31 = vadd.f32 %v1222_v33, %v5898_v41 }
 0x250   : > { %v1265_v20 = vmul.f32 0.5, %v1263_v7 }
 0x251   : > { %v1199_v12 = vpop.f32.mrf.mxu1  ;;  %v1246_v45 = vadd.f32 %v1245_v55, %v1223_v31  ;;  %v3930_v8 = vpop.eup %3929  ;;  %v3693_v55 = vld [vmem:[%s5062_s7 + $0x50] sm:$0xff] }
 0x252   : > { %v1176_v10 = vpop.f32.mrf.mxu0  ;;  %v1264_v7 = vadd.f32 1.0, %v3930_v8 }
 0x253   : > { %v1177_v34 = vadd.f32 %v1176_v10, %v5894_v40 }
 0x254   : > { %v1266_v17 = vmul.f32 0.5, %v1264_v7 }
 0x255   : > { %v1200_v58 = vadd.f32 %v1199_v12, %v1177_v34  ;;  %v3932_v27 = vpop.eup %3931  ;;  %v1261_v34 = vmul.f32 0.5, %v1259_v57  ;;  %v922_v12 = vsel %vm5688_vm0, %v5907_v24, %v5903_v9 }
 0x256   : > { %v1225_v31 = vpop.f32.mrf.mxu2 }
 0x257   : > { %3933 = vtanh.f32 %v1200_v58  ;;  %v1271_v58 = vmul.f32 %v1265_v20, %v922_v12  ;;  %v1226_v57 = vadd.f32 %v1225_v31, %v5898_v41 }
 0x258   : > { %3935 = vtanh.f32 %v1246_v45  ;;  %v1303_v45 = vunpack.c.h.bf16 %v3693_v55 }
 0x259   : > { %v1202_v16 = vpop.f32.mrf.mxu1  ;;  %v1249_v24 = vadd.f32 %v1248_v5, %v1226_v57 }
 0x25a   : > { %v1179_v62 = vpop.f32.mrf.mxu0 }
 0x25b   : > { %v1180_v10 = vadd.f32 %v1179_v62, %v5894_v40  ;;  %v1260_v62 = vadd.f32 1.0, %v3932_v27  ;;  %v923_v27 = vsel %vm5688_vm0, %v5915_v54, %v5910_v36 }
 0x25d   : > { %v3934_v28 = vpop.eup %3933  ;;  %v1203_v38 = vadd.f32 %v1202_v16, %v1180_v10  ;;  %v1262_v46 = vmul.f32 0.5, %v1260_v62 }
 0x25e   : > { %v1273_v33 = vmul.f32 %v3934_v28, %v1261_v34  ;;  %v3936_v50 = vpop.eup %3935  ;;  %v1392_v34 = vpop.f32.mrf.mxu3 }
 0x25f   : > { %3937 = vtanh.f32 %v1203_v38  ;;  %v1369_v31 = vpop.f32.mrf.mxu2 }
 0x260   : > { %v1275_v40 = vadd.f32 %v1273_v33, %v1271_v58 }
 0x261   : > { %v1346_v51 = vpop.f32.mrf.mxu1 }
 0x262   : > { %v1399_v32 = vadd.f32 %v1346_v51, %v1299_v13  ;;  %v1323_v16 = vpop.f32.mrf.mxu0  ;;  %v6526_v20 = vsel %vm5964_vm1, %v1275_v40, %v922_v12  ;;  %v3692_v51 = vld [vmem:[%s5062_s7 + $0x48] sm:$0xff]  ;;  %v1267_v13 = vadd.f32 1.0, %v3936_v50 }
 0x263   : > { %v1398_v8 = vadd.f32 %v1323_v16, %v1298_v19  ;;  %v1301_v38 = vunpack.c.h.bf16 %v3692_v51  ;;  %v1300_v12 = vunpack.c.l.bf16 %v3692_v51  ;;  %v1302_v19 = vunpack.c.l.bf16 %v3693_v55 }
 0x264   : > { %3939 = vtanh.f32 %v1399_v32  ;;  %v1269_v5 = vmul.f32 0.5, %v1267_v13  ;;  %v1272_v32 = vmul.f32 %v1266_v17, %v923_v27 }
 0x265   : > { %3941 = vtanh.f32 %v1275_v40  ;;  %v3938_v10 = vpop.eup %3937  ;;  %v1401_v36 = vadd.f32 %v1392_v34, %v1301_v38  ;;  %v1400_v54 = vadd.f32 %v1369_v31, %v1300_v12 }
 0x266   : > { %3943 = vtanh.f32 %v1249_v24  ;;  %v1274_v40 = vmul.f32 %v3938_v10, %v1262_v46 }
 0x267   : > { %3945 = vtanh.f32 %v1398_v8 }
 0x268   : > { %v1276_v7 = vadd.f32 %v1274_v40, %v1272_v32  ;;  %v1372_v32 = vpop.f32.mrf.mxu2 }
 0x269   : > { %v1349_v9 = vpop.f32.mrf.mxu1 }
 0x26a   : > { %v1403_v28 = vadd.f32 %v1349_v9, %v1303_v45  ;;  %v3940_v58 = vpop.eup %3939  ;;  %v1326_v62 = vpop.f32.mrf.mxu0  ;;  %v6536_v17 = vsel %vm5964_vm1, %v1276_v7, %v923_v27  ;;  %v3694_v9 = vld [vmem:[%s5062_s7 + $0x58] sm:$0xff] }
 0x26b   : > { %v3942_v50 = vpop.eup %3941  ;;  %v1418_v45 = vadd.f32 1.0, %v3940_v58  ;;  %v1402_v24 = vadd.f32 %v1326_v62, %v1302_v19  ;;  %v1305_v8 = vunpack.c.h.bf16 %v3694_v9  ;;  %v1304_v46 = vunpack.c.l.bf16 %v3694_v9  ;;  %v9665_v62 = vld [vmem:[#allocation74_spill] sm:$0xff]  ;;  %v9667_v9 = vld [vmem:[#allocation77_spill] sm:$0xff] }
 0x26c   : > { %3947 = vtanh.f32 %v1403_v28  ;;  %v1279_v33 = vmul.f32 %v3942_v50, %v1269_v5  ;;  %v3944_v53 = vpop.eup %3943 }
 0x26d   : > { %3949 = vtanh.f32 %v1276_v7  ;;  %v3946_v57 = vpop.eup %3945  ;;  %v1268_v55 = vadd.f32 1.0, %v3944_v53  ;;  %v1420_v27 = vmul.f32 0.5, %v1418_v45  ;;  %v1404_v40 = vadd.f32 %v1372_v32, %v1304_v46  ;;  %v6638_v45 = vld [vmem:[#allocation9 + $0x150] sm:$0xff] }
 0x26e   : > { %v6542_v16 = vsel %vm5964_vm1, %v1279_v33, %v5922_v4  ;;  %3951 = vtanh.f32 %v1400_v54  ;;  %v1414_v13 = vadd.f32 1.0, %v3946_v57  ;;  %v1395_v4 = vpop.f32.mrf.mxu3  ;;  %v6627_v54 = vld [vmem:[#allocation9 + $0x160] sm:$0xff]  ;;  %v6659_v46 = vld [vmem:[#allocation9 + $0x110] sm:$0xff] }
 0x26f   : > { %1475 = vmatmul.f32.vlgmr.msrb.gmra.mxu1 %v6542_v16  ;;  %1521 = vmatmul.f32.vlgmr.msrb.gmra.mxu3 %v6542_v16  ;;  %v1270_v51 = vmul.f32 0.5, %v1268_v55  ;;  %3953 = vtanh.f32 %v1402_v24  ;;  %v1405_v38 = vadd.f32 %v1395_v4, %v1305_v8  ;;  %v1426_v58 = vmul.f32 %v1420_v27, %v5978_v49  ;;  %v6635_v57 = vld [vmem:[#allocation9 + $0x140] sm:$0xff]  ;;  %v9668_v55 = vld [vmem:[#allocation80_spill] sm:$0xff]  ;;  %v9669_v27 = vld [vmem:[#allocation83_spill] sm:$0xff] }
 0x270   : > { %1698 = vmatpush.msrb.mxu1 %v5930_v15  ;;  %1744 = vmatpush.msrb.mxu3 %v5933_v18  ;;  %3955 = vtanh.f32 %v1401_v36  ;;  %v1416_v5 = vmul.f32 0.5, %v1414_v13  ;;  %v1652_v15 = vstv %s3757_s12  ;;  %v9663_v36 = vld [vmem:[#allocation26_spill] sm:$0xff]  ;;  %v6652_v13 = vld [vmem:[#allocation9 + $0x130] sm:$0xff] }
 0x271   : > { %3957 = vtanh.f32 %v1404_v40  ;;  %vm6564_vm2 = vcmp.eq.s32.totalorder %v1652_v15, 1  ;;  %v6656_v8 = vld [vmem:[#allocation9 + $0x100] sm:$0xff]  ;;  %v6666_v4 = vld [vmem:[#allocation9 + $0xf0] sm:$0xff]  ;;  %v9672_v15 = vld [vmem:[#allocation85_spill] sm:$0xff] }
 0x272   : > { %v3948_v10 = vpop.eup %3947  ;;  %1699 = vmatpush.msrb.mxu1 %v5936_v39  ;;  %1745 = vmatpush.msrb.mxu3 %v5939_v43  ;;  %3959 = vtanh.f32 %v1405_v38  ;;  %v6674_v32 = vld [vmem:[#allocation9 + $0xd0] sm:$0xff]  ;;  %v6683_v40 = vld [vmem:[#allocation9 + $0xa0] sm:$0xff]  ;;  %v6910_v43 = vld [vmem:[#allocation9 + $0x148] sm:$0xff] }
 0x273   : > { %v3950_v34 = vpop.eup %3949  ;;  %v1419_v19 = vadd.f32 1.0, %v3948_v10  ;;  %v6662_v10 = vld [vmem:[#allocation9 + $0xe0] sm:$0xff]  ;;  %v9673_v38 = vld [vmem:[#allocation16_spill] sm:$0xff] }
 0x274   : > { %v1280_v28 = vmul.f32 %v3950_v34, %v1270_v51  ;;  %1700 = vmatpush.msrb.mxu1 %v5947_v0  ;;  %1746 = vmatpush.msrb.mxu3 %v5950_v21  ;;  %v3952_v18 = vpop.eup %3951  ;;  %v6648_v51 = vld [vmem:[#allocation9 + $0x120] sm:$0xff]  ;;  %v9670_v34 = vld [vmem:[#allocation84_spill] sm:$0xff] }
 0x275   : > { %v3954_v12 = vpop.eup %3953  ;;  %v1428_v50 = vmul.f32 %v3952_v18, %v1416_v5  ;;  %v9671_v5 = vld [vmem:[#allocation14_spill] sm:$0xff] }
 0x276   : > { %1701 = vmatpush.msrb.mxu1 %v5958_v29  ;;  %1747 = vmatpush.msrb.mxu3 %v5961_v2  ;;  %v6560_v39 = vsel %vm5964_vm1, %v1280_v28, %v5956_v25  ;;  %v3956_v0 = vpop.eup %3955  ;;  %v1415_v7 = vadd.f32 1.0, %v3954_v12  ;;  %v1421_v29 = vmul.f32 0.5, %v1419_v19  ;;  %v6670_v28 = vld [vmem:[#allocation9 + $0xc0] sm:$0xff]  ;;  %v6687_v12 = vld [vmem:[#allocation9 + $0xb0] sm:$0xff] }
 0x277   : > { %1478 = vmatmul.f32.gmra.mxu1 %v6560_v39  ;;  %1524 = vmatmul.f32.gmra.mxu3 %v6560_v39  ;;  %v1430_v21 = vadd.f32 %v1428_v50, %v1426_v58  ;;  %v1422_v2 = vadd.f32 1.0, %v3956_v0  ;;  %v9674_v58 = vld [vmem:[#allocation15_spill] sm:$0xff]  ;;  %v6692_v19 = vld [vmem:[#allocation9 + $0x90] sm:$0xff]  ;;  %v9675_v50 = vld [vmem:[#allocation86_spill] sm:$0xff] }
 0x278   : > { %1702 = vmatpush.msrb.mxu1 %v5970_v14  ;;  %1748 = vmatpush.msrb.mxu3 %v5973_v37  ;;  %v1417_v63 = vmul.f32 0.5, %v1415_v7  ;;  %v3958_v14 = vpop.eup %3957  ;;  %v1427_v37 = vmul.f32 %v1421_v29, %v6012_v52  ;;  %v9676_v0 = vld [vmem:[#allocation18_spill] sm:$0xff]  ;;  %v9678_v7 = vld [vmem:[#allocation17_spill] sm:$0xff]  ;;  %v9679_v29 = vld [vmem:[#allocation88_spill] sm:$0xff] }
 0x279   : > { %3961 = vtanh.f32 %v1430_v21  ;;  %v6575_v25 = vsel %vm6564_vm2, %v1430_v21, %v5978_v49  ;;  %v9677_v21 = vld [vmem:[#allocation87_spill] sm:$0xff] }
 0x27a   : > { %1703 = vmatpush.msrb.mxu1 %v5980_v1  ;;  %1749 = vmatpush.msrb.mxu3 %v5983_v59  ;;  %v1429_v33 = vmul.f32 %v3958_v14, %v1417_v63  ;;  %v3960_v1 = vpop.eup %3959  ;;  %v1424_v59 = vmul.f32 0.5, %v1422_v2  ;;  %v9680_v2 = vld [vmem:[#allocation20_spill] sm:$0xff]  ;;  %v9681_v63 = vld [vmem:[#allocation89_spill] sm:$0xff]  ;;  %v9682_v14 = vld [vmem:[#allocation19_spill] sm:$0xff] }
 0x27c   : > { %1704 = vmatpush.msrb.mxu1 %v5990_v11  ;;  %1750 = vmatpush.msrb.mxu3 %v5993_v23  ;;  %v1431_v31 = vadd.f32 %v1429_v33, %v1427_v37  ;;  %v9683_v37 = vld [vmem:[#allocation90_spill] sm:$0xff] }
 0x27d   : > { %v9684_v33 = vld [vmem:[#allocation22_spill] sm:$0xff] }
 0x27e   : > { %1705 = vmatpush.msrb.mxu1 %v5996_v35  ;;  %1751 = vmatpush.msrb.mxu3 %v5999_v44  ;;  %3963 = vtanh.f32 %v1431_v31  ;;  %v6591_v23 = vsel %vm6564_vm2, %v1431_v31, %v6012_v52  ;;  %v1423_v35 = vadd.f32 1.0, %v3960_v1  ;;  %v6593_v44 = vld [vmem:[#allocation9 + $0x1e0] sm:$0xff]  ;;  %v6604_v52 = vld [vmem:[#allocation9 + $0x1d0] sm:$0xff]  ;;  %v9685_v1 = vld [vmem:[#allocation91_spill] sm:$0xff] }
 0x27f   : > { %1567 = vmatmul.f32.vlgmr.msra.gmra.mxu1 %v6542_v16  ;;  %1613 = vmatmul.f32.vlgmr.msra.gmra.mxu3 %v6542_v16  ;;  %v3962_v49 = vpop.eup %3961  ;;  %v9688_v31 = vld [vmem:[#allocation25_spill] sm:$0xff] }
 0x280   : > { %1706 = vmatpush.msrb.mxu1 %v6004_v47  ;;  %1752 = vmatpush.msrb.mxu3 %v6007_v48  ;;  %v1434_v11 = vmul.f32 %v3962_v49, %v1424_v59  ;;  %v6596_v47 = vld [vmem:[#allocation9 + $0x1f0] sm:$0xff]  ;;  %v6601_v48 = vld [vmem:[#allocation9 + $0x1c0] sm:$0xff]  ;;  %v9686_v59 = vld [vmem:[#allocation21_spill] sm:$0xff] }
 0x281   : > { %v9687_v49 = vld [vmem:[#allocation24_spill] sm:$0xff] }
 0x282   : > { %1707 = vmatpush.msrb.mxu1 %v6014_v56  ;;  %1753 = vmatpush.msrb.mxu3 %v6017_v60  ;;  %v1425_v56 = vmul.f32 0.5, %v1423_v35  ;;  %v6646_v24 = vsel %vm6564_vm2, %v1434_v11, %v9668_v55  ;;  %v9690_v35 = vld [vmem:[#allocation27_spill] sm:$0xff] }
 0x283   : > { %1452 = vmatmul.f32.vlgmr.msrb.gmra.mxu0 %v1434_v11  ;;  %1498 = vmatmul.f32.vlgmr.msrb.gmra.mxu2 %v1434_v11  ;;  %v9699_v55 = vld [vmem:[#allocation35_spill] sm:$0xff] }
 0x284   : > { %1675 = vmatpush.msrb.mxu0 %v6593_v44  ;;  %1721 = vmatpush.msrb.mxu2 %v6596_v47  ;;  %v3964_v60 = vpop.eup %3963 }
 0x285   : > { %1708 = vmatpush.msrb.mxu1 %v6022_v26  ;;  %1754 = vmatpush.msrb.mxu3 %v6025_v61  ;;  %v6611_v26 = vld [vmem:[#allocation9 + $0x1a0] sm:$0xff]  ;;  %v6614_v61 = vld [vmem:[#allocation9 + $0x1b0] sm:$0xff]  ;;  %v1435_v53 = vmul.f32 %v3964_v60, %v1425_v56  ;;  %v9691_v56 = vld [vmem:[#allocation93_spill] sm:$0xff] }
 0x286   : > { %1676 = vmatpush.msrb.mxu0 %v6601_v48  ;;  %1722 = vmatpush.msrb.mxu2 %v6604_v52  ;;  %v9692_v60 = vld [vmem:[#allocation28_spill] sm:$0xff] }
 0x287   : > { %1709 = vmatpush.msrb.mxu1 %v6030_v30  ;;  %1755 = vmatpush.msrb.mxu3 %v6033_v6  ;;  %v6619_v30 = vld [vmem:[#allocation9 + $0x180] sm:$0xff]  ;;  %v6622_v6 = vld [vmem:[#allocation9 + $0x190] sm:$0xff]  ;;  %v6680_v18 = vsel %vm6564_vm2, %v1435_v53, %v9672_v15  ;;  %v9703_v15 = vld [vmem:[#allocation39_spill] sm:$0xff] }
 0x288   : > { %1570 = vmatmul.f32.gmra.mxu1 %v6560_v39  ;;  %1616 = vmatmul.f32.gmra.mxu3 %v6560_v39 }
 0x289   : > { %1677 = vmatpush.msrb.mxu0 %v6611_v26  ;;  %1723 = vmatpush.msrb.mxu2 %v6614_v61 }
 0x28a   : > { %1710 = vmatpush.msrb.mxu1 %v6040_v3  ;;  %1756 = vmatpush.msrb.mxu3 %v6043_v22  ;;  %v6630_v3 = vld [vmem:[#allocation9 + $0x170] sm:$0xff]  ;;  %v9664_v22 = vld [vmem:[#allocation73_spill] sm:$0xff] }
 0x28b   : > { %1678 = vmatpush.msrb.mxu0 %v6619_v30  ;;  %1724 = vmatpush.msrb.mxu2 %v6622_v6 }
 0x28c   : > { %1455 = vmatmul.f32.gmra.mxu0 %v1435_v53  ;;  %1501 = vmatmul.f32.gmra.mxu2 %v1435_v53 }
 0x28d   : > { %1711 = vmatpush.msrb.mxu1 %v6048_v42  ;;  %1757 = vmatpush.msrb.mxu3 %v9663_v36  ;;  %v9666_v42 = vld [vmem:[#allocation76_spill] sm:$0xff]  ;;  %v9694_v36 = vld [vmem:[#allocation30_spill] sm:$0xff] }
 0x28e   : > { %1679 = vmatpush.msrb.mxu0 %v6627_v54  ;;  %1725 = vmatpush.msrb.mxu2 %v6630_v3 }
 0x28f   : > { %1712 = vmatpush.msrb.mxu1 %v9664_v22  ;;  %1758 = vmatpush.msrb.mxu3 %v9665_v62  ;;  %v9695_v22 = vld [vmem:[#allocation31_spill] sm:$0xff]  ;;  %v9696_v62 = vld [vmem:[#allocation32_spill] sm:$0xff] }
 0x290   : > { %1680 = vmatpush.msrb.mxu0 %v6635_v57  ;;  %1726 = vmatpush.msrb.mxu2 %v6638_v45 }
 0x291   : > { %1713 = vmatpush.msrb.mxu1 %v9666_v42  ;;  %1759 = vmatpush.msrb.mxu3 %v9667_v9  ;;  %v9697_v42 = vld [vmem:[#allocation33_spill] sm:$0xff]  ;;  %v9698_v9 = vld [vmem:[#allocation34_spill] sm:$0xff] }
 0x292   : > { %1681 = vmatpush.msrb.mxu0 %v6648_v51  ;;  %1714 = vmatmul.f32.vlgmr.msrb.gmra.mxu1 %v6646_v24 }
 0x293   : > { %1727 = vmatpush.msrb.mxu2 %v6652_v13  ;;  %1760 = vmatmul.f32.vlgmr.msrb.gmra.mxu3 %v6646_v24 }
 0x294   : > { %1682 = vmatpush.msrb.mxu0 %v6656_v8  ;;  %1590 = vmatmul.f32.vlgmr.msra.gmra.mxu2 %v1434_v11 }
 0x295   : > { %1728 = vmatpush.msrb.mxu2 %v6659_v46  ;;  %1544 = vmatmul.f32.vlgmr.msra.gmra.mxu0 %v1434_v11  ;;  %v9689_v11 = vld [vmem:[#allocation92_spill] sm:$0xff] }
 0x296   : > { %1683 = vmatpush.msrb.mxu0 %v6662_v10  ;;  %1828 = vmatpush.msra.mxu1 %v9669_v27  ;;  %v9700_v27 = vld [vmem:[#allocation36_spill] sm:$0xff] }
 0x297   : > { %1729 = vmatpush.msrb.mxu2 %v6666_v4  ;;  %1874 = vmatpush.msra.mxu3 %v9670_v34  ;;  %v9701_v34 = vld [vmem:[#allocation37_spill] sm:$0xff] }
 0x298   : > { %1684 = vmatpush.msrb.mxu0 %v6670_v28  ;;  %1829 = vmatpush.msra.mxu1 %v9671_v5  ;;  %v9702_v5 = vld [vmem:[#allocation38_spill] sm:$0xff] }
 0x299   : > { %1730 = vmatpush.msrb.mxu2 %v6674_v32  ;;  %1875 = vmatpush.msra.mxu3 %v9673_v38  ;;  %v9704_v38 = vld [vmem:[#allocation40_spill] sm:$0xff] }
 0x29a   : > { %1685 = vmatpush.msrb.mxu0 %v6683_v40  ;;  %1717 = vmatmul.f32.gmra.mxu1 %v6680_v18 }
 0x29b   : > { %1731 = vmatpush.msrb.mxu2 %v6687_v12  ;;  %1763 = vmatmul.f32.gmra.mxu3 %v6680_v18 }
 0x29c   : > { %1686 = vmatpush.msrb.mxu0 %v9674_v58  ;;  %1593 = vmatmul.f32.gmra.mxu2 %v1435_v53  ;;  %v9705_v58 = vld [vmem:[#allocation42_spill] sm:$0xff] }
 0x29d   : > { %1732 = vmatpush.msrb.mxu2 %v6692_v19  ;;  %1547 = vmatmul.f32.gmra.mxu0 %v1435_v53  ;;  %v9693_v53 = vld [vmem:[#allocation29_spill] sm:$0xff] }
 0x29e   : > { %1687 = vmatpush.msrb.mxu0 %v9675_v50  ;;  %1830 = vmatpush.msra.mxu1 %v9676_v0  ;;  %v9706_v50 = vld [vmem:[#allocation43_spill] sm:$0xff]  ;;  %v9707_v0 = vld [vmem:[#allocation46_spill] sm:$0xff] }
 0x29f   : > { %1733 = vmatpush.msrb.mxu2 %v9677_v21  ;;  %1876 = vmatpush.msra.mxu3 %v9678_v7  ;;  %v9708_v21 = vld [vmem:[#allocation47_spill] sm:$0xff]  ;;  %v9709_v7 = vld [vmem:[#allocation50_spill] sm:$0xff] }
 0x2a0   : > { %1688 = vmatpush.msrb.mxu0 %v9679_v29  ;;  %1831 = vmatpush.msra.mxu1 %v9680_v2  ;;  %v9710_v29 = vld [vmem:[#allocation51_spill] sm:$0xff]  ;;  %v9711_v2 = vld [vmem:[#allocation54_spill] sm:$0xff] }
 0x2a1   : > { %1734 = vmatpush.msrb.mxu2 %v9681_v63  ;;  %1877 = vmatpush.msra.mxu3 %v9682_v14  ;;  %v9712_v63 = vld [vmem:[#allocation55_spill] sm:$0xff]  ;;  %v9713_v14 = vld [vmem:[#allocation58_spill] sm:$0xff] }
 0x2a2   : > { %1689 = vmatpush.msrb.mxu0 %v9683_v37  ;;  %1832 = vmatpush.msra.mxu1 %v9684_v33  ;;  %v9714_v37 = vld [vmem:[#allocation59_spill] sm:$0xff] }
 0x2a3   : > { %1735 = vmatpush.msrb.mxu2 %v9685_v1  ;;  %1878 = vmatpush.msra.mxu3 %v9686_v59  ;;  %v9715_v33 = vld [vmem:[#allocation63_spill] sm:$0xff]  ;;  %v9716_v1 = vld [vmem:[#allocation65_spill] sm:$0xff]  ;;  %v9717_v59 = vld [vmem:[#allocation68_spill] sm:$0xff] }
 0x2a4   : > { %1690 = vmatpush.msrb.mxu0 %v9687_v49  ;;  %1833 = vmatpush.msra.mxu1 %v9688_v31  ;;  %v9718_v49 = vld [vmem:[#allocation69_spill] sm:$0xff]  ;;  %v9719_v31 = vld [vmem:[#allocation72_spill] sm:$0xff] }
 0x2a5   : > { %1736 = vmatpush.msrb.mxu2 %v9689_v11  ;;  %1691 = vmatmul.f32.vlgmr.msrb.gmra.mxu0 %v6646_v24  ;;  %v9720_v11 = vld [vmem:[#allocation75_spill] sm:$0xff] }
 0x2a6   : > { %1737 = vmatmul.f32.vlgmr.msrb.gmra.mxu2 %v6646_v24  ;;  %1879 = vmatpush.msra.mxu3 %v9690_v35  ;;  %v9721_v35 = vld [vmem:[#allocation78_spill] sm:$0xff] }
 0x2a7   : > { %1834 = vmatpush.msra.mxu1 %v9691_v56  ;;  %1805 = vmatpush.msra.mxu0 %v9692_v60  ;;  %v9722_v56 = vld [vmem:[#allocation79_spill] sm:$0xff]  ;;  %v9723_v60 = vld [vmem:[#allocation81_spill] sm:$0xff] }
 0x2a8   : > { %1880 = vmatpush.msra.mxu3 %v9693_v53  ;;  %1851 = vmatpush.msra.mxu2 %v9694_v36  ;;  %v9724_v53 = vld [vmem:[#allocation82_spill] sm:$0xff]  ;;  %v9725_v36 = vld [vmem:[#allocation41_spill] sm:$0xff] }
 0x2a9   : > { %1835 = vmatpush.msra.mxu1 %v9695_v22  ;;  %1806 = vmatpush.msra.mxu0 %v9696_v62  ;;  %v9726_v22 = vld [vmem:[#allocation44_spill] sm:$0xff]  ;;  %v9727_v62 = vld [vmem:[#allocation45_spill] sm:$0xff] }
 0x2aa   : > { %1881 = vmatpush.msra.mxu3 %v9697_v42  ;;  %1852 = vmatpush.msra.mxu2 %v9698_v9  ;;  %v9728_v42 = vld [vmem:[#allocation48_spill] sm:$0xff]  ;;  %v9729_v9 = vld [vmem:[#allocation49_spill] sm:$0xff] }
 0x2ab   : > { %1836 = vmatpush.msra.mxu1 %v9699_v55  ;;  %1807 = vmatpush.msra.mxu0 %v9700_v27  ;;  %v9730_v55 = vld [vmem:[#allocation52_spill] sm:$0xff]  ;;  %v9731_v27 = vld [vmem:[#allocation53_spill] sm:$0xff] }
 0x2ac   : > { %1882 = vmatpush.msra.mxu3 %v9701_v34  ;;  %1853 = vmatpush.msra.mxu2 %v9702_v5  ;;  %v9732_v34 = vld [vmem:[#allocation56_spill] sm:$0xff]  ;;  %v9733_v5 = vld [vmem:[#allocation57_spill] sm:$0xff] }
 0x2ad   : > { %1694 = vmatmul.f32.gmra.mxu0 %v6680_v18  ;;  %1837 = vmatpush.msra.mxu1 %v9703_v15  ;;  %v9734_v15 = vld [vmem:[#allocation60_spill] sm:$0xff] }
 0x2ae   : > { %1740 = vmatmul.f32.gmra.mxu2 %v6680_v18  ;;  %1883 = vmatpush.msra.mxu3 %v9704_v38  ;;  %v9735_v38 = vld [vmem:[#allocation61_spill] sm:$0xff] }
 0x2af   : > { %1838 = vmatpush.msra.mxu1 %v9705_v58  ;;  %1808 = vmatpush.msra.mxu0 %v9706_v50  ;;  %v9736_v58 = vld [vmem:[#allocation64_spill] sm:$0xff]  ;;  %v9737_v50 = vld [vmem:[#allocation23_spill] sm:$0xff] }
 0x2b0   : > { %1884 = vmatpush.msra.mxu3 %v9707_v0  ;;  %1854 = vmatpush.msra.mxu2 %v9708_v21  ;;  %v9738_v0 = vld [vmem:[#allocation62_spill] sm:$0xff] }
 0x2b1   : > { %1839 = vmatpush.msra.mxu1 %v9709_v7  ;;  %1809 = vmatpush.msra.mxu0 %v9710_v29  ;;  %v9739_v21 = vld [vmem:[#allocation66_spill] sm:$0xff]  ;;  %v9741_v29 = vld [vmem:[#allocation95_spill] sm:$0xff] }
 0x2b2   : > { %1885 = vmatpush.msra.mxu3 %v9711_v2  ;;  %1855 = vmatpush.msra.mxu2 %v9712_v63  ;;  %v9740_v7 = vld [vmem:[#allocation94_spill] sm:$0xff]  ;;  %v9742_v2 = vld [vmem:[#allocation96_spill] sm:$0xff]  ;;  %v9743_v63 = vld [vmem:[#allocation97_spill] sm:$0xff] }
 0x2b3   : > { %1840 = vmatpush.msra.mxu1 %v9713_v14  ;;  %1810 = vmatpush.msra.mxu0 %v9714_v37  ;;  %v9744_v14 = vld [vmem:[#allocation98_spill] sm:$0xff]  ;;  %v9745_v37 = vld [vmem:[#allocation99_spill] sm:$0xff] }
 0x2b4   : > { %1886 = vmatpush.msra.mxu3 %v9715_v33  ;;  %1856 = vmatpush.msra.mxu2 %v9716_v1  ;;  %v9746_v33 = vld [vmem:[#allocation100_spill] sm:$0xff]  ;;  %v9747_v1 = vld [vmem:[#allocation101_spill] sm:$0xff] }
 0x2b5   : > { %1841 = vmatpush.msra.mxu1 %v9717_v59  ;;  %1811 = vmatpush.msra.mxu0 %v9718_v49  ;;  %v9748_v59 = vld [vmem:[#allocation102_spill] sm:$0xff]  ;;  %v9749_v49 = vld [vmem:[#allocation103_spill] sm:$0xff] }
 0x2b6   : > { %1887 = vmatpush.msra.mxu3 %v9719_v31  ;;  %1857 = vmatpush.msra.mxu2 %v9720_v11  ;;  %v9750_v31 = vld [vmem:[#allocation104_spill] sm:$0xff]  ;;  %v9751_v11 = vld [vmem:[#allocation105_spill] sm:$0xff] }
 0x2b7   : > { %1842 = vmatpush.msra.mxu1 %v9721_v35  ;;  %1812 = vmatpush.msra.mxu0 %v9722_v56  ;;  %v9752_v35 = vld [vmem:[#allocation106_spill] sm:$0xff]  ;;  %v9753_v56 = vld [vmem:[#allocation107_spill] sm:$0xff] }
 0x2b8   : > { %1888 = vmatpush.msra.mxu3 %v9723_v60  ;;  %1858 = vmatpush.msra.mxu2 %v9724_v53  ;;  %v9754_v60 = vld [vmem:[#allocation108_spill] sm:$0xff]  ;;  %v9755_v53 = vld [vmem:[#allocation109_spill] sm:$0xff] }
 0x2b9   : > { %1843 = vmatpush.msra.mxu1 %v9725_v36  ;;  %1813 = vmatpush.msra.mxu0 %v9726_v22  ;;  %v9756_v36 = vld [vmem:[#allocation110_spill] sm:$0xff]  ;;  %v9757_v22 = vld [vmem:[#allocation111_spill] sm:$0xff] }
 0x2ba   : > { %1889 = vmatpush.msra.mxu3 %v9727_v62  ;;  %1859 = vmatpush.msra.mxu2 %v9730_v55  ;;  %v9758_v62 = vld [vmem:[#allocation112_spill] sm:$0xff]  ;;  %v9761_v55 = vld [vmem:[#allocation115_spill] sm:$0xff] }
 0x2bb   : > { %1920 = vmatpush.msrb.mxu1 %v9728_v42  ;;  %1814 = vmatpush.msra.mxu0 %v9732_v34  ;;  %v9759_v42 = vld [vmem:[#allocation113_spill] sm:$0xff] }
 0x2bc   : > { %1966 = vmatpush.msrb.mxu3 %v9729_v9  ;;  %1860 = vmatpush.msra.mxu2 %v9734_v15  ;;  %v9760_v9 = vld [vmem:[#allocation114_spill] sm:$0xff]  ;;  %v9763_v34 = vld [vmem:[#allocation117_spill] sm:$0xff]  ;;  %v9765_v15 = vld [vmem:[#allocation119_spill] sm:$0xff] }
 0x2bd   : > { %1921 = vmatpush.msrb.mxu1 %v9731_v27  ;;  %1815 = vmatpush.msra.mxu0 %v9736_v58  ;;  %v9762_v27 = vld [vmem:[#allocation116_spill] sm:$0xff]  ;;  %v9767_v58 = vld [vmem:[#allocation121_spill] sm:$0xff] }
 0x2be   : > { %1967 = vmatpush.msrb.mxu3 %v9733_v5  ;;  %1861 = vmatpush.msra.mxu2 %v9738_v0  ;;  %v9764_v5 = vld [vmem:[#allocation118_spill] sm:$0xff]  ;;  %v9769_v0 = vld [vmem:[#allocation123_spill] sm:$0xff] }
 0x2bf   : > { %1922 = vmatpush.msrb.mxu1 %v9735_v38  ;;  %1816 = vmatpush.msra.mxu0 %v9740_v7  ;;  %v9766_v38 = vld [vmem:[#allocation120_spill] sm:$0xff]  ;;  %v9771_v7 = vld [vmem:[#allocation125_spill] sm:$0xff] }
 0x2c0   : > { %1968 = vmatpush.msrb.mxu3 %v9737_v50  ;;  %1862 = vmatpush.msra.mxu2 %v9742_v2  ;;  %v9768_v50 = vld [vmem:[#allocation122_spill] sm:$0xff]  ;;  %v9773_v2 = vld [vmem:[#allocation127_spill] sm:$0xff] }
 0x2c1   : > { %1923 = vmatpush.msrb.mxu1 %v9739_v21  ;;  %1817 = vmatpush.msra.mxu0 %v9744_v14  ;;  %v9770_v21 = vld [vmem:[#allocation124_spill] sm:$0xff]  ;;  %v9775_v14 = vld [vmem:[#allocation129_spill] sm:$0xff] }
 0x2c2   : > { %1969 = vmatpush.msrb.mxu3 %v9741_v29  ;;  %1863 = vmatpush.msra.mxu2 %v9746_v33  ;;  %v9772_v29 = vld [vmem:[#allocation126_spill] sm:$0xff]  ;;  %v9777_v33 = vld [vmem:[#allocation131_spill] sm:$0xff] }
 0x2c3   : > { %1924 = vmatpush.msrb.mxu1 %v9743_v63  ;;  %1818 = vmatpush.msra.mxu0 %v9748_v59  ;;  %v9774_v63 = vld [vmem:[#allocation128_spill] sm:$0xff]  ;;  %v9779_v59 = vld [vmem:[#allocation133_spill] sm:$0xff] }
 0x2c4   : > { %1970 = vmatpush.msrb.mxu3 %v9745_v37  ;;  %1864 = vmatpush.msra.mxu2 %v9750_v31  ;;  %v9776_v37 = vld [vmem:[#allocation130_spill] sm:$0xff]  ;;  %v9781_v31 = vld [vmem:[#allocation135_spill] sm:$0xff] }
 0x2c5   : > { %1925 = vmatpush.msrb.mxu1 %v9747_v1  ;;  %1819 = vmatpush.msra.mxu0 %v9752_v35  ;;  %v9778_v1 = vld [vmem:[#allocation132_spill] sm:$0xff]  ;;  %v9783_v35 = vld [vmem:[#allocation137_spill] sm:$0xff] }
 0x2c6   : > { %1971 = vmatpush.msrb.mxu3 %v9749_v49  ;;  %1865 = vmatpush.msra.mxu2 %v9754_v60  ;;  %v9780_v49 = vld [vmem:[#allocation134_spill] sm:$0xff]  ;;  %v9785_v60 = vld [vmem:[#allocation139_spill] sm:$0xff] }
 0x2c7   : > { %1926 = vmatpush.msrb.mxu1 %v9751_v11  ;;  %1820 = vmatpush.msra.mxu0 %v9756_v36  ;;  %v9782_v11 = vld [vmem:[#allocation136_spill] sm:$0xff]  ;;  %v9787_v36 = vld [vmem:[#allocation141_spill] sm:$0xff] }
 0x2c8   : > { %1972 = vmatpush.msrb.mxu3 %v9753_v56  ;;  %1866 = vmatpush.msra.mxu2 %v9758_v62  ;;  %v9784_v56 = vld [vmem:[#allocation138_spill] sm:$0xff]  ;;  %v9789_v62 = vld [vmem:[#allocation143_spill] sm:$0xff] }
 0x2c9   : > { %1927 = vmatpush.msrb.mxu1 %v9755_v53  ;;  %1897 = vmatpush.msrb.mxu0 %v9760_v9  ;;  %v9786_v53 = vld [vmem:[#allocation140_spill] sm:$0xff]  ;;  %v9791_v9 = vld [vmem:[#allocation145_spill] sm:$0xff] }
 0x2ca   : > { %1973 = vmatpush.msrb.mxu3 %v9757_v22  ;;  %1943 = vmatpush.msrb.mxu2 %v9762_v27  ;;  %v9788_v22 = vld [vmem:[#allocation142_spill] sm:$0xff]  ;;  %v9793_v27 = vld [vmem:[#allocation147_spill] sm:$0xff] }
 0x2cb   : > { %1928 = vmatpush.msrb.mxu1 %v9759_v42  ;;  %1898 = vmatpush.msrb.mxu0 %v9764_v5  ;;  %v9790_v42 = vld [vmem:[#allocation144_spill] sm:$0xff]  ;;  %v9795_v5 = vld [vmem:[#allocation149_spill] sm:$0xff] }
 0x2cc   : > { %1974 = vmatpush.msrb.mxu3 %v9761_v55  ;;  %1944 = vmatpush.msrb.mxu2 %v9766_v38  ;;  %v9792_v55 = vld [vmem:[#allocation146_spill] sm:$0xff]  ;;  %v9797_v38 = vld [vmem:[#allocation151_spill] sm:$0xff] }
 0x2cd   : > { %1929 = vmatpush.msrb.mxu1 %v9763_v34  ;;  %1899 = vmatpush.msrb.mxu0 %v9768_v50  ;;  %v9794_v34 = vld [vmem:[#allocation148_spill] sm:$0xff]  ;;  %v9799_v50 = vld [vmem:[#allocation153_spill] sm:$0xff] }
 0x2ce   : > { %1975 = vmatpush.msrb.mxu3 %v9765_v15  ;;  %1945 = vmatpush.msrb.mxu2 %v9770_v21  ;;  %v9796_v15 = vld [vmem:[#allocation150_spill] sm:$0xff]  ;;  %v9801_v21 = vld [vmem:[#allocation155_spill] sm:$0xff] }
 0x2cf   : > { %1930 = vmatpush.msrb.mxu1 %v9767_v58  ;;  %1900 = vmatpush.msrb.mxu0 %v9772_v29  ;;  %v9798_v58 = vld [vmem:[#allocation152_spill] sm:$0xff]  ;;  %v9803_v29 = vld [vmem:[#allocation157_spill] sm:$0xff] }
 0x2d0   : > { %1976 = vmatpush.msrb.mxu3 %v9769_v0  ;;  %1946 = vmatpush.msrb.mxu2 %v9774_v63  ;;  %v9800_v0 = vld [vmem:[#allocation154_spill] sm:$0xff]  ;;  %v9805_v63 = vld [vmem:[#allocation159_spill] sm:$0xff] }
 0x2d1   : > { %1931 = vmatpush.msrb.mxu1 %v9771_v7  ;;  %1901 = vmatpush.msrb.mxu0 %v9776_v37  ;;  %v9802_v7 = vld [vmem:[#allocation156_spill] sm:$0xff] }
 0x2d2   : > { %1977 = vmatpush.msrb.mxu3 %v9773_v2  ;;  %1947 = vmatpush.msrb.mxu2 %v9778_v1  ;;  %v9804_v2 = vld [vmem:[#allocation158_spill] sm:$0xff] }
 0x2d3   : > { %1932 = vmatpush.msrb.mxu1 %v9775_v14  ;;  %1902 = vmatpush.msrb.mxu0 %v9780_v49  ;;  %v9806_v14 = vld [vmem:[#allocation160_spill] sm:$0xff] }
 0x2d4   : > { %1978 = vmatpush.msrb.mxu3 %v9777_v33  ;;  %1948 = vmatpush.msrb.mxu2 %v9782_v11 }
 0x2d5   : > { %1933 = vmatpush.msrb.mxu1 %v9779_v59  ;;  %1903 = vmatpush.msrb.mxu0 %v9784_v56 }
 0x2d6   : > { %1979 = vmatpush.msrb.mxu3 %v9781_v31  ;;  %1949 = vmatpush.msrb.mxu2 %v9786_v53 }
 0x2d7   : > { %1934 = vmatpush.msrb.mxu1 %v9783_v35  ;;  %1904 = vmatpush.msrb.mxu0 %v9788_v22  ;;  %v9807_v35 = vld [vmem:[#allocation67_spill] sm:$0xff] }
 0x2d8   : > { %1980 = vmatpush.msrb.mxu3 %v9785_v60  ;;  %1950 = vmatpush.msrb.mxu2 %v9790_v42  ;;  %v9808_v60 = vld [vmem:[#allocation70_spill] sm:$0xff] }
 0x2d9   : > { %1935 = vmatpush.msrb.mxu1 %v9787_v36  ;;  %1905 = vmatpush.msrb.mxu0 %v9791_v9 }
 0x2da   : > { %1981 = vmatpush.msrb.mxu3 %v9789_v62  ;;  %1951 = vmatpush.msrb.mxu2 %v9792_v55 }
 0x2db   : > { %1906 = vmatpush.msrb.mxu0 %v9793_v27 }
 0x2dc   : > { %1952 = vmatpush.msrb.mxu2 %v9794_v34 }
 0x2dd   : > { %1907 = vmatpush.msrb.mxu0 %v9795_v5 }
 0x2de   : > { %1953 = vmatpush.msrb.mxu2 %v9796_v15 }
 0x2df   : > { %1908 = vmatpush.msrb.mxu0 %v9797_v38 }
 0x2e0   : > { %1954 = vmatpush.msrb.mxu2 %v9798_v58 }
 0x2e1   : > { %1909 = vmatpush.msrb.mxu0 %v9799_v50  ;;  %v9809_v50 = vld [vmem:[#allocation71_spill] sm:$0xff] }
 0x2e2   : > { %1955 = vmatpush.msrb.mxu2 %v9800_v0 }
 0x2e3   : > { %1910 = vmatpush.msrb.mxu0 %v9801_v21 }
 0x2e4   : > { %1956 = vmatpush.msrb.mxu2 %v9802_v7 }
 0x2e5   : > { %1911 = vmatpush.msrb.mxu0 %v9803_v29 }
 0x2e6   : > { %1957 = vmatpush.msrb.mxu2 %v9804_v2  ;;  %v3700_v2 = vld [vmem:[%s5062_s7 + $0x60] sm:$0xff] }
 0x2e7   : > { %1912 = vmatpush.msrb.mxu0 %v9805_v63 }
 0x2e8   : > { %1958 = vmatpush.msrb.mxu2 %v9806_v14 }
 0x2ec   : > { %v1476_v37 = vpop.f32.mrf.mxu1 }
 0x2f2   : > { %v1522_v1 = vpop.f32.mrf.mxu3 }
 0x2f4   : > { %v1479_v33 = vpop.f32.mrf.mxu1 }
 0x2fa   : > { %v1525_v11 = vpop.f32.mrf.mxu3 }
 0x2fc   : > { %v1568_v49 = vpop.f32.mrf.mxu1 }
 0x300   : > { %v1453_v59 = vpop.f32.mrf.mxu0 }
 0x301   : > { %v1454_v56 = vadd.f32 %v1453_v59, %v9807_v35  ;;  %v1668_v59 = vunpack.c.h.bf16 %v3700_v2 }
 0x302   : > { %v1614_v34 = vpop.f32.mrf.mxu3 }
 0x303   : > { %v1477_v62 = vadd.f32 %v1476_v37, %v1454_v56 }
 0x305   : > { %v1571_v42 = vpop.f32.mrf.mxu1 }
 0x306   : > { %v1499_v31 = vpop.f32.mrf.mxu2 }
 0x307   : > { %v1500_v53 = vadd.f32 %v1499_v31, %v9808_v60 }
 0x309   : > { %v1523_v36 = vadd.f32 %v1522_v1, %v1500_v53  ;;  %v1456_v22 = vpop.f32.mrf.mxu0 }
 0x30a   : > { %v1457_v9 = vadd.f32 %v1456_v22, %v9807_v35 }
 0x30b   : > { %3965 = vtanh.f32 %v1523_v36  ;;  %v1617_v53 = vpop.f32.mrf.mxu3 }
 0x30c   : > { %3967 = vtanh.f32 %v1477_v62  ;;  %v1480_v5 = vadd.f32 %v1479_v33, %v1457_v9 }
 0x30f   : > { %v1502_v55 = vpop.f32.mrf.mxu2  ;;  %v1715_v37 = vpop.f32.mrf.mxu1 }
 0x310   : > { %v1503_v27 = vadd.f32 %v1502_v55, %v9808_v60  ;;  %v1768_v9 = vadd.f32 %v1715_v37, %v1668_v59 }
 0x311   : > { %v3966_v58 = vpop.eup %3965 }
 0x312   : > { %v1526_v15 = vadd.f32 %v1525_v11, %v1503_v27  ;;  %v1545_v38 = vpop.f32.mrf.mxu0  ;;  %v3968_v21 = vpop.eup %3967  ;;  %v1632_v29 = vadd.f32 1.0, %v3966_v58 }
 0x313   : > { %v1546_v0 = vadd.f32 %v1545_v38, %v9809_v50  ;;  %v1628_v14 = vadd.f32 1.0, %v3968_v21  ;;  %v3702_v38 = vld [vmem:[%s5062_s7 + $0x70] sm:$0xff] }
 0x314   : > { %3969 = vtanh.f32 %v1526_v15  ;;  %v1634_v33 = vmul.f32 0.5, %v1632_v29  ;;  %v1672_v29 = vunpack.c.h.bf16 %v3702_v38 }
 0x315   : > { %v1569_v7 = vadd.f32 %v1568_v49, %v1546_v0  ;;  %3971 = vtanh.f32 %v1480_v5  ;;  %v1630_v49 = vmul.f32 0.5, %v1628_v14 }
 0x316   : > { %v1640_v27 = vmul.f32 %v1634_v33, %v6526_v20  ;;  %v3701_v33 = vld [vmem:[%s5062_s7 + $0x68] sm:$0xff] }
 0x317   : > { %3973 = vtanh.f32 %v1569_v7  ;;  %v1591_v63 = vpop.f32.mrf.mxu2  ;;  %v1718_v37 = vpop.f32.mrf.mxu1 }
 0x318   : > { %v1592_v1 = vadd.f32 %v1591_v63, %v5898_v41 }
 0x31a   : > { %v1615_v31 = vadd.f32 %v1614_v34, %v1592_v1  ;;  %v1548_v11 = vpop.f32.mrf.mxu0  ;;  %v3970_v56 = vpop.eup %3969  ;;  %v1667_v34 = vunpack.c.l.bf16 %v3700_v2 }
 0x31b   : > { %v1549_v36 = vadd.f32 %v1548_v11, %v9809_v50  ;;  %v3972_v22 = vpop.eup %3971  ;;  %v1633_v5 = vadd.f32 1.0, %v3970_v56 }
 0x31c   : > { %3975 = vtanh.f32 %v1615_v31  ;;  %v1629_v0 = vadd.f32 1.0, %v3972_v22  ;;  %v1772_v22 = vadd.f32 %v1718_v37, %v1672_v29 }
 0x31d   : > { %v3974_v62 = vpop.eup %3973  ;;  %v1572_v55 = vadd.f32 %v1571_v42, %v1549_v36  ;;  %v1635_v14 = vmul.f32 0.5, %v1633_v5  ;;  %v1761_v36 = vpop.f32.mrf.mxu3 }
 0x31e   : > { %v1642_v15 = vmul.f32 %v3974_v62, %v1630_v49  ;;  %v1631_v11 = vmul.f32 0.5, %v1629_v0 }
 0x31f   : > { %3977 = vtanh.f32 %v1572_v55  ;;  %v1594_v58 = vpop.f32.mrf.mxu2  ;;  %v1641_v62 = vmul.f32 %v1635_v14, %v6536_v17  ;;  %v1669_v55 = vunpack.c.l.bf16 %v3701_v33 }
 0x320   : > { %v1644_v21 = vadd.f32 %v1642_v15, %v1640_v27  ;;  %v1595_v7 = vadd.f32 %v1594_v58, %v5898_v41  ;;  %3979 = vtanh.f32 %v1768_v9 }
 0x322   : > { %v3976_v63 = vpop.eup %3975  ;;  %3981 = vtanh.f32 %v1644_v21  ;;  %v1618_v42 = vadd.f32 %v1617_v53, %v1595_v7  ;;  %v1692_v1 = vpop.f32.mrf.mxu0  ;;  %v6845_v59 = vsel %vm6564_vm2, %v1644_v21, %v6526_v20  ;;  %v1670_v53 = vunpack.c.h.bf16 %v3701_v33 }
 0x323   : > { %v1636_v31 = vadd.f32 1.0, %v3976_v63  ;;  %v1767_v2 = vadd.f32 %v1692_v1, %v1667_v34  ;;  %v1671_v20 = vunpack.c.l.bf16 %v3702_v38  ;;  %v3703_v38 = vld [vmem:[%s5062_s7 + $0x78] sm:$0xff] }
 0x324   : > { %3983 = vtanh.f32 %v1618_v42  ;;  %v1770_v21 = vadd.f32 %v1761_v36, %v1670_v53  ;;  %v6876_v53 = vld [vmem:[#allocation9 + $0x1d8] sm:$0xff] }
 0x325   : > { %v3978_v56 = vpop.eup %3977  ;;  %v1638_v49 = vmul.f32 0.5, %v1636_v31  ;;  %3985 = vtanh.f32 %v1767_v2 }
 0x326   : > { %v1643_v9 = vmul.f32 %v3978_v56, %v1631_v11  ;;  %v3980_v27 = vpop.eup %3979  ;;  %3987 = vtanh.f32 %v1772_v22  ;;  %v6866_v11 = vld [vmem:[#allocation9 + $0x1f8] sm:$0xff]  ;;  %v1673_v56 = vunpack.c.l.bf16 %v3703_v38 }
 0x327   : > { %v1787_v37 = vadd.f32 1.0, %v3980_v27 }
 0x328   : > { %v3982_v5 = vpop.eup %3981  ;;  %v1645_v15 = vadd.f32 %v1643_v9, %v1641_v62  ;;  %v6873_v62 = vld [vmem:[#allocation9 + $0x1c8] sm:$0xff] }
 0x329   : > { %v1648_v58 = vmul.f32 %v3982_v5, %v1638_v49  ;;  %v1738_v34 = vpop.f32.mrf.mxu2  ;;  %v1789_v22 = vmul.f32 0.5, %v1787_v37  ;;  %v1764_v49 = vpop.f32.mrf.mxu3  ;;  %v6879_v5 = vld [vmem:[#allocation9 + $0x1a8] sm:$0xff] }
 0x32a   : > { %v3984_v0 = vpop.eup %3983  ;;  %3989 = vtanh.f32 %v1645_v15  ;;  %v1769_v7 = vadd.f32 %v1738_v34, %v1669_v55  ;;  %v1695_v29 = vpop.f32.mrf.mxu0  ;;  %v6853_v63 = vsel %vm6564_vm2, %v1645_v15, %v6536_v17  ;;  %v6863_v17 = vld [vmem:[#allocation9 + $0x1e8] sm:$0xff]  ;;  %v6882_v15 = vld [vmem:[#allocation9 + $0x1b8] sm:$0xff] }
 0x32b   : > { %v3986_v14 = vpop.eup %3985  ;;  %v1637_v42 = vadd.f32 1.0, %v3984_v0  ;;  %v1771_v1 = vadd.f32 %v1695_v29, %v1671_v20  ;;  %v6859_v33 = vsel %vm6564_vm2, %v1648_v58, %v6542_v16  ;;  %v1674_v16 = vunpack.c.h.bf16 %v3703_v38  ;;  %v6887_v38 = vld [vmem:[#allocation9 + $0x188] sm:$0xff] }
 0x32c   : > { %3991 = vtanh.f32 %v1769_v7  ;;  %1844 = vmatmul.f32.vlgmr.msra.gmra.mxu1 %v6859_v33  ;;  %1890 = vmatmul.f32.vlgmr.msra.gmra.mxu3 %v6859_v33  ;;  %v1783_v2 = vadd.f32 1.0, %v3986_v14  ;;  %v3988_v36 = vpop.eup %3987  ;;  %v2021_v58 = vstv %s6871_s13  ;;  %v1795_v29 = vmul.f32 %v1789_v22, %v6575_v25  ;;  %v6907_v22 = vld [vmem:[#allocation9 + $0x178] sm:$0xff] }
 0x32d   : > { %v1639_v31 = vmul.f32 0.5, %v1637_v42  ;;  %3993 = vtanh.f32 %v1771_v1  ;;  %2067 = vmatpush.msra.mxu1 %v6863_v17  ;;  %2113 = vmatpush.msra.mxu3 %v6866_v11  ;;  %v1774_v0 = vadd.f32 %v1764_v49, %v1674_v16  ;;  %v1788_v14 = vadd.f32 1.0, %v3988_v36  ;;  %v6890_v42 = vld [vmem:[#allocation9 + $0x198] sm:$0xff]  ;;  %v6904_v36 = vld [vmem:[#allocation9 + $0x168] sm:$0xff] }
 0x32e   : > { %3995 = vtanh.f32 %v1770_v21  ;;  %v1785_v27 = vmul.f32 0.5, %v1783_v2  ;;  %vm6900_vm3 = vcmp.eq.s32.totalorder %v2021_v58, 1  ;;  %v6913_v49 = vld [vmem:[#allocation9 + $0x158] sm:$0xff] }
 0x32f   : > { %2068 = vmatpush.msra.mxu1 %v6873_v62  ;;  %2114 = vmatpush.msra.mxu3 %v6876_v53  ;;  %v6924_v58 = vld [vmem:[#allocation9 + $0x138] sm:$0xff] }
 0x330   : > { %v3990_v9 = vpop.eup %3989 }
 0x331   : > { %v1649_v55 = vmul.f32 %v3990_v9, %v1639_v31  ;;  %v1741_v20 = vpop.f32.mrf.mxu2  ;;  %2069 = vmatpush.msra.mxu1 %v6879_v5  ;;  %2115 = vmatpush.msra.mxu3 %v6882_v15 }
 0x332   : > { %v3992_v34 = vpop.eup %3991  ;;  %v1773_v21 = vadd.f32 %v1741_v20, %v1673_v56  ;;  %v6921_v20 = vld [vmem:[#allocation9 + $0x128] sm:$0xff] }
 0x333   : > { %v3994_v7 = vpop.eup %3993  ;;  %v1797_v37 = vmul.f32 %v3992_v34, %v1785_v27  ;;  %2070 = vmatpush.msra.mxu1 %v6887_v38  ;;  %2116 = vmatpush.msra.mxu3 %v6890_v42  ;;  %v6896_v1 = vsel %vm6564_vm2, %v1649_v55, %v6560_v39  ;;  %v1790_v39 = vmul.f32 0.5, %v1788_v14 }
 0x334   : > { %3997 = vtanh.f32 %v1773_v21  ;;  %1847 = vmatmul.f32.gmra.mxu1 %v6896_v1  ;;  %1893 = vmatmul.f32.gmra.mxu3 %v6896_v1  ;;  %v3996_v2 = vpop.eup %3995  ;;  %v1784_v56 = vadd.f32 1.0, %v3994_v7  ;;  %v6928_v7 = vld [vmem:[#allocation9 + $0x108] sm:$0xff] }
 0x335   : > { %v1799_v16 = vadd.f32 %v1797_v37, %v1795_v29  ;;  %2071 = vmatpush.msra.mxu1 %v6904_v36  ;;  %2117 = vmatpush.msra.mxu3 %v6907_v22  ;;  %3999 = vtanh.f32 %v1774_v0  ;;  %v1791_v55 = vadd.f32 1.0, %v3996_v2  ;;  %v1796_v0 = vmul.f32 %v1790_v39, %v6591_v23 }
 0x336   : > { %v1786_v27 = vmul.f32 0.5, %v1784_v56  ;;  %v6939_v56 = vld [vmem:[#allocation9 + $0xf8] sm:$0xff] }
 0x337   : > { %4001 = vtanh.f32 %v1799_v16  ;;  %2072 = vmatpush.msra.mxu1 %v6910_v43  ;;  %2118 = vmatpush.msra.mxu3 %v6913_v49  ;;  %v6919_v9 = vsel %vm6900_vm3, %v1799_v16, %v6575_v25  ;;  %v6931_v25 = vld [vmem:[#allocation9 + $0x118] sm:$0xff]  ;;  %v1793_v14 = vmul.f32 0.5, %v1791_v55  ;;  %v6936_v16 = vld [vmem:[#allocation9 + $0xe8] sm:$0xff] }
 0x338   : > { %v6945_v55 = vld [vmem:[#allocation9 + $0xd8] sm:$0xff] }
 0x339   : > { %2073 = vmatpush.msra.mxu1 %v6921_v20  ;;  %2119 = vmatpush.msra.mxu3 %v6924_v58 }
 0x33a   : > { %v3998_v34 = vpop.eup %3997 }
 0x33b   : > { %v1798_v21 = vmul.f32 %v3998_v34, %v1786_v27  ;;  %2074 = vmatpush.msra.mxu1 %v6928_v7  ;;  %2120 = vmatpush.msra.mxu3 %v6931_v25  ;;  %v4000_v29 = vpop.eup %3999  ;;  %v6942_v27 = vld [vmem:[#allocation9 + $0xc8] sm:$0xff] }
 0x33c   : > { %1936 = vmatmul.f32.vlgmr.msrb.gmra.mxu1 %v6859_v33  ;;  %1982 = vmatmul.f32.vlgmr.msrb.gmra.mxu3 %v6859_v33 }
 0x33d   : > { %v4002_v37 = vpop.eup %4001  ;;  %v1800_v2 = vadd.f32 %v1798_v21, %v1796_v0  ;;  %2075 = vmatpush.msra.mxu1 %v6936_v16  ;;  %2121 = vmatpush.msra.mxu3 %v6939_v56  ;;  %v1792_v0 = vadd.f32 1.0, %v4000_v29  ;;  %v6955_v21 = vld [vmem:[#allocation9 + $0xa8] sm:$0xff] }
 0x33e   : > { %v1803_v39 = vmul.f32 %v4002_v37, %v1793_v14  ;;  %v6958_v14 = vld [vmem:[#allocation9 + $0xb8] sm:$0xff]  ;;  %v6963_v29 = vld [vmem:[#allocation9 + $0x88] sm:$0xff] }
 0x33f   : > { %4003 = vtanh.f32 %v1800_v2  ;;  %2076 = vmatpush.msra.mxu1 %v6942_v27  ;;  %2122 = vmatpush.msra.mxu3 %v6945_v55  ;;  %v6951_v34 = vsel %vm6900_vm3, %v1800_v2, %v6591_v23  ;;  %v1794_v23 = vmul.f32 0.5, %v1792_v0  ;;  %v6976_v37 = vld [vmem:[#allocation9 + $0x78] sm:$0xff]  ;;  %v6981_v2 = vld [vmem:[#allocation9 + $0x48] sm:$0xff] }
 0x340   : > { %1821 = vmatmul.f32.vlgmr.msra.gmra.mxu0 %v1803_v39  ;;  %1867 = vmatmul.f32.vlgmr.msra.gmra.mxu2 %v1803_v39  ;;  %v7000_v0 = vld [vmem:[#allocation9 + $0x18] sm:$0xff] }
 0x341   : > { %2044 = vmatpush.msra.mxu0 %v6593_v44  ;;  %2090 = vmatpush.msra.mxu2 %v6596_v47  ;;  %v6966_v44 = vld [vmem:[#allocation9 + $0x98] sm:$0xff]  ;;  %9813 = vst [vmem:[#allocation73_spill] sm:$0xff] %v7000_v0 }
 0x342   : > { %2077 = vmatpush.msra.mxu1 %v6955_v21  ;;  %2123 = vmatpush.msra.mxu3 %v6958_v14 }
 0x343   : > { %2045 = vmatpush.msra.mxu0 %v6601_v48  ;;  %2091 = vmatpush.msra.mxu2 %v6604_v52  ;;  %v6973_v52 = vld [vmem:[#allocation9 + $0x68] sm:$0xff] }
 0x344   : > { %2078 = vmatpush.msra.mxu1 %v6963_v29  ;;  %2124 = vmatpush.msra.mxu3 %v6966_v44 }
 0x345   : > { %v4004_v47 = vpop.eup %4003  ;;  %1939 = vmatmul.f32.gmra.mxu1 %v6896_v1  ;;  %1985 = vmatmul.f32.gmra.mxu3 %v6896_v1 }
 0x346   : > { %2046 = vmatpush.msra.mxu0 %v6611_v26  ;;  %2092 = vmatpush.msra.mxu2 %v6614_v61  ;;  %v1804_v48 = vmul.f32 %v4004_v47, %v1794_v23  ;;  %v6984_v26 = vld [vmem:[#allocation9 + $0x58] sm:$0xff]  ;;  %v6989_v61 = vld [vmem:[#allocation9 + $0x28] sm:$0xff]  ;;  %v7079_v47 = vld [vmem:[#allocation9] sm:$0xff] }
 0x347   : > { %2079 = vmatpush.msra.mxu1 %v6973_v52  ;;  %2125 = vmatpush.msra.mxu3 %v6976_v37  ;;  %v7076_v23 = vld [vmem:[#allocation11 + $0x368] sm:$0xff]  ;;  %9833 = vst [vmem:[#allocation22_spill] sm:$0xff] %v7079_v47 }
 0x348   : > { %2047 = vmatpush.msra.mxu0 %v6619_v30  ;;  %2093 = vmatpush.msra.mxu2 %v6622_v6  ;;  %v6992_v30 = vld [vmem:[#allocation9 + $0x38] sm:$0xff]  ;;  %v6997_v6 = vld [vmem:[#allocation9 + $0x8] sm:$0xff]  ;;  %9832 = vst [vmem:[#allocation90_spill] sm:$0xff] %v7076_v23 }
 0x349   : > { %1824 = vmatmul.f32.gmra.mxu0 %v1804_v48  ;;  %1870 = vmatmul.f32.gmra.mxu2 %v1804_v48  ;;  %9812 = vst [vmem:[#allocation26_spill] sm:$0xff] %v6997_v6 }
 0x34a   : > { %2080 = vmatpush.msra.mxu1 %v6981_v2  ;;  %2126 = vmatpush.msra.mxu3 %v6984_v26 }
 0x34b   : > { %2048 = vmatpush.msra.mxu0 %v6627_v54  ;;  %2094 = vmatpush.msra.mxu2 %v6630_v3  ;;  %v7006_v54 = vsel %vm6900_vm3, %v1803_v39, %v6646_v24  ;;  %v7015_v3 = vld [vmem:[#allocation11 + $0x3e0] sm:$0xff]  ;;  %v7030_v24 = vsel %vm6900_vm3, %v1804_v48, %v6680_v18  ;;  %v7061_v18 = vld [vmem:[#allocation9 + $0x50] sm:$0xff] }
 0x34c   : > { %2081 = vmatpush.msra.mxu1 %v6989_v61  ;;  %2127 = vmatpush.msra.mxu3 %v6992_v30  ;;  %9814 = vst [vmem:[#allocation74_spill] sm:$0xff] %v7006_v54 }
 0x34d   : > { %2049 = vmatpush.msra.mxu0 %v6635_v57  ;;  %2095 = vmatpush.msra.mxu2 %v6638_v45  ;;  %9815 = vst [vmem:[#allocation76_spill] sm:$0xff] %v7015_v3  ;;  %v7019_v57 = vld [vmem:[#allocation11 + $0x3e8] sm:$0xff]  ;;  %v7023_v45 = vld [vmem:[#allocation11 + $0x3c0] sm:$0xff] }
 0x34e   : > { %2082 = vmatpush.msra.mxu1 %v6997_v6  ;;  %2128 = vmatpush.msra.mxu3 %v7000_v0  ;;  %9816 = vst [vmem:[#allocation77_spill] sm:$0xff] %v7019_v57 }
 0x34f   : > { %2050 = vmatpush.msra.mxu0 %v6648_v51  ;;  %2083 = vmatmul.f32.vlgmr.msra.gmra.mxu1 %v7006_v54  ;;  %9817 = vst [vmem:[#allocation80_spill] sm:$0xff] %v7023_v45  ;;  %v7032_v51 = vld [vmem:[#allocation11 + $0x3c8] sm:$0xff] }
 0x350   : > { %2096 = vmatpush.msra.mxu2 %v6652_v13  ;;  %2129 = vmatmul.f32.vlgmr.msra.gmra.mxu3 %v7006_v54  ;;  %9818 = vst [vmem:[#allocation83_spill] sm:$0xff] %v7030_v24  ;;  %v7039_v13 = vld [vmem:[#allocation9 + $0x80] sm:$0xff] }
 0x351   : > { %2051 = vmatpush.msra.mxu0 %v6656_v8  ;;  %1959 = vmatmul.f32.vlgmr.msrb.gmra.mxu2 %v1803_v39  ;;  %9819 = vst [vmem:[#allocation84_spill] sm:$0xff] %v7032_v51  ;;  %v7043_v8 = vld [vmem:[#allocation9 + $0x60] sm:$0xff] }
 0x352   : > { %2097 = vmatpush.msra.mxu2 %v6659_v46  ;;  %1913 = vmatmul.f32.vlgmr.msrb.gmra.mxu0 %v1803_v39  ;;  %9820 = vst [vmem:[#allocation14_spill] sm:$0xff] %v7039_v13  ;;  %v7046_v46 = vld [vmem:[#allocation11 + $0x3a0] sm:$0xff]  ;;  %v7073_v39 = vld [vmem:[#allocation9 + $0x30] sm:$0xff] }
 0x353   : > { %2052 = vmatpush.msra.mxu0 %v6662_v10  ;;  %2197 = vmatpush.msrb.mxu1 %v7015_v3  ;;  %9821 = vst [vmem:[#allocation85_spill] sm:$0xff] %v7043_v8  ;;  %v7049_v10 = vld [vmem:[#allocation9 + $0x70] sm:$0xff] }
 0x354   : > { %2098 = vmatpush.msra.mxu2 %v6666_v4  ;;  %2243 = vmatpush.msrb.mxu3 %v7019_v57  ;;  %9822 = vst [vmem:[#allocation16_spill] sm:$0xff] %v7046_v46  ;;  %v7052_v4 = vld [vmem:[#allocation11 + $0x3a8] sm:$0xff] }
 0x355   : > { %2053 = vmatpush.msra.mxu0 %v6670_v28  ;;  %2198 = vmatpush.msrb.mxu1 %v7023_v45  ;;  %9823 = vst [vmem:[#allocation15_spill] sm:$0xff] %v7049_v10  ;;  %v7055_v28 = vld [vmem:[#allocation9 + $0x40] sm:$0xff] }
 0x356   : > { %2099 = vmatpush.msra.mxu2 %v6674_v32  ;;  %2244 = vmatpush.msrb.mxu3 %v7032_v51  ;;  %9824 = vst [vmem:[#allocation86_spill] sm:$0xff] %v7052_v4  ;;  %v7058_v32 = vld [vmem:[#allocation11 + $0x380] sm:$0xff] }
 0x357   : > { %2054 = vmatpush.msra.mxu0 %v6683_v40  ;;  %2086 = vmatmul.f32.gmra.mxu1 %v7030_v24  ;;  %9825 = vst [vmem:[#allocation18_spill] sm:$0xff] %v7055_v28  ;;  %v7064_v40 = vld [vmem:[#allocation11 + $0x388] sm:$0xff] }
 0x358   : > { %2100 = vmatpush.msra.mxu2 %v6687_v12  ;;  %2132 = vmatmul.f32.gmra.mxu3 %v7030_v24  ;;  %9826 = vst [vmem:[#allocation87_spill] sm:$0xff] %v7058_v32  ;;  %v7067_v12 = vld [vmem:[#allocation9 + $0x20] sm:$0xff] }
 0x359   : > { %2055 = vmatpush.msra.mxu0 %v7039_v13  ;;  %1962 = vmatmul.f32.gmra.mxu2 %v1804_v48  ;;  %9827 = vst [vmem:[#allocation17_spill] sm:$0xff] %v7061_v18 }
 0x35a   : > { %2101 = vmatpush.msra.mxu2 %v6692_v19  ;;  %1916 = vmatmul.f32.gmra.mxu0 %v1804_v48  ;;  %9828 = vst [vmem:[#allocation88_spill] sm:$0xff] %v7064_v40  ;;  %v7070_v19 = vld [vmem:[#allocation11 + $0x360] sm:$0xff] }
 0x35b   : > { %2056 = vmatpush.msra.mxu0 %v7043_v8  ;;  %2199 = vmatpush.msrb.mxu1 %v7046_v46  ;;  %9829 = vst [vmem:[#allocation20_spill] sm:$0xff] %v7067_v12  ;;  %v7082_v48 = vld [vmem:[#allocation11 + $0x340] sm:$0xff] }
 0x35c   : > { %2102 = vmatpush.msra.mxu2 %v7049_v10  ;;  %2245 = vmatpush.msrb.mxu3 %v7052_v4  ;;  %9830 = vst [vmem:[#allocation89_spill] sm:$0xff] %v7070_v19 }
 0x35d   : > { %2057 = vmatpush.msra.mxu0 %v7055_v28  ;;  %2200 = vmatpush.msrb.mxu1 %v7058_v32  ;;  %9831 = vst [vmem:[#allocation19_spill] sm:$0xff] %v7073_v39 }
 0x35e   : > { %2103 = vmatpush.msra.mxu2 %v7061_v18  ;;  %2246 = vmatpush.msrb.mxu3 %v7064_v40  ;;  %9834 = vst [vmem:[#allocation91_spill] sm:$0xff] %v7082_v48 }
 0x35f   : > { %2058 = vmatpush.msra.mxu0 %v7067_v12  ;;  %2201 = vmatpush.msrb.mxu1 %v7070_v19  ;;  %v7085_v12 = vld [vmem:[#allocation9 + $0x10] sm:$0xff]  ;;  %v7105_v19 = vld [vmem:[#allocation11 + $0x300] sm:$0xff] }
 0x360   : > { %2104 = vmatpush.msra.mxu2 %v7073_v39  ;;  %2247 = vmatpush.msrb.mxu3 %v7076_v23  ;;  %9835 = vst [vmem:[#allocation21_spill] sm:$0xff] %v7085_v12  ;;  %v7090_v39 = vld [vmem:[#allocation11 + $0x348] sm:$0xff]  ;;  %v7093_v23 = vld [vmem:[#allocation11 + $0x320] sm:$0xff] }
 0x361   : > { %2059 = vmatpush.msra.mxu0 %v7079_v47  ;;  %2202 = vmatpush.msrb.mxu1 %v7082_v48  ;;  %9836 = vst [vmem:[#allocation24_spill] sm:$0xff] %v7090_v39  ;;  %v7096_v47 = vld [vmem:[#allocation11 + $0x1e0] sm:$0xff]  ;;  %v7099_v48 = vld [vmem:[#allocation11 + $0x328] sm:$0xff] }
 0x362   : > { %2105 = vmatpush.msra.mxu2 %v7085_v12  ;;  %2060 = vmatmul.f32.vlgmr.msra.gmra.mxu0 %v7006_v54  ;;  %9837 = vst [vmem:[#allocation25_spill] sm:$0xff] %v7093_v23  ;;  %v7102_v12 = vld [vmem:[#allocation11 + $0x1e8] sm:$0xff] }
 0x363   : > { %2106 = vmatmul.f32.vlgmr.msra.gmra.mxu2 %v7006_v54  ;;  %2248 = vmatpush.msrb.mxu3 %v7090_v39  ;;  %9838 = vst [vmem:[#allocation92_spill] sm:$0xff] %v7096_v47  ;;  %v7108_v39 = vld [vmem:[#allocation11 + $0x1c0] sm:$0xff] }
 0x364   : > { %2203 = vmatpush.msrb.mxu1 %v7093_v23  ;;  %2174 = vmatpush.msrb.mxu0 %v7096_v47  ;;  %9839 = vst [vmem:[#allocation27_spill] sm:$0xff] %v7099_v48  ;;  %v7111_v23 = vld [vmem:[#allocation11 + $0x308] sm:$0xff] }
 0x365   : > { %2249 = vmatpush.msrb.mxu3 %v7099_v48  ;;  %9840 = vst [vmem:[#allocation93_spill] sm:$0xff] %v7102_v12  ;;  %2220 = vmatpush.msrb.mxu2 %v7102_v12  ;;  %v7114_v47 = vld [vmem:[#allocation11 + $0x1c8] sm:$0xff]  ;;  %v7117_v48 = vld [vmem:[#allocation11 + $0x2e0] sm:$0xff] }
 0x366   : > { %9841 = vst [vmem:[#allocation28_spill] sm:$0xff] %v7105_v19  ;;  %2204 = vmatpush.msrb.mxu1 %v7105_v19  ;;  %2175 = vmatpush.msrb.mxu0 %v7108_v39  ;;  %v7120_v12 = vld [vmem:[#allocation11 + $0x1a0] sm:$0xff]  ;;  %v7123_v19 = vld [vmem:[#allocation11 + $0x2e8] sm:$0xff] }
 0x367   : > { %9842 = vst [vmem:[#allocation29_spill] sm:$0xff] %v7108_v39  ;;  %2250 = vmatpush.msrb.mxu3 %v7111_v23  ;;  %2221 = vmatpush.msrb.mxu2 %v7114_v47  ;;  %v7126_v39 = vld [vmem:[#allocation11 + $0x1a8] sm:$0xff] }
 0x368   : > { %9843 = vst [vmem:[#allocation30_spill] sm:$0xff] %v7111_v23  ;;  %2205 = vmatpush.msrb.mxu1 %v7117_v48  ;;  %2176 = vmatpush.msrb.mxu0 %v7120_v12  ;;  %v7130_v23 = vld [vmem:[#allocation11 + $0x2c0] sm:$0xff] }
 0x369   : > { %9844 = vst [vmem:[#allocation31_spill] sm:$0xff] %v7114_v47  ;;  %2251 = vmatpush.msrb.mxu3 %v7123_v19  ;;  %2222 = vmatpush.msrb.mxu2 %v7126_v39  ;;  %v7146_v47 = vld [vmem:[#allocation11 + $0x188] sm:$0xff] }
 0x36a   : > { %9845 = vst [vmem:[#allocation32_spill] sm:$0xff] %v7117_v48  ;;  %2063 = vmatmul.f32.gmra.mxu0 %v7030_v24  ;;  %2206 = vmatpush.msrb.mxu1 %v7130_v23  ;;  %v7134_v48 = vld [vmem:[#allocation11 + $0x2c8] sm:$0xff] }
 0x36b   : > { %9846 = vst [vmem:[#allocation33_spill] sm:$0xff] %v7120_v12  ;;  %2109 = vmatmul.f32.gmra.mxu2 %v7030_v24  ;;  %2252 = vmatpush.msrb.mxu3 %v7134_v48  ;;  %v7137_v12 = vld [vmem:[#allocation11 + $0x2a0] sm:$0xff] }
 0x36c   : > { %9847 = vst [vmem:[#allocation34_spill] sm:$0xff] %v7123_v19  ;;  %2207 = vmatpush.msrb.mxu1 %v7137_v12  ;;  %v7140_v19 = vld [vmem:[#allocation11 + $0x180] sm:$0xff]  ;;  %2223 = vmatpush.msrb.mxu2 %v7146_v47 }
 0x36d   : > { %9848 = vst [vmem:[#allocation35_spill] sm:$0xff] %v7126_v39  ;;  %2177 = vmatpush.msrb.mxu0 %v7140_v19  ;;  %v7143_v39 = vld [vmem:[#allocation11 + $0x2a8] sm:$0xff] }
 0x36e   : > { %9849 = vst [vmem:[#allocation36_spill] sm:$0xff] %v7130_v23  ;;  %2253 = vmatpush.msrb.mxu3 %v7143_v39  ;;  %v7149_v23 = vld [vmem:[#allocation11 + $0x280] sm:$0xff] }
 0x36f   : > { %9850 = vst [vmem:[#allocation37_spill] sm:$0xff] %v7134_v48  ;;  %2208 = vmatpush.msrb.mxu1 %v7149_v23  ;;  %v7152_v48 = vld [vmem:[#allocation11 + $0x160] sm:$0xff] }
 0x370   : > { %9851 = vst [vmem:[#allocation38_spill] sm:$0xff] %v7137_v12  ;;  %2178 = vmatpush.msrb.mxu0 %v7152_v48  ;;  %v7155_v12 = vld [vmem:[#allocation11 + $0x288] sm:$0xff] }
 0x371   : > { %9852 = vst [vmem:[#allocation39_spill] sm:$0xff] %v7140_v19  ;;  %2254 = vmatpush.msrb.mxu3 %v7155_v12  ;;  %v7158_v19 = vld [vmem:[#allocation11 + $0x168] sm:$0xff] }
 0x372   : > { %9853 = vst [vmem:[#allocation40_spill] sm:$0xff] %v7143_v39  ;;  %2224 = vmatpush.msrb.mxu2 %v7158_v19  ;;  %v7161_v39 = vld [vmem:[#allocation11 + $0x260] sm:$0xff] }
 0x373   : > { %9854 = vst [vmem:[#allocation42_spill] sm:$0xff] %v7146_v47  ;;  %2209 = vmatpush.msrb.mxu1 %v7161_v39  ;;  %v7164_v47 = vld [vmem:[#allocation11 + $0x140] sm:$0xff] }
 0x374   : > { %9855 = vst [vmem:[#allocation43_spill] sm:$0xff] %v7149_v23  ;;  %2179 = vmatpush.msrb.mxu0 %v7164_v47  ;;  %v7167_v23 = vld [vmem:[#allocation11 + $0x268] sm:$0xff] }
 0x375   : > { %9856 = vst [vmem:[#allocation46_spill] sm:$0xff] %v7152_v48  ;;  %2255 = vmatpush.msrb.mxu3 %v7167_v23  ;;  %v7170_v48 = vld [vmem:[#allocation11 + $0x148] sm:$0xff] }
 0x376   : > { %9857 = vst [vmem:[#allocation47_spill] sm:$0xff] %v7155_v12  ;;  %2225 = vmatpush.msrb.mxu2 %v7170_v48  ;;  %v7173_v12 = vld [vmem:[#allocation11 + $0x240] sm:$0xff] }
 0x377   : > { %9858 = vst [vmem:[#allocation50_spill] sm:$0xff] %v7158_v19  ;;  %2210 = vmatpush.msrb.mxu1 %v7173_v12  ;;  %v7176_v19 = vld [vmem:[#allocation11 + $0x120] sm:$0xff] }
 0x378   : > { %9859 = vst [vmem:[#allocation51_spill] sm:$0xff] %v7161_v39  ;;  %2180 = vmatpush.msrb.mxu0 %v7176_v19  ;;  %v7179_v39 = vld [vmem:[#allocation11 + $0x248] sm:$0xff] }
 0x379   : > { %9860 = vst [vmem:[#allocation54_spill] sm:$0xff] %v7164_v47  ;;  %2256 = vmatpush.msrb.mxu3 %v7179_v39  ;;  %v7182_v47 = vld [vmem:[#allocation11 + $0x128] sm:$0xff] }
 0x37a   : > { %9861 = vst [vmem:[#allocation55_spill] sm:$0xff] %v7167_v23  ;;  %2226 = vmatpush.msrb.mxu2 %v7182_v47  ;;  %v7185_v23 = vld [vmem:[#allocation11 + $0x220] sm:$0xff] }
 0x37b   : > { %9862 = vst [vmem:[#allocation58_spill] sm:$0xff] %v7170_v48  ;;  %2211 = vmatpush.msrb.mxu1 %v7185_v23  ;;  %v7188_v48 = vld [vmem:[#allocation11 + $0x100] sm:$0xff] }
 0x37c   : > { %9863 = vst [vmem:[#allocation59_spill] sm:$0xff] %v7173_v12  ;;  %2181 = vmatpush.msrb.mxu0 %v7188_v48  ;;  %v7191_v12 = vld [vmem:[#allocation11 + $0x228] sm:$0xff] }
 0x37d   : > { %9864 = vst [vmem:[#allocation63_spill] sm:$0xff] %v7176_v19  ;;  %2257 = vmatpush.msrb.mxu3 %v7191_v12  ;;  %v7194_v19 = vld [vmem:[#allocation11 + $0x108] sm:$0xff] }
 0x37e   : > { %9865 = vst [vmem:[#allocation65_spill] sm:$0xff] %v7179_v39  ;;  %2227 = vmatpush.msrb.mxu2 %v7194_v19  ;;  %v7197_v39 = vld [vmem:[#allocation11 + $0x200] sm:$0xff] }
 0x37f   : > { %9866 = vst [vmem:[#allocation68_spill] sm:$0xff] %v7182_v47  ;;  %2212 = vmatpush.msrb.mxu1 %v7197_v39  ;;  %v7200_v47 = vld [vmem:[#allocation11 + $0xe0] sm:$0xff] }
 0x380   : > { %9867 = vst [vmem:[#allocation69_spill] sm:$0xff] %v7185_v23  ;;  %2182 = vmatpush.msrb.mxu0 %v7200_v47  ;;  %v7203_v23 = vld [vmem:[#allocation11 + $0x208] sm:$0xff] }
 0x381   : > { %9868 = vst [vmem:[#allocation72_spill] sm:$0xff] %v7188_v48  ;;  %2258 = vmatpush.msrb.mxu3 %v7203_v23  ;;  %v7206_v48 = vld [vmem:[#allocation11 + $0x3f0] sm:$0xff] }
 0x382   : > { %9869 = vst [vmem:[#allocation75_spill] sm:$0xff] %v7191_v12  ;;  %2289 = vmatpush.msra.mxu1 %v7206_v48  ;;  %v7209_v12 = vld [vmem:[#allocation11 + $0x3f8] sm:$0xff] }
 0x383   : > { %9870 = vst [vmem:[#allocation78_spill] sm:$0xff] %v7194_v19  ;;  %2335 = vmatpush.msra.mxu3 %v7209_v12  ;;  %v7212_v19 = vld [vmem:[#allocation11 + $0xe8] sm:$0xff] }
 0x384   : > { %9871 = vst [vmem:[#allocation79_spill] sm:$0xff] %v7197_v39  ;;  %2228 = vmatpush.msrb.mxu2 %v7212_v19  ;;  %v7215_v39 = vld [vmem:[#allocation11 + $0x3d0] sm:$0xff] }
 0x385   : > { %9872 = vst [vmem:[#allocation81_spill] sm:$0xff] %v7200_v47  ;;  %2290 = vmatpush.msra.mxu1 %v7215_v39  ;;  %v7218_v47 = vld [vmem:[#allocation11 + $0xc0] sm:$0xff] }
 0x386   : > { %9873 = vst [vmem:[#allocation82_spill] sm:$0xff] %v7203_v23  ;;  %2183 = vmatpush.msrb.mxu0 %v7218_v47  ;;  %v7221_v23 = vld [vmem:[#allocation11 + $0x3d8] sm:$0xff] }
 0x387   : > { %9874 = vst [vmem:[#allocation41_spill] sm:$0xff] %v7206_v48  ;;  %2336 = vmatpush.msra.mxu3 %v7221_v23  ;;  %v7224_v48 = vld [vmem:[#allocation11 + $0xc8] sm:$0xff] }
 0x388   : > { %9875 = vst [vmem:[#allocation44_spill] sm:$0xff] %v7209_v12  ;;  %2229 = vmatpush.msrb.mxu2 %v7224_v48  ;;  %v7227_v12 = vld [vmem:[#allocation11 + $0x3b0] sm:$0xff] }
 0x389   : > { %9876 = vst [vmem:[#allocation45_spill] sm:$0xff] %v7212_v19  ;;  %2291 = vmatpush.msra.mxu1 %v7227_v12  ;;  %v7230_v19 = vld [vmem:[#allocation11 + $0xa0] sm:$0xff] }
 0x38a   : > { %9877 = vst [vmem:[#allocation48_spill] sm:$0xff] %v7215_v39  ;;  %2184 = vmatpush.msrb.mxu0 %v7230_v19  ;;  %v7233_v39 = vld [vmem:[#allocation11 + $0x3b8] sm:$0xff] }
 0x38b   : > { %9878 = vst [vmem:[#allocation49_spill] sm:$0xff] %v7218_v47  ;;  %2337 = vmatpush.msra.mxu3 %v7233_v39  ;;  %v7236_v47 = vld [vmem:[#allocation11 + $0xa8] sm:$0xff] }
 0x38c   : > { %9879 = vst [vmem:[#allocation52_spill] sm:$0xff] %v7221_v23  ;;  %2230 = vmatpush.msrb.mxu2 %v7236_v47  ;;  %v7239_v23 = vld [vmem:[#allocation11 + $0x390] sm:$0xff] }
 0x38d   : > { %9880 = vst [vmem:[#allocation53_spill] sm:$0xff] %v7224_v48  ;;  %2292 = vmatpush.msra.mxu1 %v7239_v23  ;;  %v7242_v48 = vld [vmem:[#allocation11 + $0x80] sm:$0xff] }
 0x38e   : > { %9881 = vst [vmem:[#allocation56_spill] sm:$0xff] %v7227_v12  ;;  %2185 = vmatpush.msrb.mxu0 %v7242_v48  ;;  %v7245_v12 = vld [vmem:[#allocation11 + $0x398] sm:$0xff] }
 0x38f   : > { %9882 = vst [vmem:[#allocation57_spill] sm:$0xff] %v7230_v19  ;;  %2338 = vmatpush.msra.mxu3 %v7245_v12  ;;  %v7248_v19 = vld [vmem:[#allocation11 + $0x88] sm:$0xff] }
 0x390   : > { %9883 = vst [vmem:[#allocation60_spill] sm:$0xff] %v7233_v39  ;;  %2231 = vmatpush.msrb.mxu2 %v7248_v19  ;;  %v7251_v39 = vld [vmem:[#allocation11 + $0x370] sm:$0xff] }
 0x391   : > { %9884 = vst [vmem:[#allocation61_spill] sm:$0xff] %v7236_v47  ;;  %2293 = vmatpush.msra.mxu1 %v7251_v39  ;;  %v7254_v47 = vld [vmem:[#allocation11 + $0x60] sm:$0xff] }
 0x392   : > { %9885 = vst [vmem:[#allocation64_spill] sm:$0xff] %v7239_v23  ;;  %2186 = vmatpush.msrb.mxu0 %v7254_v47  ;;  %v7257_v23 = vld [vmem:[#allocation11 + $0x378] sm:$0xff] }
 0x393   : > { %9886 = vst [vmem:[#allocation23_spill] sm:$0xff] %v7242_v48  ;;  %2339 = vmatpush.msra.mxu3 %v7257_v23  ;;  %v7260_v48 = vld [vmem:[#allocation11 + $0x68] sm:$0xff] }
 0x394   : > { %9887 = vst [vmem:[#allocation62_spill] sm:$0xff] %v7245_v12  ;;  %2232 = vmatpush.msrb.mxu2 %v7260_v48  ;;  %v7263_v12 = vld [vmem:[#allocation11 + $0x350] sm:$0xff] }
 0x395   : > { %9888 = vst [vmem:[#allocation66_spill] sm:$0xff] %v7248_v19  ;;  %2294 = vmatpush.msra.mxu1 %v7263_v12  ;;  %v7266_v19 = vld [vmem:[#allocation11 + $0x40] sm:$0xff] }
 0x396   : > { %9889 = vst [vmem:[#allocation94_spill] sm:$0xff] %v7251_v39  ;;  %2187 = vmatpush.msrb.mxu0 %v7266_v19  ;;  %v7269_v39 = vld [vmem:[#allocation11 + $0x358] sm:$0xff] }
 0x397   : > { %9890 = vst [vmem:[#allocation95_spill] sm:$0xff] %v7254_v47  ;;  %2340 = vmatpush.msra.mxu3 %v7269_v39  ;;  %v7272_v47 = vld [vmem:[#allocation11 + $0x48] sm:$0xff] }
 0x398   : > { %9891 = vst [vmem:[#allocation96_spill] sm:$0xff] %v7257_v23  ;;  %2233 = vmatpush.msrb.mxu2 %v7272_v47  ;;  %v7275_v23 = vld [vmem:[#allocation11 + $0x330] sm:$0xff] }
 0x399   : > { %9892 = vst [vmem:[#allocation97_spill] sm:$0xff] %v7260_v48  ;;  %2295 = vmatpush.msra.mxu1 %v7275_v23  ;;  %v7278_v48 = vld [vmem:[#allocation11 + $0x20] sm:$0xff] }
 0x39a   : > { %9893 = vst [vmem:[#allocation98_spill] sm:$0xff] %v7263_v12  ;;  %2188 = vmatpush.msrb.mxu0 %v7278_v48  ;;  %v7281_v12 = vld [vmem:[#allocation11 + $0x338] sm:$0xff] }
 0x39b   : > { %9894 = vst [vmem:[#allocation99_spill] sm:$0xff] %v7266_v19  ;;  %2341 = vmatpush.msra.mxu3 %v7281_v12  ;;  %v7284_v19 = vld [vmem:[#allocation11 + $0x28] sm:$0xff] }
 0x39c   : > { %9895 = vst [vmem:[#allocation100_spill] sm:$0xff] %v7269_v39  ;;  %2234 = vmatpush.msrb.mxu2 %v7284_v19  ;;  %v7287_v39 = vld [vmem:[#allocation11 + $0x310] sm:$0xff] }
 0x39d   : > { %9896 = vst [vmem:[#allocation101_spill] sm:$0xff] %v7272_v47  ;;  %2296 = vmatpush.msra.mxu1 %v7287_v39  ;;  %v7290_v47 = vld [vmem:[#allocation11] sm:$0xff] }
 0x39e   : > { %9897 = vst [vmem:[#allocation102_spill] sm:$0xff] %v7275_v23  ;;  %2189 = vmatpush.msrb.mxu0 %v7290_v47  ;;  %v7293_v23 = vld [vmem:[#allocation11 + $0x318] sm:$0xff] }
 0x39f   : > { %9898 = vst [vmem:[#allocation103_spill] sm:$0xff] %v7278_v48  ;;  %2342 = vmatpush.msra.mxu3 %v7293_v23  ;;  %v7296_v48 = vld [vmem:[#allocation11 + $0x8] sm:$0xff] }
 0x3a0   : > { %9899 = vst [vmem:[#allocation104_spill] sm:$0xff] %v7281_v12  ;;  %2235 = vmatpush.msrb.mxu2 %v7296_v48  ;;  %v7299_v12 = vld [vmem:[#allocation11 + $0x2f0] sm:$0xff] }
 0x3a1   : > { %9900 = vst [vmem:[#allocation105_spill] sm:$0xff] %v7284_v19  ;;  %2297 = vmatpush.msra.mxu1 %v7299_v12  ;;  %v7302_v19 = vld [vmem:[#allocation11 + $0x1f0] sm:$0xff] }
 0x3a2   : > { %9901 = vst [vmem:[#allocation106_spill] sm:$0xff] %v7287_v39  ;;  %2266 = vmatpush.msra.mxu0 %v7302_v19  ;;  %v7305_v39 = vld [vmem:[#allocation11 + $0x2f8] sm:$0xff] }
 0x3a3   : > { %9902 = vst [vmem:[#allocation107_spill] sm:$0xff] %v7290_v47  ;;  %2343 = vmatpush.msra.mxu3 %v7305_v39  ;;  %v7308_v47 = vld [vmem:[#allocation11 + $0x1f8] sm:$0xff] }
 0x3a4   : > { %9903 = vst [vmem:[#allocation108_spill] sm:$0xff] %v7293_v23  ;;  %2312 = vmatpush.msra.mxu2 %v7308_v47  ;;  %v7311_v23 = vld [vmem:[#allocation11 + $0x2d0] sm:$0xff] }
 0x3a5   : > { %9904 = vst [vmem:[#allocation109_spill] sm:$0xff] %v7296_v48  ;;  %2298 = vmatpush.msra.mxu1 %v7311_v23  ;;  %v7314_v48 = vld [vmem:[#allocation11 + $0x1d0] sm:$0xff] }
 0x3a6   : > { %9905 = vst [vmem:[#allocation110_spill] sm:$0xff] %v7299_v12  ;;  %2267 = vmatpush.msra.mxu0 %v7314_v48  ;;  %v7317_v12 = vld [vmem:[#allocation11 + $0x2d8] sm:$0xff] }
 0x3a7   : > { %9906 = vst [vmem:[#allocation111_spill] sm:$0xff] %v7302_v19  ;;  %2344 = vmatpush.msra.mxu3 %v7317_v12  ;;  %v7320_v19 = vld [vmem:[#allocation11 + $0x1d8] sm:$0xff] }
 0x3a8   : > { %9907 = vst [vmem:[#allocation112_spill] sm:$0xff] %v7305_v39  ;;  %2313 = vmatpush.msra.mxu2 %v7320_v19  ;;  %v7323_v39 = vld [vmem:[#allocation11 + $0x2b0] sm:$0xff] }
 0x3a9   : > { %9908 = vst [vmem:[#allocation113_spill] sm:$0xff] %v7308_v47  ;;  %2299 = vmatpush.msra.mxu1 %v7323_v39  ;;  %v7326_v47 = vld [vmem:[#allocation11 + $0x1b0] sm:$0xff] }
 0x3aa   : > { %9909 = vst [vmem:[#allocation114_spill] sm:$0xff] %v7311_v23  ;;  %2268 = vmatpush.msra.mxu0 %v7326_v47  ;;  %v7329_v23 = vld [vmem:[#allocation11 + $0x2b8] sm:$0xff] }
 0x3ab   : > { %9910 = vst [vmem:[#allocation115_spill] sm:$0xff] %v7314_v48  ;;  %2345 = vmatpush.msra.mxu3 %v7329_v23  ;;  %v7332_v48 = vld [vmem:[#allocation11 + $0x1b8] sm:$0xff] }
 0x3ac   : > { %9911 = vst [vmem:[#allocation116_spill] sm:$0xff] %v7317_v12  ;;  %2314 = vmatpush.msra.mxu2 %v7332_v48  ;;  %v7335_v12 = vld [vmem:[#allocation11 + $0x290] sm:$0xff] }
 0x3ad   : > { %9912 = vst [vmem:[#allocation117_spill] sm:$0xff] %v7320_v19  ;;  %2300 = vmatpush.msra.mxu1 %v7335_v12  ;;  %v7338_v19 = vld [vmem:[#allocation11 + $0x190] sm:$0xff] }
 0x3ae   : > { %9913 = vst [vmem:[#allocation118_spill] sm:$0xff] %v7323_v39  ;;  %2269 = vmatpush.msra.mxu0 %v7338_v19  ;;  %v7341_v39 = vld [vmem:[#allocation11 + $0x298] sm:$0xff] }
 0x3af   : > { %9914 = vst [vmem:[#allocation119_spill] sm:$0xff] %v7326_v47  ;;  %2346 = vmatpush.msra.mxu3 %v7341_v39  ;;  %v7344_v47 = vld [vmem:[#allocation11 + $0x198] sm:$0xff]  ;;  %v1891_v18 = vpop.f32.mrf.mxu3 }
 0x3b0   : > { %9915 = vst [vmem:[#allocation120_spill] sm:$0xff] %v7329_v23  ;;  %2315 = vmatpush.msra.mxu2 %v7344_v47  ;;  %v7347_v23 = vld [vmem:[#allocation11 + $0x270] sm:$0xff] }
 0x3b1   : > { %9916 = vst [vmem:[#allocation121_spill] sm:$0xff] %v7332_v48  ;;  %2301 = vmatpush.msra.mxu1 %v7347_v23  ;;  %v7350_v48 = vld [vmem:[#allocation11 + $0x170] sm:$0xff] }
 0x3b2   : > { %9917 = vst [vmem:[#allocation122_spill] sm:$0xff] %v7335_v12  ;;  %2270 = vmatpush.msra.mxu0 %v7350_v48  ;;  %v7353_v12 = vld [vmem:[#allocation11 + $0x278] sm:$0xff] }
 0x3b3   : > { %9918 = vst [vmem:[#allocation123_spill] sm:$0xff] %v7338_v19  ;;  %2347 = vmatpush.msra.mxu3 %v7353_v12  ;;  %v7356_v19 = vld [vmem:[#allocation11 + $0x178] sm:$0xff] }
 0x3b4   : > { %9919 = vst [vmem:[#allocation124_spill] sm:$0xff] %v7341_v39  ;;  %2316 = vmatpush.msra.mxu2 %v7356_v19  ;;  %v7359_v39 = vld [vmem:[#allocation11 + $0x250] sm:$0xff] }
 0x3b5   : > { %9920 = vst [vmem:[#allocation125_spill] sm:$0xff] %v7344_v47  ;;  %2302 = vmatpush.msra.mxu1 %v7359_v39  ;;  %v7362_v47 = vld [vmem:[#allocation11 + $0x150] sm:$0xff] }
 0x3b6   : > { %9921 = vst [vmem:[#allocation126_spill] sm:$0xff] %v7347_v23  ;;  %2271 = vmatpush.msra.mxu0 %v7362_v47  ;;  %v7365_v23 = vld [vmem:[#allocation11 + $0x258] sm:$0xff] }
 0x3b7   : > { %9922 = vst [vmem:[#allocation127_spill] sm:$0xff] %v7350_v48  ;;  %2348 = vmatpush.msra.mxu3 %v7365_v23  ;;  %v7368_v48 = vld [vmem:[#allocation11 + $0x158] sm:$0xff]  ;;  %v1894_v4 = vpop.f32.mrf.mxu3 }
 0x3b8   : > { %9923 = vst [vmem:[#allocation128_spill] sm:$0xff] %v7353_v12  ;;  %2317 = vmatpush.msra.mxu2 %v7368_v48  ;;  %v7371_v12 = vld [vmem:[#allocation11 + $0x230] sm:$0xff] }
 0x3b9   : > { %9924 = vst [vmem:[#allocation129_spill] sm:$0xff] %v7356_v19  ;;  %2303 = vmatpush.msra.mxu1 %v7371_v12  ;;  %v7374_v19 = vld [vmem:[#allocation11 + $0x130] sm:$0xff] }
 0x3ba   : > { %9925 = vst [vmem:[#allocation130_spill] sm:$0xff] %v7359_v39  ;;  %2272 = vmatpush.msra.mxu0 %v7374_v19  ;;  %v7377_v39 = vld [vmem:[#allocation11 + $0x238] sm:$0xff] }
 0x3bb   : > { %9926 = vst [vmem:[#allocation131_spill] sm:$0xff] %v7362_v47  ;;  %2349 = vmatpush.msra.mxu3 %v7377_v39  ;;  %v7380_v47 = vld [vmem:[#allocation11 + $0x138] sm:$0xff] }
 0x3bc   : > { %9927 = vst [vmem:[#allocation132_spill] sm:$0xff] %v7365_v23  ;;  %2318 = vmatpush.msra.mxu2 %v7380_v47  ;;  %v7383_v23 = vld [vmem:[#allocation11 + $0x210] sm:$0xff] }
 0x3bd   : > { %9928 = vst [vmem:[#allocation133_spill] sm:$0xff] %v7368_v48  ;;  %2304 = vmatpush.msra.mxu1 %v7383_v23  ;;  %v7386_v48 = vld [vmem:[#allocation11 + $0x110] sm:$0xff] }
 0x3be   : > { %9929 = vst [vmem:[#allocation134_spill] sm:$0xff] %v7371_v12  ;;  %2273 = vmatpush.msra.mxu0 %v7386_v48  ;;  %v7389_v12 = vld [vmem:[#allocation11 + $0x218] sm:$0xff] }
 0x3bf   : > { %9930 = vst [vmem:[#allocation135_spill] sm:$0xff] %v7374_v19  ;;  %2350 = vmatpush.msra.mxu3 %v7389_v12  ;;  %v7392_v19 = vld [vmem:[#allocation11 + $0x118] sm:$0xff]  ;;  %v1983_v24 = vpop.f32.mrf.mxu3 }
 0x3c0   : > { %9931 = vst [vmem:[#allocation136_spill] sm:$0xff] %v7377_v39  ;;  %2319 = vmatpush.msra.mxu2 %v7392_v19  ;;  %v7395_v39 = vld [vmem:[#allocation11 + $0xf0] sm:$0xff] }
 0x3c1   : > { %9932 = vst [vmem:[#allocation137_spill] sm:$0xff] %v7380_v47  ;;  %2274 = vmatpush.msra.mxu0 %v7395_v39  ;;  %v7398_v47 = vld [vmem:[#allocation11 + $0xf8] sm:$0xff] }
 0x3c2   : > { %9933 = vst [vmem:[#allocation138_spill] sm:$0xff] %v7383_v23  ;;  %2320 = vmatpush.msra.mxu2 %v7398_v47  ;;  %v7401_v23 = vld [vmem:[#allocation11 + $0xd0] sm:$0xff] }
 0x3c3   : > { %9934 = vst [vmem:[#allocation139_spill] sm:$0xff] %v7386_v48  ;;  %2275 = vmatpush.msra.mxu0 %v7401_v23  ;;  %v7404_v48 = vld [vmem:[#allocation11 + $0xd8] sm:$0xff]  ;;  %v1868_v28 = vpop.f32.mrf.mxu2 }
 0x3c4   : > { %9935 = vst [vmem:[#allocation140_spill] sm:$0xff] %v7389_v12  ;;  %2321 = vmatpush.msra.mxu2 %v7404_v48  ;;  %v7407_v12 = vld [vmem:[#allocation11 + $0xb0] sm:$0xff]  ;;  %v1869_v10 = vadd.f32 %v1868_v28, %v9808_v60 }
 0x3c5   : > { %9936 = vst [vmem:[#allocation141_spill] sm:$0xff] %v7392_v19  ;;  %2276 = vmatpush.msra.mxu0 %v7407_v12  ;;  %v7410_v19 = vld [vmem:[#allocation11 + $0xb8] sm:$0xff] }
 0x3c6   : > { %9937 = vst [vmem:[#allocation142_spill] sm:$0xff] %v7395_v39  ;;  %2322 = vmatpush.msra.mxu2 %v7410_v19  ;;  %v7413_v39 = vld [vmem:[#allocation11 + $0x90] sm:$0xff] }
 0x3c7   : > { %9938 = vst [vmem:[#allocation143_spill] sm:$0xff] %v7398_v47  ;;  %2277 = vmatpush.msra.mxu0 %v7413_v39  ;;  %v7416_v47 = vld [vmem:[#allocation11 + $0x98] sm:$0xff] }
 0x3c8   : > { %9939 = vst [vmem:[#allocation144_spill] sm:$0xff] %v7401_v23  ;;  %2323 = vmatpush.msra.mxu2 %v7416_v47  ;;  %v7419_v23 = vld [vmem:[#allocation11 + $0x70] sm:$0xff] }
 0x3c9   : > { %9940 = vst [vmem:[#allocation145_spill] sm:$0xff] %v7404_v48  ;;  %2278 = vmatpush.msra.mxu0 %v7419_v23  ;;  %v7422_v48 = vld [vmem:[#allocation11 + $0x78] sm:$0xff] }
 0x3ca   : > { %9941 = vst [vmem:[#allocation146_spill] sm:$0xff] %v7407_v12  ;;  %2324 = vmatpush.msra.mxu2 %v7422_v48  ;;  %v7425_v12 = vld [vmem:[#allocation11 + $0x50] sm:$0xff] }
 0x3cb   : > { %9942 = vst [vmem:[#allocation147_spill] sm:$0xff] %v7410_v19  ;;  %2279 = vmatpush.msra.mxu0 %v7425_v12  ;;  %v7428_v19 = vld [vmem:[#allocation11 + $0x58] sm:$0xff] }
 0x3cc   : > { %9943 = vst [vmem:[#allocation148_spill] sm:$0xff] %v7413_v39  ;;  %2325 = vmatpush.msra.mxu2 %v7428_v19  ;;  %v7431_v39 = vld [vmem:[#allocation11 + $0x30] sm:$0xff] }
 0x3cd   : > { %9944 = vst [vmem:[#allocation149_spill] sm:$0xff] %v7416_v47  ;;  %2280 = vmatpush.msra.mxu0 %v7431_v39  ;;  %v7434_v47 = vld [vmem:[#allocation11 + $0x38] sm:$0xff] }
 0x3ce   : > { %9945 = vst [vmem:[#allocation150_spill] sm:$0xff] %v7419_v23  ;;  %2326 = vmatpush.msra.mxu2 %v7434_v47  ;;  %v7437_v23 = vld [vmem:[#allocation11 + $0x10] sm:$0xff] }
 0x3cf   : > { %9946 = vst [vmem:[#allocation151_spill] sm:$0xff] %v7422_v48  ;;  %2281 = vmatpush.msra.mxu0 %v7437_v23  ;;  %v7440_v48 = vld [vmem:[#allocation11 + $0x18] sm:$0xff] }
 0x3d0   : > { %9947 = vst [vmem:[#allocation152_spill] sm:$0xff] %v7425_v12  ;;  %2327 = vmatpush.msra.mxu2 %v7440_v48  ;;  %v1845_v12 = vpop.f32.mrf.mxu1 }
 0x3d1   : > { %9948 = vst [vmem:[#allocation153_spill] sm:$0xff] %v7428_v19  ;;  %v1822_v19 = vpop.f32.mrf.mxu0 }
 0x3d2   : > { %9949 = vst [vmem:[#allocation154_spill] sm:$0xff] %v7431_v39  ;;  %v1823_v39 = vadd.f32 %v1822_v19, %v9807_v35 }
 0x3d3   : > { %9950 = vst [vmem:[#allocation155_spill] sm:$0xff] %v7434_v47  ;;  %v1892_v47 = vadd.f32 %v1891_v18, %v1869_v10 }
 0x3d4   : > { %9951 = vst [vmem:[#allocation156_spill] sm:$0xff] %v7437_v23  ;;  %v1846_v8 = vadd.f32 %v1845_v12, %v1823_v39  ;;  %v3709_v12 = vld [vmem:[%s5062_s7 + $0x80] sm:$0xff] }
 0x3d5   : > { %9952 = vst [vmem:[#allocation157_spill] sm:$0xff] %v7440_v48  ;;  %4005 = vtanh.f32 %v1892_v47  ;;  %v1871_v48 = vpop.f32.mrf.mxu2 }
 0x3d6   : > { %4007 = vtanh.f32 %v1846_v8  ;;  %v1872_v51 = vadd.f32 %v1871_v48, %v9808_v60  ;;  %v2037_v48 = vunpack.c.h.bf16 %v3709_v12  ;;  %v1986_v60 = vpop.f32.mrf.mxu3 }
 0x3d8   : > { %v1848_v40 = vpop.f32.mrf.mxu1  ;;  %v1895_v57 = vadd.f32 %v1894_v4, %v1872_v51 }
 0x3d9   : > { %v1825_v46 = vpop.f32.mrf.mxu0 }
 0x3da   : > { %v1826_v13 = vadd.f32 %v1825_v46, %v9807_v35  ;;  %4009 = vtanh.f32 %v1895_v57 }
 0x3db   : > { %v4006_v54 = vpop.eup %4005 }
 0x3dc   : > { %v1849_v45 = vadd.f32 %v1848_v40, %v1826_v13  ;;  %v4008_v28 = vpop.eup %4007  ;;  %v2001_v18 = vadd.f32 1.0, %v4006_v54 }
 0x3dd   : > { %v1960_v39 = vpop.f32.mrf.mxu2  ;;  %v1997_v46 = vadd.f32 1.0, %v4008_v28 }
 0x3de   : > { %4011 = vtanh.f32 %v1849_v45  ;;  %v1961_v47 = vadd.f32 %v1960_v39, %v5898_v41  ;;  %v2003_v13 = vmul.f32 0.5, %v2001_v18  ;;  %v3711_v39 = vld [vmem:[%s5062_s7 + $0x90] sm:$0xff] }
 0x3e0   : > { %v1937_v32 = vpop.f32.mrf.mxu1  ;;  %v1984_v51 = vadd.f32 %v1983_v24, %v1961_v47  ;;  %v4010_v40 = vpop.eup %4009  ;;  %v2009_v28 = vmul.f32 %v2003_v13, %v6845_v59  ;;  %v2036_v24 = vunpack.c.l.bf16 %v3709_v12 }
 0x3e1   : > { %v1914_v3 = vpop.f32.mrf.mxu0 }
 0x3e2   : > { %v1915_v19 = vadd.f32 %v1914_v3, %v9809_v50 }
 0x3e4   : > { %v1938_v10 = vadd.f32 %v1937_v32, %v1915_v19  ;;  %v4012_v57 = vpop.eup %4011  ;;  %v1999_v32 = vmul.f32 0.5, %v1997_v46 }
 0x3e5   : > { %v1963_v18 = vpop.f32.mrf.mxu2  ;;  %v1998_v47 = vadd.f32 1.0, %v4012_v57 }
 0x3e6   : > { %4013 = vtanh.f32 %v1938_v10  ;;  %v2002_v10 = vadd.f32 1.0, %v4010_v40  ;;  %v1964_v6 = vadd.f32 %v1963_v18, %v5898_v41  ;;  %v3710_v40 = vld [vmem:[%s5062_s7 + $0x88] sm:$0xff] }
 0x3e7   : > { %4015 = vtanh.f32 %v1984_v51  ;;  %v2000_v57 = vmul.f32 0.5, %v1998_v47 }
 0x3e8   : > { %v1940_v23 = vpop.f32.mrf.mxu1  ;;  %v2004_v51 = vmul.f32 0.5, %v2002_v10 }
 0x3e9   : > { %v1917_v4 = vpop.f32.mrf.mxu0 }
 0x3ea   : > { %v1918_v3 = vadd.f32 %v1917_v4, %v9809_v50  ;;  %v2041_v4 = vunpack.c.h.bf16 %v3711_v39 }
 0x3ec   : > { %v4014_v54 = vpop.eup %4013  ;;  %v1941_v19 = vadd.f32 %v1940_v23, %v1918_v3  ;;  %v1987_v23 = vadd.f32 %v1986_v60, %v1964_v6  ;;  %v2039_v60 = vunpack.c.h.bf16 %v3710_v40 }
 0x3ed   : > { %v2011_v35 = vmul.f32 %v4014_v54, %v1999_v32  ;;  %v4016_v46 = vpop.eup %4015  ;;  %v2130_v32 = vpop.f32.mrf.mxu3 }
 0x3ee   : > { %4017 = vtanh.f32 %v1941_v19  ;;  %v2005_v3 = vadd.f32 1.0, %v4016_v46  ;;  %v2010_v19 = vmul.f32 %v2004_v51, %v6853_v63  ;;  %v2107_v47 = vpop.f32.mrf.mxu2 }
 0x3ef   : > { %v2013_v0 = vadd.f32 %v2011_v35, %v2009_v28  ;;  %v2038_v28 = vunpack.c.l.bf16 %v3710_v40 }
 0x3f0   : > { %v2084_v8 = vpop.f32.mrf.mxu1 }
 0x3f1   : > { %v2137_v45 = vadd.f32 %v2084_v8, %v2037_v48  ;;  %v2061_v48 = vpop.f32.mrf.mxu0  ;;  %v7457_v13 = vsel %vm6900_vm3, %v2013_v0, %v6845_v59  ;;  %v2040_v59 = vunpack.c.l.bf16 %v3711_v39  ;;  %v3712_v39 = vld [vmem:[%s5062_s7 + $0x98] sm:$0xff] }
 0x3f2   : > { %v2136_v12 = vadd.f32 %v2061_v48, %v2036_v24 }
 0x3f3   : > { %4019 = vtanh.f32 %v2137_v45  ;;  %v2007_v45 = vmul.f32 0.5, %v2005_v3 }
 0x3f4   : > { %4021 = vtanh.f32 %v2013_v0  ;;  %v4018_v35 = vpop.eup %4017 }
 0x3f5   : > { %4023 = vtanh.f32 %v1987_v23  ;;  %v2012_v6 = vmul.f32 %v4018_v35, %v2000_v57  ;;  %v2139_v23 = vadd.f32 %v2130_v32, %v2039_v60 }
 0x3f6   : > { %4025 = vtanh.f32 %v2136_v12 }
 0x3f7   : > { %v2014_v18 = vadd.f32 %v2012_v6, %v2010_v19 }
 0x3f8   : > { %v2087_v8 = vpop.f32.mrf.mxu1 }
 0x3f9   : > { %v2141_v54 = vadd.f32 %v2087_v8, %v2041_v4  ;;  %v4020_v10 = vpop.eup %4019  ;;  %v2138_v4 = vadd.f32 %v2107_v47, %v2038_v28  ;;  %v2064_v8 = vpop.f32.mrf.mxu0  ;;  %v7465_v51 = vsel %vm6900_vm3, %v2014_v18, %v6853_v63  ;;  %v2043_v63 = vunpack.c.h.bf16 %v3712_v39 }
 0x3fa   : > { %v4022_v0 = vpop.eup %4021  ;;  %v2156_v40 = vadd.f32 1.0, %v4020_v10  ;;  %v2140_v12 = vadd.f32 %v2064_v8, %v2040_v59  ;;  %v2110_v10 = vpop.f32.mrf.mxu2 }
 0x3fb   : > { %4027 = vtanh.f32 %v2141_v54  ;;  %v2017_v24 = vmul.f32 %v4022_v0, %v2007_v45  ;;  %v4024_v46 = vpop.eup %4023  ;;  %v2042_v54 = vunpack.c.l.bf16 %v3712_v39  ;;  %v7567_v39 = vld [vmem:[#allocation9 + $0x150] sm:$0xff] }
 0x3fc   : > { %4029 = vtanh.f32 %v2014_v18  ;;  %v4026_v48 = vpop.eup %4025  ;;  %v2006_v3 = vadd.f32 1.0, %v4024_v46  ;;  %v2158_v19 = vmul.f32 0.5, %v2156_v40  ;;  %v7556_v40 = vld [vmem:[#allocation9 + $0x160] sm:$0xff] }
 0x3fd   : > { %v7471_v57 = vsel %vm6900_vm3, %v2017_v24, %v6859_v33  ;;  %4031 = vtanh.f32 %v2138_v4  ;;  %v2152_v32 = vadd.f32 1.0, %v4026_v48  ;;  %v2133_v33 = vpop.f32.mrf.mxu3  ;;  %v2142_v0 = vadd.f32 %v2110_v10, %v2042_v54  ;;  %v9958_v54 = vld [vmem:[#allocation76_spill] sm:$0xff] }
 0x3fe   : > { %2213 = vmatmul.f32.vlgmr.msrb.gmra.mxu1 %v7471_v57  ;;  %2259 = vmatmul.f32.vlgmr.msrb.gmra.mxu3 %v7471_v57  ;;  %v2008_v35 = vmul.f32 0.5, %v2006_v3  ;;  %4033 = vtanh.f32 %v2140_v12  ;;  %v2143_v59 = vadd.f32 %v2133_v33, %v2043_v63  ;;  %v2164_v24 = vmul.f32 %v2158_v19, %v6919_v9  ;;  %v9957_v3 = vld [vmem:[#allocation74_spill] sm:$0xff]  ;;  %v9959_v19 = vld [vmem:[#allocation77_spill] sm:$0xff] }
 0x3ff   : > { %2436 = vmatpush.msrb.mxu1 %v6863_v17  ;;  %2482 = vmatpush.msrb.mxu3 %v6866_v11  ;;  %4035 = vtanh.f32 %v2139_v23  ;;  %v2154_v28 = vmul.f32 0.5, %v2152_v32  ;;  %v2390_v17 = vstv %s3761_s14  ;;  %v7588_v32 = vld [vmem:[#allocation9 + $0x110] sm:$0xff]  ;;  %v7591_v63 = vld [vmem:[#allocation9 + $0xe0] sm:$0xff] }
 0x400   : > { %4037 = vtanh.f32 %v2142_v0  ;;  %vm7493_vm4 = vcmp.eq.s32.totalorder %v2390_v17, 1  ;;  %v7599_v33 = vld [vmem:[#allocation9 + $0xc0] sm:$0xff]  ;;  %v9962_v17 = vld [vmem:[#allocation84_spill] sm:$0xff] }
 0x401   : > { %v4028_v45 = vpop.eup %4027  ;;  %2437 = vmatpush.msrb.mxu1 %v6873_v62  ;;  %2483 = vmatpush.msrb.mxu3 %v6876_v53  ;;  %4039 = vtanh.f32 %v2143_v59  ;;  %v7616_v59 = vld [vmem:[#allocation9 + $0xb0] sm:$0xff]  ;;  %v9963_v0 = vld [vmem:[#allocation14_spill] sm:$0xff]  ;;  %v7839_v53 = vld [vmem:[#allocation9 + $0x148] sm:$0xff] }
 0x402   : > { %v4030_v60 = vpop.eup %4029  ;;  %v2157_v47 = vadd.f32 1.0, %v4028_v45  ;;  %v7595_v45 = vld [vmem:[#allocation9 + $0xf0] sm:$0xff] }
 0x403   : > { %v2018_v6 = vmul.f32 %v4030_v60, %v2008_v35  ;;  %2438 = vmatpush.msrb.mxu1 %v6879_v5  ;;  %2484 = vmatpush.msrb.mxu3 %v6882_v15  ;;  %v4032_v11 = vpop.eup %4031  ;;  %v7585_v35 = vld [vmem:[#allocation9 + $0x100] sm:$0xff]  ;;  %v9960_v60 = vld [vmem:[#allocation80_spill] sm:$0xff] }
 0x404   : > { %v4034_v18 = vpop.eup %4033  ;;  %v2166_v46 = vmul.f32 %v4032_v11, %v2154_v28  ;;  %v9961_v28 = vld [vmem:[#allocation83_spill] sm:$0xff]  ;;  %v7612_v11 = vld [vmem:[#allocation9 + $0xa0] sm:$0xff] }
 0x405   : > { %2439 = vmatpush.msrb.mxu1 %v6887_v38  ;;  %2485 = vmatpush.msrb.mxu3 %v6890_v42  ;;  %v7489_v62 = vsel %vm6900_vm3, %v2018_v6, %v6896_v1  ;;  %v4036_v5 = vpop.eup %4035  ;;  %v2153_v23 = vadd.f32 1.0, %v4034_v18  ;;  %v2159_v38 = vmul.f32 0.5, %v2157_v47  ;;  %v7603_v6 = vld [vmem:[#allocation9 + $0xd0] sm:$0xff] }
 0x406   : > { %2216 = vmatmul.f32.gmra.mxu1 %v7489_v62  ;;  %2262 = vmatmul.f32.gmra.mxu3 %v7489_v62  ;;  %v2168_v15 = vadd.f32 %v2166_v46, %v2164_v24  ;;  %v2160_v1 = vadd.f32 1.0, %v4036_v5  ;;  %v7621_v18 = vld [vmem:[#allocation9 + $0x90] sm:$0xff]  ;;  %v9964_v24 = vld [vmem:[#allocation85_spill] sm:$0xff]  ;;  %v9966_v46 = vld [vmem:[#allocation15_spill] sm:$0xff] }
 0x407   : > { %2440 = vmatpush.msrb.mxu1 %v6904_v36  ;;  %2486 = vmatpush.msrb.mxu3 %v6907_v22  ;;  %v2155_v31 = vmul.f32 0.5, %v2153_v23  ;;  %v4038_v36 = vpop.eup %4037  ;;  %v2165_v22 = vmul.f32 %v2159_v38, %v6951_v34  ;;  %v9965_v47 = vld [vmem:[#allocation16_spill] sm:$0xff]  ;;  %v9967_v5 = vld [vmem:[#allocation86_spill] sm:$0xff]  ;;  %v9969_v23 = vld [vmem:[#allocation87_spill] sm:$0xff] }
 0x408   : > { %4041 = vtanh.f32 %v2168_v15  ;;  %v7504_v42 = vsel %vm7493_vm4, %v2168_v15, %v6919_v9  ;;  %v9968_v15 = vld [vmem:[#allocation18_spill] sm:$0xff]  ;;  %v9970_v38 = vld [vmem:[#allocation17_spill] sm:$0xff] }
 0x409   : > { %2441 = vmatpush.msrb.mxu1 %v6910_v43  ;;  %2487 = vmatpush.msrb.mxu3 %v6913_v49  ;;  %v2167_v4 = vmul.f32 %v4038_v36, %v2155_v31  ;;  %v4040_v43 = vpop.eup %4039  ;;  %v2162_v49 = vmul.f32 0.5, %v2160_v1  ;;  %v9971_v1 = vld [vmem:[#allocation88_spill] sm:$0xff]  ;;  %v9973_v36 = vld [vmem:[#allocation89_spill] sm:$0xff] }
 0x40a   : > { %v9972_v31 = vld [vmem:[#allocation20_spill] sm:$0xff] }
 0x40b   : > { %2442 = vmatpush.msrb.mxu1 %v6921_v20  ;;  %2488 = vmatpush.msrb.mxu3 %v6924_v58  ;;  %v2169_v8 = vadd.f32 %v2167_v4, %v2165_v22  ;;  %v9974_v22 = vld [vmem:[#allocation19_spill] sm:$0xff]  ;;  %v9975_v4 = vld [vmem:[#allocation90_spill] sm:$0xff] }
 0x40d   : > { %2443 = vmatpush.msrb.mxu1 %v6928_v7  ;;  %2489 = vmatpush.msrb.mxu3 %v6931_v25  ;;  %4043 = vtanh.f32 %v2169_v8  ;;  %v7520_v58 = vsel %vm7493_vm4, %v2169_v8, %v6951_v34  ;;  %v2161_v7 = vadd.f32 1.0, %v4040_v43  ;;  %v7522_v25 = vld [vmem:[#allocation9 + $0x1e0] sm:$0xff]  ;;  %v9979_v8 = vld [vmem:[#allocation24_spill] sm:$0xff] }
 0x40e   : > { %2305 = vmatmul.f32.vlgmr.msra.gmra.mxu1 %v7471_v57  ;;  %2351 = vmatmul.f32.vlgmr.msra.gmra.mxu3 %v7471_v57  ;;  %v4042_v9 = vpop.eup %4041  ;;  %v9976_v43 = vld [vmem:[#allocation22_spill] sm:$0xff] }
 0x40f   : > { %2444 = vmatpush.msrb.mxu1 %v6936_v16  ;;  %2490 = vmatpush.msrb.mxu3 %v6939_v56  ;;  %v2172_v20 = vmul.f32 %v4042_v9, %v2162_v49  ;;  %v7525_v16 = vld [vmem:[#allocation9 + $0x1f0] sm:$0xff]  ;;  %v7530_v56 = vld [vmem:[#allocation9 + $0x1c0] sm:$0xff]  ;;  %v9977_v49 = vld [vmem:[#allocation91_spill] sm:$0xff] }
 0x410   : > { %v9978_v9 = vld [vmem:[#allocation21_spill] sm:$0xff] }
 0x411   : > { %2445 = vmatpush.msrb.mxu1 %v6942_v27  ;;  %2491 = vmatpush.msrb.mxu3 %v6945_v55  ;;  %v7533_v27 = vld [vmem:[#allocation9 + $0x1d0] sm:$0xff]  ;;  %v2163_v55 = vmul.f32 0.5, %v2161_v7  ;;  %v7575_v12 = vsel %vm7493_vm4, %v2172_v20, %v9957_v3  ;;  %v9987_v3 = vld [vmem:[#allocation31_spill] sm:$0xff] }
 0x412   : > { %2190 = vmatmul.f32.vlgmr.msrb.gmra.mxu0 %v2172_v20  ;;  %2236 = vmatmul.f32.vlgmr.msrb.gmra.mxu2 %v2172_v20  ;;  %v9981_v7 = vld [vmem:[#allocation92_spill] sm:$0xff] }
 0x413   : > { %2413 = vmatpush.msrb.mxu0 %v7522_v25  ;;  %2459 = vmatpush.msrb.mxu2 %v7525_v16  ;;  %v4044_v34 = vpop.eup %4043 }
 0x414   : > { %2446 = vmatpush.msrb.mxu1 %v6955_v21  ;;  %2492 = vmatpush.msrb.mxu3 %v6958_v14  ;;  %v7540_v21 = vld [vmem:[#allocation9 + $0x1a0] sm:$0xff]  ;;  %v7543_v14 = vld [vmem:[#allocation9 + $0x1b0] sm:$0xff]  ;;  %v2173_v48 = vmul.f32 %v4044_v34, %v2163_v55  ;;  %v9982_v55 = vld [vmem:[#allocation27_spill] sm:$0xff] }
 0x415   : > { %2414 = vmatpush.msrb.mxu0 %v7530_v56  ;;  %2460 = vmatpush.msrb.mxu2 %v7533_v27  ;;  %v9983_v34 = vld [vmem:[#allocation93_spill] sm:$0xff] }
 0x416   : > { %2447 = vmatpush.msrb.mxu1 %v6963_v29  ;;  %2493 = vmatpush.msrb.mxu3 %v6966_v44  ;;  %v7548_v29 = vld [vmem:[#allocation9 + $0x180] sm:$0xff]  ;;  %v7551_v44 = vld [vmem:[#allocation9 + $0x190] sm:$0xff]  ;;  %v7609_v10 = vsel %vm7493_vm4, %v2173_v48, %v9961_v28  ;;  %v9991_v28 = vld [vmem:[#allocation35_spill] sm:$0xff] }
 0x417   : > { %2308 = vmatmul.f32.gmra.mxu1 %v7489_v62  ;;  %2354 = vmatmul.f32.gmra.mxu3 %v7489_v62 }
 0x418   : > { %2415 = vmatpush.msrb.mxu0 %v7540_v21  ;;  %2461 = vmatpush.msrb.mxu2 %v7543_v14 }
 0x419   : > { %2448 = vmatpush.msrb.mxu1 %v6973_v52  ;;  %2494 = vmatpush.msrb.mxu3 %v6976_v37  ;;  %v7559_v52 = vld [vmem:[#allocation9 + $0x170] sm:$0xff]  ;;  %v7564_v37 = vld [vmem:[#allocation9 + $0x140] sm:$0xff] }
 0x41a   : > { %2416 = vmatpush.msrb.mxu0 %v7548_v29  ;;  %2462 = vmatpush.msrb.mxu2 %v7551_v44 }
 0x41b   : > { %2193 = vmatmul.f32.gmra.mxu0 %v2173_v48  ;;  %2239 = vmatmul.f32.gmra.mxu2 %v2173_v48 }
 0x41c   : > { %2449 = vmatpush.msrb.mxu1 %v6981_v2  ;;  %2495 = vmatpush.msrb.mxu3 %v6984_v26  ;;  %v9955_v2 = vld [vmem:[#allocation26_spill] sm:$0xff]  ;;  %v9956_v26 = vld [vmem:[#allocation73_spill] sm:$0xff] }
 0x41d   : > { %2417 = vmatpush.msrb.mxu0 %v7556_v40  ;;  %2463 = vmatpush.msrb.mxu2 %v7559_v52 }
 0x41e   : > { %2450 = vmatpush.msrb.mxu1 %v6989_v61  ;;  %2496 = vmatpush.msrb.mxu3 %v6992_v30  ;;  %v7577_v61 = vld [vmem:[#allocation9 + $0x120] sm:$0xff]  ;;  %v7581_v30 = vld [vmem:[#allocation9 + $0x130] sm:$0xff] }
 0x41f   : > { %2418 = vmatpush.msrb.mxu0 %v7564_v37  ;;  %2464 = vmatpush.msrb.mxu2 %v7567_v39 }
 0x420   : > { %2451 = vmatpush.msrb.mxu1 %v9955_v2  ;;  %2497 = vmatpush.msrb.mxu3 %v9956_v26  ;;  %v9985_v2 = vld [vmem:[#allocation29_spill] sm:$0xff]  ;;  %v9986_v26 = vld [vmem:[#allocation30_spill] sm:$0xff] }
 0x421   : > { %2419 = vmatpush.msrb.mxu0 %v7577_v61  ;;  %2452 = vmatmul.f32.vlgmr.msrb.gmra.mxu1 %v7575_v12 }
 0x422   : > { %2465 = vmatpush.msrb.mxu2 %v7581_v30  ;;  %2498 = vmatmul.f32.vlgmr.msrb.gmra.mxu3 %v7575_v12 }
 0x423   : > { %2420 = vmatpush.msrb.mxu0 %v7585_v35  ;;  %2328 = vmatmul.f32.vlgmr.msra.gmra.mxu2 %v2172_v20 }
 0x424   : > { %2466 = vmatpush.msrb.mxu2 %v7588_v32  ;;  %2282 = vmatmul.f32.vlgmr.msra.gmra.mxu0 %v2172_v20  ;;  %v9980_v20 = vld [vmem:[#allocation25_spill] sm:$0xff] }
 0x425   : > { %2421 = vmatpush.msrb.mxu0 %v7591_v63  ;;  %2566 = vmatpush.msra.mxu1 %v9958_v54  ;;  %v9988_v54 = vld [vmem:[#allocation32_spill] sm:$0xff] }
 0x426   : > { %2467 = vmatpush.msrb.mxu2 %v7595_v45  ;;  %2612 = vmatpush.msra.mxu3 %v9959_v19  ;;  %v9989_v19 = vld [vmem:[#allocation33_spill] sm:$0xff] }
 0x427   : > { %2422 = vmatpush.msrb.mxu0 %v7599_v33  ;;  %2567 = vmatpush.msra.mxu1 %v9960_v60  ;;  %v9990_v60 = vld [vmem:[#allocation34_spill] sm:$0xff] }
 0x428   : > { %2468 = vmatpush.msrb.mxu2 %v7603_v6  ;;  %2613 = vmatpush.msra.mxu3 %v9962_v17  ;;  %v9992_v17 = vld [vmem:[#allocation36_spill] sm:$0xff] }
 0x429   : > { %2423 = vmatpush.msrb.mxu0 %v7612_v11  ;;  %2455 = vmatmul.f32.gmra.mxu1 %v7609_v10 }
 0x42a   : > { %2469 = vmatpush.msrb.mxu2 %v7616_v59  ;;  %2501 = vmatmul.f32.gmra.mxu3 %v7609_v10 }
 0x42b   : > { %2424 = vmatpush.msrb.mxu0 %v9963_v0  ;;  %2331 = vmatmul.f32.gmra.mxu2 %v2173_v48  ;;  %v9993_v0 = vld [vmem:[#allocation37_spill] sm:$0xff] }
 0x42c   : > { %2470 = vmatpush.msrb.mxu2 %v7621_v18  ;;  %2285 = vmatmul.f32.gmra.mxu0 %v2173_v48  ;;  %v9984_v48 = vld [vmem:[#allocation28_spill] sm:$0xff] }
 0x42d   : > { %2425 = vmatpush.msrb.mxu0 %v9964_v24  ;;  %2568 = vmatpush.msra.mxu1 %v9965_v47  ;;  %v9994_v24 = vld [vmem:[#allocation38_spill] sm:$0xff]  ;;  %v9995_v47 = vld [vmem:[#allocation39_spill] sm:$0xff] }
 0x42e   : > { %2471 = vmatpush.msrb.mxu2 %v9966_v46  ;;  %2614 = vmatpush.msra.mxu3 %v9967_v5  ;;  %v9996_v46 = vld [vmem:[#allocation40_spill] sm:$0xff]  ;;  %v9997_v5 = vld [vmem:[#allocation42_spill] sm:$0xff] }
 0x42f   : > { %2426 = vmatpush.msrb.mxu0 %v9968_v15  ;;  %2569 = vmatpush.msra.mxu1 %v9969_v23  ;;  %v9998_v15 = vld [vmem:[#allocation43_spill] sm:$0xff]  ;;  %v9999_v23 = vld [vmem:[#allocation46_spill] sm:$0xff] }
 0x430   : > { %2472 = vmatpush.msrb.mxu2 %v9970_v38  ;;  %2615 = vmatpush.msra.mxu3 %v9971_v1  ;;  %v10000_v38 = vld [vmem:[#allocation47_spill] sm:$0xff]  ;;  %v10001_v1 = vld [vmem:[#allocation50_spill] sm:$0xff] }
 0x431   : > { %2427 = vmatpush.msrb.mxu0 %v9972_v31  ;;  %2570 = vmatpush.msra.mxu1 %v9973_v36  ;;  %v10002_v31 = vld [vmem:[#allocation51_spill] sm:$0xff]  ;;  %v10003_v36 = vld [vmem:[#allocation54_spill] sm:$0xff] }
 0x432   : > { %2473 = vmatpush.msrb.mxu2 %v9974_v22  ;;  %2616 = vmatpush.msra.mxu3 %v9975_v4  ;;  %v10004_v22 = vld [vmem:[#allocation55_spill] sm:$0xff]  ;;  %v10005_v4 = vld [vmem:[#allocation58_spill] sm:$0xff] }
 0x433   : > { %2428 = vmatpush.msrb.mxu0 %v9976_v43  ;;  %2571 = vmatpush.msra.mxu1 %v9977_v49  ;;  %v10006_v43 = vld [vmem:[#allocation59_spill] sm:$0xff] }
 0x434   : > { %2474 = vmatpush.msrb.mxu2 %v9978_v9  ;;  %2429 = vmatmul.f32.vlgmr.msrb.gmra.mxu0 %v7575_v12  ;;  %v10007_v49 = vld [vmem:[#allocation63_spill] sm:$0xff]  ;;  %v10008_v9 = vld [vmem:[#allocation65_spill] sm:$0xff] }
 0x435   : > { %2475 = vmatmul.f32.vlgmr.msrb.gmra.mxu2 %v7575_v12  ;;  %2617 = vmatpush.msra.mxu3 %v9979_v8  ;;  %v10009_v8 = vld [vmem:[#allocation68_spill] sm:$0xff] }
 0x436   : > { %2572 = vmatpush.msra.mxu1 %v9980_v20  ;;  %2543 = vmatpush.msra.mxu0 %v9981_v7  ;;  %v10010_v20 = vld [vmem:[#allocation69_spill] sm:$0xff]  ;;  %v10011_v7 = vld [vmem:[#allocation72_spill] sm:$0xff] }
 0x437   : > { %2618 = vmatpush.msra.mxu3 %v9982_v55  ;;  %2589 = vmatpush.msra.mxu2 %v9983_v34  ;;  %v10012_v55 = vld [vmem:[#allocation75_spill] sm:$0xff]  ;;  %v10013_v34 = vld [vmem:[#allocation78_spill] sm:$0xff] }
 0x438   : > { %2573 = vmatpush.msra.mxu1 %v9984_v48  ;;  %2544 = vmatpush.msra.mxu0 %v9985_v2  ;;  %v10014_v48 = vld [vmem:[#allocation79_spill] sm:$0xff]  ;;  %v10015_v2 = vld [vmem:[#allocation81_spill] sm:$0xff] }
 0x439   : > { %2619 = vmatpush.msra.mxu3 %v9986_v26  ;;  %2590 = vmatpush.msra.mxu2 %v9987_v3  ;;  %v10016_v26 = vld [vmem:[#allocation82_spill] sm:$0xff]  ;;  %v10017_v3 = vld [vmem:[#allocation41_spill] sm:$0xff] }
 0x43a   : > { %2574 = vmatpush.msra.mxu1 %v9988_v54  ;;  %2545 = vmatpush.msra.mxu0 %v9989_v19  ;;  %v10018_v54 = vld [vmem:[#allocation44_spill] sm:$0xff]  ;;  %v10019_v19 = vld [vmem:[#allocation45_spill] sm:$0xff] }
 0x43b   : > { %2620 = vmatpush.msra.mxu3 %v9990_v60  ;;  %2591 = vmatpush.msra.mxu2 %v9991_v28  ;;  %v10020_v60 = vld [vmem:[#allocation48_spill] sm:$0xff]  ;;  %v10021_v28 = vld [vmem:[#allocation49_spill] sm:$0xff] }
 0x43c   : > { %2432 = vmatmul.f32.gmra.mxu0 %v7609_v10  ;;  %2575 = vmatpush.msra.mxu1 %v9992_v17  ;;  %v10022_v17 = vld [vmem:[#allocation52_spill] sm:$0xff] }
 0x43d   : > { %2478 = vmatmul.f32.gmra.mxu2 %v7609_v10  ;;  %2621 = vmatpush.msra.mxu3 %v9993_v0  ;;  %v10023_v0 = vld [vmem:[#allocation53_spill] sm:$0xff] }
 0x43e   : > { %2576 = vmatpush.msra.mxu1 %v9994_v24  ;;  %2546 = vmatpush.msra.mxu0 %v9995_v47  ;;  %v10024_v24 = vld [vmem:[#allocation56_spill] sm:$0xff]  ;;  %v10025_v47 = vld [vmem:[#allocation57_spill] sm:$0xff] }
 0x43f   : > { %2622 = vmatpush.msra.mxu3 %v9996_v46  ;;  %2592 = vmatpush.msra.mxu2 %v9997_v5  ;;  %v10026_v46 = vld [vmem:[#allocation60_spill] sm:$0xff]  ;;  %v10027_v5 = vld [vmem:[#allocation61_spill] sm:$0xff] }
 0x440   : > { %2577 = vmatpush.msra.mxu1 %v9998_v15  ;;  %2547 = vmatpush.msra.mxu0 %v9999_v23  ;;  %v10028_v15 = vld [vmem:[#allocation64_spill] sm:$0xff]  ;;  %v10029_v23 = vld [vmem:[#allocation23_spill] sm:$0xff] }
 0x441   : > { %2623 = vmatpush.msra.mxu3 %v10000_v38  ;;  %2593 = vmatpush.msra.mxu2 %v10001_v1  ;;  %v10030_v38 = vld [vmem:[#allocation62_spill] sm:$0xff] }
 0x442   : > { %2578 = vmatpush.msra.mxu1 %v10002_v31  ;;  %2548 = vmatpush.msra.mxu0 %v10003_v36  ;;  %v10031_v1 = vld [vmem:[#allocation66_spill] sm:$0xff]  ;;  %v10033_v36 = vld [vmem:[#allocation95_spill] sm:$0xff] }
 0x443   : > { %2624 = vmatpush.msra.mxu3 %v10004_v22  ;;  %2594 = vmatpush.msra.mxu2 %v10005_v4  ;;  %v10032_v31 = vld [vmem:[#allocation94_spill] sm:$0xff]  ;;  %v10034_v22 = vld [vmem:[#allocation96_spill] sm:$0xff]  ;;  %v10035_v4 = vld [vmem:[#allocation97_spill] sm:$0xff] }
 0x444   : > { %2579 = vmatpush.msra.mxu1 %v10006_v43  ;;  %2549 = vmatpush.msra.mxu0 %v10007_v49  ;;  %v10036_v43 = vld [vmem:[#allocation98_spill] sm:$0xff]  ;;  %v10037_v49 = vld [vmem:[#allocation99_spill] sm:$0xff] }
 0x445   : > { %2625 = vmatpush.msra.mxu3 %v10008_v9  ;;  %2595 = vmatpush.msra.mxu2 %v10009_v8  ;;  %v10038_v9 = vld [vmem:[#allocation100_spill] sm:$0xff]  ;;  %v10039_v8 = vld [vmem:[#allocation101_spill] sm:$0xff] }
 0x446   : > { %2580 = vmatpush.msra.mxu1 %v10010_v20  ;;  %2550 = vmatpush.msra.mxu0 %v10011_v7  ;;  %v10040_v20 = vld [vmem:[#allocation102_spill] sm:$0xff]  ;;  %v10041_v7 = vld [vmem:[#allocation103_spill] sm:$0xff] }
 0x447   : > { %2626 = vmatpush.msra.mxu3 %v10012_v55  ;;  %2596 = vmatpush.msra.mxu2 %v10013_v34  ;;  %v10042_v55 = vld [vmem:[#allocation104_spill] sm:$0xff]  ;;  %v10043_v34 = vld [vmem:[#allocation105_spill] sm:$0xff] }
 0x448   : > { %2581 = vmatpush.msra.mxu1 %v10014_v48  ;;  %2551 = vmatpush.msra.mxu0 %v10015_v2  ;;  %v10044_v48 = vld [vmem:[#allocation106_spill] sm:$0xff]  ;;  %v10045_v2 = vld [vmem:[#allocation107_spill] sm:$0xff] }
 0x449   : > { %2627 = vmatpush.msra.mxu3 %v10016_v26  ;;  %2597 = vmatpush.msra.mxu2 %v10019_v19  ;;  %v10046_v26 = vld [vmem:[#allocation108_spill] sm:$0xff]  ;;  %v10049_v19 = vld [vmem:[#allocation111_spill] sm:$0xff] }
 0x44a   : > { %2658 = vmatpush.msrb.mxu1 %v10017_v3  ;;  %2552 = vmatpush.msra.mxu0 %v10021_v28  ;;  %v10047_v3 = vld [vmem:[#allocation109_spill] sm:$0xff] }
 0x44b   : > { %2704 = vmatpush.msrb.mxu3 %v10018_v54  ;;  %2598 = vmatpush.msra.mxu2 %v10023_v0  ;;  %v10048_v54 = vld [vmem:[#allocation110_spill] sm:$0xff]  ;;  %v10051_v28 = vld [vmem:[#allocation113_spill] sm:$0xff]  ;;  %v10053_v0 = vld [vmem:[#allocation115_spill] sm:$0xff] }
 0x44c   : > { %2659 = vmatpush.msrb.mxu1 %v10020_v60  ;;  %2553 = vmatpush.msra.mxu0 %v10025_v47  ;;  %v10050_v60 = vld [vmem:[#allocation112_spill] sm:$0xff]  ;;  %v10055_v47 = vld [vmem:[#allocation117_spill] sm:$0xff] }
 0x44d   : > { %2705 = vmatpush.msrb.mxu3 %v10022_v17  ;;  %2599 = vmatpush.msra.mxu2 %v10027_v5  ;;  %v10052_v17 = vld [vmem:[#allocation114_spill] sm:$0xff]  ;;  %v10057_v5 = vld [vmem:[#allocation119_spill] sm:$0xff] }
 0x44e   : > { %2660 = vmatpush.msrb.mxu1 %v10024_v24  ;;  %2554 = vmatpush.msra.mxu0 %v10029_v23  ;;  %v10054_v24 = vld [vmem:[#allocation116_spill] sm:$0xff]  ;;  %v10059_v23 = vld [vmem:[#allocation121_spill] sm:$0xff] }
 0x44f   : > { %2706 = vmatpush.msrb.mxu3 %v10026_v46  ;;  %2600 = vmatpush.msra.mxu2 %v10031_v1  ;;  %v10056_v46 = vld [vmem:[#allocation118_spill] sm:$0xff]  ;;  %v10061_v1 = vld [vmem:[#allocation123_spill] sm:$0xff] }
 0x450   : > { %2661 = vmatpush.msrb.mxu1 %v10028_v15  ;;  %2555 = vmatpush.msra.mxu0 %v10033_v36  ;;  %v10058_v15 = vld [vmem:[#allocation120_spill] sm:$0xff]  ;;  %v10063_v36 = vld [vmem:[#allocation125_spill] sm:$0xff] }
 0x451   : > { %2707 = vmatpush.msrb.mxu3 %v10030_v38  ;;  %2601 = vmatpush.msra.mxu2 %v10035_v4  ;;  %v10060_v38 = vld [vmem:[#allocation122_spill] sm:$0xff]  ;;  %v10065_v4 = vld [vmem:[#allocation127_spill] sm:$0xff] }
 0x452   : > { %2662 = vmatpush.msrb.mxu1 %v10032_v31  ;;  %2556 = vmatpush.msra.mxu0 %v10037_v49  ;;  %v10062_v31 = vld [vmem:[#allocation124_spill] sm:$0xff]  ;;  %v10067_v49 = vld [vmem:[#allocation129_spill] sm:$0xff] }
 0x453   : > { %2708 = vmatpush.msrb.mxu3 %v10034_v22  ;;  %2602 = vmatpush.msra.mxu2 %v10039_v8  ;;  %v10064_v22 = vld [vmem:[#allocation126_spill] sm:$0xff]  ;;  %v10069_v8 = vld [vmem:[#allocation131_spill] sm:$0xff] }
 0x454   : > { %2663 = vmatpush.msrb.mxu1 %v10036_v43  ;;  %2557 = vmatpush.msra.mxu0 %v10041_v7  ;;  %v10066_v43 = vld [vmem:[#allocation128_spill] sm:$0xff]  ;;  %v10071_v7 = vld [vmem:[#allocation133_spill] sm:$0xff] }
 0x455   : > { %2709 = vmatpush.msrb.mxu3 %v10038_v9  ;;  %2603 = vmatpush.msra.mxu2 %v10043_v34  ;;  %v10068_v9 = vld [vmem:[#allocation130_spill] sm:$0xff]  ;;  %v10073_v34 = vld [vmem:[#allocation135_spill] sm:$0xff] }
 0x456   : > { %2664 = vmatpush.msrb.mxu1 %v10040_v20  ;;  %2558 = vmatpush.msra.mxu0 %v10045_v2  ;;  %v10070_v20 = vld [vmem:[#allocation132_spill] sm:$0xff]  ;;  %v10075_v2 = vld [vmem:[#allocation137_spill] sm:$0xff] }
 0x457   : > { %2710 = vmatpush.msrb.mxu3 %v10042_v55  ;;  %2604 = vmatpush.msra.mxu2 %v10047_v3  ;;  %v10072_v55 = vld [vmem:[#allocation134_spill] sm:$0xff]  ;;  %v10077_v3 = vld [vmem:[#allocation139_spill] sm:$0xff] }
 0x458   : > { %2665 = vmatpush.msrb.mxu1 %v10044_v48  ;;  %2635 = vmatpush.msrb.mxu0 %v10049_v19  ;;  %v10074_v48 = vld [vmem:[#allocation136_spill] sm:$0xff]  ;;  %v10079_v19 = vld [vmem:[#allocation141_spill] sm:$0xff] }
 0x459   : > { %2711 = vmatpush.msrb.mxu3 %v10046_v26  ;;  %2681 = vmatpush.msrb.mxu2 %v10051_v28  ;;  %v10076_v26 = vld [vmem:[#allocation138_spill] sm:$0xff]  ;;  %v10081_v28 = vld [vmem:[#allocation143_spill] sm:$0xff] }
 0x45a   : > { %2666 = vmatpush.msrb.mxu1 %v10048_v54  ;;  %2636 = vmatpush.msrb.mxu0 %v10053_v0  ;;  %v10078_v54 = vld [vmem:[#allocation140_spill] sm:$0xff]  ;;  %v10083_v0 = vld [vmem:[#allocation145_spill] sm:$0xff] }
 0x45b   : > { %2712 = vmatpush.msrb.mxu3 %v10050_v60  ;;  %2682 = vmatpush.msrb.mxu2 %v10055_v47  ;;  %v10080_v60 = vld [vmem:[#allocation142_spill] sm:$0xff]  ;;  %v10085_v47 = vld [vmem:[#allocation147_spill] sm:$0xff] }
 0x45c   : > { %2667 = vmatpush.msrb.mxu1 %v10052_v17  ;;  %2637 = vmatpush.msrb.mxu0 %v10057_v5  ;;  %v10082_v17 = vld [vmem:[#allocation144_spill] sm:$0xff]  ;;  %v10087_v5 = vld [vmem:[#allocation149_spill] sm:$0xff] }
 0x45d   : > { %2713 = vmatpush.msrb.mxu3 %v10054_v24  ;;  %2683 = vmatpush.msrb.mxu2 %v10059_v23  ;;  %v10084_v24 = vld [vmem:[#allocation146_spill] sm:$0xff]  ;;  %v10089_v23 = vld [vmem:[#allocation151_spill] sm:$0xff] }
 0x45e   : > { %2668 = vmatpush.msrb.mxu1 %v10056_v46  ;;  %2638 = vmatpush.msrb.mxu0 %v10061_v1  ;;  %v10086_v46 = vld [vmem:[#allocation148_spill] sm:$0xff]  ;;  %v10091_v1 = vld [vmem:[#allocation153_spill] sm:$0xff] }
 0x45f   : > { %2714 = vmatpush.msrb.mxu3 %v10058_v15  ;;  %2684 = vmatpush.msrb.mxu2 %v10063_v36  ;;  %v10088_v15 = vld [vmem:[#allocation150_spill] sm:$0xff]  ;;  %v10093_v36 = vld [vmem:[#allocation155_spill] sm:$0xff] }
 0x460   : > { %2669 = vmatpush.msrb.mxu1 %v10060_v38  ;;  %2639 = vmatpush.msrb.mxu0 %v10065_v4  ;;  %v10090_v38 = vld [vmem:[#allocation152_spill] sm:$0xff]  ;;  %v10095_v4 = vld [vmem:[#allocation157_spill] sm:$0xff] }
 0x461   : > { %2715 = vmatpush.msrb.mxu3 %v10062_v31  ;;  %2685 = vmatpush.msrb.mxu2 %v10067_v49  ;;  %v10092_v31 = vld [vmem:[#allocation154_spill] sm:$0xff] }
 0x462   : > { %2670 = vmatpush.msrb.mxu1 %v10064_v22  ;;  %2640 = vmatpush.msrb.mxu0 %v10069_v8  ;;  %v10094_v22 = vld [vmem:[#allocation156_spill] sm:$0xff] }
 0x463   : > { %2716 = vmatpush.msrb.mxu3 %v10066_v43  ;;  %2686 = vmatpush.msrb.mxu2 %v10071_v7 }
 0x464   : > { %2671 = vmatpush.msrb.mxu1 %v10068_v9  ;;  %2641 = vmatpush.msrb.mxu0 %v10073_v34  ;;  %v10096_v34 = vld [vmem:[#allocation67_spill] sm:$0xff] }
 0x465   : > { %2717 = vmatpush.msrb.mxu3 %v10070_v20  ;;  %2687 = vmatpush.msrb.mxu2 %v10075_v2  ;;  %v10097_v2 = vld [vmem:[#allocation70_spill] sm:$0xff] }
 0x466   : > { %2672 = vmatpush.msrb.mxu1 %v10072_v55  ;;  %2642 = vmatpush.msrb.mxu0 %v10077_v3 }
 0x467   : > { %2718 = vmatpush.msrb.mxu3 %v10074_v48  ;;  %2688 = vmatpush.msrb.mxu2 %v10079_v19 }
 0x468   : > { %2673 = vmatpush.msrb.mxu1 %v10076_v26  ;;  %2643 = vmatpush.msrb.mxu0 %v10080_v60 }
 0x469   : > { %2719 = vmatpush.msrb.mxu3 %v10078_v54  ;;  %2689 = vmatpush.msrb.mxu2 %v10081_v28 }
 0x46a   : > { %2644 = vmatpush.msrb.mxu0 %v10082_v17 }
 0x46b   : > { %2690 = vmatpush.msrb.mxu2 %v10083_v0 }
 0x46c   : > { %2645 = vmatpush.msrb.mxu0 %v10084_v24 }
 0x46d   : > { %2691 = vmatpush.msrb.mxu2 %v10085_v47 }
 0x46e   : > { %2646 = vmatpush.msrb.mxu0 %v10086_v46 }
 0x46f   : > { %2692 = vmatpush.msrb.mxu2 %v10087_v5 }
 0x470   : > { %2647 = vmatpush.msrb.mxu0 %v10088_v15 }
 0x471   : > { %2693 = vmatpush.msrb.mxu2 %v10089_v23 }
 0x472   : > { %2648 = vmatpush.msrb.mxu0 %v10090_v38 }
 0x473   : > { %2694 = vmatpush.msrb.mxu2 %v10091_v1 }
 0x474   : > { %2649 = vmatpush.msrb.mxu0 %v10092_v31 }
 0x475   : > { %2695 = vmatpush.msrb.mxu2 %v10093_v36  ;;  %v3718_v36 = vld [vmem:[%s5062_s7 + $0xa0] sm:$0xff] }
 0x476   : > { %2650 = vmatpush.msrb.mxu0 %v10094_v22 }
 0x477   : > { %2696 = vmatpush.msrb.mxu2 %v10095_v4 }
 0x47b   : > { %v2214_v43 = vpop.f32.mrf.mxu1 }
 0x481   : > { %v2260_v9 = vpop.f32.mrf.mxu3 }
 0x483   : > { %v2217_v49 = vpop.f32.mrf.mxu1 }
 0x489   : > { %v2263_v55 = vpop.f32.mrf.mxu3 }
 0x48b   : > { %v2306_v20 = vpop.f32.mrf.mxu1 }
 0x48f   : > { %v2191_v8 = vpop.f32.mrf.mxu0 }
 0x490   : > { %v2192_v48 = vadd.f32 %v2191_v8, %v10096_v34  ;;  %v2406_v8 = vunpack.c.h.bf16 %v3718_v36 }
 0x491   : > { %v2352_v24 = vpop.f32.mrf.mxu3 }
 0x492   : > { %v2215_v19 = vadd.f32 %v2214_v43, %v2192_v48 }
 0x494   : > { %v2309_v60 = vpop.f32.mrf.mxu1 }
 0x495   : > { %v2237_v7 = vpop.f32.mrf.mxu2 }
 0x496   : > { %v2238_v26 = vadd.f32 %v2237_v7, %v10097_v2 }
 0x498   : > { %v2261_v3 = vadd.f32 %v2260_v9, %v2238_v26  ;;  %v2194_v54 = vpop.f32.mrf.mxu0 }
 0x499   : > { %v2195_v28 = vadd.f32 %v2194_v54, %v10096_v34 }
 0x49a   : > { %4045 = vtanh.f32 %v2261_v3  ;;  %v2355_v26 = vpop.f32.mrf.mxu3 }
 0x49b   : > { %4047 = vtanh.f32 %v2215_v19  ;;  %v2218_v47 = vadd.f32 %v2217_v49, %v2195_v28 }
 0x49e   : > { %v2240_v17 = vpop.f32.mrf.mxu2  ;;  %v2453_v43 = vpop.f32.mrf.mxu1 }
 0x49f   : > { %v2241_v0 = vadd.f32 %v2240_v17, %v10097_v2  ;;  %v2506_v28 = vadd.f32 %v2453_v43, %v2406_v8 }
 0x4a0   : > { %v4046_v15 = vpop.eup %4045 }
 0x4a1   : > { %v2264_v46 = vadd.f32 %v2263_v55, %v2241_v0  ;;  %v2283_v5 = vpop.f32.mrf.mxu0  ;;  %v4048_v38 = vpop.eup %4047  ;;  %v2370_v31 = vadd.f32 1.0, %v4046_v15 }
 0x4a2   : > { %v2284_v23 = vadd.f32 %v2283_v5, %v9809_v50  ;;  %v2366_v4 = vadd.f32 1.0, %v4048_v38  ;;  %v3720_v5 = vld [vmem:[%s5062_s7 + $0xb0] sm:$0xff] }
 0x4a3   : > { %4049 = vtanh.f32 %v2264_v46  ;;  %v2372_v49 = vmul.f32 0.5, %v2370_v31  ;;  %v2410_v31 = vunpack.c.h.bf16 %v3720_v5 }
 0x4a4   : > { %v2307_v1 = vadd.f32 %v2306_v20, %v2284_v23  ;;  %4051 = vtanh.f32 %v2218_v47  ;;  %v2368_v20 = vmul.f32 0.5, %v2366_v4 }
 0x4a5   : > { %v2378_v0 = vmul.f32 %v2372_v49, %v7457_v13  ;;  %v3719_v49 = vld [vmem:[%s5062_s7 + $0xa8] sm:$0xff] }
 0x4a6   : > { %4053 = vtanh.f32 %v2307_v1  ;;  %v2329_v22 = vpop.f32.mrf.mxu2  ;;  %v2456_v43 = vpop.f32.mrf.mxu1 }
 0x4a7   : > { %v2330_v9 = vadd.f32 %v2329_v22, %v5898_v41 }
 0x4a9   : > { %v2353_v7 = vadd.f32 %v2352_v24, %v2330_v9  ;;  %v2286_v55 = vpop.f32.mrf.mxu0  ;;  %v4050_v48 = vpop.eup %4049  ;;  %v2405_v24 = vunpack.c.l.bf16 %v3718_v36 }
 0x4aa   : > { %v2287_v3 = vadd.f32 %v2286_v55, %v9809_v50  ;;  %v4052_v54 = vpop.eup %4051  ;;  %v2371_v47 = vadd.f32 1.0, %v4050_v48 }
 0x4ab   : > { %4055 = vtanh.f32 %v2353_v7  ;;  %v2367_v23 = vadd.f32 1.0, %v4052_v54  ;;  %v2510_v54 = vadd.f32 %v2456_v43, %v2410_v31 }
 0x4ac   : > { %v4054_v19 = vpop.eup %4053  ;;  %v2310_v17 = vadd.f32 %v2309_v60, %v2287_v3  ;;  %v2373_v4 = vmul.f32 0.5, %v2371_v47  ;;  %v2499_v3 = vpop.f32.mrf.mxu3 }
 0x4ad   : > { %v2380_v46 = vmul.f32 %v4054_v19, %v2368_v20  ;;  %v2369_v55 = vmul.f32 0.5, %v2367_v23 }
 0x4ae   : > { %4057 = vtanh.f32 %v2310_v17  ;;  %v2332_v15 = vpop.f32.mrf.mxu2  ;;  %v2379_v19 = vmul.f32 %v2373_v4, %v7465_v51  ;;  %v2407_v17 = vunpack.c.l.bf16 %v3719_v49 }
 0x4af   : > { %v2382_v38 = vadd.f32 %v2380_v46, %v2378_v0  ;;  %v2333_v1 = vadd.f32 %v2332_v15, %v5898_v41  ;;  %4059 = vtanh.f32 %v2506_v28 }
 0x4b1   : > { %v4056_v22 = vpop.eup %4055  ;;  %4061 = vtanh.f32 %v2382_v38  ;;  %v2356_v60 = vadd.f32 %v2355_v26, %v2333_v1  ;;  %v2430_v9 = vpop.f32.mrf.mxu0  ;;  %v7774_v8 = vsel %vm7493_vm4, %v2382_v38, %v7457_v13  ;;  %v2408_v26 = vunpack.c.h.bf16 %v3719_v49 }
 0x4b2   : > { %v2374_v7 = vadd.f32 1.0, %v4056_v22  ;;  %v2505_v36 = vadd.f32 %v2430_v9, %v2405_v24  ;;  %v2409_v13 = vunpack.c.l.bf16 %v3720_v5  ;;  %v3721_v5 = vld [vmem:[%s5062_s7 + $0xb8] sm:$0xff] }
 0x4b3   : > { %4063 = vtanh.f32 %v2356_v60  ;;  %v2508_v38 = vadd.f32 %v2499_v3, %v2408_v26  ;;  %v7805_v26 = vld [vmem:[#allocation9 + $0x1d8] sm:$0xff] }
 0x4b4   : > { %v4058_v48 = vpop.eup %4057  ;;  %v2376_v20 = vmul.f32 0.5, %v2374_v7  ;;  %4065 = vtanh.f32 %v2505_v36 }
 0x4b5   : > { %v2381_v28 = vmul.f32 %v4058_v48, %v2369_v55  ;;  %v4060_v0 = vpop.eup %4059  ;;  %4067 = vtanh.f32 %v2510_v54  ;;  %v7795_v55 = vld [vmem:[#allocation9 + $0x1f8] sm:$0xff]  ;;  %v2411_v48 = vunpack.c.l.bf16 %v3721_v5 }
 0x4b6   : > { %v2525_v43 = vadd.f32 1.0, %v4060_v0 }
 0x4b7   : > { %v4062_v47 = vpop.eup %4061  ;;  %v2383_v46 = vadd.f32 %v2381_v28, %v2379_v19  ;;  %v7802_v19 = vld [vmem:[#allocation9 + $0x1c8] sm:$0xff] }
 0x4b8   : > { %v2386_v15 = vmul.f32 %v4062_v47, %v2376_v20  ;;  %v2476_v24 = vpop.f32.mrf.mxu2  ;;  %v2527_v54 = vmul.f32 0.5, %v2525_v43  ;;  %v2502_v20 = vpop.f32.mrf.mxu3  ;;  %v7808_v47 = vld [vmem:[#allocation9 + $0x1a8] sm:$0xff] }
 0x4b9   : > { %v4064_v23 = vpop.eup %4063  ;;  %4069 = vtanh.f32 %v2383_v46  ;;  %v2507_v1 = vadd.f32 %v2476_v24, %v2407_v17  ;;  %v2433_v31 = vpop.f32.mrf.mxu0  ;;  %v7782_v22 = vsel %vm7493_vm4, %v2383_v46, %v7465_v51  ;;  %v7792_v51 = vld [vmem:[#allocation9 + $0x1e8] sm:$0xff]  ;;  %v7811_v46 = vld [vmem:[#allocation9 + $0x1b8] sm:$0xff] }
 0x4ba   : > { %v4066_v4 = vpop.eup %4065  ;;  %v2375_v60 = vadd.f32 1.0, %v4064_v23  ;;  %v2509_v9 = vadd.f32 %v2433_v31, %v2409_v13  ;;  %v7788_v49 = vsel %vm7493_vm4, %v2386_v15, %v7471_v57  ;;  %v2412_v57 = vunpack.c.h.bf16 %v3721_v5  ;;  %v7816_v5 = vld [vmem:[#allocation9 + $0x188] sm:$0xff] }
 0x4bb   : > { %4071 = vtanh.f32 %v2507_v1  ;;  %2582 = vmatmul.f32.vlgmr.msra.gmra.mxu1 %v7788_v49  ;;  %2628 = vmatmul.f32.vlgmr.msra.gmra.mxu3 %v7788_v49  ;;  %v2521_v36 = vadd.f32 1.0, %v4066_v4  ;;  %v4068_v3 = vpop.eup %4067  ;;  %v2759_v15 = vstv %s7800_s15  ;;  %v2533_v31 = vmul.f32 %v2527_v54, %v7504_v42  ;;  %v7836_v54 = vld [vmem:[#allocation9 + $0x178] sm:$0xff] }
 0x4bc   : > { %v2377_v7 = vmul.f32 0.5, %v2375_v60  ;;  %4073 = vtanh.f32 %v2509_v9  ;;  %2805 = vmatpush.msra.mxu1 %v7792_v51  ;;  %2851 = vmatpush.msra.mxu3 %v7795_v55  ;;  %v2512_v23 = vadd.f32 %v2502_v20, %v2412_v57  ;;  %v2526_v4 = vadd.f32 1.0, %v4068_v3  ;;  %v7819_v60 = vld [vmem:[#allocation9 + $0x198] sm:$0xff]  ;;  %v7833_v3 = vld [vmem:[#allocation9 + $0x168] sm:$0xff] }
 0x4bd   : > { %4075 = vtanh.f32 %v2508_v38  ;;  %v2523_v0 = vmul.f32 0.5, %v2521_v36  ;;  %vm7829_vm5 = vcmp.eq.s32.totalorder %v2759_v15, 1  ;;  %v7842_v20 = vld [vmem:[#allocation9 + $0x158] sm:$0xff] }
 0x4be   : > { %2806 = vmatpush.msra.mxu1 %v7802_v19  ;;  %2852 = vmatpush.msra.mxu3 %v7805_v26  ;;  %v7853_v15 = vld [vmem:[#allocation9 + $0x138] sm:$0xff] }
 0x4bf   : > { %v4070_v28 = vpop.eup %4069 }
 0x4c0   : > { %v2387_v17 = vmul.f32 %v4070_v28, %v2377_v7  ;;  %v2479_v13 = vpop.f32.mrf.mxu2  ;;  %2807 = vmatpush.msra.mxu1 %v7808_v47  ;;  %2853 = vmatpush.msra.mxu3 %v7811_v46 }
 0x4c1   : > { %v4072_v24 = vpop.eup %4071  ;;  %v2511_v38 = vadd.f32 %v2479_v13, %v2411_v48  ;;  %v7850_v13 = vld [vmem:[#allocation9 + $0x128] sm:$0xff] }
 0x4c2   : > { %v4074_v1 = vpop.eup %4073  ;;  %v2535_v43 = vmul.f32 %v4072_v24, %v2523_v0  ;;  %2808 = vmatpush.msra.mxu1 %v7816_v5  ;;  %2854 = vmatpush.msra.mxu3 %v7819_v60  ;;  %v7825_v9 = vsel %vm7493_vm4, %v2387_v17, %v7489_v62  ;;  %v2528_v62 = vmul.f32 0.5, %v2526_v4 }
 0x4c3   : > { %4077 = vtanh.f32 %v2511_v38  ;;  %2585 = vmatmul.f32.gmra.mxu1 %v7825_v9  ;;  %2631 = vmatmul.f32.gmra.mxu3 %v7825_v9  ;;  %v4076_v36 = vpop.eup %4075  ;;  %v2522_v48 = vadd.f32 1.0, %v4074_v1  ;;  %v7857_v1 = vld [vmem:[#allocation9 + $0x108] sm:$0xff] }
 0x4c4   : > { %v2537_v57 = vadd.f32 %v2535_v43, %v2533_v31  ;;  %2809 = vmatpush.msra.mxu1 %v7833_v3  ;;  %2855 = vmatpush.msra.mxu3 %v7836_v54  ;;  %4079 = vtanh.f32 %v2512_v23  ;;  %v2529_v17 = vadd.f32 1.0, %v4076_v36  ;;  %v2534_v23 = vmul.f32 %v2528_v62, %v7520_v58 }
 0x4c5   : > { %v2524_v0 = vmul.f32 0.5, %v2522_v48  ;;  %v7868_v48 = vld [vmem:[#allocation9 + $0xf8] sm:$0xff] }
 0x4c6   : > { %4081 = vtanh.f32 %v2537_v57  ;;  %2810 = vmatpush.msra.mxu1 %v7839_v53  ;;  %2856 = vmatpush.msra.mxu3 %v7842_v20  ;;  %v7848_v28 = vsel %vm7829_vm5, %v2537_v57, %v7504_v42  ;;  %v7860_v42 = vld [vmem:[#allocation9 + $0x118] sm:$0xff]  ;;  %v2531_v4 = vmul.f32 0.5, %v2529_v17  ;;  %v7865_v57 = vld [vmem:[#allocation9 + $0xe8] sm:$0xff] }
 0x4c7   : > { %v7874_v17 = vld [vmem:[#allocation9 + $0xd8] sm:$0xff] }
 0x4c8   : > { %2811 = vmatpush.msra.mxu1 %v7850_v13  ;;  %2857 = vmatpush.msra.mxu3 %v7853_v15 }
 0x4c9   : > { %v4078_v24 = vpop.eup %4077 }
 0x4ca   : > { %v2536_v38 = vmul.f32 %v4078_v24, %v2524_v0  ;;  %2812 = vmatpush.msra.mxu1 %v7857_v1  ;;  %2858 = vmatpush.msra.mxu3 %v7860_v42  ;;  %v4080_v31 = vpop.eup %4079  ;;  %v7871_v0 = vld [vmem:[#allocation9 + $0xc8] sm:$0xff] }
 0x4cb   : > { %2674 = vmatmul.f32.vlgmr.msrb.gmra.mxu1 %v7788_v49  ;;  %2720 = vmatmul.f32.vlgmr.msrb.gmra.mxu3 %v7788_v49 }
 0x4cc   : > { %v4082_v43 = vpop.eup %4081  ;;  %v2538_v36 = vadd.f32 %v2536_v38, %v2534_v23  ;;  %2813 = vmatpush.msra.mxu1 %v7865_v57  ;;  %2859 = vmatpush.msra.mxu3 %v7868_v48  ;;  %v2530_v23 = vadd.f32 1.0, %v4080_v31  ;;  %v7884_v38 = vld [vmem:[#allocation9 + $0xa8] sm:$0xff] }
 0x4cd   : > { %v2541_v62 = vmul.f32 %v4082_v43, %v2531_v4  ;;  %v7887_v4 = vld [vmem:[#allocation9 + $0xb8] sm:$0xff]  ;;  %v7892_v31 = vld [vmem:[#allocation9 + $0x88] sm:$0xff] }
 0x4ce   : > { %4083 = vtanh.f32 %v2538_v36  ;;  %2814 = vmatpush.msra.mxu1 %v7871_v0  ;;  %2860 = vmatpush.msra.mxu3 %v7874_v17  ;;  %v7880_v24 = vsel %vm7829_vm5, %v2538_v36, %v7520_v58  ;;  %v2532_v58 = vmul.f32 0.5, %v2530_v23  ;;  %v7905_v43 = vld [vmem:[#allocation9 + $0x78] sm:$0xff]  ;;  %v7910_v36 = vld [vmem:[#allocation9 + $0x48] sm:$0xff] }
 0x4cf   : > { %2559 = vmatmul.f32.vlgmr.msra.gmra.mxu0 %v2541_v62  ;;  %2605 = vmatmul.f32.vlgmr.msra.gmra.mxu2 %v2541_v62  ;;  %v7929_v23 = vld [vmem:[#allocation9 + $0x18] sm:$0xff] }
 0x4d0   : > { %2782 = vmatpush.msra.mxu0 %v7522_v25  ;;  %2828 = vmatpush.msra.mxu2 %v7525_v16  ;;  %v7895_v25 = vld [vmem:[#allocation9 + $0x98] sm:$0xff]  ;;  %10101 = vst [vmem:[#allocation159_spill] sm:$0xff] %v7929_v23 }
 0x4d1   : > { %2815 = vmatpush.msra.mxu1 %v7884_v38  ;;  %2861 = vmatpush.msra.mxu3 %v7887_v4 }
 0x4d2   : > { %2783 = vmatpush.msra.mxu0 %v7530_v56  ;;  %2829 = vmatpush.msra.mxu2 %v7533_v27  ;;  %v7902_v27 = vld [vmem:[#allocation9 + $0x68] sm:$0xff] }
 0x4d3   : > { %2816 = vmatpush.msra.mxu1 %v7892_v31  ;;  %2862 = vmatpush.msra.mxu3 %v7895_v25 }
 0x4d4   : > { %v4084_v16 = vpop.eup %4083  ;;  %2677 = vmatmul.f32.gmra.mxu1 %v7825_v9  ;;  %2723 = vmatmul.f32.gmra.mxu3 %v7825_v9 }
 0x4d5   : > { %2784 = vmatpush.msra.mxu0 %v7540_v21  ;;  %2830 = vmatpush.msra.mxu2 %v7543_v14  ;;  %v2542_v56 = vmul.f32 %v4084_v16, %v2532_v58  ;;  %v7913_v21 = vld [vmem:[#allocation9 + $0x58] sm:$0xff]  ;;  %v7918_v14 = vld [vmem:[#allocation9 + $0x28] sm:$0xff]  ;;  %v8008_v16 = vld [vmem:[#allocation9] sm:$0xff] }
 0x4d6   : > { %2817 = vmatpush.msra.mxu1 %v7902_v27  ;;  %2863 = vmatpush.msra.mxu3 %v7905_v43  ;;  %v8005_v58 = vld [vmem:[#allocation11 + $0x368] sm:$0xff]  ;;  %10121 = vst [vmem:[#allocation20_spill] sm:$0xff] %v8008_v16 }
 0x4d7   : > { %2785 = vmatpush.msra.mxu0 %v7548_v29  ;;  %2831 = vmatpush.msra.mxu2 %v7551_v44  ;;  %v7921_v29 = vld [vmem:[#allocation9 + $0x38] sm:$0xff]  ;;  %v7926_v44 = vld [vmem:[#allocation9 + $0x8] sm:$0xff]  ;;  %10120 = vst [vmem:[#allocation88_spill] sm:$0xff] %v8005_v58 }
 0x4d8   : > { %2562 = vmatmul.f32.gmra.mxu0 %v2542_v56  ;;  %2608 = vmatmul.f32.gmra.mxu2 %v2542_v56  ;;  %10100 = vst [vmem:[#allocation158_spill] sm:$0xff] %v7926_v44 }
 0x4d9   : > { %2818 = vmatpush.msra.mxu1 %v7910_v36  ;;  %2864 = vmatpush.msra.mxu3 %v7913_v21 }
 0x4da   : > { %2786 = vmatpush.msra.mxu0 %v7556_v40  ;;  %2832 = vmatpush.msra.mxu2 %v7559_v52  ;;  %v7935_v40 = vsel %vm7829_vm5, %v2541_v62, %v7575_v12  ;;  %v7944_v52 = vld [vmem:[#allocation11 + $0x3e0] sm:$0xff]  ;;  %v7959_v12 = vsel %vm7829_vm5, %v2542_v56, %v7609_v10  ;;  %v7990_v10 = vld [vmem:[#allocation9 + $0x50] sm:$0xff] }
 0x4db   : > { %2819 = vmatpush.msra.mxu1 %v7918_v14  ;;  %2865 = vmatpush.msra.mxu3 %v7921_v29  ;;  %10102 = vst [vmem:[#allocation160_spill] sm:$0xff] %v7935_v40 }
 0x4dc   : > { %2787 = vmatpush.msra.mxu0 %v7564_v37  ;;  %2833 = vmatpush.msra.mxu2 %v7567_v39  ;;  %10103 = vst [vmem:[#allocation71_spill] sm:$0xff] %v7944_v52  ;;  %v7948_v37 = vld [vmem:[#allocation11 + $0x3e8] sm:$0xff]  ;;  %v7952_v39 = vld [vmem:[#allocation11 + $0x3c0] sm:$0xff] }
 0x4dd   : > { %2820 = vmatpush.msra.mxu1 %v7926_v44  ;;  %2866 = vmatpush.msra.mxu3 %v7929_v23  ;;  %10104 = vst [vmem:[#allocation26_spill] sm:$0xff] %v7948_v37 }
 0x4de   : > { %2788 = vmatpush.msra.mxu0 %v7577_v61  ;;  %2821 = vmatmul.f32.vlgmr.msra.gmra.mxu1 %v7935_v40  ;;  %10105 = vst [vmem:[#allocation73_spill] sm:$0xff] %v7952_v39  ;;  %v7961_v61 = vld [vmem:[#allocation11 + $0x3c8] sm:$0xff] }
 0x4df   : > { %2834 = vmatpush.msra.mxu2 %v7581_v30  ;;  %2867 = vmatmul.f32.vlgmr.msra.gmra.mxu3 %v7935_v40  ;;  %10106 = vst [vmem:[#allocation74_spill] sm:$0xff] %v7959_v12  ;;  %v7968_v30 = vld [vmem:[#allocation9 + $0x80] sm:$0xff] }
 0x4e0   : > { %2789 = vmatpush.msra.mxu0 %v7585_v35  ;;  %2697 = vmatmul.f32.vlgmr.msrb.gmra.mxu2 %v2541_v62  ;;  %10107 = vst [vmem:[#allocation76_spill] sm:$0xff] %v7961_v61  ;;  %v7972_v35 = vld [vmem:[#allocation9 + $0x60] sm:$0xff] }
 0x4e1   : > { %2835 = vmatpush.msra.mxu2 %v7588_v32  ;;  %2651 = vmatmul.f32.vlgmr.msrb.gmra.mxu0 %v2541_v62  ;;  %10108 = vst [vmem:[#allocation77_spill] sm:$0xff] %v7968_v30  ;;  %v7975_v32 = vld [vmem:[#allocation11 + $0x3a0] sm:$0xff]  ;;  %v8002_v62 = vld [vmem:[#allocation9 + $0x30] sm:$0xff] }
 0x4e2   : > { %2790 = vmatpush.msra.mxu0 %v7591_v63  ;;  %2935 = vmatpush.msrb.mxu1 %v7944_v52  ;;  %10109 = vst [vmem:[#allocation80_spill] sm:$0xff] %v7972_v35  ;;  %v7978_v63 = vld [vmem:[#allocation9 + $0x70] sm:$0xff] }
 0x4e3   : > { %2836 = vmatpush.msra.mxu2 %v7595_v45  ;;  %2981 = vmatpush.msrb.mxu3 %v7948_v37  ;;  %10110 = vst [vmem:[#allocation83_spill] sm:$0xff] %v7975_v32  ;;  %v7981_v45 = vld [vmem:[#allocation11 + $0x3a8] sm:$0xff] }
 0x4e4   : > { %2791 = vmatpush.msra.mxu0 %v7599_v33  ;;  %2936 = vmatpush.msrb.mxu1 %v7952_v39  ;;  %10111 = vst [vmem:[#allocation84_spill] sm:$0xff] %v7978_v63  ;;  %v7984_v33 = vld [vmem:[#allocation9 + $0x40] sm:$0xff] }
 0x4e5   : > { %2837 = vmatpush.msra.mxu2 %v7603_v6  ;;  %2982 = vmatpush.msrb.mxu3 %v7961_v61  ;;  %10112 = vst [vmem:[#allocation14_spill] sm:$0xff] %v7981_v45  ;;  %v7987_v6 = vld [vmem:[#allocation11 + $0x380] sm:$0xff] }
 0x4e6   : > { %2792 = vmatpush.msra.mxu0 %v7612_v11  ;;  %2824 = vmatmul.f32.gmra.mxu1 %v7959_v12  ;;  %10113 = vst [vmem:[#allocation85_spill] sm:$0xff] %v7984_v33  ;;  %v7993_v11 = vld [vmem:[#allocation11 + $0x388] sm:$0xff] }
 0x4e7   : > { %2838 = vmatpush.msra.mxu2 %v7616_v59  ;;  %2870 = vmatmul.f32.gmra.mxu3 %v7959_v12  ;;  %10114 = vst [vmem:[#allocation16_spill] sm:$0xff] %v7987_v6  ;;  %v7996_v59 = vld [vmem:[#allocation9 + $0x20] sm:$0xff] }
 0x4e8   : > { %2793 = vmatpush.msra.mxu0 %v7968_v30  ;;  %2700 = vmatmul.f32.gmra.mxu2 %v2542_v56  ;;  %10115 = vst [vmem:[#allocation15_spill] sm:$0xff] %v7990_v10 }
 0x4e9   : > { %2839 = vmatpush.msra.mxu2 %v7621_v18  ;;  %2654 = vmatmul.f32.gmra.mxu0 %v2542_v56  ;;  %10116 = vst [vmem:[#allocation86_spill] sm:$0xff] %v7993_v11  ;;  %v7999_v18 = vld [vmem:[#allocation11 + $0x360] sm:$0xff] }
 0x4ea   : > { %2794 = vmatpush.msra.mxu0 %v7972_v35  ;;  %2937 = vmatpush.msrb.mxu1 %v7975_v32  ;;  %10117 = vst [vmem:[#allocation18_spill] sm:$0xff] %v7996_v59  ;;  %v8011_v56 = vld [vmem:[#allocation11 + $0x340] sm:$0xff] }
 0x4eb   : > { %2840 = vmatpush.msra.mxu2 %v7978_v63  ;;  %2983 = vmatpush.msrb.mxu3 %v7981_v45  ;;  %10118 = vst [vmem:[#allocation87_spill] sm:$0xff] %v7999_v18 }
 0x4ec   : > { %2795 = vmatpush.msra.mxu0 %v7984_v33  ;;  %2938 = vmatpush.msrb.mxu1 %v7987_v6  ;;  %10119 = vst [vmem:[#allocation17_spill] sm:$0xff] %v8002_v62 }
 0x4ed   : > { %2841 = vmatpush.msra.mxu2 %v7990_v10  ;;  %2984 = vmatpush.msrb.mxu3 %v7993_v11  ;;  %10122 = vst [vmem:[#allocation89_spill] sm:$0xff] %v8011_v56 }
 0x4ee   : > { %2796 = vmatpush.msra.mxu0 %v7996_v59  ;;  %2939 = vmatpush.msrb.mxu1 %v7999_v18  ;;  %v8014_v59 = vld [vmem:[#allocation9 + $0x10] sm:$0xff]  ;;  %v8034_v18 = vld [vmem:[#allocation11 + $0x300] sm:$0xff] }
 0x4ef   : > { %2842 = vmatpush.msra.mxu2 %v8002_v62  ;;  %2985 = vmatpush.msrb.mxu3 %v8005_v58  ;;  %10123 = vst [vmem:[#allocation19_spill] sm:$0xff] %v8014_v59  ;;  %v8019_v62 = vld [vmem:[#allocation11 + $0x348] sm:$0xff]  ;;  %v8022_v58 = vld [vmem:[#allocation11 + $0x320] sm:$0xff] }
 0x4f0   : > { %2797 = vmatpush.msra.mxu0 %v8008_v16  ;;  %2940 = vmatpush.msrb.mxu1 %v8011_v56  ;;  %10124 = vst [vmem:[#allocation90_spill] sm:$0xff] %v8019_v62  ;;  %v8025_v16 = vld [vmem:[#allocation11 + $0x1e0] sm:$0xff]  ;;  %v8028_v56 = vld [vmem:[#allocation11 + $0x328] sm:$0xff] }
 0x4f1   : > { %2843 = vmatpush.msra.mxu2 %v8014_v59  ;;  %2798 = vmatmul.f32.vlgmr.msra.gmra.mxu0 %v7935_v40  ;;  %10125 = vst [vmem:[#allocation22_spill] sm:$0xff] %v8022_v58  ;;  %v8031_v59 = vld [vmem:[#allocation11 + $0x1e8] sm:$0xff] }
 0x4f2   : > { %2844 = vmatmul.f32.vlgmr.msra.gmra.mxu2 %v7935_v40  ;;  %2986 = vmatpush.msrb.mxu3 %v8019_v62  ;;  %10126 = vst [vmem:[#allocation91_spill] sm:$0xff] %v8025_v16  ;;  %v8037_v62 = vld [vmem:[#allocation11 + $0x1c0] sm:$0xff] }
 0x4f3   : > { %2941 = vmatpush.msrb.mxu1 %v8022_v58  ;;  %2912 = vmatpush.msrb.mxu0 %v8025_v16  ;;  %10127 = vst [vmem:[#allocation21_spill] sm:$0xff] %v8028_v56  ;;  %v8040_v58 = vld [vmem:[#allocation11 + $0x308] sm:$0xff] }
 0x4f4   : > { %2987 = vmatpush.msrb.mxu3 %v8028_v56  ;;  %10128 = vst [vmem:[#allocation24_spill] sm:$0xff] %v8031_v59  ;;  %2958 = vmatpush.msrb.mxu2 %v8031_v59  ;;  %v8043_v16 = vld [vmem:[#allocation11 + $0x1c8] sm:$0xff]  ;;  %v8046_v56 = vld [vmem:[#allocation11 + $0x2e0] sm:$0xff] }
 0x4f5   : > { %10129 = vst [vmem:[#allocation25_spill] sm:$0xff] %v8034_v18  ;;  %2942 = vmatpush.msrb.mxu1 %v8034_v18  ;;  %2913 = vmatpush.msrb.mxu0 %v8037_v62  ;;  %v8049_v59 = vld [vmem:[#allocation11 + $0x1a0] sm:$0xff]  ;;  %v8052_v18 = vld [vmem:[#allocation11 + $0x2e8] sm:$0xff] }
 0x4f6   : > { %10130 = vst [vmem:[#allocation92_spill] sm:$0xff] %v8037_v62  ;;  %2988 = vmatpush.msrb.mxu3 %v8040_v58  ;;  %2959 = vmatpush.msrb.mxu2 %v8043_v16  ;;  %v8055_v62 = vld [vmem:[#allocation11 + $0x1a8] sm:$0xff] }
 0x4f7   : > { %10131 = vst [vmem:[#allocation27_spill] sm:$0xff] %v8040_v58  ;;  %2943 = vmatpush.msrb.mxu1 %v8046_v56  ;;  %2914 = vmatpush.msrb.mxu0 %v8049_v59  ;;  %v8059_v58 = vld [vmem:[#allocation11 + $0x2c0] sm:$0xff] }
 0x4f8   : > { %10132 = vst [vmem:[#allocation93_spill] sm:$0xff] %v8043_v16  ;;  %2989 = vmatpush.msrb.mxu3 %v8052_v18  ;;  %2960 = vmatpush.msrb.mxu2 %v8055_v62  ;;  %v8075_v16 = vld [vmem:[#allocation11 + $0x188] sm:$0xff] }
 0x4f9   : > { %10133 = vst [vmem:[#allocation28_spill] sm:$0xff] %v8046_v56  ;;  %2801 = vmatmul.f32.gmra.mxu0 %v7959_v12  ;;  %2944 = vmatpush.msrb.mxu1 %v8059_v58  ;;  %v8063_v56 = vld [vmem:[#allocation11 + $0x2c8] sm:$0xff] }
 0x4fa   : > { %10134 = vst [vmem:[#allocation29_spill] sm:$0xff] %v8049_v59  ;;  %2847 = vmatmul.f32.gmra.mxu2 %v7959_v12  ;;  %2990 = vmatpush.msrb.mxu3 %v8063_v56  ;;  %v8066_v59 = vld [vmem:[#allocation11 + $0x2a0] sm:$0xff] }
 0x4fb   : > { %10135 = vst [vmem:[#allocation30_spill] sm:$0xff] %v8052_v18  ;;  %2945 = vmatpush.msrb.mxu1 %v8066_v59  ;;  %v8069_v18 = vld [vmem:[#allocation11 + $0x180] sm:$0xff]  ;;  %2961 = vmatpush.msrb.mxu2 %v8075_v16 }
 0x4fc   : > { %10136 = vst [vmem:[#allocation31_spill] sm:$0xff] %v8055_v62  ;;  %2915 = vmatpush.msrb.mxu0 %v8069_v18  ;;  %v8072_v62 = vld [vmem:[#allocation11 + $0x2a8] sm:$0xff] }
 0x4fd   : > { %10137 = vst [vmem:[#allocation32_spill] sm:$0xff] %v8059_v58  ;;  %2991 = vmatpush.msrb.mxu3 %v8072_v62  ;;  %v8078_v58 = vld [vmem:[#allocation11 + $0x280] sm:$0xff] }
 0x4fe   : > { %10138 = vst [vmem:[#allocation33_spill] sm:$0xff] %v8063_v56  ;;  %2946 = vmatpush.msrb.mxu1 %v8078_v58  ;;  %v8081_v56 = vld [vmem:[#allocation11 + $0x160] sm:$0xff] }
 0x4ff   : > { %10139 = vst [vmem:[#allocation34_spill] sm:$0xff] %v8066_v59  ;;  %2916 = vmatpush.msrb.mxu0 %v8081_v56  ;;  %v8084_v59 = vld [vmem:[#allocation11 + $0x288] sm:$0xff] }
 0x500   : > { %10140 = vst [vmem:[#allocation35_spill] sm:$0xff] %v8069_v18  ;;  %2992 = vmatpush.msrb.mxu3 %v8084_v59  ;;  %v8087_v18 = vld [vmem:[#allocation11 + $0x168] sm:$0xff] }
 0x501   : > { %10141 = vst [vmem:[#allocation36_spill] sm:$0xff] %v8072_v62  ;;  %2962 = vmatpush.msrb.mxu2 %v8087_v18  ;;  %v8090_v62 = vld [vmem:[#allocation11 + $0x260] sm:$0xff] }
 0x502   : > { %10142 = vst [vmem:[#allocation37_spill] sm:$0xff] %v8075_v16  ;;  %2947 = vmatpush.msrb.mxu1 %v8090_v62  ;;  %v8093_v16 = vld [vmem:[#allocation11 + $0x140] sm:$0xff] }
 0x503   : > { %10143 = vst [vmem:[#allocation38_spill] sm:$0xff] %v8078_v58  ;;  %2917 = vmatpush.msrb.mxu0 %v8093_v16  ;;  %v8096_v58 = vld [vmem:[#allocation11 + $0x268] sm:$0xff] }
 0x504   : > { %10144 = vst [vmem:[#allocation39_spill] sm:$0xff] %v8081_v56  ;;  %2993 = vmatpush.msrb.mxu3 %v8096_v58  ;;  %v8099_v56 = vld [vmem:[#allocation11 + $0x148] sm:$0xff] }
 0x505   : > { %10145 = vst [vmem:[#allocation40_spill] sm:$0xff] %v8084_v59  ;;  %2963 = vmatpush.msrb.mxu2 %v8099_v56  ;;  %v8102_v59 = vld [vmem:[#allocation11 + $0x240] sm:$0xff] }
 0x506   : > { %10146 = vst [vmem:[#allocation42_spill] sm:$0xff] %v8087_v18  ;;  %2948 = vmatpush.msrb.mxu1 %v8102_v59  ;;  %v8105_v18 = vld [vmem:[#allocation11 + $0x120] sm:$0xff] }
 0x507   : > { %10147 = vst [vmem:[#allocation43_spill] sm:$0xff] %v8090_v62  ;;  %2918 = vmatpush.msrb.mxu0 %v8105_v18  ;;  %v8108_v62 = vld [vmem:[#allocation11 + $0x248] sm:$0xff] }
 0x508   : > { %10148 = vst [vmem:[#allocation46_spill] sm:$0xff] %v8093_v16  ;;  %2994 = vmatpush.msrb.mxu3 %v8108_v62  ;;  %v8111_v16 = vld [vmem:[#allocation11 + $0x128] sm:$0xff] }
 0x509   : > { %10149 = vst [vmem:[#allocation47_spill] sm:$0xff] %v8096_v58  ;;  %2964 = vmatpush.msrb.mxu2 %v8111_v16  ;;  %v8114_v58 = vld [vmem:[#allocation11 + $0x220] sm:$0xff] }
 0x50a   : > { %10150 = vst [vmem:[#allocation50_spill] sm:$0xff] %v8099_v56  ;;  %2949 = vmatpush.msrb.mxu1 %v8114_v58  ;;  %v8117_v56 = vld [vmem:[#allocation11 + $0x100] sm:$0xff] }
 0x50b   : > { %10151 = vst [vmem:[#allocation51_spill] sm:$0xff] %v8102_v59  ;;  %2919 = vmatpush.msrb.mxu0 %v8117_v56  ;;  %v8120_v59 = vld [vmem:[#allocation11 + $0x228] sm:$0xff] }
 0x50c   : > { %10152 = vst [vmem:[#allocation54_spill] sm:$0xff] %v8105_v18  ;;  %2995 = vmatpush.msrb.mxu3 %v8120_v59  ;;  %v8123_v18 = vld [vmem:[#allocation11 + $0x108] sm:$0xff] }
 0x50d   : > { %10153 = vst [vmem:[#allocation55_spill] sm:$0xff] %v8108_v62  ;;  %2965 = vmatpush.msrb.mxu2 %v8123_v18  ;;  %v8126_v62 = vld [vmem:[#allocation11 + $0x200] sm:$0xff] }
 0x50e   : > { %10154 = vst [vmem:[#allocation58_spill] sm:$0xff] %v8111_v16  ;;  %2950 = vmatpush.msrb.mxu1 %v8126_v62  ;;  %v8129_v16 = vld [vmem:[#allocation11 + $0xe0] sm:$0xff] }
 0x50f   : > { %10155 = vst [vmem:[#allocation59_spill] sm:$0xff] %v8114_v58  ;;  %2920 = vmatpush.msrb.mxu0 %v8129_v16  ;;  %v8132_v58 = vld [vmem:[#allocation11 + $0x208] sm:$0xff] }
 0x510   : > { %10156 = vst [vmem:[#allocation63_spill] sm:$0xff] %v8117_v56  ;;  %2996 = vmatpush.msrb.mxu3 %v8132_v58  ;;  %v8135_v56 = vld [vmem:[#allocation11 + $0x3f0] sm:$0xff] }
 0x511   : > { %10157 = vst [vmem:[#allocation65_spill] sm:$0xff] %v8120_v59  ;;  %3027 = vmatpush.msra.mxu1 %v8135_v56  ;;  %v8138_v59 = vld [vmem:[#allocation11 + $0x3f8] sm:$0xff] }
 0x512   : > { %10158 = vst [vmem:[#allocation68_spill] sm:$0xff] %v8123_v18  ;;  %3073 = vmatpush.msra.mxu3 %v8138_v59  ;;  %v8141_v18 = vld [vmem:[#allocation11 + $0xe8] sm:$0xff] }
 0x513   : > { %10159 = vst [vmem:[#allocation69_spill] sm:$0xff] %v8126_v62  ;;  %2966 = vmatpush.msrb.mxu2 %v8141_v18  ;;  %v8144_v62 = vld [vmem:[#allocation11 + $0x3d0] sm:$0xff] }
 0x514   : > { %10160 = vst [vmem:[#allocation72_spill] sm:$0xff] %v8129_v16  ;;  %3028 = vmatpush.msra.mxu1 %v8144_v62  ;;  %v8147_v16 = vld [vmem:[#allocation11 + $0xc0] sm:$0xff] }
 0x515   : > { %10161 = vst [vmem:[#allocation75_spill] sm:$0xff] %v8132_v58  ;;  %2921 = vmatpush.msrb.mxu0 %v8147_v16  ;;  %v8150_v58 = vld [vmem:[#allocation11 + $0x3d8] sm:$0xff] }
 0x516   : > { %10162 = vst [vmem:[#allocation78_spill] sm:$0xff] %v8135_v56  ;;  %3074 = vmatpush.msra.mxu3 %v8150_v58  ;;  %v8153_v56 = vld [vmem:[#allocation11 + $0xc8] sm:$0xff] }
 0x517   : > { %10163 = vst [vmem:[#allocation79_spill] sm:$0xff] %v8138_v59  ;;  %2967 = vmatpush.msrb.mxu2 %v8153_v56  ;;  %v8156_v59 = vld [vmem:[#allocation11 + $0x3b0] sm:$0xff] }
 0x518   : > { %10164 = vst [vmem:[#allocation81_spill] sm:$0xff] %v8141_v18  ;;  %3029 = vmatpush.msra.mxu1 %v8156_v59  ;;  %v8159_v18 = vld [vmem:[#allocation11 + $0xa0] sm:$0xff] }
 0x519   : > { %10165 = vst [vmem:[#allocation82_spill] sm:$0xff] %v8144_v62  ;;  %2922 = vmatpush.msrb.mxu0 %v8159_v18  ;;  %v8162_v62 = vld [vmem:[#allocation11 + $0x3b8] sm:$0xff] }
 0x51a   : > { %10166 = vst [vmem:[#allocation41_spill] sm:$0xff] %v8147_v16  ;;  %3075 = vmatpush.msra.mxu3 %v8162_v62  ;;  %v8165_v16 = vld [vmem:[#allocation11 + $0xa8] sm:$0xff] }
 0x51b   : > { %10167 = vst [vmem:[#allocation44_spill] sm:$0xff] %v8150_v58  ;;  %2968 = vmatpush.msrb.mxu2 %v8165_v16  ;;  %v8168_v58 = vld [vmem:[#allocation11 + $0x390] sm:$0xff] }
 0x51c   : > { %10168 = vst [vmem:[#allocation45_spill] sm:$0xff] %v8153_v56  ;;  %3030 = vmatpush.msra.mxu1 %v8168_v58  ;;  %v8171_v56 = vld [vmem:[#allocation11 + $0x80] sm:$0xff] }
 0x51d   : > { %10169 = vst [vmem:[#allocation48_spill] sm:$0xff] %v8156_v59  ;;  %2923 = vmatpush.msrb.mxu0 %v8171_v56  ;;  %v8174_v59 = vld [vmem:[#allocation11 + $0x398] sm:$0xff] }
 0x51e   : > { %10170 = vst [vmem:[#allocation49_spill] sm:$0xff] %v8159_v18  ;;  %3076 = vmatpush.msra.mxu3 %v8174_v59  ;;  %v8177_v18 = vld [vmem:[#allocation11 + $0x88] sm:$0xff] }
 0x51f   : > { %10171 = vst [vmem:[#allocation52_spill] sm:$0xff] %v8162_v62  ;;  %2969 = vmatpush.msrb.mxu2 %v8177_v18  ;;  %v8180_v62 = vld [vmem:[#allocation11 + $0x370] sm:$0xff] }
 0x520   : > { %10172 = vst [vmem:[#allocation53_spill] sm:$0xff] %v8165_v16  ;;  %3031 = vmatpush.msra.mxu1 %v8180_v62  ;;  %v8183_v16 = vld [vmem:[#allocation11 + $0x60] sm:$0xff] }
 0x521   : > { %10173 = vst [vmem:[#allocation56_spill] sm:$0xff] %v8168_v58  ;;  %2924 = vmatpush.msrb.mxu0 %v8183_v16  ;;  %v8186_v58 = vld [vmem:[#allocation11 + $0x378] sm:$0xff] }
 0x522   : > { %10174 = vst [vmem:[#allocation57_spill] sm:$0xff] %v8171_v56  ;;  %3077 = vmatpush.msra.mxu3 %v8186_v58  ;;  %v8189_v56 = vld [vmem:[#allocation11 + $0x68] sm:$0xff] }
 0x523   : > { %10175 = vst [vmem:[#allocation60_spill] sm:$0xff] %v8174_v59  ;;  %2970 = vmatpush.msrb.mxu2 %v8189_v56  ;;  %v8192_v59 = vld [vmem:[#allocation11 + $0x350] sm:$0xff] }
 0x524   : > { %10176 = vst [vmem:[#allocation61_spill] sm:$0xff] %v8177_v18  ;;  %3032 = vmatpush.msra.mxu1 %v8192_v59  ;;  %v8195_v18 = vld [vmem:[#allocation11 + $0x40] sm:$0xff] }
 0x525   : > { %10177 = vst [vmem:[#allocation64_spill] sm:$0xff] %v8180_v62  ;;  %2925 = vmatpush.msrb.mxu0 %v8195_v18  ;;  %v8198_v62 = vld [vmem:[#allocation11 + $0x358] sm:$0xff] }
 0x526   : > { %10178 = vst [vmem:[#allocation23_spill] sm:$0xff] %v8183_v16  ;;  %3078 = vmatpush.msra.mxu3 %v8198_v62  ;;  %v8201_v16 = vld [vmem:[#allocation11 + $0x48] sm:$0xff] }
 0x527   : > { %10179 = vst [vmem:[#allocation62_spill] sm:$0xff] %v8186_v58  ;;  %2971 = vmatpush.msrb.mxu2 %v8201_v16  ;;  %v8204_v58 = vld [vmem:[#allocation11 + $0x330] sm:$0xff] }
 0x528   : > { %10180 = vst [vmem:[#allocation66_spill] sm:$0xff] %v8189_v56  ;;  %3033 = vmatpush.msra.mxu1 %v8204_v58  ;;  %v8207_v56 = vld [vmem:[#allocation11 + $0x20] sm:$0xff] }
 0x529   : > { %10181 = vst [vmem:[#allocation94_spill] sm:$0xff] %v8192_v59  ;;  %2926 = vmatpush.msrb.mxu0 %v8207_v56  ;;  %v8210_v59 = vld [vmem:[#allocation11 + $0x338] sm:$0xff] }
 0x52a   : > { %10182 = vst [vmem:[#allocation95_spill] sm:$0xff] %v8195_v18  ;;  %3079 = vmatpush.msra.mxu3 %v8210_v59  ;;  %v8213_v18 = vld [vmem:[#allocation11 + $0x28] sm:$0xff] }
 0x52b   : > { %10183 = vst [vmem:[#allocation96_spill] sm:$0xff] %v8198_v62  ;;  %2972 = vmatpush.msrb.mxu2 %v8213_v18  ;;  %v8216_v62 = vld [vmem:[#allocation11 + $0x310] sm:$0xff] }
 0x52c   : > { %10184 = vst [vmem:[#allocation97_spill] sm:$0xff] %v8201_v16  ;;  %3034 = vmatpush.msra.mxu1 %v8216_v62  ;;  %v8219_v16 = vld [vmem:[#allocation11] sm:$0xff] }
 0x52d   : > { %10185 = vst [vmem:[#allocation98_spill] sm:$0xff] %v8204_v58  ;;  %2927 = vmatpush.msrb.mxu0 %v8219_v16  ;;  %v8222_v58 = vld [vmem:[#allocation11 + $0x318] sm:$0xff] }
 0x52e   : > { %10186 = vst [vmem:[#allocation99_spill] sm:$0xff] %v8207_v56  ;;  %3080 = vmatpush.msra.mxu3 %v8222_v58  ;;  %v8225_v56 = vld [vmem:[#allocation11 + $0x8] sm:$0xff] }
 0x52f   : > { %10187 = vst [vmem:[#allocation100_spill] sm:$0xff] %v8210_v59  ;;  %2973 = vmatpush.msrb.mxu2 %v8225_v56  ;;  %v8228_v59 = vld [vmem:[#allocation11 + $0x2f0] sm:$0xff] }
 0x530   : > { %10188 = vst [vmem:[#allocation101_spill] sm:$0xff] %v8213_v18  ;;  %3035 = vmatpush.msra.mxu1 %v8228_v59  ;;  %v8231_v18 = vld [vmem:[#allocation11 + $0x1f0] sm:$0xff] }
 0x531   : > { %10189 = vst [vmem:[#allocation102_spill] sm:$0xff] %v8216_v62  ;;  %3004 = vmatpush.msra.mxu0 %v8231_v18  ;;  %v8234_v62 = vld [vmem:[#allocation11 + $0x2f8] sm:$0xff] }
 0x532   : > { %10190 = vst [vmem:[#allocation103_spill] sm:$0xff] %v8219_v16  ;;  %3081 = vmatpush.msra.mxu3 %v8234_v62  ;;  %v8237_v16 = vld [vmem:[#allocation11 + $0x1f8] sm:$0xff] }
 0x533   : > { %10191 = vst [vmem:[#allocation104_spill] sm:$0xff] %v8222_v58  ;;  %3050 = vmatpush.msra.mxu2 %v8237_v16  ;;  %v8240_v58 = vld [vmem:[#allocation11 + $0x2d0] sm:$0xff] }
 0x534   : > { %10192 = vst [vmem:[#allocation105_spill] sm:$0xff] %v8225_v56  ;;  %3036 = vmatpush.msra.mxu1 %v8240_v58  ;;  %v8243_v56 = vld [vmem:[#allocation11 + $0x1d0] sm:$0xff] }
 0x535   : > { %10193 = vst [vmem:[#allocation106_spill] sm:$0xff] %v8228_v59  ;;  %3005 = vmatpush.msra.mxu0 %v8243_v56  ;;  %v8246_v59 = vld [vmem:[#allocation11 + $0x2d8] sm:$0xff] }
 0x536   : > { %10194 = vst [vmem:[#allocation107_spill] sm:$0xff] %v8231_v18  ;;  %3082 = vmatpush.msra.mxu3 %v8246_v59  ;;  %v8249_v18 = vld [vmem:[#allocation11 + $0x1d8] sm:$0xff] }
 0x537   : > { %10195 = vst [vmem:[#allocation108_spill] sm:$0xff] %v8234_v62  ;;  %3051 = vmatpush.msra.mxu2 %v8249_v18  ;;  %v8252_v62 = vld [vmem:[#allocation11 + $0x2b0] sm:$0xff] }
 0x538   : > { %10196 = vst [vmem:[#allocation109_spill] sm:$0xff] %v8237_v16  ;;  %3037 = vmatpush.msra.mxu1 %v8252_v62  ;;  %v8255_v16 = vld [vmem:[#allocation11 + $0x1b0] sm:$0xff] }
 0x539   : > { %10197 = vst [vmem:[#allocation110_spill] sm:$0xff] %v8240_v58  ;;  %3006 = vmatpush.msra.mxu0 %v8255_v16  ;;  %v8258_v58 = vld [vmem:[#allocation11 + $0x2b8] sm:$0xff] }
 0x53a   : > { %10198 = vst [vmem:[#allocation111_spill] sm:$0xff] %v8243_v56  ;;  %3083 = vmatpush.msra.mxu3 %v8258_v58  ;;  %v8261_v56 = vld [vmem:[#allocation11 + $0x1b8] sm:$0xff] }
 0x53b   : > { %10199 = vst [vmem:[#allocation112_spill] sm:$0xff] %v8246_v59  ;;  %3052 = vmatpush.msra.mxu2 %v8261_v56  ;;  %v8264_v59 = vld [vmem:[#allocation11 + $0x290] sm:$0xff] }
 0x53c   : > { %10200 = vst [vmem:[#allocation113_spill] sm:$0xff] %v8249_v18  ;;  %3038 = vmatpush.msra.mxu1 %v8264_v59  ;;  %v8267_v18 = vld [vmem:[#allocation11 + $0x190] sm:$0xff] }
 0x53d   : > { %10201 = vst [vmem:[#allocation114_spill] sm:$0xff] %v8252_v62  ;;  %3007 = vmatpush.msra.mxu0 %v8267_v18  ;;  %v8270_v62 = vld [vmem:[#allocation11 + $0x298] sm:$0xff] }
 0x53e   : > { %10202 = vst [vmem:[#allocation115_spill] sm:$0xff] %v8255_v16  ;;  %3084 = vmatpush.msra.mxu3 %v8270_v62  ;;  %v8273_v16 = vld [vmem:[#allocation11 + $0x198] sm:$0xff]  ;;  %v2629_v10 = vpop.f32.mrf.mxu3 }
 0x53f   : > { %10203 = vst [vmem:[#allocation116_spill] sm:$0xff] %v8258_v58  ;;  %3053 = vmatpush.msra.mxu2 %v8273_v16  ;;  %v8276_v58 = vld [vmem:[#allocation11 + $0x270] sm:$0xff] }
 0x540   : > { %10204 = vst [vmem:[#allocation117_spill] sm:$0xff] %v8261_v56  ;;  %3039 = vmatpush.msra.mxu1 %v8276_v58  ;;  %v8279_v56 = vld [vmem:[#allocation11 + $0x170] sm:$0xff] }
 0x541   : > { %10205 = vst [vmem:[#allocation118_spill] sm:$0xff] %v8264_v59  ;;  %3008 = vmatpush.msra.mxu0 %v8279_v56  ;;  %v8282_v59 = vld [vmem:[#allocation11 + $0x278] sm:$0xff] }
 0x542   : > { %10206 = vst [vmem:[#allocation119_spill] sm:$0xff] %v8267_v18  ;;  %3085 = vmatpush.msra.mxu3 %v8282_v59  ;;  %v8285_v18 = vld [vmem:[#allocation11 + $0x178] sm:$0xff] }
 0x543   : > { %10207 = vst [vmem:[#allocation120_spill] sm:$0xff] %v8270_v62  ;;  %3054 = vmatpush.msra.mxu2 %v8285_v18  ;;  %v8288_v62 = vld [vmem:[#allocation11 + $0x250] sm:$0xff] }
 0x544   : > { %10208 = vst [vmem:[#allocation121_spill] sm:$0xff] %v8273_v16  ;;  %3040 = vmatpush.msra.mxu1 %v8288_v62  ;;  %v8291_v16 = vld [vmem:[#allocation11 + $0x150] sm:$0xff] }
 0x545   : > { %10209 = vst [vmem:[#allocation122_spill] sm:$0xff] %v8276_v58  ;;  %3009 = vmatpush.msra.mxu0 %v8291_v16  ;;  %v8294_v58 = vld [vmem:[#allocation11 + $0x258] sm:$0xff] }
 0x546   : > { %10210 = vst [vmem:[#allocation123_spill] sm:$0xff] %v8279_v56  ;;  %3086 = vmatpush.msra.mxu3 %v8294_v58  ;;  %v8297_v56 = vld [vmem:[#allocation11 + $0x158] sm:$0xff]  ;;  %v2632_v45 = vpop.f32.mrf.mxu3 }
 0x547   : > { %10211 = vst [vmem:[#allocation124_spill] sm:$0xff] %v8282_v59  ;;  %3055 = vmatpush.msra.mxu2 %v8297_v56  ;;  %v8300_v59 = vld [vmem:[#allocation11 + $0x230] sm:$0xff] }
 0x548   : > { %10212 = vst [vmem:[#allocation125_spill] sm:$0xff] %v8285_v18  ;;  %3041 = vmatpush.msra.mxu1 %v8300_v59  ;;  %v8303_v18 = vld [vmem:[#allocation11 + $0x130] sm:$0xff] }
 0x549   : > { %10213 = vst [vmem:[#allocation126_spill] sm:$0xff] %v8288_v62  ;;  %3010 = vmatpush.msra.mxu0 %v8303_v18  ;;  %v8306_v62 = vld [vmem:[#allocation11 + $0x238] sm:$0xff] }
 0x54a   : > { %10214 = vst [vmem:[#allocation127_spill] sm:$0xff] %v8291_v16  ;;  %3087 = vmatpush.msra.mxu3 %v8306_v62  ;;  %v8309_v16 = vld [vmem:[#allocation11 + $0x138] sm:$0xff] }
 0x54b   : > { %10215 = vst [vmem:[#allocation128_spill] sm:$0xff] %v8294_v58  ;;  %3056 = vmatpush.msra.mxu2 %v8309_v16  ;;  %v8312_v58 = vld [vmem:[#allocation11 + $0x210] sm:$0xff] }
 0x54c   : > { %10216 = vst [vmem:[#allocation129_spill] sm:$0xff] %v8297_v56  ;;  %3042 = vmatpush.msra.mxu1 %v8312_v58  ;;  %v8315_v56 = vld [vmem:[#allocation11 + $0x110] sm:$0xff] }
 0x54d   : > { %10217 = vst [vmem:[#allocation130_spill] sm:$0xff] %v8300_v59  ;;  %3011 = vmatpush.msra.mxu0 %v8315_v56  ;;  %v8318_v59 = vld [vmem:[#allocation11 + $0x218] sm:$0xff] }
 0x54e   : > { %10218 = vst [vmem:[#allocation131_spill] sm:$0xff] %v8303_v18  ;;  %3088 = vmatpush.msra.mxu3 %v8318_v59  ;;  %v8321_v18 = vld [vmem:[#allocation11 + $0x118] sm:$0xff]  ;;  %v2721_v12 = vpop.f32.mrf.mxu3 }
 0x54f   : > { %10219 = vst [vmem:[#allocation132_spill] sm:$0xff] %v8306_v62  ;;  %3057 = vmatpush.msra.mxu2 %v8321_v18  ;;  %v8324_v62 = vld [vmem:[#allocation11 + $0xf0] sm:$0xff] }
 0x550   : > { %10220 = vst [vmem:[#allocation133_spill] sm:$0xff] %v8309_v16  ;;  %3012 = vmatpush.msra.mxu0 %v8324_v62  ;;  %v8327_v16 = vld [vmem:[#allocation11 + $0xf8] sm:$0xff] }
 0x551   : > { %10221 = vst [vmem:[#allocation134_spill] sm:$0xff] %v8312_v58  ;;  %3058 = vmatpush.msra.mxu2 %v8327_v16  ;;  %v8330_v58 = vld [vmem:[#allocation11 + $0xd0] sm:$0xff] }
 0x552   : > { %10222 = vst [vmem:[#allocation135_spill] sm:$0xff] %v8315_v56  ;;  %3013 = vmatpush.msra.mxu0 %v8330_v58  ;;  %v8333_v56 = vld [vmem:[#allocation11 + $0xd8] sm:$0xff]  ;;  %v2606_v33 = vpop.f32.mrf.mxu2 }
 0x553   : > { %10223 = vst [vmem:[#allocation136_spill] sm:$0xff] %v8318_v59  ;;  %3059 = vmatpush.msra.mxu2 %v8333_v56  ;;  %v8336_v59 = vld [vmem:[#allocation11 + $0xb0] sm:$0xff]  ;;  %v2607_v63 = vadd.f32 %v2606_v33, %v10097_v2 }
 0x554   : > { %10224 = vst [vmem:[#allocation137_spill] sm:$0xff] %v8321_v18  ;;  %3014 = vmatpush.msra.mxu0 %v8336_v59  ;;  %v8339_v18 = vld [vmem:[#allocation11 + $0xb8] sm:$0xff] }
 0x555   : > { %10225 = vst [vmem:[#allocation138_spill] sm:$0xff] %v8324_v62  ;;  %3060 = vmatpush.msra.mxu2 %v8339_v18  ;;  %v8342_v62 = vld [vmem:[#allocation11 + $0x90] sm:$0xff] }
 0x556   : > { %10226 = vst [vmem:[#allocation139_spill] sm:$0xff] %v8327_v16  ;;  %3015 = vmatpush.msra.mxu0 %v8342_v62  ;;  %v8345_v16 = vld [vmem:[#allocation11 + $0x98] sm:$0xff] }
 0x557   : > { %10227 = vst [vmem:[#allocation140_spill] sm:$0xff] %v8330_v58  ;;  %3061 = vmatpush.msra.mxu2 %v8345_v16  ;;  %v8348_v58 = vld [vmem:[#allocation11 + $0x70] sm:$0xff] }
 0x558   : > { %10228 = vst [vmem:[#allocation141_spill] sm:$0xff] %v8333_v56  ;;  %3016 = vmatpush.msra.mxu0 %v8348_v58  ;;  %v8351_v56 = vld [vmem:[#allocation11 + $0x78] sm:$0xff] }
 0x559   : > { %10229 = vst [vmem:[#allocation142_spill] sm:$0xff] %v8336_v59  ;;  %3062 = vmatpush.msra.mxu2 %v8351_v56  ;;  %v8354_v59 = vld [vmem:[#allocation11 + $0x50] sm:$0xff] }
 0x55a   : > { %10230 = vst [vmem:[#allocation143_spill] sm:$0xff] %v8339_v18  ;;  %3017 = vmatpush.msra.mxu0 %v8354_v59  ;;  %v8357_v18 = vld [vmem:[#allocation11 + $0x58] sm:$0xff] }
 0x55b   : > { %10231 = vst [vmem:[#allocation144_spill] sm:$0xff] %v8342_v62  ;;  %3063 = vmatpush.msra.mxu2 %v8357_v18  ;;  %v8360_v62 = vld [vmem:[#allocation11 + $0x30] sm:$0xff] }
 0x55c   : > { %10232 = vst [vmem:[#allocation145_spill] sm:$0xff] %v8345_v16  ;;  %3018 = vmatpush.msra.mxu0 %v8360_v62  ;;  %v8363_v16 = vld [vmem:[#allocation11 + $0x38] sm:$0xff] }
 0x55d   : > { %10233 = vst [vmem:[#allocation146_spill] sm:$0xff] %v8348_v58  ;;  %3064 = vmatpush.msra.mxu2 %v8363_v16  ;;  %v8366_v58 = vld [vmem:[#allocation11 + $0x10] sm:$0xff] }
 0x55e   : > { %10234 = vst [vmem:[#allocation147_spill] sm:$0xff] %v8351_v56  ;;  %3019 = vmatpush.msra.mxu0 %v8366_v58  ;;  %v8369_v56 = vld [vmem:[#allocation11 + $0x18] sm:$0xff] }
 0x55f   : > { %10235 = vst [vmem:[#allocation148_spill] sm:$0xff] %v8354_v59  ;;  %3065 = vmatpush.msra.mxu2 %v8369_v56  ;;  %v2583_v59 = vpop.f32.mrf.mxu1 }
 0x560   : > { %10236 = vst [vmem:[#allocation149_spill] sm:$0xff] %v8357_v18  ;;  %v2560_v18 = vpop.f32.mrf.mxu0 }
 0x561   : > { %10237 = vst [vmem:[#allocation150_spill] sm:$0xff] %v8360_v62  ;;  %v2561_v62 = vadd.f32 %v2560_v18, %v10096_v34 }
 0x562   : > { %10238 = vst [vmem:[#allocation151_spill] sm:$0xff] %v8363_v16  ;;  %v2630_v16 = vadd.f32 %v2629_v10, %v2607_v63 }
 0x563   : > { %10239 = vst [vmem:[#allocation152_spill] sm:$0xff] %v8366_v58  ;;  %v2584_v35 = vadd.f32 %v2583_v59, %v2561_v62  ;;  %v3727_v59 = vld [vmem:[%s5062_s7 + $0xc0] sm:$0xff] }
 0x564   : > { %10240 = vst [vmem:[#allocation153_spill] sm:$0xff] %v8369_v56  ;;  %4085 = vtanh.f32 %v2630_v16  ;;  %v2609_v56 = vpop.f32.mrf.mxu2 }
 0x565   : > { %4087 = vtanh.f32 %v2584_v35  ;;  %v2610_v61 = vadd.f32 %v2609_v56, %v10097_v2  ;;  %v2775_v56 = vunpack.c.h.bf16 %v3727_v59  ;;  %v2724_v2 = vpop.f32.mrf.mxu3 }
 0x567   : > { %v2586_v11 = vpop.f32.mrf.mxu1  ;;  %v2633_v37 = vadd.f32 %v2632_v45, %v2610_v61 }
 0x568   : > { %v2563_v32 = vpop.f32.mrf.mxu0 }
 0x569   : > { %v2564_v30 = vadd.f32 %v2563_v32, %v10096_v34  ;;  %4089 = vtanh.f32 %v2633_v37 }
 0x56a   : > { %v4086_v40 = vpop.eup %4085 }
 0x56b   : > { %v2587_v39 = vadd.f32 %v2586_v11, %v2564_v30  ;;  %v4088_v33 = vpop.eup %4087  ;;  %v2739_v10 = vadd.f32 1.0, %v4086_v40 }
 0x56c   : > { %v2698_v62 = vpop.f32.mrf.mxu2  ;;  %v2735_v32 = vadd.f32 1.0, %v4088_v33 }
 0x56d   : > { %4091 = vtanh.f32 %v2587_v39  ;;  %v2699_v16 = vadd.f32 %v2698_v62, %v5898_v41  ;;  %v2741_v30 = vmul.f32 0.5, %v2739_v10  ;;  %v3729_v62 = vld [vmem:[%s5062_s7 + $0xd0] sm:$0xff] }
 0x56f   : > { %v2675_v6 = vpop.f32.mrf.mxu1  ;;  %v2722_v61 = vadd.f32 %v2721_v12, %v2699_v16  ;;  %v4090_v11 = vpop.eup %4089  ;;  %v2747_v33 = vmul.f32 %v2741_v30, %v7774_v8  ;;  %v2774_v12 = vunpack.c.l.bf16 %v3727_v59 }
 0x570   : > { %v2652_v52 = vpop.f32.mrf.mxu0 }
 0x571   : > { %v2653_v18 = vadd.f32 %v2652_v52, %v9809_v50 }
 0x573   : > { %v2676_v63 = vadd.f32 %v2675_v6, %v2653_v18  ;;  %v4092_v37 = vpop.eup %4091  ;;  %v2737_v6 = vmul.f32 0.5, %v2735_v32 }
 0x574   : > { %v2701_v10 = vpop.f32.mrf.mxu2  ;;  %v2736_v16 = vadd.f32 1.0, %v4092_v37 }
 0x575   : > { %4093 = vtanh.f32 %v2676_v63  ;;  %v2740_v63 = vadd.f32 1.0, %v4090_v11  ;;  %v2702_v44 = vadd.f32 %v2701_v10, %v5898_v41  ;;  %v3728_v11 = vld [vmem:[%s5062_s7 + $0xc8] sm:$0xff] }
 0x576   : > { %4095 = vtanh.f32 %v2722_v61  ;;  %v2738_v37 = vmul.f32 0.5, %v2736_v16 }
 0x577   : > { %v2678_v58 = vpop.f32.mrf.mxu1  ;;  %v2742_v61 = vmul.f32 0.5, %v2740_v63 }
 0x578   : > { %v2655_v45 = vpop.f32.mrf.mxu0 }
 0x579   : > { %v2656_v52 = vadd.f32 %v2655_v45, %v9809_v50  ;;  %v2779_v45 = vunpack.c.h.bf16 %v3729_v62 }
 0x57b   : > { %v4094_v40 = vpop.eup %4093  ;;  %v2679_v18 = vadd.f32 %v2678_v58, %v2656_v52  ;;  %v2725_v58 = vadd.f32 %v2724_v2, %v2702_v44  ;;  %v2777_v2 = vunpack.c.h.bf16 %v3728_v11 }
 0x57c   : > { %v2749_v34 = vmul.f32 %v4094_v40, %v2737_v6  ;;  %v4096_v32 = vpop.eup %4095  ;;  %v2868_v6 = vpop.f32.mrf.mxu3 }
 0x57d   : > { %4097 = vtanh.f32 %v2679_v18  ;;  %v2743_v52 = vadd.f32 1.0, %v4096_v32  ;;  %v2748_v18 = vmul.f32 %v2742_v61, %v7782_v22  ;;  %v2845_v16 = vpop.f32.mrf.mxu2 }
 0x57e   : > { %v2751_v23 = vadd.f32 %v2749_v34, %v2747_v33  ;;  %v2776_v33 = vunpack.c.l.bf16 %v3728_v11 }
 0x57f   : > { %v2822_v35 = vpop.f32.mrf.mxu1 }
 0x580   : > { %v2875_v39 = vadd.f32 %v2822_v35, %v2775_v56  ;;  %v2799_v56 = vpop.f32.mrf.mxu0  ;;  %v8386_v30 = vsel %vm7829_vm5, %v2751_v23, %v7774_v8  ;;  %v2778_v8 = vunpack.c.l.bf16 %v3729_v62  ;;  %v3730_v62 = vld [vmem:[%s5062_s7 + $0xd8] sm:$0xff] }
 0x581   : > { %v2874_v59 = vadd.f32 %v2799_v56, %v2774_v12 }
 0x582   : > { %4099 = vtanh.f32 %v2875_v39  ;;  %v2745_v39 = vmul.f32 0.5, %v2743_v52 }
 0x583   : > { %4101 = vtanh.f32 %v2751_v23  ;;  %v4098_v34 = vpop.eup %4097 }
 0x584   : > { %4103 = vtanh.f32 %v2725_v58  ;;  %v2750_v44 = vmul.f32 %v4098_v34, %v2738_v37  ;;  %v2877_v58 = vadd.f32 %v2868_v6, %v2777_v2 }
 0x585   : > { %4105 = vtanh.f32 %v2874_v59 }
 0x586   : > { %v2752_v10 = vadd.f32 %v2750_v44, %v2748_v18 }
 0x587   : > { %v2825_v35 = vpop.f32.mrf.mxu1 }
 0x588   : > { %v2879_v40 = vadd.f32 %v2825_v35, %v2779_v45  ;;  %v4100_v63 = vpop.eup %4099  ;;  %v2876_v45 = vadd.f32 %v2845_v16, %v2776_v33  ;;  %v2802_v35 = vpop.f32.mrf.mxu0  ;;  %v8394_v61 = vsel %vm7829_vm5, %v2752_v10, %v7782_v22  ;;  %v2781_v22 = vunpack.c.h.bf16 %v3730_v62 }
 0x589   : > { %v4102_v23 = vpop.eup %4101  ;;  %v2894_v11 = vadd.f32 1.0, %v4100_v63  ;;  %v2878_v59 = vadd.f32 %v2802_v35, %v2778_v8  ;;  %v2848_v63 = vpop.f32.mrf.mxu2 }
 0x58a   : > { %4107 = vtanh.f32 %v2879_v40  ;;  %v2755_v12 = vmul.f32 %v4102_v23, %v2745_v39  ;;  %v4104_v32 = vpop.eup %4103  ;;  %v2780_v40 = vunpack.c.l.bf16 %v3730_v62  ;;  %v4769_v62 = vld [vmem:[#allocation9 + $0x190] sm:$0xff] }
 0x58b   : > { %4109 = vtanh.f32 %v2752_v10  ;;  %v4106_v56 = vpop.eup %4105  ;;  %v2744_v52 = vadd.f32 1.0, %v4104_v32  ;;  %v2896_v18 = vmul.f32 0.5, %v2894_v11  ;;  %v4767_v11 = vld [vmem:[#allocation9 + $0x1b0] sm:$0xff] }
 0x58c   : > { %v8400_v37 = vsel %vm7829_vm5, %v2755_v12, %v7788_v49  ;;  %4111 = vtanh.f32 %v2876_v45  ;;  %v2890_v6 = vadd.f32 1.0, %v4106_v56  ;;  %v2871_v49 = vpop.f32.mrf.mxu3  ;;  %v2880_v23 = vadd.f32 %v2848_v63, %v2780_v40  ;;  %v4763_v56 = vld [vmem:[#allocation9 + $0x1f0] sm:$0xff]  ;;  %v10246_v40 = vld [vmem:[#allocation71_spill] sm:$0xff] }
 0x58d   : > { %2951 = vmatmul.f32.vlgmr.msrb.gmra.mxu1 %v8400_v37  ;;  %2997 = vmatmul.f32.vlgmr.msrb.gmra.mxu3 %v8400_v37  ;;  %v2746_v34 = vmul.f32 0.5, %v2744_v52  ;;  %4113 = vtanh.f32 %v2878_v59  ;;  %v2881_v8 = vadd.f32 %v2871_v49, %v2781_v22  ;;  %v2902_v12 = vmul.f32 %v2896_v18, %v7848_v28  ;;  %v10243_v52 = vld [vmem:[#allocation158_spill] sm:$0xff]  ;;  %v10244_v59 = vld [vmem:[#allocation159_spill] sm:$0xff] }
 0x58e   : > { %3174 = vmatpush.msrb.mxu1 %v7792_v51  ;;  %3220 = vmatpush.msrb.mxu3 %v7795_v55  ;;  %4115 = vtanh.f32 %v2877_v58  ;;  %v2892_v33 = vmul.f32 0.5, %v2890_v6  ;;  %v3128_v51 = vstv %s3765_s16  ;;  %v4777_v6 = vld [vmem:[#allocation9 + $0x110] sm:$0xff]  ;;  %v4778_v22 = vld [vmem:[#allocation9 + $0xe0] sm:$0xff] }
 0x58f   : > { %4117 = vtanh.f32 %v2880_v23  ;;  %vm8422_vm6 = vcmp.eq.s32.totalorder %v3128_v51, 1  ;;  %v10247_v18 = vld [vmem:[#allocation26_spill] sm:$0xff]  ;;  %v10250_v51 = vld [vmem:[#allocation76_spill] sm:$0xff]  ;;  %v10251_v23 = vld [vmem:[#allocation77_spill] sm:$0xff] }
 0x590   : > { %v4108_v39 = vpop.eup %4107  ;;  %3175 = vmatpush.msrb.mxu1 %v7802_v19  ;;  %3221 = vmatpush.msrb.mxu3 %v7805_v26  ;;  %4119 = vtanh.f32 %v2881_v8  ;;  %v4780_v49 = vld [vmem:[#allocation9 + $0xc0] sm:$0xff]  ;;  %v4783_v8 = vld [vmem:[#allocation9 + $0xb0] sm:$0xff] }
 0x591   : > { %v4110_v2 = vpop.eup %4109  ;;  %v2895_v16 = vadd.f32 1.0, %v4108_v39  ;;  %v4779_v39 = vld [vmem:[#allocation9 + $0xf0] sm:$0xff] }
 0x592   : > { %v2756_v44 = vmul.f32 %v4110_v2, %v2746_v34  ;;  %3176 = vmatpush.msrb.mxu1 %v7808_v47  ;;  %3222 = vmatpush.msrb.mxu3 %v7811_v46  ;;  %v4112_v55 = vpop.eup %4111  ;;  %v10245_v34 = vld [vmem:[#allocation160_spill] sm:$0xff]  ;;  %v10248_v2 = vld [vmem:[#allocation73_spill] sm:$0xff] }
 0x593   : > { %v4114_v10 = vpop.eup %4113  ;;  %v2904_v32 = vmul.f32 %v4112_v55, %v2892_v33  ;;  %v10249_v33 = vld [vmem:[#allocation74_spill] sm:$0xff] }
 0x594   : > { %3177 = vmatpush.msrb.mxu1 %v7816_v5  ;;  %3223 = vmatpush.msrb.mxu3 %v7819_v60  ;;  %v8418_v19 = vsel %vm7829_vm5, %v2756_v44, %v7825_v9  ;;  %v4116_v47 = vpop.eup %4115  ;;  %v2891_v58 = vadd.f32 1.0, %v4114_v10  ;;  %v2897_v5 = vmul.f32 0.5, %v2895_v16  ;;  %v4781_v44 = vld [vmem:[#allocation9 + $0xd0] sm:$0xff]  ;;  %v4782_v55 = vld [vmem:[#allocation9 + $0xa0] sm:$0xff]  ;;  %v10253_v16 = vld [vmem:[#allocation83_spill] sm:$0xff] }
 0x595   : > { %2954 = vmatmul.f32.gmra.mxu1 %v8418_v19  ;;  %3000 = vmatmul.f32.gmra.mxu3 %v8418_v19  ;;  %v2906_v46 = vadd.f32 %v2904_v32, %v2902_v12  ;;  %v2898_v9 = vadd.f32 1.0, %v4116_v47  ;;  %v4784_v10 = vld [vmem:[#allocation9 + $0x90] sm:$0xff]  ;;  %v10255_v47 = vld [vmem:[#allocation14_spill] sm:$0xff] }
 0x596   : > { %3178 = vmatpush.msrb.mxu1 %v7833_v3  ;;  %3224 = vmatpush.msrb.mxu3 %v7836_v54  ;;  %v2893_v7 = vmul.f32 0.5, %v2891_v58  ;;  %v4118_v3 = vpop.eup %4117  ;;  %v2903_v54 = vmul.f32 %v2897_v5, %v7880_v24  ;;  %v10252_v12 = vld [vmem:[#allocation80_spill] sm:$0xff]  ;;  %v10258_v5 = vld [vmem:[#allocation15_spill] sm:$0xff] }
 0x597   : > { %4121 = vtanh.f32 %v2906_v46  ;;  %v8433_v60 = vsel %vm8422_vm6, %v2906_v46, %v7848_v28  ;;  %v10254_v32 = vld [vmem:[#allocation84_spill] sm:$0xff]  ;;  %v10256_v46 = vld [vmem:[#allocation85_spill] sm:$0xff] }
 0x598   : > { %3179 = vmatpush.msrb.mxu1 %v7839_v53  ;;  %3225 = vmatpush.msrb.mxu3 %v7842_v20  ;;  %v2905_v45 = vmul.f32 %v4118_v3, %v2893_v7  ;;  %v4120_v53 = vpop.eup %4119  ;;  %v2900_v20 = vmul.f32 0.5, %v2898_v9  ;;  %v10257_v58 = vld [vmem:[#allocation16_spill] sm:$0xff]  ;;  %v10259_v9 = vld [vmem:[#allocation86_spill] sm:$0xff]  ;;  %v10261_v3 = vld [vmem:[#allocation87_spill] sm:$0xff] }
 0x599   : > { %v10260_v7 = vld [vmem:[#allocation18_spill] sm:$0xff] }
 0x59a   : > { %3180 = vmatpush.msrb.mxu1 %v7850_v13  ;;  %3226 = vmatpush.msrb.mxu3 %v7853_v15  ;;  %v2907_v35 = vadd.f32 %v2905_v45, %v2903_v54  ;;  %v10262_v54 = vld [vmem:[#allocation17_spill] sm:$0xff]  ;;  %v10263_v45 = vld [vmem:[#allocation88_spill] sm:$0xff] }
 0x59c   : > { %3181 = vmatpush.msrb.mxu1 %v7857_v1  ;;  %3227 = vmatpush.msrb.mxu3 %v7860_v42  ;;  %4123 = vtanh.f32 %v2907_v35  ;;  %v8449_v15 = vsel %vm8422_vm6, %v2907_v35, %v7880_v24  ;;  %v2899_v1 = vadd.f32 1.0, %v4120_v53  ;;  %v4762_v42 = vld [vmem:[#allocation9 + $0x1e0] sm:$0xff]  ;;  %v10264_v53 = vld [vmem:[#allocation20_spill] sm:$0xff] }
 0x59d   : > { %3043 = vmatmul.f32.vlgmr.msra.gmra.mxu1 %v8400_v37  ;;  %3089 = vmatmul.f32.vlgmr.msra.gmra.mxu3 %v8400_v37  ;;  %v4122_v28 = vpop.eup %4121  ;;  %v4766_v24 = vld [vmem:[#allocation9 + $0x1a0] sm:$0xff] }
 0x59e   : > { %3182 = vmatpush.msrb.mxu1 %v7865_v57  ;;  %3228 = vmatpush.msrb.mxu3 %v7868_v48  ;;  %v2910_v13 = vmul.f32 %v4122_v28, %v2900_v20  ;;  %v4764_v57 = vld [vmem:[#allocation9 + $0x1c0] sm:$0xff]  ;;  %v4765_v48 = vld [vmem:[#allocation9 + $0x1d0] sm:$0xff]  ;;  %v10265_v20 = vld [vmem:[#allocation89_spill] sm:$0xff] }
 0x59f   : > { %v10266_v28 = vld [vmem:[#allocation19_spill] sm:$0xff]  ;;  %v10267_v35 = vld [vmem:[#allocation90_spill] sm:$0xff] }
 0x5a0   : > { %3183 = vmatpush.msrb.mxu1 %v7871_v0  ;;  %3229 = vmatpush.msrb.mxu3 %v7874_v17  ;;  %v2901_v0 = vmul.f32 0.5, %v2899_v1  ;;  %v10269_v1 = vld [vmem:[#allocation91_spill] sm:$0xff] }
 0x5a1   : > { %2928 = vmatmul.f32.vlgmr.msrb.gmra.mxu0 %v2910_v13  ;;  %2974 = vmatmul.f32.vlgmr.msrb.gmra.mxu2 %v2910_v13 }
 0x5a2   : > { %3151 = vmatpush.msrb.mxu0 %v4762_v42  ;;  %3197 = vmatpush.msrb.mxu2 %v4763_v56  ;;  %v4124_v17 = vpop.eup %4123  ;;  %v10270_v42 = vld [vmem:[#allocation21_spill] sm:$0xff]  ;;  %v10271_v56 = vld [vmem:[#allocation24_spill] sm:$0xff] }
 0x5a3   : > { %3184 = vmatpush.msrb.mxu1 %v7884_v38  ;;  %3230 = vmatpush.msrb.mxu3 %v7887_v4  ;;  %v2911_v38 = vmul.f32 %v4124_v17, %v2901_v0  ;;  %v4768_v4 = vld [vmem:[#allocation9 + $0x180] sm:$0xff]  ;;  %v10274_v0 = vld [vmem:[#allocation27_spill] sm:$0xff]  ;;  %v10275_v17 = vld [vmem:[#allocation93_spill] sm:$0xff] }
 0x5a4   : > { %3152 = vmatpush.msrb.mxu0 %v4764_v57  ;;  %3198 = vmatpush.msrb.mxu2 %v4765_v48  ;;  %v10272_v57 = vld [vmem:[#allocation25_spill] sm:$0xff]  ;;  %v10273_v48 = vld [vmem:[#allocation92_spill] sm:$0xff] }
 0x5a5   : > { %3185 = vmatpush.msrb.mxu1 %v7892_v31  ;;  %3231 = vmatpush.msrb.mxu3 %v7895_v25  ;;  %v4770_v31 = vld [vmem:[#allocation9 + $0x160] sm:$0xff]  ;;  %v4771_v25 = vld [vmem:[#allocation9 + $0x170] sm:$0xff]  ;;  %v8478_v63 = vsel %vm8422_vm6, %v2911_v38, %v10249_v33  ;;  %v10299_v33 = vld [vmem:[#allocation63_spill] sm:$0xff] }
 0x5a6   : > { %3046 = vmatmul.f32.gmra.mxu1 %v8418_v19  ;;  %3092 = vmatmul.f32.gmra.mxu3 %v8418_v19 }
 0x5a7   : > { %3153 = vmatpush.msrb.mxu0 %v4766_v24  ;;  %3199 = vmatpush.msrb.mxu2 %v4767_v11  ;;  %v10276_v24 = vld [vmem:[#allocation28_spill] sm:$0xff]  ;;  %v10277_v11 = vld [vmem:[#allocation29_spill] sm:$0xff] }
 0x5a8   : > { %3186 = vmatpush.msrb.mxu1 %v7902_v27  ;;  %3232 = vmatpush.msrb.mxu3 %v7905_v43  ;;  %v4772_v27 = vld [vmem:[#allocation9 + $0x140] sm:$0xff]  ;;  %v4773_v43 = vld [vmem:[#allocation9 + $0x150] sm:$0xff] }
 0x5a9   : > { %3154 = vmatpush.msrb.mxu0 %v4768_v4  ;;  %3200 = vmatpush.msrb.mxu2 %v4769_v62  ;;  %v10279_v4 = vld [vmem:[#allocation31_spill] sm:$0xff]  ;;  %v10280_v62 = vld [vmem:[#allocation32_spill] sm:$0xff] }
 0x5aa   : > { %2931 = vmatmul.f32.gmra.mxu0 %v2911_v38  ;;  %2977 = vmatmul.f32.gmra.mxu2 %v2911_v38 }
 0x5ab   : > { %3187 = vmatpush.msrb.mxu1 %v7910_v36  ;;  %3233 = vmatpush.msrb.mxu3 %v7913_v21  ;;  %v8468_v36 = vsel %vm8422_vm6, %v2910_v13, %v10245_v34  ;;  %v4774_v21 = vld [vmem:[#allocation9 + $0x120] sm:$0xff]  ;;  %v10287_v34 = vld [vmem:[#allocation39_spill] sm:$0xff] }
 0x5ac   : > { %3155 = vmatpush.msrb.mxu0 %v4770_v31  ;;  %3201 = vmatpush.msrb.mxu2 %v4771_v25  ;;  %v10281_v31 = vld [vmem:[#allocation33_spill] sm:$0xff]  ;;  %v10282_v25 = vld [vmem:[#allocation34_spill] sm:$0xff] }
 0x5ad   : > { %3188 = vmatpush.msrb.mxu1 %v7918_v14  ;;  %3234 = vmatpush.msrb.mxu3 %v7921_v29  ;;  %v4775_v14 = vld [vmem:[#allocation9 + $0x130] sm:$0xff]  ;;  %v4776_v29 = vld [vmem:[#allocation9 + $0x100] sm:$0xff] }
 0x5ae   : > { %3156 = vmatpush.msrb.mxu0 %v4772_v27  ;;  %3202 = vmatpush.msrb.mxu2 %v4773_v43  ;;  %v10283_v27 = vld [vmem:[#allocation35_spill] sm:$0xff]  ;;  %v10284_v43 = vld [vmem:[#allocation36_spill] sm:$0xff] }
 0x5af   : > { %3189 = vmatpush.msrb.mxu1 %v10243_v52  ;;  %3235 = vmatpush.msrb.mxu3 %v10244_v59  ;;  %v10285_v52 = vld [vmem:[#allocation37_spill] sm:$0xff]  ;;  %v10286_v59 = vld [vmem:[#allocation38_spill] sm:$0xff] }
 0x5b0   : > { %3157 = vmatpush.msrb.mxu0 %v4774_v21  ;;  %3190 = vmatmul.f32.vlgmr.msrb.gmra.mxu1 %v8468_v36  ;;  %v10288_v21 = vld [vmem:[#allocation40_spill] sm:$0xff] }
 0x5b1   : > { %3203 = vmatpush.msrb.mxu2 %v4775_v14  ;;  %3236 = vmatmul.f32.vlgmr.msrb.gmra.mxu3 %v8468_v36  ;;  %v10289_v14 = vld [vmem:[#allocation42_spill] sm:$0xff] }
 0x5b2   : > { %3158 = vmatpush.msrb.mxu0 %v4776_v29  ;;  %3066 = vmatmul.f32.vlgmr.msra.gmra.mxu2 %v2910_v13  ;;  %v10290_v29 = vld [vmem:[#allocation43_spill] sm:$0xff] }
 0x5b3   : > { %3204 = vmatpush.msrb.mxu2 %v4777_v6  ;;  %3020 = vmatmul.f32.vlgmr.msra.gmra.mxu0 %v2910_v13  ;;  %v10268_v13 = vld [vmem:[#allocation22_spill] sm:$0xff] }
 0x5b4   : > { %3159 = vmatpush.msrb.mxu0 %v4778_v22  ;;  %3304 = vmatpush.msra.mxu1 %v10246_v40  ;;  %v10291_v6 = vld [vmem:[#allocation46_spill] sm:$0xff]  ;;  %v10292_v22 = vld [vmem:[#allocation47_spill] sm:$0xff] }
 0x5b5   : > { %3205 = vmatpush.msrb.mxu2 %v4779_v39  ;;  %3350 = vmatpush.msra.mxu3 %v10247_v18  ;;  %v10293_v40 = vld [vmem:[#allocation50_spill] sm:$0xff]  ;;  %v10294_v39 = vld [vmem:[#allocation51_spill] sm:$0xff] }
 0x5b6   : > { %3160 = vmatpush.msrb.mxu0 %v4780_v49  ;;  %3305 = vmatpush.msra.mxu1 %v10248_v2  ;;  %v10295_v18 = vld [vmem:[#allocation54_spill] sm:$0xff]  ;;  %v10296_v49 = vld [vmem:[#allocation55_spill] sm:$0xff] }
 0x5b7   : > { %3206 = vmatpush.msrb.mxu2 %v4781_v44  ;;  %3351 = vmatpush.msra.mxu3 %v10250_v51  ;;  %v10297_v2 = vld [vmem:[#allocation58_spill] sm:$0xff]  ;;  %v10298_v44 = vld [vmem:[#allocation59_spill] sm:$0xff]  ;;  %v10300_v51 = vld [vmem:[#allocation65_spill] sm:$0xff] }
 0x5b8   : > { %3161 = vmatpush.msrb.mxu0 %v4782_v55  ;;  %3193 = vmatmul.f32.gmra.mxu1 %v8478_v63  ;;  %v10301_v55 = vld [vmem:[#allocation68_spill] sm:$0xff] }
 0x5b9   : > { %3207 = vmatpush.msrb.mxu2 %v4783_v8  ;;  %3239 = vmatmul.f32.gmra.mxu3 %v8478_v63  ;;  %v10302_v8 = vld [vmem:[#allocation69_spill] sm:$0xff] }
 0x5ba   : > { %3162 = vmatpush.msrb.mxu0 %v10251_v23  ;;  %3069 = vmatmul.f32.gmra.mxu2 %v2911_v38  ;;  %v10303_v23 = vld [vmem:[#allocation72_spill] sm:$0xff] }
 0x5bb   : > { %3208 = vmatpush.msrb.mxu2 %v4784_v10  ;;  %3023 = vmatmul.f32.gmra.mxu0 %v2911_v38  ;;  %v10278_v38 = vld [vmem:[#allocation30_spill] sm:$0xff]  ;;  %v10304_v10 = vld [vmem:[#allocation75_spill] sm:$0xff] }
 0x5bc   : > { %3163 = vmatpush.msrb.mxu0 %v10252_v12  ;;  %3306 = vmatpush.msra.mxu1 %v10253_v16  ;;  %v10305_v12 = vld [vmem:[#allocation78_spill] sm:$0xff]  ;;  %v10306_v16 = vld [vmem:[#allocation79_spill] sm:$0xff] }
 0x5bd   : > { %3209 = vmatpush.msrb.mxu2 %v10254_v32  ;;  %3352 = vmatpush.msra.mxu3 %v10255_v47  ;;  %v10307_v32 = vld [vmem:[#allocation81_spill] sm:$0xff]  ;;  %v10308_v47 = vld [vmem:[#allocation82_spill] sm:$0xff] }
 0x5be   : > { %3164 = vmatpush.msrb.mxu0 %v10256_v46  ;;  %3307 = vmatpush.msra.mxu1 %v10257_v58  ;;  %v10309_v46 = vld [vmem:[#allocation41_spill] sm:$0xff]  ;;  %v10310_v58 = vld [vmem:[#allocation44_spill] sm:$0xff] }
 0x5bf   : > { %3210 = vmatpush.msrb.mxu2 %v10258_v5  ;;  %3353 = vmatpush.msra.mxu3 %v10259_v9  ;;  %v10311_v5 = vld [vmem:[#allocation45_spill] sm:$0xff]  ;;  %v10312_v9 = vld [vmem:[#allocation48_spill] sm:$0xff] }
 0x5c0   : > { %3165 = vmatpush.msrb.mxu0 %v10260_v7  ;;  %3308 = vmatpush.msra.mxu1 %v10261_v3  ;;  %v10313_v7 = vld [vmem:[#allocation49_spill] sm:$0xff]  ;;  %v10314_v3 = vld [vmem:[#allocation52_spill] sm:$0xff] }
 0x5c1   : > { %3211 = vmatpush.msrb.mxu2 %v10262_v54  ;;  %3354 = vmatpush.msra.mxu3 %v10263_v45  ;;  %v10315_v54 = vld [vmem:[#allocation53_spill] sm:$0xff]  ;;  %v10316_v45 = vld [vmem:[#allocation56_spill] sm:$0xff] }
 0x5c2   : > { %3166 = vmatpush.msrb.mxu0 %v10264_v53  ;;  %3309 = vmatpush.msra.mxu1 %v10265_v20  ;;  %v10317_v53 = vld [vmem:[#allocation57_spill] sm:$0xff]  ;;  %v10318_v20 = vld [vmem:[#allocation60_spill] sm:$0xff] }
 0x5c3   : > { %3212 = vmatpush.msrb.mxu2 %v10266_v28  ;;  %3167 = vmatmul.f32.vlgmr.msrb.gmra.mxu0 %v8468_v36  ;;  %v10319_v28 = vld [vmem:[#allocation61_spill] sm:$0xff] }
 0x5c4   : > { %3213 = vmatmul.f32.vlgmr.msrb.gmra.mxu2 %v8468_v36  ;;  %3355 = vmatpush.msra.mxu3 %v10267_v35  ;;  %v10320_v35 = vld [vmem:[#allocation64_spill] sm:$0xff] }
 0x5c5   : > { %3310 = vmatpush.msra.mxu1 %v10268_v13  ;;  %3281 = vmatpush.msra.mxu0 %v10269_v1  ;;  %v10321_v13 = vld [vmem:[#allocation23_spill] sm:$0xff]  ;;  %v10322_v1 = vld [vmem:[#allocation62_spill] sm:$0xff] }
 0x5c6   : > { %3356 = vmatpush.msra.mxu3 %v10270_v42  ;;  %3327 = vmatpush.msra.mxu2 %v10271_v56  ;;  %v10323_v42 = vld [vmem:[#allocation66_spill] sm:$0xff] }
 0x5c7   : > { %3311 = vmatpush.msra.mxu1 %v10272_v57  ;;  %3282 = vmatpush.msra.mxu0 %v10273_v48  ;;  %v10324_v56 = vld [vmem:[#allocation94_spill] sm:$0xff]  ;;  %v10325_v57 = vld [vmem:[#allocation95_spill] sm:$0xff]  ;;  %v10326_v48 = vld [vmem:[#allocation96_spill] sm:$0xff] }
 0x5c8   : > { %3357 = vmatpush.msra.mxu3 %v10274_v0  ;;  %3328 = vmatpush.msra.mxu2 %v10275_v17  ;;  %v10327_v0 = vld [vmem:[#allocation97_spill] sm:$0xff]  ;;  %v10328_v17 = vld [vmem:[#allocation98_spill] sm:$0xff] }
 0x5c9   : > { %3312 = vmatpush.msra.mxu1 %v10276_v24  ;;  %3283 = vmatpush.msra.mxu0 %v10277_v11  ;;  %v10329_v24 = vld [vmem:[#allocation99_spill] sm:$0xff]  ;;  %v10330_v11 = vld [vmem:[#allocation100_spill] sm:$0xff] }
 0x5ca   : > { %3358 = vmatpush.msra.mxu3 %v10278_v38  ;;  %3329 = vmatpush.msra.mxu2 %v10279_v4  ;;  %v10331_v38 = vld [vmem:[#allocation101_spill] sm:$0xff]  ;;  %v10332_v4 = vld [vmem:[#allocation102_spill] sm:$0xff] }
 0x5cb   : > { %3170 = vmatmul.f32.gmra.mxu0 %v8478_v63  ;;  %3313 = vmatpush.msra.mxu1 %v10280_v62  ;;  %v10333_v62 = vld [vmem:[#allocation103_spill] sm:$0xff] }
 0x5cc   : > { %3216 = vmatmul.f32.gmra.mxu2 %v8478_v63  ;;  %3359 = vmatpush.msra.mxu3 %v10281_v31  ;;  %v10334_v31 = vld [vmem:[#allocation104_spill] sm:$0xff] }
 0x5cd   : > { %3314 = vmatpush.msra.mxu1 %v10282_v25  ;;  %3284 = vmatpush.msra.mxu0 %v10283_v27  ;;  %v10335_v25 = vld [vmem:[#allocation105_spill] sm:$0xff]  ;;  %v10336_v27 = vld [vmem:[#allocation106_spill] sm:$0xff] }
 0x5ce   : > { %3360 = vmatpush.msra.mxu3 %v10284_v43  ;;  %3330 = vmatpush.msra.mxu2 %v10285_v52  ;;  %v10337_v43 = vld [vmem:[#allocation107_spill] sm:$0xff]  ;;  %v10338_v52 = vld [vmem:[#allocation108_spill] sm:$0xff] }
 0x5cf   : > { %3315 = vmatpush.msra.mxu1 %v10286_v59  ;;  %3285 = vmatpush.msra.mxu0 %v10287_v34  ;;  %v10339_v59 = vld [vmem:[#allocation109_spill] sm:$0xff]  ;;  %v10340_v34 = vld [vmem:[#allocation110_spill] sm:$0xff] }
 0x5d0   : > { %3361 = vmatpush.msra.mxu3 %v10288_v21  ;;  %3331 = vmatpush.msra.mxu2 %v10289_v14  ;;  %v10341_v21 = vld [vmem:[#allocation111_spill] sm:$0xff]  ;;  %v10342_v14 = vld [vmem:[#allocation112_spill] sm:$0xff] }
 0x5d1   : > { %3316 = vmatpush.msra.mxu1 %v10290_v29  ;;  %3286 = vmatpush.msra.mxu0 %v10291_v6  ;;  %v10343_v29 = vld [vmem:[#allocation113_spill] sm:$0xff]  ;;  %v10344_v6 = vld [vmem:[#allocation114_spill] sm:$0xff] }
 0x5d2   : > { %3362 = vmatpush.msra.mxu3 %v10292_v22  ;;  %3332 = vmatpush.msra.mxu2 %v10293_v40  ;;  %v10345_v22 = vld [vmem:[#allocation115_spill] sm:$0xff]  ;;  %v10346_v40 = vld [vmem:[#allocation116_spill] sm:$0xff] }
 0x5d3   : > { %3317 = vmatpush.msra.mxu1 %v10294_v39  ;;  %3287 = vmatpush.msra.mxu0 %v10295_v18  ;;  %v10347_v39 = vld [vmem:[#allocation117_spill] sm:$0xff]  ;;  %v10348_v18 = vld [vmem:[#allocation118_spill] sm:$0xff] }
 0x5d4   : > { %3363 = vmatpush.msra.mxu3 %v10296_v49  ;;  %3333 = vmatpush.msra.mxu2 %v10297_v2  ;;  %v10349_v49 = vld [vmem:[#allocation119_spill] sm:$0xff]  ;;  %v10350_v2 = vld [vmem:[#allocation120_spill] sm:$0xff] }
 0x5d5   : > { %3318 = vmatpush.msra.mxu1 %v10298_v44  ;;  %3288 = vmatpush.msra.mxu0 %v10299_v33  ;;  %v10351_v44 = vld [vmem:[#allocation121_spill] sm:$0xff]  ;;  %v10352_v33 = vld [vmem:[#allocation122_spill] sm:$0xff] }
 0x5d6   : > { %3364 = vmatpush.msra.mxu3 %v10300_v51  ;;  %3334 = vmatpush.msra.mxu2 %v10301_v55  ;;  %v10353_v51 = vld [vmem:[#allocation123_spill] sm:$0xff]  ;;  %v10354_v55 = vld [vmem:[#allocation124_spill] sm:$0xff] }
 0x5d7   : > { %3319 = vmatpush.msra.mxu1 %v10302_v8  ;;  %3289 = vmatpush.msra.mxu0 %v10303_v23  ;;  %v10355_v8 = vld [vmem:[#allocation125_spill] sm:$0xff]  ;;  %v10356_v23 = vld [vmem:[#allocation126_spill] sm:$0xff] }
 0x5d8   : > { %3365 = vmatpush.msra.mxu3 %v10304_v10  ;;  %3335 = vmatpush.msra.mxu2 %v10307_v32  ;;  %v10357_v10 = vld [vmem:[#allocation127_spill] sm:$0xff]  ;;  %v10360_v32 = vld [vmem:[#allocation130_spill] sm:$0xff] }
 0x5d9   : > { %3396 = vmatpush.msrb.mxu1 %v10305_v12  ;;  %3290 = vmatpush.msra.mxu0 %v10309_v46  ;;  %v10358_v12 = vld [vmem:[#allocation128_spill] sm:$0xff] }
 0x5da   : > { %3442 = vmatpush.msrb.mxu3 %v10306_v16  ;;  %3336 = vmatpush.msra.mxu2 %v10311_v5  ;;  %v10359_v16 = vld [vmem:[#allocation129_spill] sm:$0xff]  ;;  %v10362_v46 = vld [vmem:[#allocation132_spill] sm:$0xff]  ;;  %v10364_v5 = vld [vmem:[#allocation134_spill] sm:$0xff] }
 0x5db   : > { %3397 = vmatpush.msrb.mxu1 %v10308_v47  ;;  %3291 = vmatpush.msra.mxu0 %v10313_v7  ;;  %v10361_v47 = vld [vmem:[#allocation131_spill] sm:$0xff]  ;;  %v10366_v7 = vld [vmem:[#allocation136_spill] sm:$0xff] }
 0x5dc   : > { %3443 = vmatpush.msrb.mxu3 %v10310_v58  ;;  %3337 = vmatpush.msra.mxu2 %v10315_v54  ;;  %v10363_v58 = vld [vmem:[#allocation133_spill] sm:$0xff]  ;;  %v10368_v54 = vld [vmem:[#allocation138_spill] sm:$0xff] }
 0x5dd   : > { %3398 = vmatpush.msrb.mxu1 %v10312_v9  ;;  %3292 = vmatpush.msra.mxu0 %v10317_v53  ;;  %v10365_v9 = vld [vmem:[#allocation135_spill] sm:$0xff]  ;;  %v10370_v53 = vld [vmem:[#allocation140_spill] sm:$0xff] }
 0x5de   : > { %3444 = vmatpush.msrb.mxu3 %v10314_v3  ;;  %3338 = vmatpush.msra.mxu2 %v10319_v28  ;;  %v10367_v3 = vld [vmem:[#allocation137_spill] sm:$0xff]  ;;  %v10372_v28 = vld [vmem:[#allocation142_spill] sm:$0xff] }
 0x5df   : > { %3399 = vmatpush.msrb.mxu1 %v10316_v45  ;;  %3293 = vmatpush.msra.mxu0 %v10321_v13  ;;  %v10369_v45 = vld [vmem:[#allocation139_spill] sm:$0xff]  ;;  %v10374_v13 = vld [vmem:[#allocation144_spill] sm:$0xff] }
 0x5e0   : > { %3445 = vmatpush.msrb.mxu3 %v10318_v20  ;;  %3339 = vmatpush.msra.mxu2 %v10323_v42  ;;  %v10371_v20 = vld [vmem:[#allocation141_spill] sm:$0xff]  ;;  %v10376_v42 = vld [vmem:[#allocation146_spill] sm:$0xff] }
 0x5e1   : > { %3400 = vmatpush.msrb.mxu1 %v10320_v35  ;;  %3294 = vmatpush.msra.mxu0 %v10325_v57  ;;  %v10373_v35 = vld [vmem:[#allocation143_spill] sm:$0xff]  ;;  %v10378_v57 = vld [vmem:[#allocation148_spill] sm:$0xff] }
 0x5e2   : > { %3446 = vmatpush.msrb.mxu3 %v10322_v1  ;;  %3340 = vmatpush.msra.mxu2 %v10327_v0  ;;  %v10375_v1 = vld [vmem:[#allocation145_spill] sm:$0xff]  ;;  %v10380_v0 = vld [vmem:[#allocation150_spill] sm:$0xff] }
 0x5e3   : > { %3401 = vmatpush.msrb.mxu1 %v10324_v56  ;;  %3295 = vmatpush.msra.mxu0 %v10329_v24  ;;  %v10377_v56 = vld [vmem:[#allocation147_spill] sm:$0xff]  ;;  %v10382_v24 = vld [vmem:[#allocation152_spill] sm:$0xff] }
 0x5e4   : > { %3447 = vmatpush.msrb.mxu3 %v10326_v48  ;;  %3341 = vmatpush.msra.mxu2 %v10331_v38  ;;  %v10379_v48 = vld [vmem:[#allocation149_spill] sm:$0xff] }
 0x5e5   : > { %3402 = vmatpush.msrb.mxu1 %v10328_v17  ;;  %3296 = vmatpush.msra.mxu0 %v10333_v62  ;;  %v10381_v17 = vld [vmem:[#allocation151_spill] sm:$0xff] }
 0x5e6   : > { %3448 = vmatpush.msrb.mxu3 %v10330_v11  ;;  %3342 = vmatpush.msra.mxu2 %v10335_v25  ;;  %v10383_v11 = vld [vmem:[#allocation153_spill] sm:$0xff] }
 0x5e7   : > { %3403 = vmatpush.msrb.mxu1 %v10332_v4  ;;  %3373 = vmatpush.msrb.mxu0 %v10337_v43 }
 0x5e8   : > { %3449 = vmatpush.msrb.mxu3 %v10334_v31  ;;  %3419 = vmatpush.msrb.mxu2 %v10339_v59 }
 0x5e9   : > { %3404 = vmatpush.msrb.mxu1 %v10336_v27  ;;  %3374 = vmatpush.msrb.mxu0 %v10341_v21 }
 0x5ea   : > { %3450 = vmatpush.msrb.mxu3 %v10338_v52  ;;  %3420 = vmatpush.msrb.mxu2 %v10343_v29  ;;  %v10384_v52 = vld [vmem:[#allocation67_spill] sm:$0xff] }
 0x5eb   : > { %3405 = vmatpush.msrb.mxu1 %v10340_v34  ;;  %3375 = vmatpush.msrb.mxu0 %v10345_v22  ;;  %v10385_v34 = vld [vmem:[#allocation70_spill] sm:$0xff] }
 0x5ec   : > { %3451 = vmatpush.msrb.mxu3 %v10342_v14  ;;  %3421 = vmatpush.msrb.mxu2 %v10347_v39 }
 0x5ed   : > { %3406 = vmatpush.msrb.mxu1 %v10344_v6  ;;  %3376 = vmatpush.msrb.mxu0 %v10349_v49 }
 0x5ee   : > { %3452 = vmatpush.msrb.mxu3 %v10346_v40  ;;  %3422 = vmatpush.msrb.mxu2 %v10351_v44 }
 0x5ef   : > { %3407 = vmatpush.msrb.mxu1 %v10348_v18  ;;  %3377 = vmatpush.msrb.mxu0 %v10353_v51 }
 0x5f0   : > { %3453 = vmatpush.msrb.mxu3 %v10350_v2  ;;  %3423 = vmatpush.msrb.mxu2 %v10355_v8 }
 0x5f1   : > { %3408 = vmatpush.msrb.mxu1 %v10352_v33  ;;  %3378 = vmatpush.msrb.mxu0 %v10357_v10 }
 0x5f2   : > { %3454 = vmatpush.msrb.mxu3 %v10354_v55  ;;  %3424 = vmatpush.msrb.mxu2 %v10359_v16 }
 0x5f3   : > { %3409 = vmatpush.msrb.mxu1 %v10356_v23  ;;  %3379 = vmatpush.msrb.mxu0 %v10361_v47 }
 0x5f4   : > { %3455 = vmatpush.msrb.mxu3 %v10358_v12  ;;  %3425 = vmatpush.msrb.mxu2 %v10363_v58  ;;  %v3736_v12 = vld [vmem:[%s5062_s7 + $0xe0] sm:$0xff] }
 0x5f5   : > { %3410 = vmatpush.msrb.mxu1 %v10360_v32  ;;  %3380 = vmatpush.msrb.mxu0 %v10365_v9  ;;  %v3144_v58 = vunpack.c.h.bf16 %v3736_v12 }
 0x5f6   : > { %3456 = vmatpush.msrb.mxu3 %v10362_v46  ;;  %3426 = vmatpush.msrb.mxu2 %v10367_v3 }
 0x5f7   : > { %3411 = vmatpush.msrb.mxu1 %v10364_v5  ;;  %3381 = vmatpush.msrb.mxu0 %v10368_v54 }
 0x5f8   : > { %3457 = vmatpush.msrb.mxu3 %v10366_v7  ;;  %3427 = vmatpush.msrb.mxu2 %v10369_v45 }
 0x5f9   : > { %3382 = vmatpush.msrb.mxu0 %v10370_v53 }
 0x5fa   : > { %3428 = vmatpush.msrb.mxu2 %v10371_v20 }
 0x5fb   : > { %3383 = vmatpush.msrb.mxu0 %v10372_v28 }
 0x5fc   : > { %3429 = vmatpush.msrb.mxu2 %v10373_v35 }
 0x5fd   : > { %3384 = vmatpush.msrb.mxu0 %v10374_v13 }
 0x5fe   : > { %3430 = vmatpush.msrb.mxu2 %v10375_v1 }
 0x5ff   : > { %3385 = vmatpush.msrb.mxu0 %v10376_v42 }
 0x600   : > { %3431 = vmatpush.msrb.mxu2 %v10377_v56 }
 0x601   : > { %3386 = vmatpush.msrb.mxu0 %v10378_v57  ;;  %v3738_v57 = vld [vmem:[%s5062_s7 + $0xf0] sm:$0xff] }
 0x602   : > { %3432 = vmatpush.msrb.mxu2 %v10379_v48 }
 0x603   : > { %3387 = vmatpush.msrb.mxu0 %v10380_v0  ;;  %v3143_v0 = vunpack.c.l.bf16 %v3736_v12 }
 0x604   : > { %3433 = vmatpush.msrb.mxu2 %v10381_v17 }
 0x605   : > { %3388 = vmatpush.msrb.mxu0 %v10382_v24 }
 0x606   : > { %3434 = vmatpush.msrb.mxu2 %v10383_v11 }
 0x60a   : > { %v2952_v38 = vpop.f32.mrf.mxu1 }
 0x610   : > { %v2998_v62 = vpop.f32.mrf.mxu3 }
 0x612   : > { %v2955_v4 = vpop.f32.mrf.mxu1 }
 0x618   : > { %v3001_v43 = vpop.f32.mrf.mxu3 }
 0x61a   : > { %v3044_v25 = vpop.f32.mrf.mxu1 }
 0x61e   : > { %v2929_v31 = vpop.f32.mrf.mxu0 }
 0x61f   : > { %v2930_v59 = vadd.f32 %v2929_v31, %v10384_v52 }
 0x620   : > { %v3090_v49 = vpop.f32.mrf.mxu3 }
 0x621   : > { %v2953_v6 = vadd.f32 %v2952_v38, %v2930_v59  ;;  %v3148_v38 = vunpack.c.h.bf16 %v3738_v57  ;;  %v3737_v59 = vld [vmem:[%s5062_s7 + $0xe8] sm:$0xff] }
 0x623   : > { %v3047_v22 = vpop.f32.mrf.mxu1 }
 0x624   : > { %v2975_v27 = vpop.f32.mrf.mxu2 }
 0x625   : > { %v2976_v21 = vadd.f32 %v2975_v27, %v10385_v34 }
 0x627   : > { %v2999_v14 = vadd.f32 %v2998_v62, %v2976_v21  ;;  %v2932_v29 = vpop.f32.mrf.mxu0 }
 0x628   : > { %v2933_v40 = vadd.f32 %v2932_v29, %v10384_v52 }
 0x629   : > { %4125 = vtanh.f32 %v2999_v14  ;;  %v3093_v54 = vpop.f32.mrf.mxu3 }
 0x62a   : > { %4127 = vtanh.f32 %v2953_v6  ;;  %v2956_v2 = vadd.f32 %v2955_v4, %v2933_v40 }
 0x62d   : > { %v2978_v39 = vpop.f32.mrf.mxu2  ;;  %v3191_v47 = vpop.f32.mrf.mxu1 }
 0x62e   : > { %v2979_v18 = vadd.f32 %v2978_v39, %v10385_v34  ;;  %v3244_v35 = vadd.f32 %v3191_v47, %v3144_v58 }
 0x62f   : > { %v4126_v51 = vpop.eup %4125 }
 0x630   : > { %v3002_v44 = vadd.f32 %v3001_v43, %v2979_v18  ;;  %v3021_v33 = vpop.f32.mrf.mxu0  ;;  %v4128_v8 = vpop.eup %4127  ;;  %v3108_v10 = vadd.f32 1.0, %v4126_v51 }
 0x631   : > { %v3022_v55 = vadd.f32 %v3021_v33, %v9809_v50  ;;  %v3104_v32 = vadd.f32 1.0, %v4128_v8 }
 0x632   : > { %4129 = vtanh.f32 %v3002_v44  ;;  %v3110_v5 = vmul.f32 0.5, %v3108_v10  ;;  %v3145_v44 = vunpack.c.l.bf16 %v3737_v59 }
 0x633   : > { %v3045_v23 = vadd.f32 %v3044_v25, %v3022_v55  ;;  %4131 = vtanh.f32 %v2956_v2  ;;  %v3106_v20 = vmul.f32 0.5, %v3104_v32 }
 0x634   : > { %v3116_v1 = vmul.f32 %v3110_v5, %v8386_v30  ;;  %v3739_v5 = vld [vmem:[%s5062_s7 + $0xf8] sm:$0xff] }
 0x635   : > { %4133 = vtanh.f32 %v3045_v23  ;;  %v3067_v16 = vpop.f32.mrf.mxu2  ;;  %v3194_v31 = vpop.f32.mrf.mxu1 }
 0x636   : > { %v3068_v46 = vadd.f32 %v3067_v16, %v5898_v41  ;;  %v3248_v40 = vadd.f32 %v3194_v31, %v3148_v38 }
 0x638   : > { %v3091_v9 = vadd.f32 %v3090_v49, %v3068_v46  ;;  %v3024_v7 = vpop.f32.mrf.mxu0  ;;  %v4130_v3 = vpop.eup %4129  ;;  %v3146_v49 = vunpack.c.h.bf16 %v3737_v59 }
 0x639   : > { %v3025_v45 = vadd.f32 %v3024_v7, %v9809_v50  ;;  %v4132_v53 = vpop.eup %4131  ;;  %v3109_v42 = vadd.f32 1.0, %v4130_v3 }
 0x63a   : > { %4135 = vtanh.f32 %v3091_v9  ;;  %v3105_v17 = vadd.f32 1.0, %v4132_v53  ;;  %v3149_v53 = vunpack.c.l.bf16 %v3739_v5 }
 0x63b   : > { %v4134_v28 = vpop.eup %4133  ;;  %v3048_v13 = vadd.f32 %v3047_v22, %v3025_v45  ;;  %v3111_v62 = vmul.f32 0.5, %v3109_v42  ;;  %v3237_v22 = vpop.f32.mrf.mxu3  ;;  %v3497_v42 = vstv %s3767_s17 }
 0x63c   : > { %v3118_v56 = vmul.f32 %v4134_v28, %v3106_v20  ;;  %v3107_v29 = vmul.f32 0.5, %v3105_v17  ;;  %v3246_v12 = vadd.f32 %v3237_v22, %v3146_v49  ;;  %vm8660_vm7 = vcmp.eq.s32.totalorder %v3497_v42, 1 }
 0x63d   : > { %4137 = vtanh.f32 %v3048_v13  ;;  %v3070_v48 = vpop.f32.mrf.mxu2  ;;  %v3117_v18 = vmul.f32 %v3111_v62, %v8394_v61 }
 0x63e   : > { %v3120_v24 = vadd.f32 %v3118_v56, %v3116_v1  ;;  %v3071_v11 = vadd.f32 %v3070_v48, %v5898_v41  ;;  %4139 = vtanh.f32 %v3244_v35 }
 0x640   : > { %v4136_v4 = vpop.eup %4135  ;;  %4141 = vtanh.f32 %v3120_v24  ;;  %v3094_v25 = vadd.f32 %v3093_v54, %v3071_v11  ;;  %v3168_v27 = vpop.f32.mrf.mxu0  ;;  %v8634_v43 = vsel %vm8422_vm6, %v3120_v24, %v8386_v30  ;;  %v3147_v30 = vunpack.c.l.bf16 %v3738_v57 }
 0x641   : > { %v3112_v21 = vadd.f32 1.0, %v4136_v4  ;;  %v3243_v14 = vadd.f32 %v3168_v27, %v3143_v0 }
 0x642   : > { %4143 = vtanh.f32 %v3094_v25 }
 0x643   : > { %v4138_v6 = vpop.eup %4137  ;;  %v3114_v39 = vmul.f32 0.5, %v3112_v21  ;;  %4145 = vtanh.f32 %v3243_v14  ;;  %v3240_v35 = vpop.f32.mrf.mxu3 }
 0x644   : > { %v3119_v2 = vmul.f32 %v4138_v6, %v3107_v29  ;;  %v4140_v33 = vpop.eup %4139  ;;  %4147 = vtanh.f32 %v3248_v40 }
 0x645   : > { %v3263_v58 = vadd.f32 1.0, %v4140_v33 }
 0x646   : > { %v4142_v51 = vpop.eup %4141  ;;  %v3121_v55 = vadd.f32 %v3119_v2, %v3117_v18 }
 0x647   : > { %v3124_v8 = vmul.f32 %v4142_v51, %v3114_v39  ;;  %v3214_v23 = vpop.f32.mrf.mxu2  ;;  %v3265_v28 = vmul.f32 0.5, %v3263_v58 }
 0x648   : > { %v4144_v10 = vpop.eup %4143  ;;  %4149 = vtanh.f32 %v3121_v55  ;;  %v3245_v16 = vadd.f32 %v3214_v23, %v3145_v44  ;;  %v3171_v32 = vpop.f32.mrf.mxu0  ;;  %v8642_v47 = vsel %vm8422_vm6, %v3121_v55, %v8394_v61  ;;  %v3150_v61 = vunpack.c.h.bf16 %v3739_v5 }
 0x649   : > { %v4146_v46 = vpop.eup %4145  ;;  %v3113_v9 = vadd.f32 1.0, %v4144_v10  ;;  %v3247_v7 = vadd.f32 %v3171_v32, %v3147_v30  ;;  %v8648_v3 = vsel %vm8422_vm6, %v3124_v8, %v8400_v37  ;;  %v3271_v24 = vmul.f32 %v3265_v28, %v8433_v60 }
 0x64a   : > { %4151 = vtanh.f32 %v3245_v16  ;;  %3320 = vmatmul.f32.vlgmr.msra.gmra.mxu1 %v8648_v3  ;;  %3366 = vmatmul.f32.vlgmr.msra.gmra.mxu3 %v8648_v3  ;;  %v3259_v45 = vadd.f32 1.0, %v4146_v46  ;;  %v4148_v20 = vpop.eup %4147  ;;  %v3250_v48 = vadd.f32 %v3240_v35, %v3150_v61 }
 0x64b   : > { %v3115_v54 = vmul.f32 0.5, %v3113_v9  ;;  %4153 = vtanh.f32 %v3247_v7  ;;  %v3264_v11 = vadd.f32 1.0, %v4148_v20 }
 0x64c   : > { %4155 = vtanh.f32 %v3246_v12  ;;  %v3261_v37 = vmul.f32 0.5, %v3259_v45 }
 0x64d   : > { %v3266_v59 = vmul.f32 0.5, %v3264_v11 }
 0x64e   : > { %v4150_v13 = vpop.eup %4149 }
 0x64f   : > { %v3125_v1 = vmul.f32 %v4150_v13, %v3115_v54  ;;  %v3217_v56 = vpop.f32.mrf.mxu2  ;;  %v3272_v29 = vmul.f32 %v3266_v59, %v8449_v15 }
 0x650   : > { %v4152_v57 = vpop.eup %4151  ;;  %v3249_v0 = vadd.f32 %v3217_v56, %v3149_v53 }
 0x651   : > { %v4154_v17 = vpop.eup %4153  ;;  %v3273_v38 = vmul.f32 %v4152_v57, %v3261_v37  ;;  %v8658_v4 = vsel %vm8422_vm6, %v3125_v1, %v8418_v19 }
 0x652   : > { %4157 = vtanh.f32 %v3249_v0  ;;  %3323 = vmatmul.f32.gmra.mxu1 %v8658_v4  ;;  %3369 = vmatmul.f32.gmra.mxu3 %v8658_v4  ;;  %v4156_v31 = vpop.eup %4155  ;;  %v3260_v27 = vadd.f32 1.0, %v4154_v17 }
 0x653   : > { %v3275_v25 = vadd.f32 %v3273_v38, %v3271_v24  ;;  %4159 = vtanh.f32 %v3250_v48  ;;  %v3267_v26 = vadd.f32 1.0, %v4156_v31 }
 0x654   : > { %v3262_v21 = vmul.f32 0.5, %v3260_v27 }
 0x655   : > { %4161 = vtanh.f32 %v3275_v25  ;;  %v3501_v19 = vsel %vm8660_vm7, %v3275_v25, %v8433_v60  ;;  %v3269_v40 = vmul.f32 0.5, %v3267_v26 }
 0x656   : > { %3509 = vst [vmem:[#allocation3 + $0x8] sm:$0xff] %v3501_v19 }
 0x658   : > { %v4158_v14 = vpop.eup %4157 }
 0x659   : > { %v3274_v6 = vmul.f32 %v4158_v14, %v3262_v21  ;;  %v4160_v22 = vpop.eup %4159 }
 0x65a   : > { %3412 = vmatmul.f32.vlgmr.msrb.gmra.mxu1 %v8648_v3  ;;  %3458 = vmatmul.f32.vlgmr.msrb.gmra.mxu3 %v8648_v3  ;;  %v3268_v2 = vadd.f32 1.0, %v4160_v22 }
 0x65b   : > { %v4162_v39 = vpop.eup %4161  ;;  %v3276_v18 = vadd.f32 %v3274_v6, %v3272_v29 }
 0x65c   : > { %v3279_v49 = vmul.f32 %v4162_v39, %v3269_v40  ;;  %v3270_v33 = vmul.f32 0.5, %v3268_v2 }
 0x65d   : > { %4163 = vtanh.f32 %v3276_v18  ;;  %v3502_v60 = vsel %vm8660_vm7, %v3276_v18, %v8449_v15 }
 0x65e   : > { %3510 = vst [vmem:[#allocation3] sm:$0xff] %v3502_v60  ;;  %3297 = vmatmul.f32.vlgmr.msra.gmra.mxu0 %v3279_v49  ;;  %v3499_v44 = vsel %vm8660_vm7, %v3279_v49, %v8468_v36  ;;  %3343 = vmatmul.f32.vlgmr.msra.gmra.mxu2 %v3279_v49 }
 0x65f   : > { %3507 = vst [vmem:[#allocation2] sm:$0xff] %v3499_v44 }
 0x662   : > { %3415 = vmatmul.f32.gmra.mxu1 %v8658_v4  ;;  %3461 = vmatmul.f32.gmra.mxu3 %v8658_v4 }
 0x663   : > { %v4164_v30 = vpop.eup %4163 }
 0x664   : > { %v3280_v51 = vmul.f32 %v4164_v30, %v3270_v33 }
 0x666   : > { %3300 = vmatmul.f32.gmra.mxu0 %v3280_v51  ;;  %v3500_v15 = vsel %vm8660_vm7, %v3280_v51, %v8478_v63  ;;  %3346 = vmatmul.f32.gmra.mxu2 %v3280_v51 }
 0x667   : > { %3508 = vst [vmem:[#allocation2 + $0x8] sm:$0xff] %v3500_v15 }
 0x66e   : > { %3389 = vmatmul.f32.vlgmr.msrb.gmra.mxu0 %v3279_v49  ;;  %3435 = vmatmul.f32.vlgmr.msrb.gmra.mxu2 %v3279_v49 }
 0x676   : > { %3392 = vmatmul.f32.gmra.mxu0 %v3280_v51  ;;  %3438 = vmatmul.f32.gmra.mxu2 %v3280_v51 }
 0x6c7   : > { %v3321_v36 = vpop.f32.mrf.mxu1 }
 0x6cd   : > { %v3367_v8 = vpop.f32.mrf.mxu3 }
 0x6cf   : > { %v3324_v10 = vpop.f32.mrf.mxu1 }
 0x6d5   : > { %v3370_v63 = vpop.f32.mrf.mxu3 }
 0x6d7   : > { %v3413_v54 = vpop.f32.mrf.mxu1 }
 0x6db   : > { %v3298_v55 = vpop.f32.mrf.mxu0 }
 0x6dc   : > { %v3299_v23 = vadd.f32 %v3298_v55, %v10384_v52 }
 0x6dd   : > { %v3459_v42 = vpop.f32.mrf.mxu3 }
 0x6de   : > { %v3322_v46 = vadd.f32 %v3321_v36, %v3299_v23 }
 0x6df   : > { %v3416_v38 = vpop.f32.mrf.mxu1 }
 0x6e1   : > { %v3344_v12 = vpop.f32.mrf.mxu2 }
 0x6e2   : > { %v3345_v16 = vadd.f32 %v3344_v12, %v10385_v34 }
 0x6e3   : > { %v3301_v32 = vpop.f32.mrf.mxu0 }
 0x6e4   : > { %v3368_v58 = vadd.f32 %v3367_v8, %v3345_v16  ;;  %v3302_v5 = vadd.f32 %v3301_v32, %v10384_v52 }
 0x6e5   : > { %v3462_v6 = vpop.f32.mrf.mxu3 }
 0x6e6   : > { %4165 = vtanh.f32 %v3368_v58  ;;  %v3325_v45 = vadd.f32 %v3324_v10, %v3302_v5 }
 0x6e7   : > { %4167 = vtanh.f32 %v3322_v46 }
 0x6e9   : > { %v3347_v9 = vpop.f32.mrf.mxu2 }
 0x6ea   : > { %v3348_v7 = vadd.f32 %v3347_v9, %v10385_v34 }
 0x6eb   : > { %v3390_v61 = vpop.f32.mrf.mxu0 }
 0x6ec   : > { %v4166_v53 = vpop.eup %4165  ;;  %v3371_v20 = vadd.f32 %v3370_v63, %v3348_v7  ;;  %v3391_v28 = vadd.f32 %v3390_v61, %v9809_v50 }
 0x6ed   : > { %v4168_v35 = vpop.eup %4167  ;;  %v3477_v1 = vadd.f32 1.0, %v4166_v53 }
 0x6ee   : > { %4169 = vtanh.f32 %v3371_v20  ;;  %v3414_v13 = vadd.f32 %v3413_v54, %v3391_v28  ;;  %v3473_v37 = vadd.f32 1.0, %v4168_v35 }
 0x6ef   : > { %4171 = vtanh.f32 %v3325_v45  ;;  %v3479_v57 = vmul.f32 0.5, %v3477_v1 }
 0x6f0   : > { %4173 = vtanh.f32 %v3414_v13  ;;  %v3475_v11 = vmul.f32 0.5, %v3473_v37 }
 0x6f1   : > { %v3436_v52 = vpop.f32.mrf.mxu2  ;;  %v3485_v27 = vmul.f32 %v3479_v57, %v8634_v43 }
 0x6f2   : > { %v3437_v56 = vadd.f32 %v3436_v52, %v5898_v41 }
 0x6f3   : > { %v3393_v34 = vpop.f32.mrf.mxu0 }
 0x6f4   : > { %v4170_v48 = vpop.eup %4169  ;;  %v3460_v0 = vadd.f32 %v3459_v42, %v3437_v56  ;;  %v3394_v17 = vadd.f32 %v3393_v34, %v9809_v50 }
 0x6f5   : > { %v4172_v24 = vpop.eup %4171  ;;  %v3478_v59 = vadd.f32 1.0, %v4170_v48 }
 0x6f6   : > { %v4174_v31 = vpop.eup %4173  ;;  %4175 = vtanh.f32 %v3460_v0  ;;  %v3417_v25 = vadd.f32 %v3416_v38, %v3394_v17  ;;  %v3474_v26 = vadd.f32 1.0, %v4172_v24 }
 0x6f7   : > { %v3487_v19 = vmul.f32 %v4174_v31, %v3475_v11  ;;  %v3480_v22 = vmul.f32 0.5, %v3478_v59 }
 0x6f8   : > { %4177 = vtanh.f32 %v3417_v25  ;;  %v3476_v18 = vmul.f32 0.5, %v3474_v26 }
 0x6f9   : > { %v3489_v21 = vadd.f32 %v3487_v19, %v3485_v27  ;;  %v3439_v14 = vpop.f32.mrf.mxu2  ;;  %v3486_v2 = vmul.f32 %v3480_v22, %v8642_v47 }
 0x6fa   : > { %v3440_v29 = vadd.f32 %v3439_v14, %v5898_v41 }
 0x6fb   : > { %4179 = vtanh.f32 %v3489_v21  ;;  %v3505_v50 = vsel %vm8660_vm7, %v3489_v21, %v8634_v43 }
 0x6fc   : > { %v4176_v40 = vpop.eup %4175  ;;  %3513 = vst [vmem:[#allocation5] sm:$0xff] %v3505_v50  ;;  %v3463_v39 = vadd.f32 %v3462_v6, %v3440_v29 }
 0x6fd   : > { %v3481_v49 = vadd.f32 1.0, %v4176_v40 }
 0x6fe   : > { %v4178_v60 = vpop.eup %4177  ;;  %4181 = vtanh.f32 %v3463_v39 }
 0x6ff   : > { %v3483_v44 = vmul.f32 0.5, %v3481_v49  ;;  %v3488_v33 = vmul.f32 %v4178_v60, %v3476_v18 }
 0x701   : > { %v4180_v30 = vpop.eup %4179  ;;  %v3490_v41 = vadd.f32 %v3488_v33, %v3486_v2 }
 0x702   : > { %v3493_v51 = vmul.f32 %v4180_v30, %v3483_v44 }
 0x703   : > { %4183 = vtanh.f32 %v3490_v41  ;;  %v3506_v15 = vsel %vm8660_vm7, %v3490_v41, %v8642_v47 }
 0x704   : > { %v4182_v43 = vpop.eup %4181  ;;  %v3503_v36 = vsel %vm8660_vm7, %v3493_v51, %v8648_v3  ;;  %3514 = vst [vmem:[#allocation5 + $0x8] sm:$0xff] %v3506_v15 }
 0x705   : > { %3511 = vst [vmem:[#allocation4 + $0x8] sm:$0xff] %v3503_v36  ;;  %v3482_v55 = vadd.f32 1.0, %v4182_v43 }
 0x707   : > { %v3484_v8 = vmul.f32 0.5, %v3482_v55 }
 0x709   : > { %v4184_v23 = vpop.eup %4183  ;;  %3518 = sbr.rel (%p3745_p10) target bundleno = 1970 (0x7b2), region = 64 }
 0x70a   : > { %v3494_v10 = vmul.f32 %v4184_v23, %v3484_v8 }
 0x70c   : > { %v3504_v12 = vsel %vm8660_vm7, %v3494_v10, %v8658_v4 }
 0x70d   : > { %3512 = vst [vmem:[#allocation4] sm:$0xff] %v3504_v12 }
 0x70e   : > { %v3534_v47 = vld [vmem:[%s8782_s4 + $0x78] sm:$0xff]  ;;  %v3533_v3 = vld [vmem:[%s8782_s4 + $0x70] sm:$0xff]  ;;  %v3532_v16 = vld [vmem:[%s8782_s4 + $0x68] sm:$0xff]  ;;  %vm3564_vm8 = vcmask 7168  }
 0x70f   : > { %3539 = vmatpush.msra.mxu0 %v3534_v47  ;;  %3768 = vmatpush.msra.mxu1 %v3534_v47  ;;  %v3531_v4 = vld [vmem:[%s8782_s4 + $0x60] sm:$0xff]  ;;  %v3530_v62 = vld [vmem:[%s8782_s4 + $0x58] sm:$0xff]  ;;  %v3529_v32 = vld [vmem:[%s8782_s4 + $0x50] sm:$0xff] }
 0x710   : > { %v3528_v46 = vld [vmem:[%s8782_s4 + $0x48] sm:$0xff]  ;;  %v3527_v58 = vld [vmem:[%s8782_s4 + $0x40] sm:$0xff]  ;;  %v3526_v63 = vld [vmem:[%s8782_s4 + $0x38] sm:$0xff] }
 0x711   : > { %3540 = vmatpush.msra.mxu0 %v3533_v3  ;;  %3769 = vmatpush.msra.mxu1 %v3533_v3  ;;  %v3525_v5 = vld [vmem:[%s8782_s4 + $0x30] sm:$0xff]  ;;  %v3524_v9 = vld [vmem:[%s8782_s4 + $0x28] sm:$0xff]  ;;  %v3523_v7 = vld [vmem:[%s8782_s4 + $0x20] sm:$0xff] }
 0x712   : > { %v3522_v54 = vld [vmem:[%s8782_s4 + $0x18] sm:$0xff]  ;;  %v3521_v45 = vld [vmem:[%s8782_s4 + $0x10] sm:$0xff]  ;;  %v3520_v61 = vld [vmem:[%s8782_s4 + $0x8] sm:$0xff] }
 0x713   : > { %3541 = vmatpush.msra.mxu0 %v3532_v16  ;;  %3770 = vmatpush.msra.mxu1 %v3532_v16  ;;  %v3519_v53 = vld [vmem:[%s8782_s4] sm:$0xff] }
 0x714   : > { %v4785_v20 = vld [vmem:[#allocation6] ss:$0 sm:$0xff] }
 0x715   : > { %3542 = vmatpush.msra.mxu0 %v3531_v4  ;;  %3771 = vmatpush.msra.mxu1 %v3531_v4 }
 0x717   : > { %3543 = vmatpush.msra.mxu0 %v3530_v62  ;;  %3772 = vmatpush.msra.mxu1 %v3530_v62 }
 0x719   : > { %3544 = vmatpush.msra.mxu0 %v3529_v32  ;;  %3773 = vmatpush.msra.mxu1 %v3529_v32 }
 0x71b   : > { %3545 = vmatpush.msra.mxu0 %v3528_v46  ;;  %3774 = vmatpush.msra.mxu1 %v3528_v46 }
 0x71d   : > { %3546 = vmatpush.msra.mxu0 %v3527_v58  ;;  %3775 = vmatpush.msra.mxu1 %v3527_v58 }
 0x71f   : > { %3547 = vmatpush.msra.mxu0 %v3526_v63  ;;  %3776 = vmatpush.msra.mxu1 %v3526_v63 }
 0x721   : > { %3548 = vmatpush.msra.mxu0 %v3525_v5  ;;  %3777 = vmatpush.msra.mxu1 %v3525_v5 }
 0x723   : > { %3549 = vmatpush.msra.mxu0 %v3524_v9  ;;  %3778 = vmatpush.msra.mxu1 %v3524_v9 }
 0x725   : > { %3550 = vmatpush.msra.mxu0 %v3523_v7  ;;  %3779 = vmatpush.msra.mxu1 %v3523_v7 }
 0x727   : > { %3551 = vmatpush.msra.mxu0 %v3522_v54  ;;  %3780 = vmatpush.msra.mxu1 %v3522_v54 }
 0x729   : > { %3552 = vmatpush.msra.mxu0 %v3521_v45  ;;  %3781 = vmatpush.msra.mxu1 %v3521_v45 }
 0x72b   : > { %3553 = vmatpush.msra.mxu0 %v3520_v61  ;;  %3782 = vmatpush.msra.mxu1 %v3520_v61 }
 0x72d   : > { %3554 = vmatpush.msra.mxu0 %v3519_v53  ;;  %3783 = vmatpush.msra.mxu1 %v3519_v53 }
 0x72e   : > { %3555 = vmatmul.f32.vlgmr.msra.gmra.mxu0 %v3503_v36  ;;  %3558 = vmatmul.f32.vlgmr.msra.gmra.mxu1 %v3504_v12 }
 0x7ab   : > { %v3556_v28 = vpop.f32.mrf.mxu0  ;;  %v3559_v35 = vpop.f32.mrf.mxu1 }
 0x7ac   : > { %v3557_v13 = vadd.f32 %v4785_v20, %v3556_v28  ;;  %v3560_v1 = vadd.f32 %v4785_v20, %v3559_v35 }
 0x7ae   : > { %v3562_v37 = vmax.f32 %v3557_v13, 0.0  ;;  %v3563_v42 = vmax.f32 %v3560_v1, 0.0 }
 0x7b0   : > { %3565 = vst.msk [vmem:[%s8784_s6] sm:$0xff] %vm3564_vm8, %v3562_v37 }
 0x7b1   : > { %3566 = vst.msk [vmem:[%s8784_s6 + $0x8] sm:$0xff] %vm3564_vm8, %v3563_v42 }
 0x7b2 PF: > { %s22_s28 = sadd.s32 1, %s4930_s28   ;;  %s10388_s23 = smov %s4914_s24 }
 0x7b3   : > { %p19_p11 = scmp.ge.s32.totalorder %s22_s28, 4   ;;  %s10389_s24 = smov %s4918_s25 }
 0x7b4   : > { %s10390_s25 = smov %s5050_s9  ;;  %s10391_s26 = smov %s4926_s27 }
 0x7b5   : > { %s10392_s27 = smov %s10394_s20  ;;  %21 = sbr.rel (!%p19_p11) target bundleno = 8 (0x8), region = 107 }
 0x7ba   :  { %3589 = vsyncpa [#allocation8], 1 }
 0x7bb   :  { %3591 = vsyncpa [#allocation8 + $0x1], 1 }
 0x7bc   :  { %3592 = vsyncpa [#allocation10], 1 }

</bundles_post_ra>
